<compile_context>
chip_gen: v7x
topology: tpu7x:2x2x1
jax: 0.10.0
libtpu: 0.0.40
codegen_flags: <defaults>
</compile_context>

<pallas_src>
import numpy as np
import jax
import jax.numpy as jnp
from jax.experimental import pallas as pl
from jax.experimental.pallas import tpu as pltpu

OUT_PAD = 128  # lane-dense padding for the 1-wide output layer
KEEP_SCALE = 2.0  # 1 / (1 - 0.5)


def _round_up(a, b):
    return (a + b - 1) // b * b


def _vmem_capacity_bytes():
    try:
        return int(pltpu.get_tpu_info().vmem_capacity_bytes)
    except Exception:
        return 128 * 1024 * 1024  # conservative default (v5e/v6e)


def _pick_tile(batch, cap):
    """Row-tile (multiple of 8, <= cap) minimizing padded batch size."""
    b_al = _round_up(max(batch, 1), 16)  # >=16 rows: bf16 sublane packing
    if b_al <= cap:
        return b_al, b_al
    best_tb = cap
    best_pad = _round_up(b_al, cap)
    for tb in range(cap - 8, 7, -8):
        padded = _round_up(b_al, tb)
        if padded < best_pad:
            best_tb, best_pad = tb, padded
    return best_tb, best_pad


def _dropout_masks(key, rows, h1, h2):
    """Raw 32-bit random words; element is KEPT iff the sign bit is clear."""
    k1, k2 = jax.random.split(key)
    m1 = jax.lax.bitcast_convert_type(
        jax.random.bits(k1, (rows, h1), jnp.uint32), jnp.int32)
    m2 = jax.lax.bitcast_convert_type(
        jax.random.bits(k2, (rows, h2), jnp.uint32), jnp.int32)
    return m1, m2


def _make_kernel(training: bool):
    def kernel(x_ref,                  # (TB, 2560)  f32
               w1_ref, b1_ref,         # (2560,1024) bf16 / (1,1024) f32
               w2_ref, b2_ref,         # (1024,1024) bf16 / (1,1024) f32
               w3_ref, b3_ref,         # (1024,128)  bf16 / (1,128)  f32
               *rest):                 # [m1 (TB,1024), m2 (TB,1024) i32,] o (TB,128) f32
        if training:
            m1_ref, m2_ref, o_ref = rest
        else:
            (o_ref,) = rest

        # ---- layer 1: x @ W1 + b1, ReLU, dropout --------------------------
        h1 = jnp.dot(x_ref[...].astype(jnp.bfloat16), w1_ref[...],
                     preferred_element_type=jnp.float32)
        h1 = jnp.maximum(h1 + b1_ref[...], 0.0)
        if training:
            h1 = jnp.where(m1_ref[...] >= 0, h1 * KEEP_SCALE, 0.0)

        # ---- layer 2: h1 @ W2 + b2, ReLU, dropout -------------------------
        h2 = jnp.dot(h1.astype(jnp.bfloat16), w2_ref[...],
                     preferred_element_type=jnp.float32)
        h2 = jnp.maximum(h2 + b2_ref[...], 0.0)
        if training:
            h2 = jnp.where(m2_ref[...] >= 0, h2 * KEEP_SCALE, 0.0)

        # ---- layer 3 (lane-padded to 128 cols) + sigmoid ------------------
        z = jnp.dot(h2.astype(jnp.bfloat16), w3_ref[...],
                    preferred_element_type=jnp.float32)
        o_ref[...] = jax.nn.sigmoid(z + b3_ref[...])

    return kernel


def prepare_params(w1, b1, w2, b2, w3, b3):
    """One-time conversion of PyTorch-layout params (out,in) to kernel layout:
    (in,out) bf16 weights, lane-padded layer-3, f32 row-vector biases.
    Call once at init time; do NOT call per forward."""
    h1_dim, d_in = w1.shape
    h2_dim = w2.shape[0]
    d_out = w3.shape[0]
    w1_t = jnp.transpose(w1).astype(jnp.bfloat16)                 # (2560,1024)
    w2_t = jnp.transpose(w2).astype(jnp.bfloat16)                 # (1024,1024)
    w3_t = (jnp.zeros((h2_dim, OUT_PAD), jnp.float32)
            .at[:, :d_out].set(jnp.transpose(w3))
            .astype(jnp.bfloat16))                                # (1024,128)
    b1_r = b1.reshape(1, h1_dim).astype(jnp.float32)
    b2_r = b2.reshape(1, h2_dim).astype(jnp.float32)
    b3_r = jnp.zeros((1, OUT_PAD), jnp.float32).at[:, :d_out].set(
        b3.reshape(1, d_out))
    return (w1_t, b1_r, w2_t, b2_r, w3_t, b3_r, d_out)


def adversarial_network_forward(x, params, *, training=False, rng_key=None):
    """x: (B, 2560) f32.  params: output of prepare_params(...)."""
    w1_t, b1_r, w2_t, b2_r, w3_t, b3_r, d_out = params
    B, d_in = x.shape
    h1_dim = w1_t.shape[1]
    h2_dim = w2_t.shape[1]

    vmem_cap = _vmem_capacity_bytes()
    small_vmem = vmem_cap <= 64 * 1024 * 1024          # v7x-class TensorCore
    tb_cap = 256 if small_vmem else 512                # v5e/v6e can afford 512
    vmem_limit = (40 if small_vmem else 64) * 1024 * 1024

    tb, b_pad = _pick_tile(B, tb_cap)
    if b_pad != B:
        x = jnp.pad(x, ((0, b_pad - B), (0, 0)))

    in_specs = [
        pl.BlockSpec((tb, d_in), lambda i: (i, 0)),         # x tile (pipelined)
        pl.BlockSpec((d_in, h1_dim), lambda i: (0, 0)),     # W1 (resident)
        pl.BlockSpec((1, h1_dim), lambda i: (0, 0)),        # b1
        pl.BlockSpec((h1_dim, h2_dim), lambda i: (0, 0)),   # W2 (resident)
        pl.BlockSpec((1, h2_dim), lambda i: (0, 0)),        # b2
        pl.BlockSpec((h2_dim, OUT_PAD), lambda i: (0, 0)),  # W3 padded
        pl.BlockSpec((1, OUT_PAD), lambda i: (0, 0)),       # b3 padded
    ]
    args = [x, w1_t, b1_r, w2_t, b2_r, w3_t, b3_r]

    if training:
        if rng_key is None:
            rng_key = jax.random.PRNGKey(0)
        m1, m2 = _dropout_masks(rng_key, B, h1_dim, h2_dim)
        if b_pad != B:
            # padded rows get 0 (== keep); they are sliced off anyway
            m1 = jnp.pad(m1, ((0, b_pad - B), (0, 0)))
            m2 = jnp.pad(m2, ((0, b_pad - B), (0, 0)))
        in_specs += [pl.BlockSpec((tb, h1_dim), lambda i: (i, 0)),
                     pl.BlockSpec((tb, h2_dim), lambda i: (i, 0))]
        args += [m1, m2]

    grid = (b_pad // tb,)
    grid_spec = pltpu.PrefetchScalarGridSpec(
        num_scalar_prefetch=0,
        grid=grid,
        in_specs=in_specs,
        out_specs=pl.BlockSpec((tb, OUT_PAD), lambda i: (i, 0)),
    )

    flops = 2 * b_pad * (d_in * h1_dim + h1_dim * h2_dim + h2_dim * OUT_PAD)
    bytes_accessed = (b_pad * d_in * 4 + d_in * h1_dim * 2
                      + h1_dim * h2_dim * 2 + h2_dim * OUT_PAD * 2
                      + (h1_dim + h2_dim + OUT_PAD) * 4
                      + b_pad * OUT_PAD * 4
                      + (b_pad * (h1_dim + h2_dim) * 4 if training else 0))

    out = pl.pallas_call(
        _make_kernel(training),
        out_shape=jax.ShapeDtypeStruct((b_pad, OUT_PAD), jnp.float32),
        grid_spec=grid_spec,
        compiler_params=pltpu.CompilerParams(
            dimension_semantics=("parallel",),
            vmem_limit_bytes=vmem_limit,
        ),
        cost_estimate=pl.CostEstimate(
            flops=flops,
            transcendentals=b_pad * OUT_PAD,
            bytes_accessed=bytes_accessed,
        ),
    )(*args)

    return out[:B, :d_out]


def _reference(x, w1, b1, w2, b2, w3, b3, m1=None, m2=None):
    """Pure-JAX reference with the same bf16-operand / f32-accumulation matmul
    precision as the kernel.  Optional masks reproduce training-mode dropout."""
    def mm(a, w):
        return jnp.dot(a.astype(jnp.bfloat16), w.T.astype(jnp.bfloat16),
                       preferred_element_type=jnp.float32)

    h1 = jnp.maximum(mm(x, w1) + b1, 0.0)
    if m1 is not None:
        h1 = jnp.where(m1 >= 0, h1 * KEEP_SCALE, 0.0)
    h2 = jnp.maximum(mm(h1, w2) + b2, 0.0)
    if m2 is not None:
        h2 = jnp.where(m2 >= 0, h2 * KEEP_SCALE, 0.0)
    return jax.nn.sigmoid(mm(h2, w3) + b3)


if __name__ == "__main__":
    # Shapes are dictated by the module: in=2560, hidden=1024, out=1.
    B = 8
    D_IN, H1, H2, D_OUT = 2560, 1024, 1024, 1

    key = jax.random.PRNGKey(0)
    kx, k1, kb1, k2, kb2, k3, kb3, kdrop = jax.random.split(key, 8)

    x = jax.random.normal(kx, (B, D_IN), dtype=jnp.float32)
    # nn.Linear default init: U(-1/sqrt(fan_in), 1/sqrt(fan_in))
    s1 = 1.0 / np.sqrt(D_IN)
    s2 = 1.0 / np.sqrt(H1)
    s3 = 1.0 / np.sqrt(H2)
    w1 = jax.random.uniform(k1, (H1, D_IN), jnp.float32, -s1, s1)
    b1 = jax.random.uniform(kb1, (H1,), jnp.float32, -s1, s1)
    w2 = jax.random.uniform(k2, (H2, H1), jnp.float32, -s2, s2)
    b2 = jax.random.uniform(kb2, (H2,), jnp.float32, -s2, s2)
    w3 = jax.random.uniform(k3, (D_OUT, H2), jnp.float32, -s3, s3)
    b3 = jax.random.uniform(kb3, (D_OUT,), jnp.float32, -s3, s3)

    # One-time parameter prep (transpose / pad / bf16) -- NOT per forward call.
    params = prepare_params(w1, b1, w2, b2, w3, b3)

    # --- eval mode (dropout = identity): check against pure-JAX reference ---
    out = adversarial_network_forward(x, params, training=False)
    out = jax.block_until_ready(out)
    assert out.shape == (B, D_OUT), out.shape
    ref = _reference(x, w1, b1, w2, b2, w3, b3)
    np.testing.assert_allclose(np.asarray(out), np.asarray(ref),
                               rtol=2e-3, atol=2e-3)

    # --- training mode: deterministic masks -> full numerical check ---------
    out_tr = adversarial_network_forward(x, params, training=True,
                                         rng_key=kdrop)
    out_tr = jax.block_until_ready(out_tr)
    assert out_tr.shape == (B, D_OUT)
    m1, m2 = _dropout_masks(kdrop, B, H1, H2)
    ref_tr = _reference(x, w1, b1, w2, b2, w3, b3, m1=m1, m2=m2)
    np.testing.assert_allclose(np.asarray(out_tr), np.asarray(ref_tr),
                               rtol=2e-3, atol=2e-3)
    assert bool(jnp.all(jnp.isfinite(out_tr)))
    assert bool(jnp.all((out_tr >= 0.0) & (out_tr <= 1.0)))

    print("KERNEL_OK")
</pallas_src>

<mosaic_0001>
module attributes {stable_mosaic.version = 11 : i64} {
  func.func @kernel(%arg0: i32, %arg1: memref<16x2560xf32, #tpu.memory_space<vmem>>, %arg2: memref<2560x1024xbf16, #tpu.memory_space<vmem>>, %arg3: memref<1x1024xf32, #tpu.memory_space<vmem>>, %arg4: memref<1024x1024xbf16, #tpu.memory_space<vmem>>, %arg5: memref<1x1024xf32, #tpu.memory_space<vmem>>, %arg6: memref<1024x128xbf16, #tpu.memory_space<vmem>>, %arg7: memref<1x128xf32, #tpu.memory_space<vmem>>, %arg8: memref<16x128xf32, #tpu.memory_space<vmem>>) attributes {dimension_semantics = [#tpu.dimension_semantics<parallel>], iteration_bounds = array<i64: 1>, scalar_prefetch = 0 : i64, scratch_operands = 0 : i64, tpu.core_type = #tpu.core_type<tc>, window_params = [{transform_indices = @transform_0, window_bounds = array<i64: 16, 2560>}, {pipeline_mode = #tpu.pipeline_mode<synchronous>, transform_indices = @transform_1, window_bounds = array<i64: 2560, 1024>}, {pipeline_mode = #tpu.pipeline_mode<synchronous>, transform_indices = @transform_2, window_bounds = array<i64: 1, 1024>}, {pipeline_mode = #tpu.pipeline_mode<synchronous>, transform_indices = @transform_3, window_bounds = array<i64: 1024, 1024>}, {pipeline_mode = #tpu.pipeline_mode<synchronous>, transform_indices = @transform_4, window_bounds = array<i64: 1, 1024>}, {pipeline_mode = #tpu.pipeline_mode<synchronous>, transform_indices = @transform_5, window_bounds = array<i64: 1024, 128>}, {pipeline_mode = #tpu.pipeline_mode<synchronous>, transform_indices = @transform_6, window_bounds = array<i64: 1, 128>}, {transform_indices = @transform_7, window_bounds = array<i64: 16, 128>}]} {
    %c0 = arith.constant 0 : index
    %c0_0 = arith.constant 0 : index
    %0 = vector.load %arg1[%c0, %c0_0] : memref<16x2560xf32, #tpu.memory_space<vmem>>, vector<16x2560xf32>
    %1 = arith.truncf %0 : vector<16x2560xf32> to vector<16x2560xbf16>
    %c0_1 = arith.constant 0 : index
    %c0_2 = arith.constant 0 : index
    %2 = vector.load %arg2[%c0_1, %c0_2] : memref<2560x1024xbf16, #tpu.memory_space<vmem>>, vector<2560x1024xbf16>
    %cst = arith.constant dense<0.000000e+00> : vector<16x1024xf32>
    %3 = tpu.matmul %1, %2, %cst {dimension_numbers = #tpu.dot_dimension_numbers<[1], [0], [0], [1], [0, 0, 1, 1], [], []>} : vector<16x2560xbf16>, vector<2560x1024xbf16>, vector<16x1024xf32> -> vector<16x1024xf32>
    %c0_3 = arith.constant 0 : index
    %c0_4 = arith.constant 0 : index
    %4 = vector.load %arg3[%c0_3, %c0_4] : memref<1x1024xf32, #tpu.memory_space<vmem>>, vector<1x1024xf32>
    %5 = vector.broadcast %4 : vector<1x1024xf32> to vector<16x1024xf32>
    %6 = arith.addf %3, %5 : vector<16x1024xf32>
    %cst_5 = arith.constant 0.000000e+00 : f32
    %7 = vector.broadcast %cst_5 : f32 to vector<16x1024xf32>
    %8 = arith.maximumf %6, %7 : vector<16x1024xf32>
    %9 = arith.truncf %8 : vector<16x1024xf32> to vector<16x1024xbf16>
    %c0_6 = arith.constant 0 : index
    %c0_7 = arith.constant 0 : index
    %10 = vector.load %arg4[%c0_6, %c0_7] : memref<1024x1024xbf16, #tpu.memory_space<vmem>>, vector<1024x1024xbf16>
    %cst_8 = arith.constant dense<0.000000e+00> : vector<16x1024xf32>
    %11 = tpu.matmul %9, %10, %cst_8 {dimension_numbers = #tpu.dot_dimension_numbers<[1], [0], [0], [1], [0, 0, 1, 1], [], []>} : vector<16x1024xbf16>, vector<1024x1024xbf16>, vector<16x1024xf32> -> vector<16x1024xf32>
    %c0_9 = arith.constant 0 : index
    %c0_10 = arith.constant 0 : index
    %12 = vector.load %arg5[%c0_9, %c0_10] : memref<1x1024xf32, #tpu.memory_space<vmem>>, vector<1x1024xf32>
    %13 = vector.broadcast %12 : vector<1x1024xf32> to vector<16x1024xf32>
    %14 = arith.addf %11, %13 : vector<16x1024xf32>
    %cst_11 = arith.constant 0.000000e+00 : f32
    %15 = vector.broadcast %cst_11 : f32 to vector<16x1024xf32>
    %16 = arith.maximumf %14, %15 : vector<16x1024xf32>
    %17 = arith.truncf %16 : vector<16x1024xf32> to vector<16x1024xbf16>
    %c0_12 = arith.constant 0 : index
    %c0_13 = arith.constant 0 : index
    %18 = vector.load %arg6[%c0_12, %c0_13] : memref<1024x128xbf16, #tpu.memory_space<vmem>>, vector<1024x128xbf16>
    %cst_14 = arith.constant dense<0.000000e+00> : vector<16x128xf32>
    %19 = tpu.matmul %17, %18, %cst_14 {dimension_numbers = #tpu.dot_dimension_numbers<[1], [0], [0], [1], [0, 0, 1, 1], [], []>} : vector<16x1024xbf16>, vector<1024x128xbf16>, vector<16x128xf32> -> vector<16x128xf32>
    %c0_15 = arith.constant 0 : index
    %c0_16 = arith.constant 0 : index
    %20 = vector.load %arg7[%c0_15, %c0_16] : memref<1x128xf32, #tpu.memory_space<vmem>>, vector<1x128xf32>
    %21 = vector.broadcast %20 : vector<1x128xf32> to vector<16x128xf32>
    %22 = arith.addf %19, %21 : vector<16x128xf32>
    %23 = arith.negf %22 : vector<16x128xf32>
    %24 = math.exp %23 : vector<16x128xf32>
    %cst_17 = arith.constant 1.000000e+00 : f32
    %25 = vector.broadcast %cst_17 : f32 to vector<16x128xf32>
    %26 = arith.addf %25, %24 : vector<16x128xf32>
    %27 = arith.divf %25, %26 : vector<16x128xf32>
    %c0_18 = arith.constant 0 : index
    %c0_19 = arith.constant 0 : index
    %28 = vector.load %arg8[%c0_18, %c0_19] : memref<16x128xf32, #tpu.memory_space<vmem>>, vector<16x128xf32>
    tpu.vector_store %arg8[%c0_18, %c0_19], %27 {strides = array<i32>} : memref<16x128xf32, #tpu.memory_space<vmem>>, vector<16x128xf32>,
    return
  }
  func.func @transform_0(%arg0: i32) -> (i32, i32) {
    %c0_i32 = arith.constant 0 : i32
    %c0_i32_0 = arith.constant 0 : i32
    return %arg0, %c0_i32 : i32, i32
  }
  func.func @transform_1(%arg0: i32) -> (i32, i32) {
    %c0_i32 = arith.constant 0 : i32
    %c0_i32_0 = arith.constant 0 : i32
    %c0_i32_1 = arith.constant 0 : i32
    return %c0_i32, %c0_i32_0 : i32, i32
  }
  func.func @transform_2(%arg0: i32) -> (i32, i32) {
    %c0_i32 = arith.constant 0 : i32
    %c0_i32_0 = arith.constant 0 : i32
    %c0_i32_1 = arith.constant 0 : i32
    return %c0_i32, %c0_i32_0 : i32, i32
  }
  func.func @transform_3(%arg0: i32) -> (i32, i32) {
    %c0_i32 = arith.constant 0 : i32
    %c0_i32_0 = arith.constant 0 : i32
    %c0_i32_1 = arith.constant 0 : i32
    return %c0_i32, %c0_i32_0 : i32, i32
  }
  func.func @transform_4(%arg0: i32) -> (i32, i32) {
    %c0_i32 = arith.constant 0 : i32
    %c0_i32_0 = arith.constant 0 : i32
    %c0_i32_1 = arith.constant 0 : i32
    return %c0_i32, %c0_i32_0 : i32, i32
  }
  func.func @transform_5(%arg0: i32) -> (i32, i32) {
    %c0_i32 = arith.constant 0 : i32
    %c0_i32_0 = arith.constant 0 : i32
    %c0_i32_1 = arith.constant 0 : i32
    return %c0_i32, %c0_i32_0 : i32, i32
  }
  func.func @transform_6(%arg0: i32) -> (i32, i32) {
    %c0_i32 = arith.constant 0 : i32
    %c0_i32_0 = arith.constant 0 : i32
    %c0_i32_1 = arith.constant 0 : i32
    return %c0_i32, %c0_i32_0 : i32, i32
  }
  func.func @transform_7(%arg0: i32) -> (i32, i32) {
    %c0_i32 = arith.constant 0 : i32
    %c0_i32_0 = arith.constant 0 : i32
    return %arg0, %c0_i32 : i32, i32
  }
}

</mosaic_0001>

<bundles_post_ra>
// kernel: tpu_custom_call.1
= control target key start
LH: loop header
LB: loop body
LE: loop exit
PB: predicated region body
PF: predicated region fallthrough
CT: control target
= control target key end

     0   :  { %12 = vsyncpa [#allocation3], 0  ;;  %s17032_s0 = inlined_call_operand.hbm [shape: f32[16,2560], index: 0, kind: input, shape index: {}]   ;;  %s17033_s1 = inlined_call_operand.hbm [shape: bf16[2560,1024], index: 1, kind: input, shape index: {}]   ;;  %s17034_s2 = inlined_call_operand.hbm [shape: f32[1,1024], index: 2, kind: input, shape index: {}]   ;;  %s17035_s3 = inlined_call_operand.hbm [shape: bf16[1024,1024], index: 3, kind: input, shape index: {}]   ;;  %s17036_s4 = inlined_call_operand.hbm [shape: f32[1,1024], index: 4, kind: input, shape index: {}]   ;;  %s17037_s5 = inlined_call_operand.hbm [shape: bf16[1024,128], index: 5, kind: input, shape index: {}]   ;;  %s17038_s6 = inlined_call_operand.hbm [shape: f32[1,128], index: 6, kind: input, shape index: {}]   ;;  %s17039_s7 = inlined_call_operand.hbm [shape: f32[16,128], index: 7, kind: output, shape index: {}]  }
   0x1   :  { %13 = vsyncpa [#allocation6], 0 }
   0x2   :  { %14 = vsyncpa [#allocation9], 0 }
   0x3   :  { %15 = vsyncpa [#allocation12], 0 }
   0x4   :  { %16 = vsyncpa [#allocation4], 0  ;;  %s16632_s24 = smov [#allocation5]   ;;  %s16446_s28 = scalar_lea.hbm %s17033_s1, 163840 }
   0x5   :  { %s34_s25 = sshll.u32 %s16632_s24, 4  ;;  %p16447_p0 = scmp.ne.s32.totalorder %s17033_s1, %s16446_s28  ;;  %s35_s25 = int_to_ptr.vmem [resolvable:$true] %s34_s25 }
   0x6   :  { %p16450_p1 = scmp.lt.u32.totalorder %s16446_s28, %s17033_s1 }
   0x8   :  { %p16452_p2 = pnand %p16450_p1, %p16447_p0 }
   0xa   :  { %16455 = shalt.err (!%p16452_p2)
}
   0xb   :  { %s16456_s10 = scalar_lea.vmem %s35_s25, 163840  ;;  %p16461_p4 = scmp.lt.s32.totalorder %s35_s25, %s35_s25 }
   0xc   :  { %p16457_p3 = scmp.ne.s32.totalorder %s35_s25, %s16456_s10  ;;  %p16462_p5 = scmp.lt.s32.totalorder %s16456_s10, %s16456_s10 }
   0xe   :  { %p16463_p6 = por %p16462_p5, %p16461_p4 }
  0x10   :  { %p16464_p7 = pnand %p16463_p6, %p16457_p3 }
  0x12   :  { %16467 = shalt.err (!%p16464_p7)
}
  0x13   :  { %s16633_s11 = smov 512   ;;  %s16634_s12 = smov 32  }
  0x14   :  { %40 = dma.hbm_to_vmem [thread:$0]  %s17033_s1, 163840, %s35_s25, [#allocation6], %s16633_s11, %s16633_s11, %s16634_s12  }
  0x15   :  { %s16635_s15 = smov [#allocation8]   ;;  %s16636_s17 = smov [#allocation11]  }
  0x16   :  { %s56_s16 = sshll.u32 %s16635_s15, 4  ;;  %s78_s18 = sshll.u32 %s16636_s17, 4  ;;  %s57_s16 = int_to_ptr.vmem [resolvable:$true] %s56_s16  ;;  %s79_s18 = int_to_ptr.vmem [resolvable:$true] %s78_s18 }
  0x17   :  { %s16468_s21 = scalar_lea.hbm %s17035_s3, 65536 }
  0x18   :  { %p16469_p8 = scmp.ne.s32.totalorder %s17035_s3, %s16468_s21  ;;  %p16472_p9 = scmp.lt.u32.totalorder %s16468_s21, %s17035_s3 }
  0x1a   :  { %p16474_p10 = pnand %p16472_p9, %p16469_p8 }
  0x1c   :  { %16477 = shalt.err (!%p16474_p10)
}
  0x1d   :  { %s16478_s1 = scalar_lea.vmem %s57_s16, 65536  ;;  %p16483_p12 = scmp.lt.s32.totalorder %s57_s16, %s57_s16 }
  0x1e   :  { %p16479_p11 = scmp.ne.s32.totalorder %s57_s16, %s16478_s1  ;;  %p16484_p13 = scmp.lt.s32.totalorder %s16478_s1, %s16478_s1 }
  0x20   :  { %p16485_p0 = por %p16484_p13, %p16483_p12 }
  0x22   :  { %p16486_p1 = pnand %p16485_p0, %p16479_p11 }
  0x24   :  { %16489 = shalt.err (!%p16486_p1)
}
  0x25   :  { %62 = dma.hbm_to_vmem [thread:$0]  %s17035_s3, 65536, %s57_s16, [#allocation9], %s16633_s11, %s16633_s11, %s16634_s12  }
  0x26   :  { %s16490_s30 = scalar_lea.hbm %s17037_s5, 8192 }
  0x27   :  { %p16491_p2 = scmp.ne.s32.totalorder %s17037_s5, %s16490_s30  ;;  %p16494_p3 = scmp.lt.u32.totalorder %s16490_s30, %s17037_s5 }
  0x29   :  { %p16496_p4 = pnand %p16494_p3, %p16491_p2 }
  0x2b   :  { %16499 = shalt.err (!%p16496_p4)
}
  0x2c   :  { %s16500_s14 = scalar_lea.vmem %s79_s18, 8192  ;;  %p16505_p6 = scmp.lt.s32.totalorder %s79_s18, %s79_s18 }
  0x2d   :  { %p16501_p5 = scmp.ne.s32.totalorder %s79_s18, %s16500_s14  ;;  %p16506_p7 = scmp.lt.s32.totalorder %s16500_s14, %s16500_s14 }
  0x2f   :  { %p16507_p8 = por %p16506_p7, %p16505_p6 }
  0x31   :  { %p16508_p9 = pnand %p16507_p8, %p16501_p5 }
  0x33   :  { %16511 = shalt.err (!%p16508_p9)
}
  0x34   :  { %s16637_s3 = smov 64   ;;  %s16638_s11 = smov 4  }
  0x35   :  { %84 = dma.hbm_to_vmem [thread:$0]  %s17037_s5, 8192, %s79_s18, [#allocation12], %s16637_s3, %s16637_s3, %s16638_s11  }
  0x36   :  { %s16639_s16 = smov [#allocation2]   ;;  %s16512_s21 = scalar_lea.hbm %s17032_s0, 5120 }
  0x37   :  { %s22_s17 = sshll.u32 %s16639_s16, 4  ;;  %p16513_p10 = scmp.ne.s32.totalorder %s17032_s0, %s16512_s21  ;;  %s23_s17 = int_to_ptr.vmem [resolvable:$true] %s22_s17 }
  0x38   :  { %p16516_p11 = scmp.lt.u32.totalorder %s16512_s21, %s17032_s0 }
  0x3a   :  { %p16518_p12 = pnand %p16516_p11, %p16513_p10 }
  0x3c   :  { %16521 = shalt.err (!%p16518_p12)
}
  0x3d   :  { %s16522_s1 = scalar_lea.vmem %s23_s17, 5120  ;;  %p16527_p0 = scmp.lt.s32.totalorder %s23_s17, %s23_s17 }
  0x3e   :  { %p16523_p13 = scmp.ne.s32.totalorder %s23_s17, %s16522_s1  ;;  %p16528_p1 = scmp.lt.s32.totalorder %s16522_s1, %s16522_s1 }
  0x40   :  { %p16529_p2 = por %p16528_p1, %p16527_p0 }
  0x42   :  { %p16530_p3 = pnand %p16529_p2, %p16523_p13 }
  0x44   :  { %16533 = shalt.err (!%p16530_p3)
}
  0x45   :  { %s16640_s5 = smov 2560   ;;  %s16641_s18 = smov 160  }
  0x46   :  { %28 = dma.hbm_to_vmem [thread:$0]  %s17032_s0, 5120, %s23_s17, [#allocation3], %s16640_s5, %s16640_s5, %s16641_s18  }
  0x47   :  { %s16642_s28 = smov [#allocation7]   ;;  %s16643_s30 = smov [#allocation10]  }
  0x48   :  { %s47_s29 = sshll.u32 %s16642_s28, 4  ;;  %s69_s8 = sshll.u32 %s16643_s30, 4  ;;  %s48_s29 = int_to_ptr.vmem [resolvable:$true] %s47_s29  ;;  %s70_s8 = int_to_ptr.vmem [resolvable:$true] %s69_s8 }
  0x49   :  { %s16534_s13 = scalar_lea.hbm %s17034_s2, 128 }
  0x4a   :  { %p16535_p4 = scmp.ne.s32.totalorder %s17034_s2, %s16534_s13  ;;  %p16538_p5 = scmp.lt.u32.totalorder %s16534_s13, %s17034_s2 }
  0x4c   :  { %p16540_p6 = pnand %p16538_p5, %p16535_p4 }
  0x4e   :  { %16543 = shalt.err (!%p16540_p6)
}
  0x4f   :  { %s16544_s0 = scalar_lea.vmem %s48_s29, 128  ;;  %p16549_p8 = scmp.lt.s32.totalorder %s48_s29, %s48_s29 }
  0x50   :  { %p16545_p7 = scmp.ne.s32.totalorder %s48_s29, %s16544_s0  ;;  %p16550_p9 = scmp.lt.s32.totalorder %s16544_s0, %s16544_s0 }
  0x52   :  { %p16551_p10 = por %p16550_p9, %p16549_p8 }
  0x54   :  { %p16552_p11 = pnand %p16551_p10, %p16545_p7 }
  0x56   :  { %16555 = shalt.err (!%p16552_p11)
}
  0x57   :  { %50 = dma.hbm_to_vmem [thread:$0]  %s17034_s2, 128, %s48_s29, [#allocation6]  }
  0x58   :  { %s16556_s20 = scalar_lea.hbm %s17036_s4, 128 }
  0x59   :  { %p16557_p12 = scmp.ne.s32.totalorder %s17036_s4, %s16556_s20  ;;  %p16560_p13 = scmp.lt.u32.totalorder %s16556_s20, %s17036_s4 }
  0x5b   :  { %p16562_p0 = pnand %p16560_p13, %p16557_p12 }
  0x5d   :  { %16565 = shalt.err (!%p16562_p0)
}
  0x5e   :  { %s16566_s26 = scalar_lea.vmem %s70_s8, 128  ;;  %p16571_p2 = scmp.lt.s32.totalorder %s70_s8, %s70_s8 }
  0x5f   :  { %p16567_p1 = scmp.ne.s32.totalorder %s70_s8, %s16566_s26  ;;  %p16572_p3 = scmp.lt.s32.totalorder %s16566_s26, %s16566_s26 }
  0x61   :  { %p16573_p4 = por %p16572_p3, %p16571_p2 }
  0x63   :  { %p16574_p5 = pnand %p16573_p4, %p16567_p1 }
  0x65   :  { %16577 = shalt.err (!%p16574_p5)
}
  0x66   :  { %72 = dma.hbm_to_vmem [thread:$0]  %s17036_s4, 128, %s70_s8, [#allocation9]  }
  0x67   :  { %s16644_s5 = smov [#allocation13]   ;;  %s16578_s28 = scalar_lea.hbm %s17038_s6, 16 }
  0x68   :  { %s91_s18 = sshll.u32 %s16644_s5, 4  ;;  %p16579_p6 = scmp.ne.s32.totalorder %s17038_s6, %s16578_s28  ;;  %s92_s18 = int_to_ptr.vmem [resolvable:$true] %s91_s18 }
  0x69   :  { %p16582_p7 = scmp.lt.u32.totalorder %s16578_s28, %s17038_s6 }
  0x6b   :  { %p16584_p8 = pnand %p16582_p7, %p16579_p6 }
  0x6d   :  { %16587 = shalt.err (!%p16584_p8)
}
  0x6e   :  { %s16588_s13 = scalar_lea.vmem %s92_s18, 16  ;;  %s16592_s4 = scalar_lea.vmem %s92_s18, 32 }
  0x6f   :  { %p16589_p9 = scmp.ne.s32.totalorder %s92_s18, %s16588_s13  ;;  %p16593_p10 = scmp.lt.s32.totalorder %s92_s18, %s92_s18 }
  0x70   :  { %p16594_p11 = scmp.lt.s32.totalorder %s16592_s4, %s16588_s13 }
  0x72   :  { %p16595_p12 = por %p16594_p11, %p16593_p10 }
  0x74   :  { %p16596_p13 = pnand %p16595_p12, %p16589_p9 }
  0x76   :  { %16599 = shalt.err (!%p16596_p13)
}
  0x77   :  { %94 = dma.hbm_to_vmem [thread:$0]  %s17038_s6, 16, %s92_s18, [#allocation12]  }
  0x78   :  { %16622 = dma.done.wait [#allocation3], 5120  }
  0x79   :  { %16623 = vsyncadd [#allocation3], 4294962176 }
  0x7a   :  { %16624 = dma.done.wait [#allocation6], 163968  }
  0x7b   :  { %16625 = vsyncadd [#allocation6], 4294803328 }
  0x7c   :  { %16626 = dma.done.wait [#allocation9], 65664  }
  0x7d   :  { %16627 = vsyncadd [#allocation9], 4294901632 }
  0x7e   :  { %16628 = dma.done.wait [#allocation12], 8208  }
  0x7f   :  { %16629 = vsyncadd [#allocation12], 4294959088  ;;  %v177_v0 = vld [vmem:[#allocation5] sm:$0xff]  ;;  %v178_v2 = vld [vmem:[#allocation5 + $0x8] sm:$0xff]  ;;  %s16645_s6 = smov [#allocation14]  }
  0x80   :  { %v181_v1 = vld [vmem:[#allocation5 + $0x20] sm:$0xff]  ;;  %v182_v4 = vld [vmem:[#allocation5 + $0x28] sm:$0xff]  ;;  %s14171_s3 = sshll.u32 %s16645_s6, 4  ;;  %s14172_s3 = int_to_ptr.vmem [resolvable:$true] %s14171_s3 }
  0x81   :  { %v14187_v3 = vcombine.high %v177_v0, %v181_v1  ;;  %v14186_v5 = vcombine.low %v177_v0, %v181_v1  ;;  %v185_v6 = vld [vmem:[#allocation5 + $0x40] sm:$0xff]  ;;  %v14189_v8 = vcombine.high %v178_v2, %v182_v4  ;;  %v14188_v9 = vcombine.low %v178_v2, %v182_v4  ;;  %v186_v11 = vld [vmem:[#allocation5 + $0x48] sm:$0xff]  ;;  %s16600_s11 = scalar_lea.vmem %s14172_s3, 256  ;;  %p16605_p1 = scmp.lt.s32.totalorder %s14172_s3, %s14172_s3 }
  0x82   :  { %v189_v7 = vld [vmem:[#allocation5 + $0x60] sm:$0xff]  ;;  %v190_v12 = vld [vmem:[#allocation5 + $0x68] sm:$0xff]  ;;  %p16601_p0 = scmp.ne.s32.totalorder %s14172_s3, %s16600_s11  ;;  %p16606_p2 = scmp.lt.s32.totalorder %s16600_s11, %s16600_s11 }
  0x83   :  { %v14195_v10 = vcombine.high %v185_v6, %v189_v7  ;;  %v193_v13 = vld [vmem:[#allocation5 + $0x80] sm:$0xff]  ;;  %7899 = vmatprep.subr.bf16.mxu0 %v14187_v3  ;;  %v14197_v14 = vcombine.high %v186_v11, %v190_v12  ;;  %v194_v16 = vld [vmem:[#allocation5 + $0x88] sm:$0xff]  ;;  %8329 = vmatprep.subr.bf16.mxu1 %v14189_v8  ;;  %v14194_v18 = vcombine.low %v185_v6, %v189_v7 }
  0x84   :  { %v197_v15 = vld [vmem:[#allocation5 + $0xa0] sm:$0xff]  ;;  %v198_v17 = vld [vmem:[#allocation5 + $0xa8] sm:$0xff]  ;;  %7900 = vmatpush1.bf16.msra.mxu0 %v14186_v5  ;;  %8330 = vmatpush1.bf16.msra.mxu1 %v14188_v9  ;;  %v14196_v19 = vcombine.low %v186_v11, %v190_v12  ;;  %p16607_p3 = por %p16606_p2, %p16605_p1 }
  0x85   :  { %7901 = vmatprep.subr.bf16.mxu0 %v14195_v10  ;;  %v14203_v20 = vcombine.high %v193_v13, %v197_v15  ;;  %8331 = vmatprep.subr.bf16.mxu1 %v14197_v14  ;;  %v14205_v21 = vcombine.high %v194_v16, %v198_v17  ;;  %v201_v22 = vld [vmem:[#allocation5 + $0xc0] sm:$0xff]  ;;  %v202_v24 = vld [vmem:[#allocation5 + $0xc8] sm:$0xff]  ;;  %v14202_v26 = vcombine.low %v193_v13, %v197_v15 }
  0x86   :  { %v205_v23 = vld [vmem:[#allocation5 + $0xe0] sm:$0xff]  ;;  %v206_v25 = vld [vmem:[#allocation5 + $0xe8] sm:$0xff]  ;;  %v14204_v27 = vcombine.low %v194_v16, %v198_v17  ;;  %p16608_p4 = pnand %p16607_p3, %p16601_p0 }
  0x87   :  { %v14211_v28 = vcombine.high %v201_v22, %v205_v23  ;;  %v14213_v29 = vcombine.high %v202_v24, %v206_v25  ;;  %v209_v30 = vld [vmem:[#allocation5 + $0x100] sm:$0xff]  ;;  %v210_v32 = vld [vmem:[#allocation5 + $0x108] sm:$0xff]  ;;  %v14210_v34 = vcombine.low %v201_v22, %v205_v23  ;;  %v14212_v35 = vcombine.low %v202_v24, %v206_v25 }
  0x88   :  { %7902 = vmatpush1.bf16.msra.mxu0 %v14194_v18  ;;  %8332 = vmatpush1.bf16.msra.mxu1 %v14196_v19  ;;  %v213_v31 = vld [vmem:[#allocation5 + $0x120] sm:$0xff]  ;;  %v214_v33 = vld [vmem:[#allocation5 + $0x128] sm:$0xff] }
  0x89   :  { %7903 = vmatprep.subr.bf16.mxu0 %v14203_v20  ;;  %8333 = vmatprep.subr.bf16.mxu1 %v14205_v21  ;;  %v14219_v36 = vcombine.high %v209_v30, %v213_v31  ;;  %v14221_v37 = vcombine.high %v210_v32, %v214_v33  ;;  %v217_v38 = vld [vmem:[#allocation5 + $0x140] sm:$0xff]  ;;  %v218_v40 = vld [vmem:[#allocation5 + $0x148] sm:$0xff]  ;;  %v14218_v42 = vcombine.low %v209_v30, %v213_v31 }
  0x8a   :  { %v221_v39 = vld [vmem:[#allocation5 + $0x160] sm:$0xff]  ;;  %v222_v41 = vld [vmem:[#allocation5 + $0x168] sm:$0xff]  ;;  %v14220_v43 = vcombine.low %v210_v32, %v214_v33 }
  0x8b   :  { %v14227_v44 = vcombine.high %v217_v38, %v221_v39  ;;  %v14229_v45 = vcombine.high %v218_v40, %v222_v41  ;;  %v225_v46 = vld [vmem:[#allocation5 + $0x180] sm:$0xff]  ;;  %v226_v48 = vld [vmem:[#allocation5 + $0x188] sm:$0xff]  ;;  %v14226_v50 = vcombine.low %v217_v38, %v221_v39  ;;  %v14228_v51 = vcombine.low %v218_v40, %v222_v41 }
  0x8c   :  { %7904 = vmatpush1.bf16.msra.mxu0 %v14202_v26  ;;  %8334 = vmatpush1.bf16.msra.mxu1 %v14204_v27  ;;  %v229_v47 = vld [vmem:[#allocation5 + $0x1a0] sm:$0xff]  ;;  %v230_v49 = vld [vmem:[#allocation5 + $0x1a8] sm:$0xff] }
  0x8d   :  { %7905 = vmatprep.subr.bf16.mxu0 %v14211_v28  ;;  %8335 = vmatprep.subr.bf16.mxu1 %v14213_v29  ;;  %v14235_v52 = vcombine.high %v225_v46, %v229_v47  ;;  %v118_v53 = vld [vmem:[#allocation2 + $0x8] sm:$0xff]  ;;  %v14237_v55 = vcombine.high %v226_v48, %v230_v49  ;;  %v233_v56 = vld [vmem:[#allocation5 + $0x1c0] sm:$0xff]  ;;  %v14234_v61 = vcombine.low %v225_v46, %v229_v47 }
  0x8e   :  { %v138_v54 = vld [vmem:[#allocation2 + $0xa8] sm:$0xff]  ;;  %v237_v57 = vld [vmem:[#allocation5 + $0x1e0] sm:$0xff]  ;;  %v14236_v62 = vcombine.low %v226_v48, %v230_v49 }
  0x8f   :  { %v16772_v58 = vpack.c.bf16 %v138_v54, %v118_v53  ;;  %v234_v59 = vld [vmem:[#allocation5 + $0x1c8] sm:$0xff]  ;;  %v14243_v63 = vcombine.high %v233_v56, %v237_v57  ;;  %v241_v1 = vld [vmem:[#allocation5 + $0x200] sm:$0xff]  ;;  %v14242_v5 = vcombine.low %v233_v56, %v237_v57 }
  0x90   :  { %7906 = vmatpush1.bf16.msra.mxu0 %v14210_v34  ;;  %8336 = vmatpush1.bf16.msra.mxu1 %v14212_v35  ;;  %v238_v60 = vld [vmem:[#allocation5 + $0x1e8] sm:$0xff]  ;;  %v245_v2 = vld [vmem:[#allocation5 + $0x220] sm:$0xff] }
  0x91   :  { %7907 = vmatprep.subr.bf16.mxu0 %v14219_v36  ;;  %8337 = vmatprep.subr.bf16.mxu1 %v14221_v37  ;;  %v14245_v0 = vcombine.high %v234_v59, %v238_v60  ;;  %v242_v3 = vld [vmem:[#allocation5 + $0x208] sm:$0xff]  ;;  %v14244_v6 = vcombine.low %v234_v59, %v238_v60  ;;  %v14251_v7 = vcombine.high %v241_v1, %v245_v2  ;;  %v249_v9 = vld [vmem:[#allocation5 + $0x240] sm:$0xff] }
  0x92   :  { %7931 = vmatprep.mubr.bf16.mxu0 %v16772_v58  ;;  %8361 = vmatprep.mubr.bf16.mxu1 %v16772_v58  ;;  %v246_v4 = vld [vmem:[#allocation5 + $0x228] sm:$0xff]  ;;  %v253_v10 = vld [vmem:[#allocation5 + $0x260] sm:$0xff]  ;;  %v14250_v13 = vcombine.low %v241_v1, %v245_v2 }
  0x93   :  { %v14253_v8 = vcombine.high %v242_v3, %v246_v4  ;;  %v250_v11 = vld [vmem:[#allocation5 + $0x248] sm:$0xff]  ;;  %v14252_v14 = vcombine.low %v242_v3, %v246_v4  ;;  %v14259_v15 = vcombine.high %v249_v9, %v253_v10  ;;  %v257_v17 = vld [vmem:[#allocation5 + $0x280] sm:$0xff]  ;;  %v14258_v21 = vcombine.low %v249_v9, %v253_v10 }
  0x94   :  { %7908 = vmatpush1.bf16.msra.mxu0 %v14218_v42  ;;  %8338 = vmatpush1.bf16.msra.mxu1 %v14220_v43  ;;  %v254_v12 = vld [vmem:[#allocation5 + $0x268] sm:$0xff]  ;;  %v261_v18 = vld [vmem:[#allocation5 + $0x2a0] sm:$0xff] }
  0x95   :  { %7909 = vmatprep.subr.bf16.mxu0 %v14227_v44  ;;  %8339 = vmatprep.subr.bf16.mxu1 %v14229_v45  ;;  %v14261_v16 = vcombine.high %v250_v11, %v254_v12  ;;  %v258_v19 = vld [vmem:[#allocation5 + $0x288] sm:$0xff]  ;;  %v14260_v22 = vcombine.low %v250_v11, %v254_v12  ;;  %v14267_v23 = vcombine.high %v257_v17, %v261_v18  ;;  %v265_v25 = vld [vmem:[#allocation5 + $0x2c0] sm:$0xff] }
  0x96   :  { %v262_v20 = vld [vmem:[#allocation5 + $0x2a8] sm:$0xff]  ;;  %v269_v26 = vld [vmem:[#allocation5 + $0x2e0] sm:$0xff]  ;;  %v14266_v29 = vcombine.low %v257_v17, %v261_v18  ;;  %v120_v17 = vld [vmem:[#allocation2 + $0x18] sm:$0xff] }
  0x97   :  { %v14269_v24 = vcombine.high %v258_v19, %v262_v20  ;;  %v266_v27 = vld [vmem:[#allocation5 + $0x2c8] sm:$0xff]  ;;  %v14268_v30 = vcombine.low %v258_v19, %v262_v20  ;;  %v14275_v31 = vcombine.high %v265_v25, %v269_v26  ;;  %v273_v33 = vld [vmem:[#allocation5 + $0x300] sm:$0xff]  ;;  %v14274_v37 = vcombine.low %v265_v25, %v269_v26  ;;  %v140_v18 = vld [vmem:[#allocation2 + $0xb8] sm:$0xff] }
  0x98   :  { %7910 = vmatpush1.bf16.msra.mxu0 %v14226_v50  ;;  %8340 = vmatpush1.bf16.msra.mxu1 %v14228_v51  ;;  %v270_v28 = vld [vmem:[#allocation5 + $0x2e8] sm:$0xff]  ;;  %v277_v34 = vld [vmem:[#allocation5 + $0x320] sm:$0xff]  ;;  %v16778_v25 = vpack.c.bf16 %v140_v18, %v120_v17 }
  0x99   :  { %7911 = vmatprep.subr.bf16.mxu0 %v14235_v52  ;;  %8341 = vmatprep.subr.bf16.mxu1 %v14237_v55  ;;  %v14277_v32 = vcombine.high %v266_v27, %v270_v28  ;;  %v274_v35 = vld [vmem:[#allocation5 + $0x308] sm:$0xff]  ;;  %v14276_v38 = vcombine.low %v266_v27, %v270_v28  ;;  %v14283_v39 = vcombine.high %v273_v33, %v277_v34  ;;  %v281_v41 = vld [vmem:[#allocation5 + $0x340] sm:$0xff] }
  0x9a   :  { %v278_v36 = vld [vmem:[#allocation5 + $0x328] sm:$0xff]  ;;  %v285_v42 = vld [vmem:[#allocation5 + $0x360] sm:$0xff]  ;;  %v14282_v45 = vcombine.low %v273_v33, %v277_v34 }
  0x9b   :  { %v14285_v40 = vcombine.high %v274_v35, %v278_v36  ;;  %v282_v43 = vld [vmem:[#allocation5 + $0x348] sm:$0xff]  ;;  %v14284_v46 = vcombine.low %v274_v35, %v278_v36  ;;  %v14291_v47 = vcombine.high %v281_v41, %v285_v42  ;;  %v289_v49 = vld [vmem:[#allocation5 + $0x380] sm:$0xff]  ;;  %v14290_v53 = vcombine.low %v281_v41, %v285_v42 }
  0x9c   :  { %7912 = vmatpush1.bf16.msra.mxu0 %v14234_v61  ;;  %8342 = vmatpush1.bf16.msra.mxu1 %v14236_v62  ;;  %v286_v44 = vld [vmem:[#allocation5 + $0x368] sm:$0xff]  ;;  %v293_v50 = vld [vmem:[#allocation5 + $0x3a0] sm:$0xff] }
  0x9d   :  { %7913 = vmatprep.subr.bf16.mxu0 %v14243_v63  ;;  %8343 = vmatprep.subr.bf16.mxu1 %v14245_v0  ;;  %v14293_v48 = vcombine.high %v282_v43, %v286_v44  ;;  %v290_v51 = vld [vmem:[#allocation5 + $0x388] sm:$0xff]  ;;  %v14292_v54 = vcombine.low %v282_v43, %v286_v44  ;;  %v14299_v55 = vcombine.high %v289_v49, %v293_v50  ;;  %v297_v57 = vld [vmem:[#allocation5 + $0x3c0] sm:$0xff] }
  0x9e   :  { %v294_v52 = vld [vmem:[#allocation5 + $0x3a8] sm:$0xff]  ;;  %v301_v59 = vld [vmem:[#allocation5 + $0x3e0] sm:$0xff]  ;;  %v14298_v62 = vcombine.low %v289_v49, %v293_v50 }
  0x9f   :  { %v14301_v56 = vcombine.high %v290_v51, %v294_v52  ;;  %v298_v60 = vld [vmem:[#allocation5 + $0x3c8] sm:$0xff]  ;;  %v14300_v63 = vcombine.low %v290_v51, %v294_v52  ;;  %v14307_v0 = vcombine.high %v297_v57, %v301_v59  ;;  %v305_v2 = vld [vmem:[#allocation5 + $0x400] sm:$0xff] }
  0xa0   :  { %7914 = vmatpush1.bf16.msra.mxu0 %v14242_v5  ;;  %8344 = vmatpush1.bf16.msra.mxu1 %v14244_v6  ;;  %v302_v61 = vld [vmem:[#allocation5 + $0x3e8] sm:$0xff]  ;;  %v309_v3 = vld [vmem:[#allocation5 + $0x420] sm:$0xff]  ;;  %v14306_v6 = vcombine.low %v297_v57, %v301_v59 }
  0xa1   :  { %7915 = vmatprep.subr.bf16.mxu0 %v14251_v7  ;;  %8345 = vmatprep.subr.bf16.mxu1 %v14253_v8  ;;  %v14309_v1 = vcombine.high %v298_v60, %v302_v61  ;;  %v306_v4 = vld [vmem:[#allocation5 + $0x408] sm:$0xff]  ;;  %v117_v7 = vld [vmem:[#allocation2] sm:$0xff]  ;;  %v14308_v9 = vcombine.low %v298_v60, %v302_v61  ;;  %v14315_v10 = vcombine.high %v305_v2, %v309_v3 }
  0xa2   :  { %v310_v5 = vld [vmem:[#allocation5 + $0x428] sm:$0xff]  ;;  %v137_v8 = vld [vmem:[#allocation2 + $0xa0] sm:$0xff]  ;;  %v14314_v19 = vcombine.low %v305_v2, %v309_v3 }
  0xa3   :  { %v14317_v11 = vcombine.high %v306_v4, %v310_v5  ;;  %v313_v12 = vld [vmem:[#allocation5 + $0x440] sm:$0xff]  ;;  %v14316_v20 = vcombine.low %v306_v4, %v310_v5  ;;  %v322_v26 = vld [vmem:[#allocation5 + $0x488] sm:$0xff] }
  0xa4   :  { %7916 = vmatpush1.bf16.msra.mxu0 %v14250_v13  ;;  %8346 = vmatpush1.bf16.msra.mxu1 %v14252_v14  ;;  %v317_v13 = vld [vmem:[#allocation5 + $0x460] sm:$0xff]  ;;  %v314_v14 = vld [vmem:[#allocation5 + $0x448] sm:$0xff] }
  0xa5   :  { %7917 = vmatprep.subr.bf16.mxu0 %v14259_v15  ;;  %8347 = vmatprep.subr.bf16.mxu1 %v14261_v16  ;;  %v16776_v15 = vpack.c.bf16 %v137_v8, %v117_v7  ;;  %v318_v16 = vld [vmem:[#allocation5 + $0x468] sm:$0xff]  ;;  %v14322_v28 = vcombine.low %v313_v12, %v317_v13  ;;  %v369_v8 = vld [vmem:[#allocation5 + $0x600] sm:$0xff] }
  0xa6   :  { %v326_v27 = vld [vmem:[#allocation5 + $0x4a8] sm:$0xff]  ;;  %v377_v17 = vld [vmem:[#allocation5 + $0x640] sm:$0xff] }
  0xa7   :  { %v14333_v33 = vcombine.high %v322_v26, %v326_v27  ;;  %v330_v34 = vld [vmem:[#allocation5 + $0x4c8] sm:$0xff]  ;;  %v381_v18 = vld [vmem:[#allocation5 + $0x660] sm:$0xff] }
  0xa8   :  { %7918 = vmatpush1.bf16.msra.mxu0 %v14258_v21  ;;  %8348 = vmatpush1.bf16.msra.mxu1 %v14260_v22  ;;  %v14323_v21 = vcombine.high %v313_v12, %v317_v13  ;;  %v14325_v22 = vcombine.high %v314_v14, %v318_v16  ;;  %v334_v35 = vld [vmem:[#allocation5 + $0x4e8] sm:$0xff] }
  0xa9   :  { %7919 = vmatprep.subr.bf16.mxu0 %v14267_v23  ;;  %8349 = vmatprep.subr.bf16.mxu1 %v14269_v24  ;;  %v321_v23 = vld [vmem:[#allocation5 + $0x480] sm:$0xff]  ;;  %v338_v41 = vld [vmem:[#allocation5 + $0x508] sm:$0xff]  ;;  %v14341_v42 = vcombine.high %v330_v34, %v334_v35 }
  0xaa   :  { %v325_v24 = vld [vmem:[#allocation5 + $0x4a0] sm:$0xff]  ;;  %v342_v43 = vld [vmem:[#allocation5 + $0x528] sm:$0xff] }
  0xab   :  { %v14330_v36 = vcombine.low %v321_v23, %v325_v24  ;;  %v346_v49 = vld [vmem:[#allocation5 + $0x548] sm:$0xff]  ;;  %v14349_v50 = vcombine.high %v338_v41, %v342_v43 }
  0xac   :  { %7920 = vmatpush1.bf16.msra.mxu0 %v14266_v29  ;;  %8350 = vmatpush1.bf16.msra.mxu1 %v14268_v30  ;;  %v14324_v29 = vcombine.low %v314_v14, %v318_v16  ;;  %v14331_v30 = vcombine.high %v321_v23, %v325_v24  ;;  %v350_v51 = vld [vmem:[#allocation5 + $0x568] sm:$0xff]  ;;  %v14387_v24 = vcombine.high %v377_v17, %v381_v18 }
  0xad   :  { %7921 = vmatprep.subr.bf16.mxu0 %v14275_v31  ;;  %8351 = vmatprep.subr.bf16.mxu1 %v14277_v32  ;;  %v329_v31 = vld [vmem:[#allocation5 + $0x4c0] sm:$0xff]  ;;  %v354_v57 = vld [vmem:[#allocation5 + $0x588] sm:$0xff]  ;;  %v14357_v59 = vcombine.high %v346_v49, %v350_v51 }
  0xae   :  { %v333_v32 = vld [vmem:[#allocation5 + $0x4e0] sm:$0xff]  ;;  %v358_v60 = vld [vmem:[#allocation5 + $0x5a8] sm:$0xff] }
  0xaf   :  { %v14338_v44 = vcombine.low %v329_v31, %v333_v32  ;;  %v362_v2 = vld [vmem:[#allocation5 + $0x5c8] sm:$0xff]  ;;  %v14365_v3 = vcombine.high %v354_v57, %v358_v60 }
  0xb0   :  { %7922 = vmatpush1.bf16.msra.mxu0 %v14274_v37  ;;  %8352 = vmatpush1.bf16.msra.mxu1 %v14276_v38  ;;  %v14332_v37 = vcombine.low %v322_v26, %v326_v27  ;;  %v14339_v38 = vcombine.high %v329_v31, %v333_v32  ;;  %v366_v4 = vld [vmem:[#allocation5 + $0x5e8] sm:$0xff]  ;;  %v385_v26 = vld [vmem:[#allocation5 + $0x680] sm:$0xff]  ;;  %v14386_v31 = vcombine.low %v377_v17, %v381_v18  ;;  %v119_v17 = vld [vmem:[#allocation2 + $0x10] sm:$0xff] }
  0xb1   :  { %7923 = vmatprep.subr.bf16.mxu0 %v14283_v39  ;;  %8353 = vmatprep.subr.bf16.mxu1 %v14285_v40  ;;  %v337_v39 = vld [vmem:[#allocation5 + $0x500] sm:$0xff]  ;;  %v374_v12 = vld [vmem:[#allocation5 + $0x628] sm:$0xff]  ;;  %v14372_v14 = vcombine.low %v362_v2, %v366_v4  ;;  %v139_v18 = vld [vmem:[#allocation2 + $0xb0] sm:$0xff] }
  0xb2   :  { %v341_v40 = vld [vmem:[#allocation5 + $0x520] sm:$0xff] }
  0xb3   :  { %v14346_v52 = vcombine.low %v337_v39, %v341_v40  ;;  %v389_v27 = vld [vmem:[#allocation5 + $0x6a0] sm:$0xff] }
  0xb4   :  { %7924 = vmatpush1.bf16.msra.mxu0 %v14282_v45  ;;  %8354 = vmatpush1.bf16.msra.mxu1 %v14284_v46  ;;  %v14340_v45 = vcombine.low %v330_v34, %v334_v35  ;;  %v14347_v46 = vcombine.high %v337_v39, %v341_v40  ;;  %v393_v34 = vld [vmem:[#allocation5 + $0x6c0] sm:$0xff]  ;;  %v14394_v39 = vcombine.low %v385_v26, %v389_v27 }
  0xb5   :  { %7925 = vmatprep.subr.bf16.mxu0 %v14291_v47  ;;  %8355 = vmatprep.subr.bf16.mxu1 %v14293_v48  ;;  %v345_v47 = vld [vmem:[#allocation5 + $0x540] sm:$0xff] }
  0xb6   :  { %v349_v48 = vld [vmem:[#allocation5 + $0x560] sm:$0xff] }
  0xb7   :  { %v14354_v61 = vcombine.low %v345_v47, %v349_v48  ;;  %v397_v35 = vld [vmem:[#allocation5 + $0x6e0] sm:$0xff] }
  0xb8   :  { %7926 = vmatpush1.bf16.msra.mxu0 %v14290_v53  ;;  %8356 = vmatpush1.bf16.msra.mxu1 %v14292_v54  ;;  %v14348_v53 = vcombine.low %v338_v41, %v342_v43  ;;  %v14355_v54 = vcombine.high %v345_v47, %v349_v48  ;;  %v14403_v41 = vcombine.high %v393_v34, %v397_v35  ;;  %v405_v43 = vld [vmem:[#allocation5 + $0x720] sm:$0xff] }
  0xb9   :  { %7927 = vmatprep.subr.bf16.mxu0 %v14299_v55  ;;  %8357 = vmatprep.subr.bf16.mxu1 %v14301_v56  ;;  %v353_v55 = vld [vmem:[#allocation5 + $0x580] sm:$0xff]  ;;  %v14402_v47 = vcombine.low %v393_v34, %v397_v35 }
  0xba   :  { %v357_v56 = vld [vmem:[#allocation5 + $0x5a0] sm:$0xff] }
  0xbb   :  { %v14362_v5 = vcombine.low %v353_v55, %v357_v56  ;;  %v449_v35 = vld [vmem:[#allocation5 + $0x880] sm:$0xff] }
  0xbc   :  { %7928 = vmatpush1.bf16.msra.mxu0 %v14298_v62  ;;  %8358 = vmatpush1.bf16.msra.mxu1 %v14300_v63  ;;  %v14356_v62 = vcombine.low %v346_v49, %v350_v51  ;;  %v14363_v63 = vcombine.high %v353_v55, %v357_v56  ;;  %v413_v51 = vld [vmem:[#allocation5 + $0x760] sm:$0xff] }
  0xbd   :  { %7929 = vmatprep.subr.bf16.mxu0 %v14307_v0  ;;  %8359 = vmatprep.subr.bf16.mxu1 %v14309_v1  ;;  %v361_v0 = vld [vmem:[#allocation5 + $0x5c0] sm:$0xff] }
  0xbe   :  { %v365_v1 = vld [vmem:[#allocation5 + $0x5e0] sm:$0xff] }
  0xbf   :  { %v14371_v7 = vcombine.high %v361_v0, %v365_v1  ;;  %v14370_v13 = vcombine.low %v361_v0, %v365_v1 }
  0xc0   :  { %7930 = vmatpush1.bf16.msra.mxu0 %v14306_v6  ;;  %8360 = vmatpush1.bf16.msra.mxu1 %v14308_v9  ;;  %v14364_v6 = vcombine.low %v354_v57, %v358_v60  ;;  %v373_v9 = vld [vmem:[#allocation5 + $0x620] sm:$0xff] }
  0xc1   :  { %7942 = vmatprep.subr.bf16.mxu0 %v14315_v10  ;;  %8372 = vmatprep.subr.bf16.mxu1 %v14317_v11  ;;  %v370_v10 = vld [vmem:[#allocation5 + $0x608] sm:$0xff]  ;;  %v14373_v11 = vcombine.high %v362_v2, %v366_v4  ;;  %v14379_v16 = vcombine.high %v369_v8, %v373_v9  ;;  %v421_v60 = vld [vmem:[#allocation5 + $0x7a0] sm:$0xff] }
  0xc2   :  { %v14380_v23 = vcombine.low %v370_v10, %v374_v12  ;;  %v429_v4 = vld [vmem:[#allocation5 + $0x7e0] sm:$0xff] }
  0xc3   :  { %7932 = vmatmul.mubr.bf16.vlgmr.msra.gmra.mrb[0].mxu0 %v16776_v15  ;;  %8362 = vmatmul.mubr.bf16.vlgmr.msra.gmra.mrb[0].mxu1 %v16776_v15 }
  0xc4   :  { %7943 = vmatpush1.bf16.msra.mxu0 %v14314_v19  ;;  %8373 = vmatpush1.bf16.msra.mxu1 %v14316_v20  ;;  %v378_v19 = vld [vmem:[#allocation5 + $0x648] sm:$0xff]  ;;  %v14381_v20 = vcombine.high %v370_v10, %v374_v12  ;;  %v437_v12 = vld [vmem:[#allocation5 + $0x820] sm:$0xff] }
  0xc5   :  { %7944 = vmatprep.subr.bf16.mxu0 %v14323_v21  ;;  %8374 = vmatprep.subr.bf16.mxu1 %v14325_v22  ;;  %v382_v21 = vld [vmem:[#allocation5 + $0x668] sm:$0xff]  ;;  %v14378_v22 = vcombine.low %v369_v8, %v373_v9  ;;  %v433_v9 = vld [vmem:[#allocation5 + $0x800] sm:$0xff] }
  0xc6   :  { %7974 = vmatprep.mubr.bf16.mxu0 %v16778_v25  ;;  %8404 = vmatprep.mubr.bf16.mxu1 %v16778_v25  ;;  %v14388_v32 = vcombine.low %v378_v19, %v382_v21 }
  0xc8   :  { %7945 = vmatpush1.bf16.msra.mxu0 %v14322_v28  ;;  %8375 = vmatpush1.bf16.msra.mxu1 %v14324_v29  ;;  %v386_v28 = vld [vmem:[#allocation5 + $0x688] sm:$0xff]  ;;  %v14389_v29 = vcombine.high %v378_v19, %v382_v21  ;;  %v445_v21 = vld [vmem:[#allocation5 + $0x860] sm:$0xff] }
  0xc9   :  { %7946 = vmatprep.subr.bf16.mxu0 %v14331_v30  ;;  %8376 = vmatprep.subr.bf16.mxu1 %v14333_v33  ;;  %v390_v30 = vld [vmem:[#allocation5 + $0x6a8] sm:$0xff]  ;;  %v14395_v33 = vcombine.high %v385_v26, %v389_v27 }
  0xca   :  { %v14396_v40 = vcombine.low %v386_v28, %v390_v30  ;;  %v446_v26 = vld [vmem:[#allocation5 + $0x868] sm:$0xff] }
  0xcb   :  { %v122_v27 = vld [vmem:[#allocation2 + $0x28] sm:$0xff] }
  0xcc   :  { %7947 = vmatpush1.bf16.msra.mxu0 %v14330_v36  ;;  %8377 = vmatpush1.bf16.msra.mxu1 %v14332_v37  ;;  %v394_v36 = vld [vmem:[#allocation5 + $0x6c8] sm:$0xff]  ;;  %v14397_v37 = vcombine.high %v386_v28, %v390_v30  ;;  %v16784_v30 = vpack.c.bf16 %v139_v18, %v119_v17 }
  0xcd   :  { %7948 = vmatprep.subr.bf16.mxu0 %v14339_v38  ;;  %8378 = vmatprep.subr.bf16.mxu1 %v14341_v42  ;;  %v398_v38 = vld [vmem:[#allocation5 + $0x6e8] sm:$0xff]  ;;  %v401_v42 = vld [vmem:[#allocation5 + $0x700] sm:$0xff] }
  0xce   :  { %v14404_v48 = vcombine.low %v394_v36, %v398_v38  ;;  %v14411_v49 = vcombine.high %v401_v42, %v405_v43  ;;  %v14410_v55 = vcombine.low %v401_v42, %v405_v43  ;;  %v457_v43 = vld [vmem:[#allocation5 + $0x8c0] sm:$0xff]  ;;  %v494_v17 = vld [vmem:[#allocation5 + $0x9e8] sm:$0xff] }
  0xd0   :  { %7949 = vmatpush1.bf16.msra.mxu0 %v14338_v44  ;;  %8379 = vmatpush1.bf16.msra.mxu1 %v14340_v45  ;;  %v402_v44 = vld [vmem:[#allocation5 + $0x708] sm:$0xff]  ;;  %v14405_v45 = vcombine.high %v394_v36, %v398_v38  ;;  %v453_v36 = vld [vmem:[#allocation5 + $0x8a0] sm:$0xff] }
  0xd1   :  { %7950 = vmatprep.subr.bf16.mxu0 %v14347_v46  ;;  %8380 = vmatprep.subr.bf16.mxu1 %v14349_v50  ;;  %v406_v46 = vld [vmem:[#allocation5 + $0x728] sm:$0xff]  ;;  %v409_v50 = vld [vmem:[#allocation5 + $0x740] sm:$0xff]  ;;  %v14459_v42 = vcombine.high %v449_v35, %v453_v36 }
  0xd2   :  { %v14412_v56 = vcombine.low %v402_v44, %v406_v46  ;;  %v14419_v57 = vcombine.high %v409_v50, %v413_v51  ;;  %v14418_v0 = vcombine.low %v409_v50, %v413_v51  ;;  %v450_v38 = vld [vmem:[#allocation5 + $0x888] sm:$0xff] }
  0xd4   :  { %7951 = vmatpush1.bf16.msra.mxu0 %v14346_v52  ;;  %8381 = vmatpush1.bf16.msra.mxu1 %v14348_v53  ;;  %v410_v52 = vld [vmem:[#allocation5 + $0x748] sm:$0xff]  ;;  %v14413_v53 = vcombine.high %v402_v44, %v406_v46  ;;  %v461_v44 = vld [vmem:[#allocation5 + $0x8e0] sm:$0xff] }
  0xd5   :  { %7952 = vmatprep.subr.bf16.mxu0 %v14355_v54  ;;  %8382 = vmatprep.subr.bf16.mxu1 %v14357_v59  ;;  %v414_v54 = vld [vmem:[#allocation5 + $0x768] sm:$0xff]  ;;  %v417_v59 = vld [vmem:[#allocation5 + $0x780] sm:$0xff]  ;;  %v14467_v50 = vcombine.high %v457_v43, %v461_v44 }
  0xd6   :  { %v14420_v1 = vcombine.low %v410_v52, %v414_v54  ;;  %v14427_v2 = vcombine.high %v417_v59, %v421_v60  ;;  %v14426_v8 = vcombine.low %v417_v59, %v421_v60 }
  0xd8   :  { %7953 = vmatpush1.bf16.msra.mxu0 %v14354_v61  ;;  %8383 = vmatpush1.bf16.msra.mxu1 %v14356_v62  ;;  %v418_v61 = vld [vmem:[#allocation5 + $0x788] sm:$0xff]  ;;  %v14421_v62 = vcombine.high %v410_v52, %v414_v54  ;;  %v465_v52 = vld [vmem:[#allocation5 + $0x900] sm:$0xff] }
  0xd9   :  { %7954 = vmatprep.subr.bf16.mxu0 %v14363_v63  ;;  %8384 = vmatprep.subr.bf16.mxu1 %v14365_v3  ;;  %v422_v63 = vld [vmem:[#allocation5 + $0x7a8] sm:$0xff]  ;;  %v425_v3 = vld [vmem:[#allocation5 + $0x7c0] sm:$0xff] }
  0xda   :  { %v14428_v10 = vcombine.low %v418_v61, %v422_v63  ;;  %v14434_v19 = vcombine.low %v425_v3, %v429_v4  ;;  %v466_v54 = vld [vmem:[#allocation5 + $0x908] sm:$0xff] }
  0xdc   :  { %7955 = vmatpush1.bf16.msra.mxu0 %v14362_v5  ;;  %8385 = vmatpush1.bf16.msra.mxu1 %v14364_v6  ;;  %v426_v5 = vld [vmem:[#allocation5 + $0x7c8] sm:$0xff]  ;;  %v14429_v6 = vcombine.high %v418_v61, %v422_v63  ;;  %v473_v61 = vld [vmem:[#allocation5 + $0x940] sm:$0xff] }
  0xdd   :  { %7956 = vmatprep.subr.bf16.mxu0 %v14371_v7  ;;  %8386 = vmatprep.subr.bf16.mxu1 %v14373_v11  ;;  %v430_v7 = vld [vmem:[#allocation5 + $0x7e8] sm:$0xff]  ;;  %v14435_v11 = vcombine.high %v425_v3, %v429_v4 }
  0xde   :  { %v474_v63 = vld [vmem:[#allocation5 + $0x948] sm:$0xff] }
  0xe0   :  { %7957 = vmatpush1.bf16.msra.mxu0 %v14370_v13  ;;  %8387 = vmatpush1.bf16.msra.mxu1 %v14372_v14  ;;  %v434_v13 = vld [vmem:[#allocation5 + $0x808] sm:$0xff] }
  0xe1   :  { %7958 = vmatprep.subr.bf16.mxu0 %v14379_v16  ;;  %8388 = vmatprep.subr.bf16.mxu1 %v14381_v20  ;;  %v438_v14 = vld [vmem:[#allocation5 + $0x828] sm:$0xff]  ;;  %v14437_v16 = vcombine.high %v426_v5, %v430_v7  ;;  %v441_v20 = vld [vmem:[#allocation5 + $0x840] sm:$0xff] }
  0xe2   :  { %v14445_v28 = vcombine.high %v434_v13, %v438_v14 }
  0xe4   :  { %7959 = vmatpush1.bf16.msra.mxu0 %v14378_v22  ;;  %8389 = vmatpush1.bf16.msra.mxu1 %v14380_v23  ;;  %v14436_v22 = vcombine.low %v426_v5, %v430_v7  ;;  %v14443_v23 = vcombine.high %v433_v9, %v437_v12  ;;  %v481_v5 = vld [vmem:[#allocation5 + $0x980] sm:$0xff]  ;;  %v482_v7 = vld [vmem:[#allocation5 + $0x988] sm:$0xff] }
  0xe5   :  { %7960 = vmatprep.subr.bf16.mxu0 %v14387_v24  ;;  %8390 = vmatprep.subr.bf16.mxu1 %v14389_v29  ;;  %v442_v24 = vld [vmem:[#allocation5 + $0x848] sm:$0xff] }
  0xe6   :  { %v142_v29 = vld [vmem:[#allocation2 + $0xc8] sm:$0xff]  ;;  %v14453_v34 = vcombine.high %v442_v24, %v446_v26 }
  0xe8   :  { %7961 = vmatpush1.bf16.msra.mxu0 %v14386_v31  ;;  %8391 = vmatpush1.bf16.msra.mxu1 %v14388_v32  ;;  %v14442_v31 = vcombine.low %v433_v9, %v437_v12  ;;  %v14444_v32 = vcombine.low %v434_v13, %v438_v14  ;;  %v489_v13 = vld [vmem:[#allocation5 + $0x9c0] sm:$0xff] }
  0xe9   :  { %7962 = vmatprep.subr.bf16.mxu0 %v14395_v33  ;;  %8392 = vmatprep.subr.bf16.mxu1 %v14397_v37  ;;  %v14451_v33 = vcombine.high %v441_v20, %v445_v21  ;;  %v16786_v37 = vpack.c.bf16 %v142_v29, %v122_v27  ;;  %v493_v14 = vld [vmem:[#allocation5 + $0x9e0] sm:$0xff] }
  0xea   :  { %v14498_v27 = vcombine.low %v489_v13, %v493_v14 }
  0xec   :  { %7963 = vmatpush1.bf16.msra.mxu0 %v14394_v39  ;;  %8393 = vmatpush1.bf16.msra.mxu1 %v14396_v40  ;;  %v454_v39 = vld [vmem:[#allocation5 + $0x8a8] sm:$0xff]  ;;  %v14450_v40 = vcombine.low %v441_v20, %v445_v21  ;;  %v14499_v20 = vcombine.high %v489_v13, %v493_v14 }
  0xed   :  { %7964 = vmatprep.subr.bf16.mxu0 %v14403_v41  ;;  %8394 = vmatprep.subr.bf16.mxu1 %v14405_v45  ;;  %v14452_v41 = vcombine.low %v442_v24, %v446_v26  ;;  %v458_v45 = vld [vmem:[#allocation5 + $0x8c8] sm:$0xff]  ;;  %v14461_v46 = vcombine.high %v450_v38, %v454_v39 }
  0xee   :  { %v498_v24 = vld [vmem:[#allocation5 + $0xa08] sm:$0xff] }
  0xef   :  { %v502_v26 = vld [vmem:[#allocation5 + $0xa28] sm:$0xff] }
  0xf0   :  { %7965 = vmatpush1.bf16.msra.mxu0 %v14402_v47  ;;  %8395 = vmatpush1.bf16.msra.mxu1 %v14404_v48  ;;  %v462_v47 = vld [vmem:[#allocation5 + $0x8e8] sm:$0xff]  ;;  %v14458_v48 = vcombine.low %v449_v35, %v453_v36 }
  0xf1   :  { %7966 = vmatprep.subr.bf16.mxu0 %v14411_v49  ;;  %8396 = vmatprep.subr.bf16.mxu1 %v14413_v53  ;;  %v14460_v49 = vcombine.low %v450_v38, %v454_v39  ;;  %v14469_v51 = vcombine.high %v458_v45, %v462_v47  ;;  %v469_v53 = vld [vmem:[#allocation5 + $0x920] sm:$0xff]  ;;  %v510_v35 = vld [vmem:[#allocation5 + $0xa68] sm:$0xff]  ;;  %v14508_v38 = vcombine.low %v498_v24, %v502_v26 }
  0xf2   :  { %v14475_v59 = vcombine.high %v465_v52, %v469_v53  ;;  %v550_v13 = vld [vmem:[#allocation5 + $0xba8] sm:$0xff] }
  0xf4   :  { %7967 = vmatpush1.bf16.msra.mxu0 %v14410_v55  ;;  %8397 = vmatpush1.bf16.msra.mxu1 %v14412_v56  ;;  %v470_v55 = vld [vmem:[#allocation5 + $0x928] sm:$0xff]  ;;  %v14466_v56 = vcombine.low %v457_v43, %v461_v44 }
  0xf5   :  { %7968 = vmatprep.subr.bf16.mxu0 %v14419_v57  ;;  %8398 = vmatprep.subr.bf16.mxu1 %v14421_v62  ;;  %v14468_v57 = vcombine.low %v458_v45, %v462_v47  ;;  %v14477_v60 = vcombine.high %v466_v54, %v470_v55  ;;  %v477_v62 = vld [vmem:[#allocation5 + $0x960] sm:$0xff]  ;;  %v514_v43 = vld [vmem:[#allocation5 + $0xa88] sm:$0xff] }
  0xf6   :  { %v14483_v3 = vcombine.high %v473_v61, %v477_v62  ;;  %v14482_v9 = vcombine.low %v473_v61, %v477_v62  ;;  %v518_v44 = vld [vmem:[#allocation5 + $0xaa8] sm:$0xff] }
  0xf7   :  { %v534_v61 = vld [vmem:[#allocation5 + $0xb28] sm:$0xff] }
  0xf8   :  { %7969 = vmatpush1.bf16.msra.mxu0 %v14418_v0  ;;  %8399 = vmatpush1.bf16.msra.mxu1 %v14420_v1  ;;  %v478_v0 = vld [vmem:[#allocation5 + $0x968] sm:$0xff]  ;;  %v14474_v1 = vcombine.low %v465_v52, %v469_v53 }
  0xf9   :  { %7970 = vmatprep.subr.bf16.mxu0 %v14427_v2  ;;  %8400 = vmatprep.subr.bf16.mxu1 %v14429_v6  ;;  %v14476_v2 = vcombine.low %v466_v54, %v470_v55  ;;  %v14485_v4 = vcombine.high %v474_v63, %v478_v0  ;;  %v485_v6 = vld [vmem:[#allocation5 + $0x9a0] sm:$0xff]  ;;  %v526_v52 = vld [vmem:[#allocation5 + $0xae8] sm:$0xff]  ;;  %v14524_v54 = vcombine.low %v514_v43, %v518_v44 }
  0xfa   :  { %v14490_v18 = vcombine.low %v481_v5, %v485_v6 }
  0xfc   :  { %7971 = vmatpush1.bf16.msra.mxu0 %v14426_v8  ;;  %8401 = vmatpush1.bf16.msra.mxu1 %v14428_v10  ;;  %v486_v8 = vld [vmem:[#allocation5 + $0x9a8] sm:$0xff]  ;;  %v14484_v10 = vcombine.low %v474_v63, %v478_v0 }
  0xfd   :  { %7972 = vmatprep.subr.bf16.mxu0 %v14435_v11  ;;  %8402 = vmatprep.subr.bf16.mxu1 %v14437_v16  ;;  %v14491_v11 = vcombine.high %v481_v5, %v485_v6  ;;  %v14493_v12 = vcombine.high %v482_v7, %v486_v8  ;;  %v490_v16 = vld [vmem:[#allocation5 + $0x9c8] sm:$0xff] }
  0xfe   :  { %v14501_v21 = vcombine.high %v490_v16, %v494_v17  ;;  %v542_v5 = vld [vmem:[#allocation5 + $0xb68] sm:$0xff] }
 0x100   :  { %7973 = vmatpush1.bf16.msra.mxu0 %v14434_v19  ;;  %8403 = vmatpush1.bf16.msra.mxu1 %v14436_v22  ;;  %v14492_v19 = vcombine.low %v482_v7, %v486_v8  ;;  %v497_v22 = vld [vmem:[#allocation5 + $0xa00] sm:$0xff] }
 0x101   :  { %7985 = vmatprep.subr.bf16.mxu0 %v14443_v23  ;;  %8415 = vmatprep.subr.bf16.mxu1 %v14445_v28  ;;  %v501_v23 = vld [vmem:[#allocation5 + $0xa20] sm:$0xff]  ;;  %v14500_v28 = vcombine.low %v490_v16, %v494_v17 }
 0x102   :  { %v14507_v29 = vcombine.high %v497_v22, %v501_v23  ;;  %v14506_v36 = vcombine.low %v497_v22, %v501_v23  ;;  %v558_v22 = vld [vmem:[#allocation5 + $0xbe8] sm:$0xff] }
 0x103   :  { %7975 = vmatmul.mubr.bf16.vlgmr.msra.gmra.mrb[0].mxu0 %v16784_v30  ;;  %8405 = vmatmul.mubr.bf16.vlgmr.msra.gmra.mrb[0].mxu1 %v16784_v30 }
 0x104   :  { %7986 = vmatpush1.bf16.msra.mxu0 %v14442_v31  ;;  %8416 = vmatpush1.bf16.msra.mxu1 %v14444_v32  ;;  %v14509_v31 = vcombine.high %v498_v24, %v502_v26  ;;  %v505_v32 = vld [vmem:[#allocation5 + $0xa40] sm:$0xff] }
 0x105   :  { %7987 = vmatprep.subr.bf16.mxu0 %v14451_v33  ;;  %8417 = vmatprep.subr.bf16.mxu1 %v14453_v34  ;;  %v509_v33 = vld [vmem:[#allocation5 + $0xa60] sm:$0xff]  ;;  %v506_v34 = vld [vmem:[#allocation5 + $0xa48] sm:$0xff] }
 0x106   :  { %8017 = vmatprep.mubr.bf16.mxu0 %v16786_v37  ;;  %8447 = vmatprep.mubr.bf16.mxu1 %v16786_v37  ;;  %v14515_v39 = vcombine.high %v505_v32, %v509_v33  ;;  %v14514_v45 = vcombine.low %v505_v32, %v509_v33  ;;  %v566_v32 = vld [vmem:[#allocation5 + $0xc28] sm:$0xff] }
 0x108   :  { %7988 = vmatpush1.bf16.msra.mxu0 %v14450_v40  ;;  %8418 = vmatpush1.bf16.msra.mxu1 %v14452_v41  ;;  %v14517_v40 = vcombine.high %v506_v34, %v510_v35  ;;  %v513_v41 = vld [vmem:[#allocation5 + $0xa80] sm:$0xff] }
 0x109   :  { %7989 = vmatprep.subr.bf16.mxu0 %v14459_v42  ;;  %8419 = vmatprep.subr.bf16.mxu1 %v14461_v46  ;;  %v517_v42 = vld [vmem:[#allocation5 + $0xaa0] sm:$0xff]  ;;  %v14516_v46 = vcombine.low %v506_v34, %v510_v35 }
 0x10a   :  { %v14523_v47 = vcombine.high %v513_v41, %v517_v42  ;;  %v14522_v53 = vcombine.low %v513_v41, %v517_v42  ;;  %v121_v34 = vld [vmem:[#allocation2 + $0x20] sm:$0xff]  ;;  %v570_v42 = vld [vmem:[#allocation5 + $0xc48] sm:$0xff] }
 0x10b   :  { %v141_v35 = vld [vmem:[#allocation2 + $0xc0] sm:$0xff] }
 0x10c   :  { %7990 = vmatpush1.bf16.msra.mxu0 %v14458_v48  ;;  %8420 = vmatpush1.bf16.msra.mxu1 %v14460_v49  ;;  %v14525_v48 = vcombine.high %v514_v43, %v518_v44  ;;  %v521_v49 = vld [vmem:[#allocation5 + $0xac0] sm:$0xff]  ;;  %v16792_v43 = vpack.c.bf16 %v141_v35, %v121_v34  ;;  %v574_v44 = vld [vmem:[#allocation5 + $0xc68] sm:$0xff] }
 0x10d   :  { %7991 = vmatprep.subr.bf16.mxu0 %v14467_v50  ;;  %8421 = vmatprep.subr.bf16.mxu1 %v14469_v51  ;;  %v525_v50 = vld [vmem:[#allocation5 + $0xae0] sm:$0xff]  ;;  %v522_v51 = vld [vmem:[#allocation5 + $0xac8] sm:$0xff] }
 0x10e   :  { %v14531_v55 = vcombine.high %v521_v49, %v525_v50  ;;  %v14530_v62 = vcombine.low %v521_v49, %v525_v50  ;;  %v14532_v63 = vcombine.low %v522_v51, %v526_v52  ;;  %v573_v41 = vld [vmem:[#allocation5 + $0xc60] sm:$0xff]  ;;  %v14581_v50 = vcombine.high %v570_v42, %v574_v44  ;;  %v618_v34 = vld [vmem:[#allocation5 + $0xdc8] sm:$0xff] }
 0x10f   :  { %v622_v35 = vld [vmem:[#allocation5 + $0xde8] sm:$0xff] }
 0x110   :  { %7992 = vmatpush1.bf16.msra.mxu0 %v14466_v56  ;;  %8422 = vmatpush1.bf16.msra.mxu1 %v14468_v57  ;;  %v14533_v56 = vcombine.high %v522_v51, %v526_v52  ;;  %v529_v57 = vld [vmem:[#allocation5 + $0xb00] sm:$0xff] }
 0x111   :  { %7993 = vmatprep.subr.bf16.mxu0 %v14475_v59  ;;  %8423 = vmatprep.subr.bf16.mxu1 %v14477_v60  ;;  %v533_v59 = vld [vmem:[#allocation5 + $0xb20] sm:$0xff]  ;;  %v530_v60 = vld [vmem:[#allocation5 + $0xb08] sm:$0xff] }
 0x112   :  { %v14539_v0 = vcombine.high %v529_v57, %v533_v59  ;;  %v14538_v6 = vcombine.low %v529_v57, %v533_v59  ;;  %v14540_v7 = vcombine.low %v530_v60, %v534_v61  ;;  %v577_v51 = vld [vmem:[#allocation5 + $0xc80] sm:$0xff]  ;;  %v14580_v57 = vcombine.low %v570_v42, %v574_v44  ;;  %v626_v44 = vld [vmem:[#allocation5 + $0xe08] sm:$0xff] }
 0x113   :  { %v581_v52 = vld [vmem:[#allocation5 + $0xca0] sm:$0xff] }
 0x114   :  { %7994 = vmatpush1.bf16.msra.mxu0 %v14474_v1  ;;  %8424 = vmatpush1.bf16.msra.mxu1 %v14476_v2  ;;  %v14541_v1 = vcombine.high %v530_v60, %v534_v61  ;;  %v537_v2 = vld [vmem:[#allocation5 + $0xb40] sm:$0xff]  ;;  %v14587_v59 = vcombine.high %v577_v51, %v581_v52 }
 0x115   :  { %7995 = vmatprep.subr.bf16.mxu0 %v14483_v3  ;;  %8425 = vmatprep.subr.bf16.mxu1 %v14485_v4  ;;  %v541_v3 = vld [vmem:[#allocation5 + $0xb60] sm:$0xff]  ;;  %v538_v4 = vld [vmem:[#allocation5 + $0xb48] sm:$0xff] }
 0x116   :  { %v14547_v8 = vcombine.high %v537_v2, %v541_v3  ;;  %v14546_v14 = vcombine.low %v537_v2, %v541_v3  ;;  %v14548_v16 = vcombine.low %v538_v4, %v542_v5  ;;  %v585_v61 = vld [vmem:[#allocation5 + $0xcc0] sm:$0xff] }
 0x117   :  { %v629_v42 = vld [vmem:[#allocation5 + $0xe20] sm:$0xff] }
 0x118   :  { %7996 = vmatpush1.bf16.msra.mxu0 %v14482_v9  ;;  %8426 = vmatpush1.bf16.msra.mxu1 %v14484_v10  ;;  %v14549_v9 = vcombine.high %v538_v4, %v542_v5  ;;  %v545_v10 = vld [vmem:[#allocation5 + $0xb80] sm:$0xff] }
 0x119   :  { %7997 = vmatprep.subr.bf16.mxu0 %v14491_v11  ;;  %8427 = vmatprep.subr.bf16.mxu1 %v14493_v12  ;;  %v549_v11 = vld [vmem:[#allocation5 + $0xba0] sm:$0xff]  ;;  %v546_v12 = vld [vmem:[#allocation5 + $0xb88] sm:$0xff] }
 0x11a   :  { %v14555_v17 = vcombine.high %v545_v10, %v549_v11  ;;  %v14554_v23 = vcombine.low %v545_v10, %v549_v11  ;;  %v14556_v24 = vcombine.low %v546_v12, %v550_v13  ;;  %v593_v5 = vld [vmem:[#allocation5 + $0xd00] sm:$0xff] }
 0x11c   :  { %7998 = vmatpush1.bf16.msra.mxu0 %v14490_v18  ;;  %8428 = vmatpush1.bf16.msra.mxu1 %v14492_v19  ;;  %v14557_v18 = vcombine.high %v546_v12, %v550_v13  ;;  %v553_v19 = vld [vmem:[#allocation5 + $0xbc0] sm:$0xff] }
 0x11d   :  { %7999 = vmatprep.subr.bf16.mxu0 %v14499_v20  ;;  %8429 = vmatprep.subr.bf16.mxu1 %v14501_v21  ;;  %v557_v20 = vld [vmem:[#allocation5 + $0xbe0] sm:$0xff]  ;;  %v554_v21 = vld [vmem:[#allocation5 + $0xbc8] sm:$0xff] }
 0x11e   :  { %v14563_v26 = vcombine.high %v553_v19, %v557_v20  ;;  %v14562_v33 = vcombine.low %v553_v19, %v557_v20  ;;  %v601_v13 = vld [vmem:[#allocation5 + $0xd40] sm:$0xff] }
 0x120   :  { %8000 = vmatpush1.bf16.msra.mxu0 %v14498_v27  ;;  %8430 = vmatpush1.bf16.msra.mxu1 %v14500_v28  ;;  %v14565_v27 = vcombine.high %v554_v21, %v558_v22  ;;  %v561_v28 = vld [vmem:[#allocation5 + $0xc00] sm:$0xff] }
 0x121   :  { %8001 = vmatprep.subr.bf16.mxu0 %v14507_v29  ;;  %8431 = vmatprep.subr.bf16.mxu1 %v14509_v31  ;;  %v565_v29 = vld [vmem:[#allocation5 + $0xc20] sm:$0xff]  ;;  %v562_v31 = vld [vmem:[#allocation5 + $0xc08] sm:$0xff] }
 0x124   :  { %8002 = vmatpush1.bf16.msra.mxu0 %v14506_v36  ;;  %8432 = vmatpush1.bf16.msra.mxu1 %v14508_v38  ;;  %v14564_v36 = vcombine.low %v554_v21, %v558_v22  ;;  %v14571_v38 = vcombine.high %v561_v28, %v565_v29  ;;  %v609_v22 = vld [vmem:[#allocation5 + $0xd80] sm:$0xff] }
 0x125   :  { %8003 = vmatprep.subr.bf16.mxu0 %v14515_v39  ;;  %8433 = vmatprep.subr.bf16.mxu1 %v14517_v40  ;;  %v14573_v39 = vcombine.high %v562_v31, %v566_v32  ;;  %v569_v40 = vld [vmem:[#allocation5 + $0xc40] sm:$0xff] }
 0x126   :  { %v14579_v49 = vcombine.high %v569_v40, %v573_v41 }
 0x128   :  { %8004 = vmatpush1.bf16.msra.mxu0 %v14514_v45  ;;  %8434 = vmatpush1.bf16.msra.mxu1 %v14516_v46  ;;  %v124_v45 = vld [vmem:[#allocation2 + $0x38] sm:$0xff] }
 0x129   :  { %8005 = vmatprep.subr.bf16.mxu0 %v14523_v47  ;;  %8435 = vmatprep.subr.bf16.mxu1 %v14525_v48  ;;  %v144_v46 = vld [vmem:[#allocation2 + $0xd8] sm:$0xff]  ;;  %v14570_v47 = vcombine.low %v561_v28, %v565_v29  ;;  %v14572_v48 = vcombine.low %v562_v31, %v566_v32  ;;  %v617_v32 = vld [vmem:[#allocation5 + $0xdc0] sm:$0xff] }
 0x12c   :  { %8006 = vmatpush1.bf16.msra.mxu0 %v14522_v53  ;;  %8436 = vmatpush1.bf16.msra.mxu1 %v14524_v54  ;;  %v16794_v53 = vpack.c.bf16 %v144_v46, %v124_v45  ;;  %v578_v54 = vld [vmem:[#allocation5 + $0xc88] sm:$0xff] }
 0x12d   :  { %8007 = vmatprep.subr.bf16.mxu0 %v14531_v55  ;;  %8437 = vmatprep.subr.bf16.mxu1 %v14533_v56  ;;  %v582_v55 = vld [vmem:[#allocation5 + $0xca8] sm:$0xff]  ;;  %v14578_v56 = vcombine.low %v569_v40, %v573_v41  ;;  %v14629_v40 = vcombine.high %v618_v34, %v622_v35  ;;  %v625_v41 = vld [vmem:[#allocation5 + $0xe00] sm:$0xff] }
 0x12e   :  { %v14589_v60 = vcombine.high %v578_v54, %v582_v55  ;;  %v14588_v2 = vcombine.low %v578_v54, %v582_v55  ;;  %v630_v45 = vld [vmem:[#allocation5 + $0xe28] sm:$0xff]  ;;  %v14634_v55 = vcombine.low %v625_v41, %v629_v42 }
 0x12f   :  { %v638_v54 = vld [vmem:[#allocation5 + $0xe68] sm:$0xff] }
 0x130   :  { %8008 = vmatpush1.bf16.msra.mxu0 %v14530_v62  ;;  %8438 = vmatpush1.bf16.msra.mxu1 %v14532_v63  ;;  %v589_v62 = vld [vmem:[#allocation5 + $0xce0] sm:$0xff]  ;;  %v586_v63 = vld [vmem:[#allocation5 + $0xcc8] sm:$0xff] }
 0x131   :  { %8009 = vmatprep.subr.bf16.mxu0 %v14539_v0  ;;  %8439 = vmatprep.subr.bf16.mxu1 %v14541_v1  ;;  %v590_v0 = vld [vmem:[#allocation5 + $0xce8] sm:$0xff]  ;;  %v14586_v1 = vcombine.low %v577_v51, %v581_v52  ;;  %v14595_v3 = vcombine.high %v585_v61, %v589_v62  ;;  %v637_v51 = vld [vmem:[#allocation5 + $0xe60] sm:$0xff] }
 0x132   :  { %v14597_v4 = vcombine.high %v586_v63, %v590_v0  ;;  %v14596_v10 = vcombine.low %v586_v63, %v590_v0  ;;  %v634_v52 = vld [vmem:[#allocation5 + $0xe48] sm:$0xff] }
 0x133   :  { %v646_v63 = vld [vmem:[#allocation5 + $0xea8] sm:$0xff] }
 0x134   :  { %8010 = vmatpush1.bf16.msra.mxu0 %v14538_v6  ;;  %8440 = vmatpush1.bf16.msra.mxu1 %v14540_v7  ;;  %v597_v6 = vld [vmem:[#allocation5 + $0xd20] sm:$0xff]  ;;  %v594_v7 = vld [vmem:[#allocation5 + $0xd08] sm:$0xff] }
 0x135   :  { %8011 = vmatprep.subr.bf16.mxu0 %v14547_v8  ;;  %8441 = vmatprep.subr.bf16.mxu1 %v14549_v9  ;;  %v598_v8 = vld [vmem:[#allocation5 + $0xd28] sm:$0xff]  ;;  %v14594_v9 = vcombine.low %v585_v61, %v589_v62  ;;  %v14603_v11 = vcombine.high %v593_v5, %v597_v6  ;;  %v645_v61 = vld [vmem:[#allocation5 + $0xea0] sm:$0xff] }
 0x136   :  { %v14605_v12 = vcombine.high %v594_v7, %v598_v8  ;;  %v14604_v19 = vcombine.low %v594_v7, %v598_v8  ;;  %v642_v62 = vld [vmem:[#allocation5 + $0xe88] sm:$0xff] }
 0x137   :  { %v654_v7 = vld [vmem:[#allocation5 + $0xee8] sm:$0xff] }
 0x138   :  { %8012 = vmatpush1.bf16.msra.mxu0 %v14546_v14  ;;  %8442 = vmatpush1.bf16.msra.mxu1 %v14548_v16  ;;  %v605_v14 = vld [vmem:[#allocation5 + $0xd60] sm:$0xff]  ;;  %v602_v16 = vld [vmem:[#allocation5 + $0xd48] sm:$0xff] }
 0x139   :  { %8013 = vmatprep.subr.bf16.mxu0 %v14555_v17  ;;  %8443 = vmatprep.subr.bf16.mxu1 %v14557_v18  ;;  %v606_v17 = vld [vmem:[#allocation5 + $0xd68] sm:$0xff]  ;;  %v14602_v18 = vcombine.low %v593_v5, %v597_v6  ;;  %v14611_v20 = vcombine.high %v601_v13, %v605_v14  ;;  %v653_v5 = vld [vmem:[#allocation5 + $0xee0] sm:$0xff] }
 0x13a   :  { %v14613_v21 = vcombine.high %v602_v16, %v606_v17  ;;  %v14612_v28 = vcombine.low %v602_v16, %v606_v17  ;;  %v650_v6 = vld [vmem:[#allocation5 + $0xec8] sm:$0xff] }
 0x13b   :  { %v662_v16 = vld [vmem:[#allocation5 + $0xf28] sm:$0xff] }
 0x13c   :  { %8014 = vmatpush1.bf16.msra.mxu0 %v14554_v23  ;;  %8444 = vmatpush1.bf16.msra.mxu1 %v14556_v24  ;;  %v613_v23 = vld [vmem:[#allocation5 + $0xda0] sm:$0xff]  ;;  %v610_v24 = vld [vmem:[#allocation5 + $0xd88] sm:$0xff] }
 0x13d   :  { %8015 = vmatprep.subr.bf16.mxu0 %v14563_v26  ;;  %8445 = vmatprep.subr.bf16.mxu1 %v14565_v27  ;;  %v614_v26 = vld [vmem:[#allocation5 + $0xda8] sm:$0xff]  ;;  %v14610_v27 = vcombine.low %v601_v13, %v605_v14  ;;  %v14619_v29 = vcombine.high %v609_v22, %v613_v23  ;;  %v661_v13 = vld [vmem:[#allocation5 + $0xf20] sm:$0xff] }
 0x13e   :  { %v14621_v31 = vcombine.high %v610_v24, %v614_v26  ;;  %v658_v14 = vld [vmem:[#allocation5 + $0xf08] sm:$0xff] }
 0x140   :  { %8016 = vmatpush1.bf16.msra.mxu0 %v14562_v33  ;;  %8446 = vmatpush1.bf16.msra.mxu1 %v14564_v36  ;;  %v621_v33 = vld [vmem:[#allocation5 + $0xde0] sm:$0xff]  ;;  %v14618_v36 = vcombine.low %v609_v22, %v613_v23  ;;  %v666_v23 = vld [vmem:[#allocation5 + $0xf48] sm:$0xff] }
 0x141   :  { %8028 = vmatprep.subr.bf16.mxu0 %v14571_v38  ;;  %8458 = vmatprep.subr.bf16.mxu1 %v14573_v39  ;;  %v14620_v38 = vcombine.low %v610_v24, %v614_v26  ;;  %v14627_v39 = vcombine.high %v617_v32, %v621_v33  ;;  %v14626_v46 = vcombine.low %v617_v32, %v621_v33  ;;  %v669_v22 = vld [vmem:[#allocation5 + $0xf60] sm:$0xff]  ;;  %v670_v24 = vld [vmem:[#allocation5 + $0xf68] sm:$0xff] }
 0x142   :  { %v677_v32 = vld [vmem:[#allocation5 + $0xfa0] sm:$0xff]  ;;  %v674_v33 = vld [vmem:[#allocation5 + $0xf88] sm:$0xff] }
 0x143   :  { %8018 = vmatmul.mubr.bf16.vlgmr.msra.gmra.mrb[0].mxu0 %v16792_v43  ;;  %8448 = vmatmul.mubr.bf16.vlgmr.msra.gmra.mrb[0].mxu1 %v16792_v43 }
 0x144   :  { %8029 = vmatpush1.bf16.msra.mxu0 %v14570_v47  ;;  %8459 = vmatpush1.bf16.msra.mxu1 %v14572_v48  ;;  %v14628_v47 = vcombine.low %v618_v34, %v622_v35  ;;  %v14635_v48 = vcombine.high %v625_v41, %v629_v42  ;;  %v678_v34 = vld [vmem:[#allocation5 + $0xfa8] sm:$0xff]  ;;  %v685_v41 = vld [vmem:[#allocation5 + $0xfe0] sm:$0xff] }
 0x145   :  { %8030 = vmatprep.subr.bf16.mxu0 %v14579_v49  ;;  %8460 = vmatprep.subr.bf16.mxu1 %v14581_v50  ;;  %v14637_v49 = vcombine.high %v626_v44, %v630_v45  ;;  %v633_v50 = vld [vmem:[#allocation5 + $0xe40] sm:$0xff]  ;;  %v682_v42 = vld [vmem:[#allocation5 + $0xfc8] sm:$0xff] }
 0x146   :  { %8060 = vmatprep.mubr.bf16.mxu0 %v16794_v53  ;;  %8490 = vmatprep.mubr.bf16.mxu1 %v16794_v53  ;;  %v14642_v0 = vcombine.low %v633_v50, %v637_v51 }
 0x148   :  { %8031 = vmatpush1.bf16.msra.mxu0 %v14578_v56  ;;  %8461 = vmatpush1.bf16.msra.mxu1 %v14580_v57  ;;  %v14636_v56 = vcombine.low %v626_v44, %v630_v45  ;;  %v14643_v57 = vcombine.high %v633_v50, %v637_v51  ;;  %v686_v44 = vld [vmem:[#allocation5 + $0xfe8] sm:$0xff]  ;;  %v693_v50 = vld [vmem:[#allocation5 + $0x1020] sm:$0xff] }
 0x149   :  { %8032 = vmatprep.subr.bf16.mxu0 %v14587_v59  ;;  %8462 = vmatprep.subr.bf16.mxu1 %v14589_v60  ;;  %v14645_v59 = vcombine.high %v634_v52, %v638_v54  ;;  %v641_v60 = vld [vmem:[#allocation5 + $0xe80] sm:$0xff]  ;;  %v690_v51 = vld [vmem:[#allocation5 + $0x1008] sm:$0xff] }
 0x14a   :  { %v14650_v8 = vcombine.low %v641_v60, %v645_v61 }
 0x14c   :  { %8033 = vmatpush1.bf16.msra.mxu0 %v14586_v1  ;;  %8463 = vmatpush1.bf16.msra.mxu1 %v14588_v2  ;;  %v14644_v1 = vcombine.low %v634_v52, %v638_v54  ;;  %v14651_v2 = vcombine.high %v641_v60, %v645_v61  ;;  %v694_v52 = vld [vmem:[#allocation5 + $0x1028] sm:$0xff]  ;;  %v697_v61 = vld [vmem:[#allocation5 + $0x1040] sm:$0xff] }
 0x14d   :  { %8034 = vmatprep.subr.bf16.mxu0 %v14595_v3  ;;  %8464 = vmatprep.subr.bf16.mxu1 %v14597_v4  ;;  %v14653_v3 = vcombine.high %v642_v62, %v646_v63  ;;  %v649_v4 = vld [vmem:[#allocation5 + $0xec0] sm:$0xff]  ;;  %v14701_v60 = vcombine.high %v690_v51, %v694_v52 }
 0x14e   :  { %v14658_v17 = vcombine.low %v649_v4, %v653_v5 }
 0x150   :  { %8035 = vmatpush1.bf16.msra.mxu0 %v14594_v9  ;;  %8465 = vmatpush1.bf16.msra.mxu1 %v14596_v10  ;;  %v14652_v9 = vcombine.low %v642_v62, %v646_v63  ;;  %v14659_v10 = vcombine.high %v649_v4, %v653_v5  ;;  %v701_v62 = vld [vmem:[#allocation5 + $0x1060] sm:$0xff]  ;;  %v698_v63 = vld [vmem:[#allocation5 + $0x1048] sm:$0xff]  ;;  %v14700_v5 = vcombine.low %v690_v51, %v694_v52 }
 0x151   :  { %8036 = vmatprep.subr.bf16.mxu0 %v14603_v11  ;;  %8466 = vmatprep.subr.bf16.mxu1 %v14605_v12  ;;  %v14661_v11 = vcombine.high %v650_v6, %v654_v7  ;;  %v657_v12 = vld [vmem:[#allocation5 + $0xf00] sm:$0xff] }
 0x152   :  { %v14666_v26 = vcombine.low %v657_v12, %v661_v13 }
 0x154   :  { %8037 = vmatpush1.bf16.msra.mxu0 %v14602_v18  ;;  %8467 = vmatpush1.bf16.msra.mxu1 %v14604_v19  ;;  %v14660_v18 = vcombine.low %v650_v6, %v654_v7  ;;  %v14667_v19 = vcombine.high %v657_v12, %v661_v13  ;;  %v14707_v6 = vcombine.high %v697_v61, %v701_v62  ;;  %v710_v12 = vld [vmem:[#allocation5 + $0x10a8] sm:$0xff] }
 0x155   :  { %8038 = vmatprep.subr.bf16.mxu0 %v14611_v20  ;;  %8468 = vmatprep.subr.bf16.mxu1 %v14613_v21  ;;  %v14669_v20 = vcombine.high %v658_v14, %v662_v16  ;;  %v665_v21 = vld [vmem:[#allocation5 + $0xf40] sm:$0xff]  ;;  %v14706_v13 = vcombine.low %v697_v61, %v701_v62 }
 0x156   :  { %v14674_v35 = vcombine.low %v665_v21, %v669_v22 }
 0x158   :  { %8039 = vmatpush1.bf16.msra.mxu0 %v14610_v27  ;;  %8469 = vmatpush1.bf16.msra.mxu1 %v14612_v28  ;;  %v14668_v27 = vcombine.low %v658_v14, %v662_v16  ;;  %v14675_v28 = vcombine.high %v665_v21, %v669_v22  ;;  %v718_v21 = vld [vmem:[#allocation5 + $0x10e8] sm:$0xff] }
 0x159   :  { %8040 = vmatprep.subr.bf16.mxu0 %v14619_v29  ;;  %8470 = vmatprep.subr.bf16.mxu1 %v14621_v31  ;;  %v14677_v29 = vcombine.high %v666_v23, %v670_v24  ;;  %v673_v31 = vld [vmem:[#allocation5 + $0xf80] sm:$0xff] }
 0x15a   :  { %v14682_v45 = vcombine.low %v673_v31, %v677_v32 }
 0x15c   :  { %8041 = vmatpush1.bf16.msra.mxu0 %v14618_v36  ;;  %8471 = vmatpush1.bf16.msra.mxu1 %v14620_v38  ;;  %v14676_v36 = vcombine.low %v666_v23, %v670_v24  ;;  %v14683_v38 = vcombine.high %v673_v31, %v677_v32  ;;  %v726_v31 = vld [vmem:[#allocation5 + $0x1128] sm:$0xff] }
 0x15d   :  { %8042 = vmatprep.subr.bf16.mxu0 %v14627_v39  ;;  %8472 = vmatprep.subr.bf16.mxu1 %v14629_v40  ;;  %v14685_v39 = vcombine.high %v674_v33, %v678_v34  ;;  %v681_v40 = vld [vmem:[#allocation5 + $0xfc0] sm:$0xff] }
 0x15e   :  { %v14690_v54 = vcombine.low %v681_v40, %v685_v41 }
 0x160   :  { %8043 = vmatpush1.bf16.msra.mxu0 %v14626_v46  ;;  %8473 = vmatpush1.bf16.msra.mxu1 %v14628_v47  ;;  %v14684_v46 = vcombine.low %v674_v33, %v678_v34  ;;  %v14691_v47 = vcombine.high %v681_v40, %v685_v41  ;;  %v734_v40 = vld [vmem:[#allocation5 + $0x1168] sm:$0xff] }
 0x161   :  { %8044 = vmatprep.subr.bf16.mxu0 %v14635_v48  ;;  %8474 = vmatprep.subr.bf16.mxu1 %v14637_v49  ;;  %v14693_v48 = vcombine.high %v682_v42, %v686_v44  ;;  %v689_v49 = vld [vmem:[#allocation5 + $0x1000] sm:$0xff] }
 0x162   :  { %v14698_v4 = vcombine.low %v689_v49, %v693_v50 }
 0x164   :  { %8045 = vmatpush1.bf16.msra.mxu0 %v14634_v55  ;;  %8475 = vmatpush1.bf16.msra.mxu1 %v14636_v56  ;;  %v123_v55 = vld [vmem:[#allocation2 + $0x30] sm:$0xff] }
 0x165   :  { %8046 = vmatprep.subr.bf16.mxu0 %v14643_v57  ;;  %8476 = vmatprep.subr.bf16.mxu1 %v14645_v59  ;;  %v143_v56 = vld [vmem:[#allocation2 + $0xd0] sm:$0xff]  ;;  %v14692_v57 = vcombine.low %v682_v42, %v686_v44  ;;  %v14699_v59 = vcombine.high %v689_v49, %v693_v50  ;;  %v742_v49 = vld [vmem:[#allocation5 + $0x11a8] sm:$0xff] }
 0x168   :  { %8047 = vmatpush1.bf16.msra.mxu0 %v14642_v0  ;;  %8477 = vmatpush1.bf16.msra.mxu1 %v14644_v1  ;;  %v16800_v0 = vpack.c.bf16 %v143_v56, %v123_v55  ;;  %v702_v1 = vld [vmem:[#allocation5 + $0x1068] sm:$0xff]  ;;  %v745_v55 = vld [vmem:[#allocation5 + $0x11c0] sm:$0xff] }
 0x169   :  { %8048 = vmatprep.subr.bf16.mxu0 %v14651_v2  ;;  %8478 = vmatprep.subr.bf16.mxu1 %v14653_v3  ;;  %v126_v2 = vld [vmem:[#allocation2 + $0x48] sm:$0xff]  ;;  %v14709_v7 = vcombine.high %v698_v63, %v702_v1  ;;  %v14708_v14 = vcombine.low %v698_v63, %v702_v1  ;;  %v749_v56 = vld [vmem:[#allocation5 + $0x11e0] sm:$0xff] }
 0x16a   :  { %v146_v3 = vld [vmem:[#allocation2 + $0xe8] sm:$0xff]  ;;  %v14755_v62 = vcombine.high %v745_v55, %v749_v56  ;;  %v753_v1 = vld [vmem:[#allocation5 + $0x1200] sm:$0xff] }
 0x16c   :  { %8049 = vmatpush1.bf16.msra.mxu0 %v14650_v8  ;;  %8479 = vmatpush1.bf16.msra.mxu1 %v14652_v9  ;;  %v705_v8 = vld [vmem:[#allocation5 + $0x1080] sm:$0xff] }
 0x16d   :  { %8050 = vmatprep.subr.bf16.mxu0 %v14659_v10  ;;  %8480 = vmatprep.subr.bf16.mxu1 %v14661_v11  ;;  %v709_v9 = vld [vmem:[#allocation5 + $0x10a0] sm:$0xff]  ;;  %v16802_v10 = vpack.c.bf16 %v146_v3, %v126_v2  ;;  %v706_v11 = vld [vmem:[#allocation5 + $0x1088] sm:$0xff] }
 0x16e   :  { %v14715_v16 = vcombine.high %v705_v8, %v709_v9  ;;  %v14714_v22 = vcombine.low %v705_v8, %v709_v9  ;;  %v14716_v23 = vcombine.low %v706_v11, %v710_v12  ;;  %v757_v2 = vld [vmem:[#allocation5 + $0x1220] sm:$0xff]  ;;  %v754_v3 = vld [vmem:[#allocation5 + $0x1208] sm:$0xff] }
 0x16f   :  { %v761_v9 = vld [vmem:[#allocation5 + $0x1240] sm:$0xff] }
 0x170   :  { %8051 = vmatpush1.bf16.msra.mxu0 %v14658_v17  ;;  %8481 = vmatpush1.bf16.msra.mxu1 %v14660_v18  ;;  %v14717_v17 = vcombine.high %v706_v11, %v710_v12  ;;  %v713_v18 = vld [vmem:[#allocation5 + $0x10c0] sm:$0xff]  ;;  %v762_v12 = vld [vmem:[#allocation5 + $0x1248] sm:$0xff] }
 0x171   :  { %8052 = vmatprep.subr.bf16.mxu0 %v14667_v19  ;;  %8482 = vmatprep.subr.bf16.mxu1 %v14669_v20  ;;  %v717_v19 = vld [vmem:[#allocation5 + $0x10e0] sm:$0xff]  ;;  %v714_v20 = vld [vmem:[#allocation5 + $0x10c8] sm:$0xff] }
 0x172   :  { %v14723_v24 = vcombine.high %v713_v18, %v717_v19  ;;  %v14722_v32 = vcombine.low %v713_v18, %v717_v19  ;;  %v14724_v33 = vcombine.low %v714_v20, %v718_v21  ;;  %v765_v11 = vld [vmem:[#allocation5 + $0x1260] sm:$0xff] }
 0x173   :  { %v769_v19 = vld [vmem:[#allocation5 + $0x1280] sm:$0xff] }
 0x174   :  { %8053 = vmatpush1.bf16.msra.mxu0 %v14666_v26  ;;  %8483 = vmatpush1.bf16.msra.mxu1 %v14668_v27  ;;  %v14725_v26 = vcombine.high %v714_v20, %v718_v21  ;;  %v721_v27 = vld [vmem:[#allocation5 + $0x1100] sm:$0xff]  ;;  %v770_v21 = vld [vmem:[#allocation5 + $0x1288] sm:$0xff] }
 0x175   :  { %8054 = vmatprep.subr.bf16.mxu0 %v14675_v28  ;;  %8484 = vmatprep.subr.bf16.mxu1 %v14677_v29  ;;  %v725_v28 = vld [vmem:[#allocation5 + $0x1120] sm:$0xff]  ;;  %v722_v29 = vld [vmem:[#allocation5 + $0x1108] sm:$0xff] }
 0x176   :  { %v14731_v34 = vcombine.high %v721_v27, %v725_v28  ;;  %v14730_v41 = vcombine.low %v721_v27, %v725_v28  ;;  %v14732_v42 = vcombine.low %v722_v29, %v726_v31  ;;  %v773_v20 = vld [vmem:[#allocation5 + $0x12a0] sm:$0xff] }
 0x177   :  { %v777_v28 = vld [vmem:[#allocation5 + $0x12c0] sm:$0xff] }
 0x178   :  { %8055 = vmatpush1.bf16.msra.mxu0 %v14674_v35  ;;  %8485 = vmatpush1.bf16.msra.mxu1 %v14676_v36  ;;  %v14733_v35 = vcombine.high %v722_v29, %v726_v31  ;;  %v729_v36 = vld [vmem:[#allocation5 + $0x1140] sm:$0xff]  ;;  %v778_v31 = vld [vmem:[#allocation5 + $0x12c8] sm:$0xff] }
 0x179   :  { %8056 = vmatprep.subr.bf16.mxu0 %v14683_v38  ;;  %8486 = vmatprep.subr.bf16.mxu1 %v14685_v39  ;;  %v733_v38 = vld [vmem:[#allocation5 + $0x1160] sm:$0xff]  ;;  %v730_v39 = vld [vmem:[#allocation5 + $0x1148] sm:$0xff] }
 0x17a   :  { %v14739_v44 = vcombine.high %v729_v36, %v733_v38  ;;  %v14738_v50 = vcombine.low %v729_v36, %v733_v38  ;;  %v14740_v51 = vcombine.low %v730_v39, %v734_v40  ;;  %v781_v29 = vld [vmem:[#allocation5 + $0x12e0] sm:$0xff] }
 0x17b   :  { %v785_v38 = vld [vmem:[#allocation5 + $0x1300] sm:$0xff] }
 0x17c   :  { %8057 = vmatpush1.bf16.msra.mxu0 %v14682_v45  ;;  %8487 = vmatpush1.bf16.msra.mxu1 %v14684_v46  ;;  %v14741_v45 = vcombine.high %v730_v39, %v734_v40  ;;  %v737_v46 = vld [vmem:[#allocation5 + $0x1180] sm:$0xff]  ;;  %v786_v40 = vld [vmem:[#allocation5 + $0x1308] sm:$0xff] }
 0x17d   :  { %8058 = vmatprep.subr.bf16.mxu0 %v14691_v47  ;;  %8488 = vmatprep.subr.bf16.mxu1 %v14693_v48  ;;  %v741_v47 = vld [vmem:[#allocation5 + $0x11a0] sm:$0xff]  ;;  %v738_v48 = vld [vmem:[#allocation5 + $0x1188] sm:$0xff] }
 0x17e   :  { %v14747_v52 = vcombine.high %v737_v46, %v741_v47  ;;  %v14748_v61 = vcombine.low %v738_v48, %v742_v49  ;;  %v789_v39 = vld [vmem:[#allocation5 + $0x1320] sm:$0xff] }
 0x180   :  { %8059 = vmatpush1.bf16.msra.mxu0 %v14690_v54  ;;  %8489 = vmatpush1.bf16.msra.mxu1 %v14692_v57  ;;  %v14749_v54 = vcombine.high %v738_v48, %v742_v49  ;;  %v746_v57 = vld [vmem:[#allocation5 + $0x11c8] sm:$0xff]  ;;  %v797_v48 = vld [vmem:[#allocation5 + $0x1360] sm:$0xff] }
 0x181   :  { %8071 = vmatprep.subr.bf16.mxu0 %v14699_v59  ;;  %8501 = vmatprep.subr.bf16.mxu1 %v14701_v60  ;;  %v750_v59 = vld [vmem:[#allocation5 + $0x11e8] sm:$0xff]  ;;  %v14746_v60 = vcombine.low %v737_v46, %v741_v47  ;;  %v793_v47 = vld [vmem:[#allocation5 + $0x1340] sm:$0xff] }
 0x182   :  { %v14757_v63 = vcombine.high %v746_v57, %v750_v59  ;;  %v794_v49 = vld [vmem:[#allocation5 + $0x1348] sm:$0xff] }
 0x183   :  { %8061 = vmatmul.mubr.bf16.vlgmr.msra.gmra.mrb[0].mxu0 %v16800_v0  ;;  %8491 = vmatmul.mubr.bf16.vlgmr.msra.gmra.mrb[0].mxu1 %v16800_v0 }
 0x184   :  { %8072 = vmatpush1.bf16.msra.mxu0 %v14698_v4  ;;  %8502 = vmatpush1.bf16.msra.mxu1 %v14700_v5  ;;  %v758_v4 = vld [vmem:[#allocation5 + $0x1228] sm:$0xff]  ;;  %v14754_v5 = vcombine.low %v745_v55, %v749_v56  ;;  %v801_v56 = vld [vmem:[#allocation5 + $0x1380] sm:$0xff] }
 0x185   :  { %8073 = vmatprep.subr.bf16.mxu0 %v14707_v6  ;;  %8503 = vmatprep.subr.bf16.mxu1 %v14709_v7  ;;  %v14756_v6 = vcombine.low %v746_v57, %v750_v59  ;;  %v14763_v7 = vcombine.high %v753_v1, %v757_v2  ;;  %v14765_v8 = vcombine.high %v754_v3, %v758_v4  ;;  %v805_v57 = vld [vmem:[#allocation5 + $0x13a0] sm:$0xff]  ;;  %v802_v59 = vld [vmem:[#allocation5 + $0x1388] sm:$0xff] }
 0x186   :  { %8103 = vmatprep.mubr.bf16.mxu0 %v16802_v10  ;;  %8533 = vmatprep.mubr.bf16.mxu1 %v16802_v10 }
 0x188   :  { %8074 = vmatpush1.bf16.msra.mxu0 %v14706_v13  ;;  %8504 = vmatpush1.bf16.msra.mxu1 %v14708_v14  ;;  %v766_v13 = vld [vmem:[#allocation5 + $0x1268] sm:$0xff]  ;;  %v14762_v14 = vcombine.low %v753_v1, %v757_v2  ;;  %v809_v2 = vld [vmem:[#allocation5 + $0x13c0] sm:$0xff] }
 0x189   :  { %8075 = vmatprep.subr.bf16.mxu0 %v14715_v16  ;;  %8505 = vmatprep.subr.bf16.mxu1 %v14717_v17  ;;  %v14764_v16 = vcombine.low %v754_v3, %v758_v4  ;;  %v14771_v17 = vcombine.high %v761_v9, %v765_v11  ;;  %v14773_v18 = vcombine.high %v762_v12, %v766_v13  ;;  %v813_v3 = vld [vmem:[#allocation5 + $0x13e0] sm:$0xff]  ;;  %v810_v4 = vld [vmem:[#allocation5 + $0x13c8] sm:$0xff] }
 0x18c   :  { %8076 = vmatpush1.bf16.msra.mxu0 %v14714_v22  ;;  %8506 = vmatpush1.bf16.msra.mxu1 %v14716_v23  ;;  %v774_v22 = vld [vmem:[#allocation5 + $0x12a8] sm:$0xff]  ;;  %v14770_v23 = vcombine.low %v761_v9, %v765_v11  ;;  %v817_v11 = vld [vmem:[#allocation5 + $0x1400] sm:$0xff] }
 0x18d   :  { %8077 = vmatprep.subr.bf16.mxu0 %v14723_v24  ;;  %8507 = vmatprep.subr.bf16.mxu1 %v14725_v26  ;;  %v14772_v24 = vcombine.low %v762_v12, %v766_v13  ;;  %v14779_v26 = vcombine.high %v769_v19, %v773_v20  ;;  %v14781_v27 = vcombine.high %v770_v21, %v774_v22  ;;  %v821_v12 = vld [vmem:[#allocation5 + $0x1420] sm:$0xff]  ;;  %v818_v13 = vld [vmem:[#allocation5 + $0x1408] sm:$0xff] }
 0x190   :  { %8078 = vmatpush1.bf16.msra.mxu0 %v14722_v32  ;;  %8508 = vmatpush1.bf16.msra.mxu1 %v14724_v33  ;;  %v782_v32 = vld [vmem:[#allocation5 + $0x12e8] sm:$0xff]  ;;  %v14778_v33 = vcombine.low %v769_v19, %v773_v20  ;;  %v14827_v20 = vcombine.high %v817_v11, %v821_v12 }
 0x191   :  { %8079 = vmatprep.subr.bf16.mxu0 %v14731_v34  ;;  %8509 = vmatprep.subr.bf16.mxu1 %v14733_v35  ;;  %v14780_v34 = vcombine.low %v770_v21, %v774_v22  ;;  %v14787_v35 = vcombine.high %v777_v28, %v781_v29  ;;  %v14789_v36 = vcombine.high %v778_v31, %v782_v32  ;;  %v825_v22 = vld [vmem:[#allocation5 + $0x1440] sm:$0xff] }
 0x194   :  { %8080 = vmatpush1.bf16.msra.mxu0 %v14730_v41  ;;  %8510 = vmatpush1.bf16.msra.mxu1 %v14732_v42  ;;  %v790_v41 = vld [vmem:[#allocation5 + $0x1328] sm:$0xff]  ;;  %v14786_v42 = vcombine.low %v777_v28, %v781_v29  ;;  %v128_v28 = vld [vmem:[#allocation2 + $0x58] sm:$0xff] }
 0x195   :  { %8081 = vmatprep.subr.bf16.mxu0 %v14739_v44  ;;  %8511 = vmatprep.subr.bf16.mxu1 %v14741_v45  ;;  %v14788_v44 = vcombine.low %v778_v31, %v782_v32  ;;  %v14795_v45 = vcombine.high %v785_v38, %v789_v39  ;;  %v14797_v46 = vcombine.high %v786_v40, %v790_v41  ;;  %v148_v29 = vld [vmem:[#allocation2 + $0xf8] sm:$0xff] }
 0x196   :  { %v14826_v31 = vcombine.low %v817_v11, %v821_v12  ;;  %v869_v11 = vld [vmem:[#allocation5 + $0x15a0] sm:$0xff]  ;;  %v866_v12 = vld [vmem:[#allocation5 + $0x1588] sm:$0xff] }
 0x198   :  { %8082 = vmatpush1.bf16.msra.mxu0 %v14738_v50  ;;  %8512 = vmatpush1.bf16.msra.mxu1 %v14740_v51  ;;  %v798_v50 = vld [vmem:[#allocation5 + $0x1368] sm:$0xff]  ;;  %v14794_v51 = vcombine.low %v785_v38, %v789_v39  ;;  %v16810_v38 = vpack.c.bf16 %v148_v29, %v128_v28  ;;  %v881_v29 = vld [vmem:[#allocation5 + $0x1600] sm:$0xff] }
 0x199   :  { %8083 = vmatprep.subr.bf16.mxu0 %v14747_v52  ;;  %8513 = vmatprep.subr.bf16.mxu1 %v14749_v54  ;;  %v14796_v52 = vcombine.low %v786_v40, %v790_v41  ;;  %v14803_v54 = vcombine.high %v793_v47, %v797_v48  ;;  %v14805_v55 = vcombine.high %v794_v49, %v798_v50  ;;  %v834_v39 = vld [vmem:[#allocation5 + $0x1488] sm:$0xff] }
 0x19a   :  { %v838_v40 = vld [vmem:[#allocation5 + $0x14a8] sm:$0xff] }
 0x19c   :  { %8084 = vmatpush1.bf16.msra.mxu0 %v14746_v60  ;;  %8514 = vmatpush1.bf16.msra.mxu1 %v14748_v61  ;;  %v806_v60 = vld [vmem:[#allocation5 + $0x13a8] sm:$0xff]  ;;  %v14802_v61 = vcombine.low %v793_v47, %v797_v48  ;;  %v845_v47 = vld [vmem:[#allocation5 + $0x14e0] sm:$0xff] }
 0x19d   :  { %8085 = vmatprep.subr.bf16.mxu0 %v14755_v62  ;;  %8515 = vmatprep.subr.bf16.mxu1 %v14757_v63  ;;  %v14804_v62 = vcombine.low %v794_v49, %v798_v50  ;;  %v14811_v63 = vcombine.high %v801_v56, %v805_v57  ;;  %v14813_v1 = vcombine.high %v802_v59, %v806_v60  ;;  %v842_v48 = vld [vmem:[#allocation5 + $0x14c8] sm:$0xff] }
 0x19e   :  { %v846_v49 = vld [vmem:[#allocation5 + $0x14e8] sm:$0xff] }
 0x1a0   :  { %8086 = vmatpush1.bf16.msra.mxu0 %v14754_v5  ;;  %8516 = vmatpush1.bf16.msra.mxu1 %v14756_v6  ;;  %v814_v5 = vld [vmem:[#allocation5 + $0x13e8] sm:$0xff]  ;;  %v14810_v6 = vcombine.low %v801_v56, %v805_v57  ;;  %v853_v56 = vld [vmem:[#allocation5 + $0x1520] sm:$0xff] }
 0x1a1   :  { %8087 = vmatprep.subr.bf16.mxu0 %v14763_v7  ;;  %8517 = vmatprep.subr.bf16.mxu1 %v14765_v8  ;;  %v14812_v7 = vcombine.low %v802_v59, %v806_v60  ;;  %v14819_v8 = vcombine.high %v809_v2, %v813_v3  ;;  %v14821_v9 = vcombine.high %v810_v4, %v814_v5  ;;  %v850_v57 = vld [vmem:[#allocation5 + $0x1508] sm:$0xff] }
 0x1a2   :  { %v14820_v19 = vcombine.low %v810_v4, %v814_v5  ;;  %v854_v59 = vld [vmem:[#allocation5 + $0x1528] sm:$0xff] }
 0x1a3   :  { %v862_v4 = vld [vmem:[#allocation5 + $0x1568] sm:$0xff] }
 0x1a4   :  { %8088 = vmatpush1.bf16.msra.mxu0 %v14762_v14  ;;  %8518 = vmatpush1.bf16.msra.mxu1 %v14764_v16  ;;  %v822_v14 = vld [vmem:[#allocation5 + $0x1428] sm:$0xff]  ;;  %v14818_v16 = vcombine.low %v809_v2, %v813_v3  ;;  %v861_v2 = vld [vmem:[#allocation5 + $0x1560] sm:$0xff] }
 0x1a5   :  { %8089 = vmatprep.subr.bf16.mxu0 %v14771_v17  ;;  %8519 = vmatprep.subr.bf16.mxu1 %v14773_v18  ;;  %v125_v17 = vld [vmem:[#allocation2 + $0x40] sm:$0xff]  ;;  %v14829_v21 = vcombine.high %v818_v13, %v822_v14  ;;  %v14828_v32 = vcombine.low %v818_v13, %v822_v14  ;;  %v858_v3 = vld [vmem:[#allocation5 + $0x1548] sm:$0xff] }
 0x1a6   :  { %v145_v18 = vld [vmem:[#allocation2 + $0xe0] sm:$0xff]  ;;  %v870_v13 = vld [vmem:[#allocation5 + $0x15a8] sm:$0xff] }
 0x1a8   :  { %8090 = vmatpush1.bf16.msra.mxu0 %v14770_v23  ;;  %8520 = vmatpush1.bf16.msra.mxu1 %v14772_v24  ;;  %v829_v23 = vld [vmem:[#allocation5 + $0x1460] sm:$0xff]  ;;  %v826_v24 = vld [vmem:[#allocation5 + $0x1448] sm:$0xff] }
 0x1a9   :  { %8091 = vmatprep.subr.bf16.mxu0 %v14779_v26  ;;  %8521 = vmatprep.subr.bf16.mxu1 %v14781_v27  ;;  %v16808_v26 = vpack.c.bf16 %v145_v18, %v125_v17  ;;  %v830_v27 = vld [vmem:[#allocation5 + $0x1468] sm:$0xff]  ;;  %v14834_v41 = vcombine.low %v825_v22, %v829_v23  ;;  %v14877_v18 = vcombine.high %v866_v12, %v870_v13 }
 0x1ac   :  { %8092 = vmatpush1.bf16.msra.mxu0 %v14778_v33  ;;  %8522 = vmatpush1.bf16.msra.mxu1 %v14780_v34  ;;  %v14835_v33 = vcombine.high %v825_v22, %v829_v23  ;;  %v14837_v34 = vcombine.high %v826_v24, %v830_v27  ;;  %v878_v22 = vld [vmem:[#allocation5 + $0x15e8] sm:$0xff] }
 0x1ad   :  { %8093 = vmatprep.subr.bf16.mxu0 %v14787_v35  ;;  %8523 = vmatprep.subr.bf16.mxu1 %v14789_v36  ;;  %v833_v35 = vld [vmem:[#allocation5 + $0x1480] sm:$0xff] }
 0x1ae   :  { %v837_v36 = vld [vmem:[#allocation5 + $0x14a0] sm:$0xff] }
 0x1af   :  { %v14842_v50 = vcombine.low %v833_v35, %v837_v36 }
 0x1b0   :  { %8094 = vmatpush1.bf16.msra.mxu0 %v14786_v42  ;;  %8524 = vmatpush1.bf16.msra.mxu1 %v14788_v44  ;;  %v14836_v42 = vcombine.low %v826_v24, %v830_v27  ;;  %v14843_v44 = vcombine.high %v833_v35, %v837_v36  ;;  %v14876_v24 = vcombine.low %v866_v12, %v870_v13  ;;  %v921_v13 = vld [vmem:[#allocation5 + $0x1740] sm:$0xff] }
 0x1b1   :  { %8095 = vmatprep.subr.bf16.mxu0 %v14795_v45  ;;  %8525 = vmatprep.subr.bf16.mxu1 %v14797_v46  ;;  %v14845_v45 = vcombine.high %v834_v39, %v838_v40  ;;  %v841_v46 = vld [vmem:[#allocation5 + $0x14c0] sm:$0xff] }
 0x1b2   :  { %v14850_v60 = vcombine.low %v841_v46, %v845_v47 }
 0x1b4   :  { %8096 = vmatpush1.bf16.msra.mxu0 %v14794_v51  ;;  %8526 = vmatpush1.bf16.msra.mxu1 %v14796_v52  ;;  %v14844_v51 = vcombine.low %v834_v39, %v838_v40  ;;  %v14851_v52 = vcombine.high %v841_v46, %v845_v47  ;;  %v889_v40 = vld [vmem:[#allocation5 + $0x1640] sm:$0xff] }
 0x1b5   :  { %8097 = vmatprep.subr.bf16.mxu0 %v14803_v54  ;;  %8527 = vmatprep.subr.bf16.mxu1 %v14805_v55  ;;  %v14853_v54 = vcombine.high %v842_v48, %v846_v49  ;;  %v849_v55 = vld [vmem:[#allocation5 + $0x1500] sm:$0xff] }
 0x1b6   :  { %v14858_v5 = vcombine.low %v849_v55, %v853_v56 }
 0x1b8   :  { %8098 = vmatpush1.bf16.msra.mxu0 %v14802_v61  ;;  %8528 = vmatpush1.bf16.msra.mxu1 %v14804_v62  ;;  %v14852_v61 = vcombine.low %v842_v48, %v846_v49  ;;  %v14859_v62 = vcombine.high %v849_v55, %v853_v56  ;;  %v897_v49 = vld [vmem:[#allocation5 + $0x1680] sm:$0xff] }
 0x1b9   :  { %8099 = vmatprep.subr.bf16.mxu0 %v14811_v63  ;;  %8529 = vmatprep.subr.bf16.mxu1 %v14813_v1  ;;  %v14861_v63 = vcombine.high %v850_v57, %v854_v59  ;;  %v857_v1 = vld [vmem:[#allocation5 + $0x1540] sm:$0xff] }
 0x1ba   :  { %v14866_v14 = vcombine.low %v857_v1, %v861_v2 }
 0x1bc   :  { %8100 = vmatpush1.bf16.msra.mxu0 %v14810_v6  ;;  %8530 = vmatpush1.bf16.msra.mxu1 %v14812_v7  ;;  %v14860_v6 = vcombine.low %v850_v57, %v854_v59  ;;  %v14867_v7 = vcombine.high %v857_v1, %v861_v2  ;;  %v905_v59 = vld [vmem:[#allocation5 + $0x16c0] sm:$0xff] }
 0x1bd   :  { %8101 = vmatprep.subr.bf16.mxu0 %v14819_v8  ;;  %8531 = vmatprep.subr.bf16.mxu1 %v14821_v9  ;;  %v14869_v8 = vcombine.high %v858_v3, %v862_v4  ;;  %v865_v9 = vld [vmem:[#allocation5 + $0x1580] sm:$0xff] }
 0x1be   :  { %v14875_v17 = vcombine.high %v865_v9, %v869_v11  ;;  %v14874_v23 = vcombine.low %v865_v9, %v869_v11 }
 0x1c0   :  { %8102 = vmatpush1.bf16.msra.mxu0 %v14818_v16  ;;  %8532 = vmatpush1.bf16.msra.mxu1 %v14820_v19  ;;  %v14868_v16 = vcombine.low %v858_v3, %v862_v4  ;;  %v873_v19 = vld [vmem:[#allocation5 + $0x15c0] sm:$0xff] }
 0x1c1   :  { %8114 = vmatprep.subr.bf16.mxu0 %v14827_v20  ;;  %8544 = vmatprep.subr.bf16.mxu1 %v14829_v21  ;;  %v877_v20 = vld [vmem:[#allocation5 + $0x15e0] sm:$0xff]  ;;  %v874_v21 = vld [vmem:[#allocation5 + $0x15c8] sm:$0xff] }
 0x1c2   :  { %v14883_v27 = vcombine.high %v873_v19, %v877_v20  ;;  %v14885_v28 = vcombine.high %v874_v21, %v878_v22  ;;  %v14884_v35 = vcombine.low %v874_v21, %v878_v22  ;;  %v913_v4 = vld [vmem:[#allocation5 + $0x1700] sm:$0xff] }
 0x1c3   :  { %8104 = vmatmul.mubr.bf16.vlgmr.msra.gmra.mrb[0].mxu0 %v16808_v26  ;;  %8534 = vmatmul.mubr.bf16.vlgmr.msra.gmra.mrb[0].mxu1 %v16808_v26  ;;  %v929_v22 = vld [vmem:[#allocation5 + $0x1780] sm:$0xff] }
 0x1c4   :  { %8115 = vmatpush1.bf16.msra.mxu0 %v14826_v31  ;;  %8545 = vmatpush1.bf16.msra.mxu1 %v14828_v32  ;;  %v885_v31 = vld [vmem:[#allocation5 + $0x1620] sm:$0xff]  ;;  %v882_v32 = vld [vmem:[#allocation5 + $0x1608] sm:$0xff] }
 0x1c5   :  { %8116 = vmatprep.subr.bf16.mxu0 %v14835_v33  ;;  %8546 = vmatprep.subr.bf16.mxu1 %v14837_v34  ;;  %v886_v33 = vld [vmem:[#allocation5 + $0x1628] sm:$0xff]  ;;  %v14882_v34 = vcombine.low %v873_v19, %v877_v20  ;;  %v14891_v36 = vcombine.high %v881_v29, %v885_v31 }
 0x1c6   :  { %8146 = vmatprep.mubr.bf16.mxu0 %v16810_v38  ;;  %8576 = vmatprep.mubr.bf16.mxu1 %v16810_v38  ;;  %v14893_v39 = vcombine.high %v882_v32, %v886_v33  ;;  %v14892_v46 = vcombine.low %v882_v32, %v886_v33  ;;  %v937_v33 = vld [vmem:[#allocation5 + $0x17c0] sm:$0xff] }
 0x1c8   :  { %8117 = vmatpush1.bf16.msra.mxu0 %v14834_v41  ;;  %8547 = vmatpush1.bf16.msra.mxu1 %v14836_v42  ;;  %v893_v41 = vld [vmem:[#allocation5 + $0x1660] sm:$0xff]  ;;  %v890_v42 = vld [vmem:[#allocation5 + $0x1648] sm:$0xff] }
 0x1c9   :  { %8118 = vmatprep.subr.bf16.mxu0 %v14843_v44  ;;  %8548 = vmatprep.subr.bf16.mxu1 %v14845_v45  ;;  %v894_v44 = vld [vmem:[#allocation5 + $0x1668] sm:$0xff]  ;;  %v14890_v45 = vcombine.low %v881_v29, %v885_v31  ;;  %v14899_v47 = vcombine.high %v889_v40, %v893_v41 }
 0x1ca   :  { %v14901_v48 = vcombine.high %v890_v42, %v894_v44  ;;  %v14900_v55 = vcombine.low %v890_v42, %v894_v44  ;;  %v945_v44 = vld [vmem:[#allocation5 + $0x1800] sm:$0xff] }
 0x1cc   :  { %8119 = vmatpush1.bf16.msra.mxu0 %v14842_v50  ;;  %8549 = vmatpush1.bf16.msra.mxu1 %v14844_v51  ;;  %v901_v50 = vld [vmem:[#allocation5 + $0x16a0] sm:$0xff]  ;;  %v898_v51 = vld [vmem:[#allocation5 + $0x1688] sm:$0xff] }
 0x1cd   :  { %8120 = vmatprep.subr.bf16.mxu0 %v14851_v52  ;;  %8550 = vmatprep.subr.bf16.mxu1 %v14853_v54  ;;  %v902_v52 = vld [vmem:[#allocation5 + $0x16a8] sm:$0xff]  ;;  %v14898_v54 = vcombine.low %v889_v40, %v893_v41  ;;  %v14907_v56 = vcombine.high %v897_v49, %v901_v50 }
 0x1ce   :  { %v14909_v57 = vcombine.high %v898_v51, %v902_v52  ;;  %v14908_v1 = vcombine.low %v898_v51, %v902_v52 }
 0x1d0   :  { %8121 = vmatpush1.bf16.msra.mxu0 %v14850_v60  ;;  %8551 = vmatpush1.bf16.msra.mxu1 %v14852_v61  ;;  %v909_v60 = vld [vmem:[#allocation5 + $0x16e0] sm:$0xff]  ;;  %v906_v61 = vld [vmem:[#allocation5 + $0x16c8] sm:$0xff] }
 0x1d1   :  { %8122 = vmatprep.subr.bf16.mxu0 %v14859_v62  ;;  %8552 = vmatprep.subr.bf16.mxu1 %v14861_v63  ;;  %v910_v62 = vld [vmem:[#allocation5 + $0x16e8] sm:$0xff]  ;;  %v14906_v63 = vcombine.low %v897_v49, %v901_v50  ;;  %v14915_v2 = vcombine.high %v905_v59, %v909_v60  ;;  %v127_v49 = vld [vmem:[#allocation2 + $0x50] sm:$0xff] }
 0x1d2   :  { %v14917_v3 = vcombine.high %v906_v61, %v910_v62  ;;  %v14916_v9 = vcombine.low %v906_v61, %v910_v62  ;;  %v147_v50 = vld [vmem:[#allocation2 + $0xf0] sm:$0xff]  ;;  %v130_v61 = vld [vmem:[#allocation2 + $0x68] sm:$0xff] }
 0x1d3   :  { %v150_v62 = vld [vmem:[#allocation2 + $0x108] sm:$0xff] }
 0x1d4   :  { %8123 = vmatpush1.bf16.msra.mxu0 %v14858_v5  ;;  %8553 = vmatpush1.bf16.msra.mxu1 %v14860_v6  ;;  %v917_v5 = vld [vmem:[#allocation5 + $0x1720] sm:$0xff]  ;;  %v914_v6 = vld [vmem:[#allocation5 + $0x1708] sm:$0xff] }
 0x1d5   :  { %8124 = vmatprep.subr.bf16.mxu0 %v14867_v7  ;;  %8554 = vmatprep.subr.bf16.mxu1 %v14869_v8  ;;  %v918_v7 = vld [vmem:[#allocation5 + $0x1728] sm:$0xff]  ;;  %v14914_v8 = vcombine.low %v905_v59, %v909_v60  ;;  %v14923_v11 = vcombine.high %v913_v4, %v917_v5  ;;  %v16816_v59 = vpack.c.bf16 %v147_v50, %v127_v49 }
 0x1d6   :  { %v14925_v12 = vcombine.high %v914_v6, %v918_v7  ;;  %v14924_v19 = vcombine.low %v914_v6, %v918_v7  ;;  %v958_v60 = vld [vmem:[#allocation5 + $0x1868] sm:$0xff]  ;;  %v16818_v6 = vpack.c.bf16 %v150_v62, %v130_v61 }
 0x1d7   :  { %v962_v7 = vld [vmem:[#allocation5 + $0x1888] sm:$0xff] }
 0x1d8   :  { %8125 = vmatpush1.bf16.msra.mxu0 %v14866_v14  ;;  %8555 = vmatpush1.bf16.msra.mxu1 %v14868_v16  ;;  %v925_v14 = vld [vmem:[#allocation5 + $0x1760] sm:$0xff]  ;;  %v922_v16 = vld [vmem:[#allocation5 + $0x1748] sm:$0xff] }
 0x1d9   :  { %8126 = vmatprep.subr.bf16.mxu0 %v14875_v17  ;;  %8556 = vmatprep.subr.bf16.mxu1 %v14877_v18  ;;  %v926_v17 = vld [vmem:[#allocation5 + $0x1768] sm:$0xff]  ;;  %v14922_v18 = vcombine.low %v913_v4, %v917_v5  ;;  %v14931_v20 = vcombine.high %v921_v13, %v925_v14  ;;  %v961_v4 = vld [vmem:[#allocation5 + $0x1880] sm:$0xff] }
 0x1da   :  { %v14933_v21 = vcombine.high %v922_v16, %v926_v17  ;;  %v14932_v29 = vcombine.low %v922_v16, %v926_v17  ;;  %v965_v5 = vld [vmem:[#allocation5 + $0x18a0] sm:$0xff]  ;;  %v970_v17 = vld [vmem:[#allocation5 + $0x18c8] sm:$0xff] }
 0x1db   :  { %v973_v16 = vld [vmem:[#allocation5 + $0x18e0] sm:$0xff] }
 0x1dc   :  { %8127 = vmatpush1.bf16.msra.mxu0 %v14874_v23  ;;  %8557 = vmatpush1.bf16.msra.mxu1 %v14876_v24  ;;  %v933_v23 = vld [vmem:[#allocation5 + $0x17a0] sm:$0xff]  ;;  %v930_v24 = vld [vmem:[#allocation5 + $0x1788] sm:$0xff] }
 0x1dd   :  { %8128 = vmatprep.subr.bf16.mxu0 %v14883_v27  ;;  %8558 = vmatprep.subr.bf16.mxu1 %v14885_v28  ;;  %v934_v27 = vld [vmem:[#allocation5 + $0x17a8] sm:$0xff]  ;;  %v14930_v28 = vcombine.low %v921_v13, %v925_v14  ;;  %v14939_v31 = vcombine.high %v929_v22, %v933_v23  ;;  %v969_v14 = vld [vmem:[#allocation5 + $0x18c0] sm:$0xff] }
 0x1de   :  { %v14941_v32 = vcombine.high %v930_v24, %v934_v27  ;;  %v14940_v40 = vcombine.low %v930_v24, %v934_v27  ;;  %v981_v24 = vld [vmem:[#allocation5 + $0x1920] sm:$0xff]  ;;  %v978_v27 = vld [vmem:[#allocation5 + $0x1908] sm:$0xff] }
 0x1e0   :  { %8129 = vmatpush1.bf16.msra.mxu0 %v14882_v34  ;;  %8559 = vmatpush1.bf16.msra.mxu1 %v14884_v35  ;;  %v941_v34 = vld [vmem:[#allocation5 + $0x17e0] sm:$0xff]  ;;  %v938_v35 = vld [vmem:[#allocation5 + $0x17c8] sm:$0xff] }
 0x1e1   :  { %8130 = vmatprep.subr.bf16.mxu0 %v14891_v36  ;;  %8560 = vmatprep.subr.bf16.mxu1 %v14893_v39  ;;  %v942_v36 = vld [vmem:[#allocation5 + $0x17e8] sm:$0xff]  ;;  %v14938_v39 = vcombine.low %v929_v22, %v933_v23  ;;  %v14947_v41 = vcombine.high %v937_v33, %v941_v34  ;;  %v977_v23 = vld [vmem:[#allocation5 + $0x1900] sm:$0xff] }
 0x1e2   :  { %v14949_v42 = vcombine.high %v938_v35, %v942_v36  ;;  %v14948_v51 = vcombine.low %v938_v35, %v942_v36  ;;  %v989_v35 = vld [vmem:[#allocation5 + $0x1960] sm:$0xff]  ;;  %v986_v36 = vld [vmem:[#allocation5 + $0x1948] sm:$0xff] }
 0x1e4   :  { %8131 = vmatpush1.bf16.msra.mxu0 %v14890_v45  ;;  %8561 = vmatpush1.bf16.msra.mxu1 %v14892_v46  ;;  %v949_v45 = vld [vmem:[#allocation5 + $0x1820] sm:$0xff]  ;;  %v946_v46 = vld [vmem:[#allocation5 + $0x1808] sm:$0xff] }
 0x1e5   :  { %8132 = vmatprep.subr.bf16.mxu0 %v14899_v47  ;;  %8562 = vmatprep.subr.bf16.mxu1 %v14901_v48  ;;  %v950_v47 = vld [vmem:[#allocation5 + $0x1828] sm:$0xff]  ;;  %v14946_v48 = vcombine.low %v937_v33, %v941_v34  ;;  %v14955_v52 = vcombine.high %v945_v44, %v949_v45  ;;  %v985_v34 = vld [vmem:[#allocation5 + $0x1940] sm:$0xff] }
 0x1e6   :  { %v14994_v49 = vcombine.low %v985_v34, %v989_v35 }
 0x1e8   :  { %8133 = vmatpush1.bf16.msra.mxu0 %v14898_v54  ;;  %8563 = vmatpush1.bf16.msra.mxu1 %v14900_v55  ;;  %v14957_v54 = vcombine.high %v946_v46, %v950_v47  ;;  %v953_v55 = vld [vmem:[#allocation5 + $0x1840] sm:$0xff] }
 0x1e9   :  { %8134 = vmatprep.subr.bf16.mxu0 %v14907_v56  ;;  %8564 = vmatprep.subr.bf16.mxu1 %v14909_v57  ;;  %v957_v56 = vld [vmem:[#allocation5 + $0x1860] sm:$0xff]  ;;  %v954_v57 = vld [vmem:[#allocation5 + $0x1848] sm:$0xff] }
 0x1ec   :  { %8135 = vmatpush1.bf16.msra.mxu0 %v14906_v63  ;;  %8565 = vmatpush1.bf16.msra.mxu1 %v14908_v1  ;;  %v14954_v63 = vcombine.low %v945_v44, %v949_v45  ;;  %v14956_v1 = vcombine.low %v946_v46, %v950_v47  ;;  %v993_v45 = vld [vmem:[#allocation5 + $0x1980] sm:$0xff]  ;;  %v994_v47 = vld [vmem:[#allocation5 + $0x1988] sm:$0xff] }
 0x1ed   :  { %8136 = vmatprep.subr.bf16.mxu0 %v14915_v2  ;;  %8566 = vmatprep.subr.bf16.mxu1 %v14917_v3  ;;  %v14963_v2 = vcombine.high %v953_v55, %v957_v56  ;;  %v14965_v3 = vcombine.high %v954_v57, %v958_v60  ;;  %v997_v46 = vld [vmem:[#allocation5 + $0x19a0] sm:$0xff] }
 0x1f0   :  { %8137 = vmatpush1.bf16.msra.mxu0 %v14914_v8  ;;  %8567 = vmatpush1.bf16.msra.mxu1 %v14916_v9  ;;  %v966_v8 = vld [vmem:[#allocation5 + $0x18a8] sm:$0xff]  ;;  %v14962_v9 = vcombine.low %v953_v55, %v957_v56  ;;  %v1005_v55 = vld [vmem:[#allocation5 + $0x19e0] sm:$0xff] }
 0x1f1   :  { %8138 = vmatprep.subr.bf16.mxu0 %v14923_v11  ;;  %8568 = vmatprep.subr.bf16.mxu1 %v14925_v12  ;;  %v14964_v11 = vcombine.low %v954_v57, %v958_v60  ;;  %v14971_v12 = vcombine.high %v961_v4, %v965_v5  ;;  %v14973_v13 = vcombine.high %v962_v7, %v966_v8  ;;  %v1002_v56 = vld [vmem:[#allocation5 + $0x19c8] sm:$0xff] }
 0x1f2   :  { %v1006_v57 = vld [vmem:[#allocation5 + $0x19e8] sm:$0xff]  ;;  %v15002_v60 = vcombine.low %v993_v45, %v997_v46 }
 0x1f4   :  { %8139 = vmatpush1.bf16.msra.mxu0 %v14922_v18  ;;  %8569 = vmatpush1.bf16.msra.mxu1 %v14924_v19  ;;  %v974_v18 = vld [vmem:[#allocation5 + $0x18e8] sm:$0xff]  ;;  %v14970_v19 = vcombine.low %v961_v4, %v965_v5 }
 0x1f5   :  { %8140 = vmatprep.subr.bf16.mxu0 %v14931_v20  ;;  %8570 = vmatprep.subr.bf16.mxu1 %v14933_v21  ;;  %v14972_v20 = vcombine.low %v962_v7, %v966_v8  ;;  %v14979_v21 = vcombine.high %v969_v14, %v973_v16  ;;  %v14981_v22 = vcombine.high %v970_v17, %v974_v18  ;;  %v1014_v4 = vld [vmem:[#allocation5 + $0x1a28] sm:$0xff] }
 0x1f6   :  { %v15012_v7 = vcombine.low %v1002_v56, %v1006_v57 }
 0x1f8   :  { %8141 = vmatpush1.bf16.msra.mxu0 %v14930_v28  ;;  %8571 = vmatpush1.bf16.msra.mxu1 %v14932_v29  ;;  %v982_v28 = vld [vmem:[#allocation5 + $0x1928] sm:$0xff]  ;;  %v14978_v29 = vcombine.low %v969_v14, %v973_v16 }
 0x1f9   :  { %8142 = vmatprep.subr.bf16.mxu0 %v14939_v31  ;;  %8572 = vmatprep.subr.bf16.mxu1 %v14941_v32  ;;  %v14980_v31 = vcombine.low %v970_v17, %v974_v18  ;;  %v14987_v32 = vcombine.high %v977_v23, %v981_v24  ;;  %v14989_v33 = vcombine.high %v978_v27, %v982_v28  ;;  %v1022_v14 = vld [vmem:[#allocation5 + $0x1a68] sm:$0xff] }
 0x1fc   :  { %8143 = vmatpush1.bf16.msra.mxu0 %v14938_v39  ;;  %8573 = vmatpush1.bf16.msra.mxu1 %v14940_v40  ;;  %v990_v39 = vld [vmem:[#allocation5 + $0x1968] sm:$0xff]  ;;  %v14986_v40 = vcombine.low %v977_v23, %v981_v24 }
 0x1fd   :  { %8144 = vmatprep.subr.bf16.mxu0 %v14947_v41  ;;  %8574 = vmatprep.subr.bf16.mxu1 %v14949_v42  ;;  %v14988_v41 = vcombine.low %v978_v27, %v982_v28  ;;  %v14995_v42 = vcombine.high %v985_v34, %v989_v35  ;;  %v14997_v44 = vcombine.high %v986_v36, %v990_v39  ;;  %v1030_v23 = vld [vmem:[#allocation5 + $0x1aa8] sm:$0xff] }
 0x1fe   :  { %v14996_v50 = vcombine.low %v986_v36, %v990_v39  ;;  %v1038_v34 = vld [vmem:[#allocation5 + $0x1ae8] sm:$0xff] }
 0x200   :  { %8145 = vmatpush1.bf16.msra.mxu0 %v14946_v48  ;;  %8575 = vmatpush1.bf16.msra.mxu1 %v14948_v51  ;;  %v998_v48 = vld [vmem:[#allocation5 + $0x19a8] sm:$0xff]  ;;  %v15003_v51 = vcombine.high %v993_v45, %v997_v46 }
 0x201   :  { %8157 = vmatprep.subr.bf16.mxu0 %v14955_v52  ;;  %8587 = vmatprep.subr.bf16.mxu1 %v14957_v54  ;;  %v15005_v52 = vcombine.high %v994_v47, %v998_v48  ;;  %v1001_v54 = vld [vmem:[#allocation5 + $0x19c0] sm:$0xff]  ;;  %v15004_v61 = vcombine.low %v994_v47, %v998_v48  ;;  %v1046_v45 = vld [vmem:[#allocation5 + $0x1b28] sm:$0xff] }
 0x202   :  { %v15011_v62 = vcombine.high %v1001_v54, %v1005_v55  ;;  %v15010_v5 = vcombine.low %v1001_v54, %v1005_v55  ;;  %v1054_v54 = vld [vmem:[#allocation5 + $0x1b68] sm:$0xff] }
 0x203   :  { %8147 = vmatmul.mubr.bf16.vlgmr.msra.gmra.mrb[0].mxu0 %v16816_v59  ;;  %8577 = vmatmul.mubr.bf16.vlgmr.msra.gmra.mrb[0].mxu1 %v16816_v59 }
 0x204   :  { %8158 = vmatpush1.bf16.msra.mxu0 %v14954_v63  ;;  %8588 = vmatpush1.bf16.msra.mxu1 %v14956_v1  ;;  %v15013_v63 = vcombine.high %v1002_v56, %v1006_v57  ;;  %v1009_v1 = vld [vmem:[#allocation5 + $0x1a00] sm:$0xff] }
 0x205   :  { %8159 = vmatprep.subr.bf16.mxu0 %v14963_v2  ;;  %8589 = vmatprep.subr.bf16.mxu1 %v14965_v3  ;;  %v1013_v2 = vld [vmem:[#allocation5 + $0x1a20] sm:$0xff]  ;;  %v1010_v3 = vld [vmem:[#allocation5 + $0x1a08] sm:$0xff] }
 0x206   :  { %8189 = vmatprep.mubr.bf16.mxu0 %v16818_v6  ;;  %8619 = vmatprep.mubr.bf16.mxu1 %v16818_v6  ;;  %v15019_v8 = vcombine.high %v1009_v1, %v1013_v2  ;;  %v15018_v16 = vcombine.low %v1009_v1, %v1013_v2  ;;  %v15020_v17 = vcombine.low %v1010_v3, %v1014_v4  ;;  %v1062_v1 = vld [vmem:[#allocation5 + $0x1ba8] sm:$0xff] }
 0x208   :  { %8160 = vmatpush1.bf16.msra.mxu0 %v14962_v9  ;;  %8590 = vmatpush1.bf16.msra.mxu1 %v14964_v11  ;;  %v15021_v9 = vcombine.high %v1010_v3, %v1014_v4  ;;  %v1017_v11 = vld [vmem:[#allocation5 + $0x1a40] sm:$0xff] }
 0x209   :  { %8161 = vmatprep.subr.bf16.mxu0 %v14971_v12  ;;  %8591 = vmatprep.subr.bf16.mxu1 %v14973_v13  ;;  %v1021_v12 = vld [vmem:[#allocation5 + $0x1a60] sm:$0xff]  ;;  %v1018_v13 = vld [vmem:[#allocation5 + $0x1a48] sm:$0xff] }
 0x20a   :  { %v15027_v18 = vcombine.high %v1017_v11, %v1021_v12  ;;  %v15026_v24 = vcombine.low %v1017_v11, %v1021_v12  ;;  %v15028_v27 = vcombine.low %v1018_v13, %v1022_v14  ;;  %v1070_v11 = vld [vmem:[#allocation5 + $0x1be8] sm:$0xff] }
 0x20c   :  { %8162 = vmatpush1.bf16.msra.mxu0 %v14970_v19  ;;  %8592 = vmatpush1.bf16.msra.mxu1 %v14972_v20  ;;  %v15029_v19 = vcombine.high %v1018_v13, %v1022_v14  ;;  %v1025_v20 = vld [vmem:[#allocation5 + $0x1a80] sm:$0xff] }
 0x20d   :  { %8163 = vmatprep.subr.bf16.mxu0 %v14979_v21  ;;  %8593 = vmatprep.subr.bf16.mxu1 %v14981_v22  ;;  %v1029_v21 = vld [vmem:[#allocation5 + $0x1aa0] sm:$0xff]  ;;  %v1026_v22 = vld [vmem:[#allocation5 + $0x1a88] sm:$0xff] }
 0x20e   :  { %v15035_v28 = vcombine.high %v1025_v20, %v1029_v21  ;;  %v15034_v35 = vcombine.low %v1025_v20, %v1029_v21  ;;  %v15036_v36 = vcombine.low %v1026_v22, %v1030_v23  ;;  %v1078_v20 = vld [vmem:[#allocation5 + $0x1c28] sm:$0xff] }
 0x210   :  { %8164 = vmatpush1.bf16.msra.mxu0 %v14978_v29  ;;  %8594 = vmatpush1.bf16.msra.mxu1 %v14980_v31  ;;  %v15037_v29 = vcombine.high %v1026_v22, %v1030_v23  ;;  %v1033_v31 = vld [vmem:[#allocation5 + $0x1ac0] sm:$0xff] }
 0x211   :  { %8165 = vmatprep.subr.bf16.mxu0 %v14987_v32  ;;  %8595 = vmatprep.subr.bf16.mxu1 %v14989_v33  ;;  %v1037_v32 = vld [vmem:[#allocation5 + $0x1ae0] sm:$0xff]  ;;  %v1034_v33 = vld [vmem:[#allocation5 + $0x1ac8] sm:$0xff] }
 0x212   :  { %v15043_v39 = vcombine.high %v1033_v31, %v1037_v32  ;;  %v15042_v46 = vcombine.low %v1033_v31, %v1037_v32  ;;  %v15044_v47 = vcombine.low %v1034_v33, %v1038_v34  ;;  %v129_v22 = vld [vmem:[#allocation2 + $0x60] sm:$0xff]  ;;  %v1082_v32 = vld [vmem:[#allocation5 + $0x1c48] sm:$0xff] }
 0x213   :  { %v149_v23 = vld [vmem:[#allocation2 + $0x100] sm:$0xff] }
 0x214   :  { %8166 = vmatpush1.bf16.msra.mxu0 %v14986_v40  ;;  %8596 = vmatpush1.bf16.msra.mxu1 %v14988_v41  ;;  %v15045_v40 = vcombine.high %v1034_v33, %v1038_v34  ;;  %v1041_v41 = vld [vmem:[#allocation5 + $0x1b00] sm:$0xff]  ;;  %v16824_v33 = vpack.c.bf16 %v149_v23, %v129_v22  ;;  %v1086_v34 = vld [vmem:[#allocation5 + $0x1c68] sm:$0xff] }
 0x215   :  { %8167 = vmatprep.subr.bf16.mxu0 %v14995_v42  ;;  %8597 = vmatprep.subr.bf16.mxu1 %v14997_v44  ;;  %v1045_v42 = vld [vmem:[#allocation5 + $0x1b20] sm:$0xff]  ;;  %v1042_v44 = vld [vmem:[#allocation5 + $0x1b08] sm:$0xff] }
 0x216   :  { %v15051_v48 = vcombine.high %v1041_v41, %v1045_v42  ;;  %v15050_v55 = vcombine.low %v1041_v41, %v1045_v42  ;;  %v15052_v56 = vcombine.low %v1042_v44, %v1046_v45  ;;  %v1085_v31 = vld [vmem:[#allocation5 + $0x1c60] sm:$0xff]  ;;  %v15093_v42 = vcombine.high %v1082_v32, %v1086_v34  ;;  %v1122_v22 = vld [vmem:[#allocation5 + $0x1d88] sm:$0xff] }
 0x217   :  { %v1126_v23 = vld [vmem:[#allocation5 + $0x1da8] sm:$0xff] }
 0x218   :  { %8168 = vmatpush1.bf16.msra.mxu0 %v14994_v49  ;;  %8598 = vmatpush1.bf16.msra.mxu1 %v14996_v50  ;;  %v15053_v49 = vcombine.high %v1042_v44, %v1046_v45  ;;  %v1049_v50 = vld [vmem:[#allocation5 + $0x1b40] sm:$0xff] }
 0x219   :  { %8169 = vmatprep.subr.bf16.mxu0 %v15003_v51  ;;  %8599 = vmatprep.subr.bf16.mxu1 %v15005_v52  ;;  %v1053_v51 = vld [vmem:[#allocation5 + $0x1b60] sm:$0xff]  ;;  %v1050_v52 = vld [vmem:[#allocation5 + $0x1b48] sm:$0xff] }
 0x21a   :  { %v15059_v57 = vcombine.high %v1049_v50, %v1053_v51  ;;  %v15058_v2 = vcombine.low %v1049_v50, %v1053_v51  ;;  %v15060_v3 = vcombine.low %v1050_v52, %v1054_v54  ;;  %v1089_v44 = vld [vmem:[#allocation5 + $0x1c80] sm:$0xff]  ;;  %v15092_v50 = vcombine.low %v1082_v32, %v1086_v34  ;;  %v1130_v34 = vld [vmem:[#allocation5 + $0x1dc8] sm:$0xff] }
 0x21b   :  { %v1093_v45 = vld [vmem:[#allocation5 + $0x1ca0] sm:$0xff] }
 0x21c   :  { %8170 = vmatpush1.bf16.msra.mxu0 %v15002_v60  ;;  %8600 = vmatpush1.bf16.msra.mxu1 %v15004_v61  ;;  %v15061_v60 = vcombine.high %v1050_v52, %v1054_v54  ;;  %v1057_v61 = vld [vmem:[#allocation5 + $0x1b80] sm:$0xff]  ;;  %v15099_v51 = vcombine.high %v1089_v44, %v1093_v45 }
 0x21d   :  { %8171 = vmatprep.subr.bf16.mxu0 %v15011_v62  ;;  %8601 = vmatprep.subr.bf16.mxu1 %v15013_v63  ;;  %v1061_v62 = vld [vmem:[#allocation5 + $0x1ba0] sm:$0xff]  ;;  %v1058_v63 = vld [vmem:[#allocation5 + $0x1b88] sm:$0xff] }
 0x21e   :  { %v15067_v4 = vcombine.high %v1057_v61, %v1061_v62  ;;  %v15066_v12 = vcombine.low %v1057_v61, %v1061_v62  ;;  %v15068_v13 = vcombine.low %v1058_v63, %v1062_v1  ;;  %v1097_v54 = vld [vmem:[#allocation5 + $0x1cc0] sm:$0xff] }
 0x21f   :  { %v1133_v32 = vld [vmem:[#allocation5 + $0x1de0] sm:$0xff] }
 0x220   :  { %8172 = vmatpush1.bf16.msra.mxu0 %v15010_v5  ;;  %8602 = vmatpush1.bf16.msra.mxu1 %v15012_v7  ;;  %v15069_v5 = vcombine.high %v1058_v63, %v1062_v1  ;;  %v1065_v7 = vld [vmem:[#allocation5 + $0x1bc0] sm:$0xff] }
 0x221   :  { %8173 = vmatprep.subr.bf16.mxu0 %v15019_v8  ;;  %8603 = vmatprep.subr.bf16.mxu1 %v15021_v9  ;;  %v1069_v8 = vld [vmem:[#allocation5 + $0x1be0] sm:$0xff]  ;;  %v1066_v9 = vld [vmem:[#allocation5 + $0x1bc8] sm:$0xff] }
 0x222   :  { %v15075_v14 = vcombine.high %v1065_v7, %v1069_v8  ;;  %v15074_v21 = vcombine.low %v1065_v7, %v1069_v8  ;;  %v1105_v1 = vld [vmem:[#allocation5 + $0x1d00] sm:$0xff] }
 0x224   :  { %8174 = vmatpush1.bf16.msra.mxu0 %v15018_v16  ;;  %8604 = vmatpush1.bf16.msra.mxu1 %v15020_v17  ;;  %v15077_v16 = vcombine.high %v1066_v9, %v1070_v11  ;;  %v1073_v17 = vld [vmem:[#allocation5 + $0x1c00] sm:$0xff] }
 0x225   :  { %8175 = vmatprep.subr.bf16.mxu0 %v15027_v18  ;;  %8605 = vmatprep.subr.bf16.mxu1 %v15029_v19  ;;  %v1077_v18 = vld [vmem:[#allocation5 + $0x1c20] sm:$0xff]  ;;  %v1074_v19 = vld [vmem:[#allocation5 + $0x1c08] sm:$0xff] }
 0x228   :  { %8176 = vmatpush1.bf16.msra.mxu0 %v15026_v24  ;;  %8606 = vmatpush1.bf16.msra.mxu1 %v15028_v27  ;;  %v15076_v24 = vcombine.low %v1066_v9, %v1070_v11  ;;  %v15083_v27 = vcombine.high %v1073_v17, %v1077_v18  ;;  %v1113_v11 = vld [vmem:[#allocation5 + $0x1d40] sm:$0xff] }
 0x229   :  { %8177 = vmatprep.subr.bf16.mxu0 %v15035_v28  ;;  %8607 = vmatprep.subr.bf16.mxu1 %v15037_v29  ;;  %v15085_v28 = vcombine.high %v1074_v19, %v1078_v20  ;;  %v1081_v29 = vld [vmem:[#allocation5 + $0x1c40] sm:$0xff] }
 0x22a   :  { %v15091_v41 = vcombine.high %v1081_v29, %v1085_v31 }
 0x22c   :  { %8178 = vmatpush1.bf16.msra.mxu0 %v15034_v35  ;;  %8608 = vmatpush1.bf16.msra.mxu1 %v15036_v36  ;;  %v132_v35 = vld [vmem:[#allocation2 + $0x78] sm:$0xff] }
 0x22d   :  { %8179 = vmatprep.subr.bf16.mxu0 %v15043_v39  ;;  %8609 = vmatprep.subr.bf16.mxu1 %v15045_v40  ;;  %v152_v36 = vld [vmem:[#allocation2 + $0x118] sm:$0xff]  ;;  %v15082_v39 = vcombine.low %v1073_v17, %v1077_v18  ;;  %v15084_v40 = vcombine.low %v1074_v19, %v1078_v20  ;;  %v1121_v20 = vld [vmem:[#allocation5 + $0x1d80] sm:$0xff] }
 0x230   :  { %8180 = vmatpush1.bf16.msra.mxu0 %v15042_v46  ;;  %8610 = vmatpush1.bf16.msra.mxu1 %v15044_v47  ;;  %v16826_v46 = vpack.c.bf16 %v152_v36, %v132_v35  ;;  %v1090_v47 = vld [vmem:[#allocation5 + $0x1c88] sm:$0xff] }
 0x231   :  { %8181 = vmatprep.subr.bf16.mxu0 %v15051_v48  ;;  %8611 = vmatprep.subr.bf16.mxu1 %v15053_v49  ;;  %v1094_v48 = vld [vmem:[#allocation5 + $0x1ca8] sm:$0xff]  ;;  %v15090_v49 = vcombine.low %v1081_v29, %v1085_v31  ;;  %v15133_v29 = vcombine.high %v1122_v22, %v1126_v23  ;;  %v1129_v31 = vld [vmem:[#allocation5 + $0x1dc0] sm:$0xff] }
 0x232   :  { %v15101_v52 = vcombine.high %v1090_v47, %v1094_v48  ;;  %v15100_v61 = vcombine.low %v1090_v47, %v1094_v48  ;;  %v1134_v35 = vld [vmem:[#allocation5 + $0x1de8] sm:$0xff]  ;;  %v15138_v48 = vcombine.low %v1129_v31, %v1133_v32 }
 0x233   :  { %v1142_v47 = vld [vmem:[#allocation5 + $0x1e28] sm:$0xff] }
 0x234   :  { %8182 = vmatpush1.bf16.msra.mxu0 %v15050_v55  ;;  %8612 = vmatpush1.bf16.msra.mxu1 %v15052_v56  ;;  %v1101_v55 = vld [vmem:[#allocation5 + $0x1ce0] sm:$0xff]  ;;  %v1098_v56 = vld [vmem:[#allocation5 + $0x1cc8] sm:$0xff] }
 0x235   :  { %8183 = vmatprep.subr.bf16.mxu0 %v15059_v57  ;;  %8613 = vmatprep.subr.bf16.mxu1 %v15061_v60  ;;  %v1102_v57 = vld [vmem:[#allocation5 + $0x1ce8] sm:$0xff]  ;;  %v15098_v60 = vcombine.low %v1089_v44, %v1093_v45  ;;  %v15107_v62 = vcombine.high %v1097_v54, %v1101_v55  ;;  %v1141_v44 = vld [vmem:[#allocation5 + $0x1e20] sm:$0xff] }
 0x236   :  { %v15109_v63 = vcombine.high %v1098_v56, %v1102_v57  ;;  %v15108_v7 = vcombine.low %v1098_v56, %v1102_v57  ;;  %v1138_v45 = vld [vmem:[#allocation5 + $0x1e08] sm:$0xff] }
 0x237   :  { %v1150_v56 = vld [vmem:[#allocation5 + $0x1e68] sm:$0xff] }
 0x238   :  { %8184 = vmatpush1.bf16.msra.mxu0 %v15058_v2  ;;  %8614 = vmatpush1.bf16.msra.mxu1 %v15060_v3  ;;  %v1109_v2 = vld [vmem:[#allocation5 + $0x1d20] sm:$0xff]  ;;  %v1106_v3 = vld [vmem:[#allocation5 + $0x1d08] sm:$0xff] }
 0x239   :  { %8185 = vmatprep.subr.bf16.mxu0 %v15067_v4  ;;  %8615 = vmatprep.subr.bf16.mxu1 %v15069_v5  ;;  %v1110_v4 = vld [vmem:[#allocation5 + $0x1d28] sm:$0xff]  ;;  %v15106_v5 = vcombine.low %v1097_v54, %v1101_v55  ;;  %v15115_v8 = vcombine.high %v1105_v1, %v1109_v2  ;;  %v1149_v54 = vld [vmem:[#allocation5 + $0x1e60] sm:$0xff] }
 0x23a   :  { %v15117_v9 = vcombine.high %v1106_v3, %v1110_v4  ;;  %v15116_v17 = vcombine.low %v1106_v3, %v1110_v4  ;;  %v1146_v55 = vld [vmem:[#allocation5 + $0x1e48] sm:$0xff] }
 0x23b   :  { %v1158_v3 = vld [vmem:[#allocation5 + $0x1ea8] sm:$0xff] }
 0x23c   :  { %8186 = vmatpush1.bf16.msra.mxu0 %v15066_v12  ;;  %8616 = vmatpush1.bf16.msra.mxu1 %v15068_v13  ;;  %v1117_v12 = vld [vmem:[#allocation5 + $0x1d60] sm:$0xff]  ;;  %v1114_v13 = vld [vmem:[#allocation5 + $0x1d48] sm:$0xff] }
 0x23d   :  { %8187 = vmatprep.subr.bf16.mxu0 %v15075_v14  ;;  %8617 = vmatprep.subr.bf16.mxu1 %v15077_v16  ;;  %v1118_v14 = vld [vmem:[#allocation5 + $0x1d68] sm:$0xff]  ;;  %v15114_v16 = vcombine.low %v1105_v1, %v1109_v2  ;;  %v15123_v18 = vcombine.high %v1113_v11, %v1117_v12  ;;  %v1157_v1 = vld [vmem:[#allocation5 + $0x1ea0] sm:$0xff] }
 0x23e   :  { %v15125_v19 = vcombine.high %v1114_v13, %v1118_v14  ;;  %v1154_v2 = vld [vmem:[#allocation5 + $0x1e88] sm:$0xff] }
 0x240   :  { %8188 = vmatpush1.bf16.msra.mxu0 %v15074_v21  ;;  %8618 = vmatpush1.bf16.msra.mxu1 %v15076_v24  ;;  %v1125_v21 = vld [vmem:[#allocation5 + $0x1da0] sm:$0xff]  ;;  %v15122_v24 = vcombine.low %v1113_v11, %v1117_v12  ;;  %v1162_v12 = vld [vmem:[#allocation5 + $0x1ec8] sm:$0xff] }
 0x241   :  { %8200 = vmatprep.subr.bf16.mxu0 %v15083_v27  ;;  %8630 = vmatprep.subr.bf16.mxu1 %v15085_v28  ;;  %v15124_v27 = vcombine.low %v1114_v13, %v1118_v14  ;;  %v15131_v28 = vcombine.high %v1121_v20, %v1125_v21  ;;  %v15130_v36 = vcombine.low %v1121_v20, %v1125_v21  ;;  %v1165_v11 = vld [vmem:[#allocation5 + $0x1ee0] sm:$0xff]  ;;  %v1166_v13 = vld [vmem:[#allocation5 + $0x1ee8] sm:$0xff] }
 0x242   :  { %v1173_v20 = vld [vmem:[#allocation5 + $0x1f20] sm:$0xff]  ;;  %v1170_v21 = vld [vmem:[#allocation5 + $0x1f08] sm:$0xff] }
 0x243   :  { %8190 = vmatmul.mubr.bf16.vlgmr.msra.gmra.mrb[0].mxu0 %v16824_v33  ;;  %8620 = vmatmul.mubr.bf16.vlgmr.msra.gmra.mrb[0].mxu1 %v16824_v33 }
 0x244   :  { %8201 = vmatpush1.bf16.msra.mxu0 %v15082_v39  ;;  %8631 = vmatpush1.bf16.msra.mxu1 %v15084_v40  ;;  %v15132_v39 = vcombine.low %v1122_v22, %v1126_v23  ;;  %v15139_v40 = vcombine.high %v1129_v31, %v1133_v32  ;;  %v1174_v22 = vld [vmem:[#allocation5 + $0x1f28] sm:$0xff]  ;;  %v1181_v31 = vld [vmem:[#allocation5 + $0x1f60] sm:$0xff] }
 0x245   :  { %8202 = vmatprep.subr.bf16.mxu0 %v15091_v41  ;;  %8632 = vmatprep.subr.bf16.mxu1 %v15093_v42  ;;  %v15141_v41 = vcombine.high %v1130_v34, %v1134_v35  ;;  %v1137_v42 = vld [vmem:[#allocation5 + $0x1e00] sm:$0xff]  ;;  %v1178_v32 = vld [vmem:[#allocation5 + $0x1f48] sm:$0xff] }
 0x246   :  { %8232 = vmatprep.mubr.bf16.mxu0 %v16826_v46  ;;  %8662 = vmatprep.mubr.bf16.mxu1 %v16826_v46  ;;  %v15146_v57 = vcombine.low %v1137_v42, %v1141_v44 }
 0x248   :  { %8203 = vmatpush1.bf16.msra.mxu0 %v15090_v49  ;;  %8633 = vmatpush1.bf16.msra.mxu1 %v15092_v50  ;;  %v15140_v49 = vcombine.low %v1130_v34, %v1134_v35  ;;  %v15147_v50 = vcombine.high %v1137_v42, %v1141_v44  ;;  %v1182_v34 = vld [vmem:[#allocation5 + $0x1f68] sm:$0xff]  ;;  %v1189_v42 = vld [vmem:[#allocation5 + $0x1fa0] sm:$0xff] }
 0x249   :  { %8204 = vmatprep.subr.bf16.mxu0 %v15099_v51  ;;  %8634 = vmatprep.subr.bf16.mxu1 %v15101_v52  ;;  %v15149_v51 = vcombine.high %v1138_v45, %v1142_v47  ;;  %v1145_v52 = vld [vmem:[#allocation5 + $0x1e40] sm:$0xff]  ;;  %v1186_v44 = vld [vmem:[#allocation5 + $0x1f88] sm:$0xff] }
 0x24a   :  { %v15154_v4 = vcombine.low %v1145_v52, %v1149_v54 }
 0x24c   :  { %8205 = vmatpush1.bf16.msra.mxu0 %v15098_v60  ;;  %8635 = vmatpush1.bf16.msra.mxu1 %v15100_v61  ;;  %v15148_v60 = vcombine.low %v1138_v45, %v1142_v47  ;;  %v15155_v61 = vcombine.high %v1145_v52, %v1149_v54  ;;  %v1190_v45 = vld [vmem:[#allocation5 + $0x1fa8] sm:$0xff]  ;;  %v1197_v52 = vld [vmem:[#allocation5 + $0x1fe0] sm:$0xff] }
 0x24d   :  { %8206 = vmatprep.subr.bf16.mxu0 %v15107_v62  ;;  %8636 = vmatprep.subr.bf16.mxu1 %v15109_v63  ;;  %v15157_v62 = vcombine.high %v1146_v55, %v1150_v56  ;;  %v1153_v63 = vld [vmem:[#allocation5 + $0x1e80] sm:$0xff]  ;;  %v1194_v54 = vld [vmem:[#allocation5 + $0x1fc8] sm:$0xff] }
 0x24e   :  { %v15162_v14 = vcombine.low %v1153_v63, %v1157_v1 }
 0x250   :  { %8207 = vmatpush1.bf16.msra.mxu0 %v15106_v5  ;;  %8637 = vmatpush1.bf16.msra.mxu1 %v15108_v7  ;;  %v15156_v5 = vcombine.low %v1146_v55, %v1150_v56  ;;  %v15163_v7 = vcombine.high %v1153_v63, %v1157_v1  ;;  %v1198_v55 = vld [vmem:[#allocation5 + $0x1fe8] sm:$0xff]  ;;  %v1205_v63 = vld [vmem:[#allocation5 + $0x2020] sm:$0xff] }
 0x251   :  { %8208 = vmatprep.subr.bf16.mxu0 %v15115_v8  ;;  %8638 = vmatprep.subr.bf16.mxu1 %v15117_v9  ;;  %v15165_v8 = vcombine.high %v1154_v2, %v1158_v3  ;;  %v1161_v9 = vld [vmem:[#allocation5 + $0x1ec0] sm:$0xff]  ;;  %v1202_v1 = vld [vmem:[#allocation5 + $0x2008] sm:$0xff] }
 0x252   :  { %v15170_v23 = vcombine.low %v1161_v9, %v1165_v11 }
 0x254   :  { %8209 = vmatpush1.bf16.msra.mxu0 %v15114_v16  ;;  %8639 = vmatpush1.bf16.msra.mxu1 %v15116_v17  ;;  %v15164_v16 = vcombine.low %v1154_v2, %v1158_v3  ;;  %v15171_v17 = vcombine.high %v1161_v9, %v1165_v11  ;;  %v1206_v2 = vld [vmem:[#allocation5 + $0x2028] sm:$0xff]  ;;  %v1209_v11 = vld [vmem:[#allocation5 + $0x2040] sm:$0xff] }
 0x255   :  { %8210 = vmatprep.subr.bf16.mxu0 %v15123_v18  ;;  %8640 = vmatprep.subr.bf16.mxu1 %v15125_v19  ;;  %v15173_v18 = vcombine.high %v1162_v12, %v1166_v13  ;;  %v1169_v19 = vld [vmem:[#allocation5 + $0x1f00] sm:$0xff]  ;;  %v15213_v9 = vcombine.high %v1202_v1, %v1206_v2 }
 0x256   :  { %v15178_v35 = vcombine.low %v1169_v19, %v1173_v20 }
 0x258   :  { %8211 = vmatpush1.bf16.msra.mxu0 %v15122_v24  ;;  %8641 = vmatpush1.bf16.msra.mxu1 %v15124_v27  ;;  %v15172_v24 = vcombine.low %v1162_v12, %v1166_v13  ;;  %v15179_v27 = vcombine.high %v1169_v19, %v1173_v20  ;;  %v1213_v12 = vld [vmem:[#allocation5 + $0x2060] sm:$0xff]  ;;  %v1210_v13 = vld [vmem:[#allocation5 + $0x2048] sm:$0xff]  ;;  %v15212_v20 = vcombine.low %v1202_v1, %v1206_v2 }
 0x259   :  { %8212 = vmatprep.subr.bf16.mxu0 %v15131_v28  ;;  %8642 = vmatprep.subr.bf16.mxu1 %v15133_v29  ;;  %v15181_v28 = vcombine.high %v1170_v21, %v1174_v22  ;;  %v1177_v29 = vld [vmem:[#allocation5 + $0x1f40] sm:$0xff] }
 0x25a   :  { %v15186_v47 = vcombine.low %v1177_v29, %v1181_v31 }
 0x25c   :  { %8213 = vmatpush1.bf16.msra.mxu0 %v15130_v36  ;;  %8643 = vmatpush1.bf16.msra.mxu1 %v15132_v39  ;;  %v15180_v36 = vcombine.low %v1170_v21, %v1174_v22  ;;  %v15187_v39 = vcombine.high %v1177_v29, %v1181_v31  ;;  %v15219_v21 = vcombine.high %v1209_v11, %v1213_v12  ;;  %v1222_v29 = vld [vmem:[#allocation5 + $0x20a8] sm:$0xff] }
 0x25d   :  { %8214 = vmatprep.subr.bf16.mxu0 %v15139_v40  ;;  %8644 = vmatprep.subr.bf16.mxu1 %v15141_v41  ;;  %v15189_v40 = vcombine.high %v1178_v32, %v1182_v34  ;;  %v1185_v41 = vld [vmem:[#allocation5 + $0x1f80] sm:$0xff]  ;;  %v15218_v31 = vcombine.low %v1209_v11, %v1213_v12 }
 0x25e   :  { %v15194_v56 = vcombine.low %v1185_v41, %v1189_v42 }
 0x260   :  { %8215 = vmatpush1.bf16.msra.mxu0 %v15138_v48  ;;  %8645 = vmatpush1.bf16.msra.mxu1 %v15140_v49  ;;  %v15188_v48 = vcombine.low %v1178_v32, %v1182_v34  ;;  %v15195_v49 = vcombine.high %v1185_v41, %v1189_v42  ;;  %v1230_v41 = vld [vmem:[#allocation5 + $0x20e8] sm:$0xff] }
 0x261   :  { %8216 = vmatprep.subr.bf16.mxu0 %v15147_v50  ;;  %8646 = vmatprep.subr.bf16.mxu1 %v15149_v51  ;;  %v15197_v50 = vcombine.high %v1186_v44, %v1190_v45  ;;  %v1193_v51 = vld [vmem:[#allocation5 + $0x1fc0] sm:$0xff] }
 0x262   :  { %v15202_v3 = vcombine.low %v1193_v51, %v1197_v52 }
 0x264   :  { %8217 = vmatpush1.bf16.msra.mxu0 %v15146_v57  ;;  %8647 = vmatpush1.bf16.msra.mxu1 %v15148_v60  ;;  %v15196_v57 = vcombine.low %v1186_v44, %v1190_v45  ;;  %v15203_v60 = vcombine.high %v1193_v51, %v1197_v52  ;;  %v1238_v51 = vld [vmem:[#allocation5 + $0x2128] sm:$0xff] }
 0x265   :  { %8218 = vmatprep.subr.bf16.mxu0 %v15155_v61  ;;  %8648 = vmatprep.subr.bf16.mxu1 %v15157_v62  ;;  %v15205_v61 = vcombine.high %v1194_v54, %v1198_v55  ;;  %v1201_v62 = vld [vmem:[#allocation5 + $0x2000] sm:$0xff] }
 0x266   :  { %v15210_v19 = vcombine.low %v1201_v62, %v1205_v63 }
 0x268   :  { %8219 = vmatpush1.bf16.msra.mxu0 %v15154_v4  ;;  %8649 = vmatpush1.bf16.msra.mxu1 %v15156_v5  ;;  %v131_v4 = vld [vmem:[#allocation2 + $0x70] sm:$0xff] }
 0x269   :  { %8220 = vmatprep.subr.bf16.mxu0 %v15163_v7  ;;  %8650 = vmatprep.subr.bf16.mxu1 %v15165_v8  ;;  %v151_v5 = vld [vmem:[#allocation2 + $0x110] sm:$0xff]  ;;  %v15204_v7 = vcombine.low %v1194_v54, %v1198_v55  ;;  %v15211_v8 = vcombine.high %v1201_v62, %v1205_v63  ;;  %v1246_v62 = vld [vmem:[#allocation5 + $0x2168] sm:$0xff] }
 0x26c   :  { %8221 = vmatpush1.bf16.msra.mxu0 %v15162_v14  ;;  %8651 = vmatpush1.bf16.msra.mxu1 %v15164_v16  ;;  %v16832_v14 = vpack.c.bf16 %v151_v5, %v131_v4  ;;  %v1214_v16 = vld [vmem:[#allocation5 + $0x2068] sm:$0xff]  ;;  %v1249_v4 = vld [vmem:[#allocation5 + $0x2180] sm:$0xff] }
 0x26d   :  { %8222 = vmatprep.subr.bf16.mxu0 %v15171_v17  ;;  %8652 = vmatprep.subr.bf16.mxu1 %v15173_v18  ;;  %v134_v17 = vld [vmem:[#allocation2 + $0x88] sm:$0xff]  ;;  %v15221_v22 = vcombine.high %v1210_v13, %v1214_v16  ;;  %v15220_v32 = vcombine.low %v1210_v13, %v1214_v16  ;;  %v1253_v5 = vld [vmem:[#allocation5 + $0x21a0] sm:$0xff] }
 0x26e   :  { %v154_v18 = vld [vmem:[#allocation2 + $0x128] sm:$0xff]  ;;  %v15259_v12 = vcombine.high %v1249_v4, %v1253_v5  ;;  %v1257_v16 = vld [vmem:[#allocation5 + $0x21c0] sm:$0xff] }
 0x270   :  { %8223 = vmatpush1.bf16.msra.mxu0 %v15170_v23  ;;  %8653 = vmatpush1.bf16.msra.mxu1 %v15172_v24  ;;  %v1217_v23 = vld [vmem:[#allocation5 + $0x2080] sm:$0xff] }
 0x271   :  { %8224 = vmatprep.subr.bf16.mxu0 %v15179_v27  ;;  %8654 = vmatprep.subr.bf16.mxu1 %v15181_v28  ;;  %v1221_v24 = vld [vmem:[#allocation5 + $0x20a0] sm:$0xff]  ;;  %v16834_v27 = vpack.c.bf16 %v154_v18, %v134_v17  ;;  %v1218_v28 = vld [vmem:[#allocation5 + $0x2088] sm:$0xff] }
 0x272   :  { %v15227_v34 = vcombine.high %v1217_v23, %v1221_v24  ;;  %v15226_v42 = vcombine.low %v1217_v23, %v1221_v24  ;;  %v15228_v44 = vcombine.low %v1218_v28, %v1222_v29  ;;  %v1261_v17 = vld [vmem:[#allocation5 + $0x21e0] sm:$0xff]  ;;  %v1258_v18 = vld [vmem:[#allocation5 + $0x21c8] sm:$0xff] }
 0x273   :  { %v1265_v24 = vld [vmem:[#allocation5 + $0x2200] sm:$0xff] }
 0x274   :  { %8225 = vmatpush1.bf16.msra.mxu0 %v15178_v35  ;;  %8655 = vmatpush1.bf16.msra.mxu1 %v15180_v36  ;;  %v15229_v35 = vcombine.high %v1218_v28, %v1222_v29  ;;  %v1225_v36 = vld [vmem:[#allocation5 + $0x20c0] sm:$0xff]  ;;  %v1266_v29 = vld [vmem:[#allocation5 + $0x2208] sm:$0xff] }
 0x275   :  { %8226 = vmatprep.subr.bf16.mxu0 %v15187_v39  ;;  %8656 = vmatprep.subr.bf16.mxu1 %v15189_v40  ;;  %v1229_v39 = vld [vmem:[#allocation5 + $0x20e0] sm:$0xff]  ;;  %v1226_v40 = vld [vmem:[#allocation5 + $0x20c8] sm:$0xff] }
 0x276   :  { %v15235_v45 = vcombine.high %v1225_v36, %v1229_v39  ;;  %v15234_v52 = vcombine.low %v1225_v36, %v1229_v39  ;;  %v15236_v54 = vcombine.low %v1226_v40, %v1230_v41  ;;  %v1269_v28 = vld [vmem:[#allocation5 + $0x2220] sm:$0xff] }
 0x277   :  { %v1273_v39 = vld [vmem:[#allocation5 + $0x2240] sm:$0xff] }
 0x278   :  { %8227 = vmatpush1.bf16.msra.mxu0 %v15186_v47  ;;  %8657 = vmatpush1.bf16.msra.mxu1 %v15188_v48  ;;  %v15237_v47 = vcombine.high %v1226_v40, %v1230_v41  ;;  %v1233_v48 = vld [vmem:[#allocation5 + $0x2100] sm:$0xff]  ;;  %v1274_v41 = vld [vmem:[#allocation5 + $0x2248] sm:$0xff] }
 0x279   :  { %8228 = vmatprep.subr.bf16.mxu0 %v15195_v49  ;;  %8658 = vmatprep.subr.bf16.mxu1 %v15197_v50  ;;  %v1237_v49 = vld [vmem:[#allocation5 + $0x2120] sm:$0xff]  ;;  %v1234_v50 = vld [vmem:[#allocation5 + $0x2108] sm:$0xff] }
 0x27a   :  { %v15243_v55 = vcombine.high %v1233_v48, %v1237_v49  ;;  %v15242_v63 = vcombine.low %v1233_v48, %v1237_v49  ;;  %v15244_v1 = vcombine.low %v1234_v50, %v1238_v51  ;;  %v1277_v40 = vld [vmem:[#allocation5 + $0x2260] sm:$0xff] }
 0x27b   :  { %v1281_v49 = vld [vmem:[#allocation5 + $0x2280] sm:$0xff] }
 0x27c   :  { %8229 = vmatpush1.bf16.msra.mxu0 %v15194_v56  ;;  %8659 = vmatpush1.bf16.msra.mxu1 %v15196_v57  ;;  %v15245_v56 = vcombine.high %v1234_v50, %v1238_v51  ;;  %v1241_v57 = vld [vmem:[#allocation5 + $0x2140] sm:$0xff]  ;;  %v1282_v51 = vld [vmem:[#allocation5 + $0x2288] sm:$0xff] }
 0x27d   :  { %8230 = vmatprep.subr.bf16.mxu0 %v15203_v60  ;;  %8660 = vmatprep.subr.bf16.mxu1 %v15205_v61  ;;  %v1245_v60 = vld [vmem:[#allocation5 + $0x2160] sm:$0xff]  ;;  %v1242_v61 = vld [vmem:[#allocation5 + $0x2148] sm:$0xff] }
 0x27e   :  { %v15251_v2 = vcombine.high %v1241_v57, %v1245_v60  ;;  %v15252_v11 = vcombine.low %v1242_v61, %v1246_v62  ;;  %v1285_v50 = vld [vmem:[#allocation5 + $0x22a0] sm:$0xff] }
 0x280   :  { %8231 = vmatpush1.bf16.msra.mxu0 %v15202_v3  ;;  %8661 = vmatpush1.bf16.msra.mxu1 %v15204_v7  ;;  %v15253_v3 = vcombine.high %v1242_v61, %v1246_v62  ;;  %v1250_v7 = vld [vmem:[#allocation5 + $0x2188] sm:$0xff]  ;;  %v1293_v61 = vld [vmem:[#allocation5 + $0x22e0] sm:$0xff] }
 0x281   :  { %8243 = vmatprep.subr.bf16.mxu0 %v15211_v8  ;;  %8673 = vmatprep.subr.bf16.mxu1 %v15213_v9  ;;  %v1254_v8 = vld [vmem:[#allocation5 + $0x21a8] sm:$0xff]  ;;  %v15250_v9 = vcombine.low %v1241_v57, %v1245_v60  ;;  %v1289_v60 = vld [vmem:[#allocation5 + $0x22c0] sm:$0xff] }
 0x282   :  { %v15261_v13 = vcombine.high %v1250_v7, %v1254_v8  ;;  %v1290_v62 = vld [vmem:[#allocation5 + $0x22c8] sm:$0xff] }
 0x283   :  { %8233 = vmatmul.mubr.bf16.vlgmr.msra.gmra.mrb[0].mxu0 %v16832_v14  ;;  %8663 = vmatmul.mubr.bf16.vlgmr.msra.gmra.mrb[0].mxu1 %v16832_v14 }
 0x284   :  { %8244 = vmatpush1.bf16.msra.mxu0 %v15210_v19  ;;  %8674 = vmatpush1.bf16.msra.mxu1 %v15212_v20  ;;  %v1262_v19 = vld [vmem:[#allocation5 + $0x21e8] sm:$0xff]  ;;  %v15258_v20 = vcombine.low %v1249_v4, %v1253_v5  ;;  %v1297_v5 = vld [vmem:[#allocation5 + $0x2300] sm:$0xff] }
 0x285   :  { %8245 = vmatprep.subr.bf16.mxu0 %v15219_v21  ;;  %8675 = vmatprep.subr.bf16.mxu1 %v15221_v22  ;;  %v15260_v21 = vcombine.low %v1250_v7, %v1254_v8  ;;  %v15267_v22 = vcombine.high %v1257_v16, %v1261_v17  ;;  %v15269_v23 = vcombine.high %v1258_v18, %v1262_v19  ;;  %v1301_v7 = vld [vmem:[#allocation5 + $0x2320] sm:$0xff]  ;;  %v1298_v8 = vld [vmem:[#allocation5 + $0x2308] sm:$0xff] }
 0x286   :  { %8275 = vmatprep.mubr.bf16.mxu0 %v16834_v27  ;;  %8705 = vmatprep.mubr.bf16.mxu1 %v16834_v27 }
 0x288   :  { %8246 = vmatpush1.bf16.msra.mxu0 %v15218_v31  ;;  %8676 = vmatpush1.bf16.msra.mxu1 %v15220_v32  ;;  %v1270_v31 = vld [vmem:[#allocation5 + $0x2228] sm:$0xff]  ;;  %v15266_v32 = vcombine.low %v1257_v16, %v1261_v17  ;;  %v1305_v17 = vld [vmem:[#allocation5 + $0x2340] sm:$0xff] }
 0x289   :  { %8247 = vmatprep.subr.bf16.mxu0 %v15227_v34  ;;  %8677 = vmatprep.subr.bf16.mxu1 %v15229_v35  ;;  %v15268_v34 = vcombine.low %v1258_v18, %v1262_v19  ;;  %v15275_v35 = vcombine.high %v1265_v24, %v1269_v28  ;;  %v15277_v36 = vcombine.high %v1266_v29, %v1270_v31  ;;  %v1309_v18 = vld [vmem:[#allocation5 + $0x2360] sm:$0xff]  ;;  %v1306_v19 = vld [vmem:[#allocation5 + $0x2348] sm:$0xff] }
 0x28c   :  { %8248 = vmatpush1.bf16.msra.mxu0 %v15226_v42  ;;  %8678 = vmatpush1.bf16.msra.mxu1 %v15228_v44  ;;  %v1278_v42 = vld [vmem:[#allocation5 + $0x2268] sm:$0xff]  ;;  %v15274_v44 = vcombine.low %v1265_v24, %v1269_v28  ;;  %v1313_v28 = vld [vmem:[#allocation5 + $0x2380] sm:$0xff] }
 0x28d   :  { %8249 = vmatprep.subr.bf16.mxu0 %v15235_v45  ;;  %8679 = vmatprep.subr.bf16.mxu1 %v15237_v47  ;;  %v15276_v45 = vcombine.low %v1266_v29, %v1270_v31  ;;  %v15283_v47 = vcombine.high %v1273_v39, %v1277_v40  ;;  %v15285_v48 = vcombine.high %v1274_v41, %v1278_v42  ;;  %v1317_v29 = vld [vmem:[#allocation5 + $0x23a0] sm:$0xff]  ;;  %v1314_v31 = vld [vmem:[#allocation5 + $0x2388] sm:$0xff] }
 0x290   :  { %8250 = vmatpush1.bf16.msra.mxu0 %v15234_v52  ;;  %8680 = vmatpush1.bf16.msra.mxu1 %v15236_v54  ;;  %v1286_v52 = vld [vmem:[#allocation5 + $0x22a8] sm:$0xff]  ;;  %v15282_v54 = vcombine.low %v1273_v39, %v1277_v40  ;;  %v1321_v40 = vld [vmem:[#allocation5 + $0x23c0] sm:$0xff] }
 0x291   :  { %8251 = vmatprep.subr.bf16.mxu0 %v15243_v55  ;;  %8681 = vmatprep.subr.bf16.mxu1 %v15245_v56  ;;  %v15284_v55 = vcombine.low %v1274_v41, %v1278_v42  ;;  %v15291_v56 = vcombine.high %v1281_v49, %v1285_v50  ;;  %v15293_v57 = vcombine.high %v1282_v51, %v1286_v52  ;;  %v1325_v41 = vld [vmem:[#allocation5 + $0x23e0] sm:$0xff]  ;;  %v1322_v42 = vld [vmem:[#allocation5 + $0x23c8] sm:$0xff] }
 0x294   :  { %8252 = vmatpush1.bf16.msra.mxu0 %v15242_v63  ;;  %8682 = vmatpush1.bf16.msra.mxu1 %v15244_v1  ;;  %v1294_v63 = vld [vmem:[#allocation5 + $0x22e8] sm:$0xff]  ;;  %v15290_v1 = vcombine.low %v1281_v49, %v1285_v50  ;;  %v1329_v50 = vld [vmem:[#allocation5 + $0x2400] sm:$0xff] }
 0x295   :  { %8253 = vmatprep.subr.bf16.mxu0 %v15251_v2  ;;  %8683 = vmatprep.subr.bf16.mxu1 %v15253_v3  ;;  %v15292_v2 = vcombine.low %v1282_v51, %v1286_v52  ;;  %v15299_v3 = vcombine.high %v1289_v60, %v1293_v61  ;;  %v15301_v4 = vcombine.high %v1290_v62, %v1294_v63  ;;  %v1333_v51 = vld [vmem:[#allocation5 + $0x2420] sm:$0xff]  ;;  %v1330_v52 = vld [vmem:[#allocation5 + $0x2408] sm:$0xff] }
 0x298   :  { %8254 = vmatpush1.bf16.msra.mxu0 %v15250_v9  ;;  %8684 = vmatpush1.bf16.msra.mxu1 %v15252_v11  ;;  %v1302_v9 = vld [vmem:[#allocation5 + $0x2328] sm:$0xff]  ;;  %v15298_v11 = vcombine.low %v1289_v60, %v1293_v61  ;;  %v15339_v61 = vcombine.high %v1329_v50, %v1333_v51 }
 0x299   :  { %8255 = vmatprep.subr.bf16.mxu0 %v15259_v12  ;;  %8685 = vmatprep.subr.bf16.mxu1 %v15261_v13  ;;  %v15300_v12 = vcombine.low %v1290_v62, %v1294_v63  ;;  %v15307_v13 = vcombine.high %v1297_v5, %v1301_v7  ;;  %v15309_v16 = vcombine.high %v1298_v8, %v1302_v9  ;;  %v1337_v63 = vld [vmem:[#allocation5 + $0x2440] sm:$0xff] }
 0x29c   :  { %8256 = vmatpush1.bf16.msra.mxu0 %v15258_v20  ;;  %8686 = vmatpush1.bf16.msra.mxu1 %v15260_v21  ;;  %v1310_v20 = vld [vmem:[#allocation5 + $0x2368] sm:$0xff]  ;;  %v15306_v21 = vcombine.low %v1297_v5, %v1301_v7  ;;  %v136_v5 = vld [vmem:[#allocation2 + $0x98] sm:$0xff] }
 0x29d   :  { %8257 = vmatprep.subr.bf16.mxu0 %v15267_v22  ;;  %8687 = vmatprep.subr.bf16.mxu1 %v15269_v23  ;;  %v15308_v22 = vcombine.low %v1298_v8, %v1302_v9  ;;  %v15315_v23 = vcombine.high %v1305_v17, %v1309_v18  ;;  %v15317_v24 = vcombine.high %v1306_v19, %v1310_v20  ;;  %v156_v7 = vld [vmem:[#allocation2 + $0x138] sm:$0xff] }
 0x29e   :  { %v15338_v8 = vcombine.low %v1329_v50, %v1333_v51  ;;  %v1373_v50 = vld [vmem:[#allocation5 + $0x2560] sm:$0xff]  ;;  %v1370_v51 = vld [vmem:[#allocation5 + $0x2548] sm:$0xff] }
 0x2a0   :  { %8258 = vmatpush1.bf16.msra.mxu0 %v15266_v32  ;;  %8688 = vmatpush1.bf16.msra.mxu1 %v15268_v34  ;;  %v1318_v32 = vld [vmem:[#allocation5 + $0x23a8] sm:$0xff]  ;;  %v15314_v34 = vcombine.low %v1305_v17, %v1309_v18  ;;  %v16842_v17 = vpack.c.bf16 %v156_v7, %v136_v5  ;;  %v1385_v7 = vld [vmem:[#allocation5 + $0x25c0] sm:$0xff] }
 0x2a1   :  { %8259 = vmatprep.subr.bf16.mxu0 %v15275_v35  ;;  %8689 = vmatprep.subr.bf16.mxu1 %v15277_v36  ;;  %v15316_v35 = vcombine.low %v1306_v19, %v1310_v20  ;;  %v15323_v36 = vcombine.high %v1313_v28, %v1317_v29  ;;  %v15325_v39 = vcombine.high %v1314_v31, %v1318_v32  ;;  %v1346_v18 = vld [vmem:[#allocation5 + $0x2488] sm:$0xff] }
 0x2a2   :  { %v1350_v19 = vld [vmem:[#allocation5 + $0x24a8] sm:$0xff] }
 0x2a4   :  { %8260 = vmatpush1.bf16.msra.mxu0 %v15274_v44  ;;  %8690 = vmatpush1.bf16.msra.mxu1 %v15276_v45  ;;  %v1326_v44 = vld [vmem:[#allocation5 + $0x23e8] sm:$0xff]  ;;  %v15322_v45 = vcombine.low %v1313_v28, %v1317_v29  ;;  %v1357_v28 = vld [vmem:[#allocation5 + $0x24e0] sm:$0xff] }
 0x2a5   :  { %8261 = vmatprep.subr.bf16.mxu0 %v15283_v47  ;;  %8691 = vmatprep.subr.bf16.mxu1 %v15285_v48  ;;  %v15324_v47 = vcombine.low %v1314_v31, %v1318_v32  ;;  %v15331_v48 = vcombine.high %v1321_v40, %v1325_v41  ;;  %v15333_v49 = vcombine.high %v1322_v42, %v1326_v44  ;;  %v1354_v29 = vld [vmem:[#allocation5 + $0x24c8] sm:$0xff] }
 0x2a6   :  { %v15332_v60 = vcombine.low %v1322_v42, %v1326_v44  ;;  %v1358_v31 = vld [vmem:[#allocation5 + $0x24e8] sm:$0xff] }
 0x2a7   :  { %v1366_v42 = vld [vmem:[#allocation5 + $0x2528] sm:$0xff] }
 0x2a8   :  { %8262 = vmatpush1.bf16.msra.mxu0 %v15282_v54  ;;  %8692 = vmatpush1.bf16.msra.mxu1 %v15284_v55  ;;  %v1334_v54 = vld [vmem:[#allocation5 + $0x2428] sm:$0xff]  ;;  %v15330_v55 = vcombine.low %v1321_v40, %v1325_v41  ;;  %v1365_v40 = vld [vmem:[#allocation5 + $0x2520] sm:$0xff] }
 0x2a9   :  { %8263 = vmatprep.subr.bf16.mxu0 %v15291_v56  ;;  %8693 = vmatprep.subr.bf16.mxu1 %v15293_v57  ;;  %v133_v56 = vld [vmem:[#allocation2 + $0x80] sm:$0xff]  ;;  %v15341_v62 = vcombine.high %v1330_v52, %v1334_v54  ;;  %v15340_v9 = vcombine.low %v1330_v52, %v1334_v54  ;;  %v1362_v41 = vld [vmem:[#allocation5 + $0x2508] sm:$0xff] }
 0x2aa   :  { %v153_v57 = vld [vmem:[#allocation2 + $0x120] sm:$0xff]  ;;  %v1374_v52 = vld [vmem:[#allocation5 + $0x2568] sm:$0xff] }
 0x2ac   :  { %8264 = vmatpush1.bf16.msra.mxu0 %v15290_v1  ;;  %8694 = vmatpush1.bf16.msra.mxu1 %v15292_v2  ;;  %v1341_v1 = vld [vmem:[#allocation5 + $0x2460] sm:$0xff]  ;;  %v1338_v2 = vld [vmem:[#allocation5 + $0x2448] sm:$0xff] }
 0x2ad   :  { %8265 = vmatprep.subr.bf16.mxu0 %v15299_v3  ;;  %8695 = vmatprep.subr.bf16.mxu1 %v15301_v4  ;;  %v16840_v3 = vpack.c.bf16 %v153_v57, %v133_v56  ;;  %v1342_v4 = vld [vmem:[#allocation5 + $0x2468] sm:$0xff]  ;;  %v15346_v20 = vcombine.low %v1337_v63, %v1341_v1  ;;  %v15381_v57 = vcombine.high %v1370_v51, %v1374_v52 }
 0x2b0   :  { %8266 = vmatpush1.bf16.msra.mxu0 %v15298_v11  ;;  %8696 = vmatpush1.bf16.msra.mxu1 %v15300_v12  ;;  %v15347_v11 = vcombine.high %v1337_v63, %v1341_v1  ;;  %v15349_v12 = vcombine.high %v1338_v2, %v1342_v4  ;;  %v1382_v63 = vld [vmem:[#allocation5 + $0x25a8] sm:$0xff] }
 0x2b1   :  { %8267 = vmatprep.subr.bf16.mxu0 %v15307_v13  ;;  %8697 = vmatprep.subr.bf16.mxu1 %v15309_v16  ;;  %v1345_v13 = vld [vmem:[#allocation5 + $0x2480] sm:$0xff] }
 0x2b2   :  { %v1349_v16 = vld [vmem:[#allocation5 + $0x24a0] sm:$0xff] }
 0x2b3   :  { %v15354_v32 = vcombine.low %v1345_v13, %v1349_v16 }
 0x2b4   :  { %8268 = vmatpush1.bf16.msra.mxu0 %v15306_v21  ;;  %8698 = vmatpush1.bf16.msra.mxu1 %v15308_v22  ;;  %v15348_v21 = vcombine.low %v1338_v2, %v1342_v4  ;;  %v15355_v22 = vcombine.high %v1345_v13, %v1349_v16  ;;  %v15380_v2 = vcombine.low %v1370_v51, %v1374_v52  ;;  %v1417_v52 = vld [vmem:[#allocation5 + $0x26c0] sm:$0xff] }
 0x2b5   :  { %8269 = vmatprep.subr.bf16.mxu0 %v15315_v23  ;;  %8699 = vmatprep.subr.bf16.mxu1 %v15317_v24  ;;  %v15357_v23 = vcombine.high %v1346_v18, %v1350_v19  ;;  %v1353_v24 = vld [vmem:[#allocation5 + $0x24c0] sm:$0xff] }
 0x2b6   :  { %v15362_v44 = vcombine.low %v1353_v24, %v1357_v28 }
 0x2b8   :  { %8270 = vmatpush1.bf16.msra.mxu0 %v15314_v34  ;;  %8700 = vmatpush1.bf16.msra.mxu1 %v15316_v35  ;;  %v15356_v34 = vcombine.low %v1346_v18, %v1350_v19  ;;  %v15363_v35 = vcombine.high %v1353_v24, %v1357_v28  ;;  %v1393_v19 = vld [vmem:[#allocation5 + $0x2600] sm:$0xff] }
 0x2b9   :  { %8271 = vmatprep.subr.bf16.mxu0 %v15323_v36  ;;  %8701 = vmatprep.subr.bf16.mxu1 %v15325_v39  ;;  %v15365_v36 = vcombine.high %v1354_v29, %v1358_v31  ;;  %v1361_v39 = vld [vmem:[#allocation5 + $0x2500] sm:$0xff] }
 0x2ba   :  { %v15370_v54 = vcombine.low %v1361_v39, %v1365_v40 }
 0x2bc   :  { %8272 = vmatpush1.bf16.msra.mxu0 %v15322_v45  ;;  %8702 = vmatpush1.bf16.msra.mxu1 %v15324_v47  ;;  %v15364_v45 = vcombine.low %v1354_v29, %v1358_v31  ;;  %v15371_v47 = vcombine.high %v1361_v39, %v1365_v40  ;;  %v1401_v31 = vld [vmem:[#allocation5 + $0x2640] sm:$0xff] }
 0x2bd   :  { %8273 = vmatprep.subr.bf16.mxu0 %v15331_v48  ;;  %8703 = vmatprep.subr.bf16.mxu1 %v15333_v49  ;;  %v15373_v48 = vcombine.high %v1362_v41, %v1366_v42  ;;  %v1369_v49 = vld [vmem:[#allocation5 + $0x2540] sm:$0xff] }
 0x2be   :  { %v15379_v56 = vcombine.high %v1369_v49, %v1373_v50  ;;  %v15378_v1 = vcombine.low %v1369_v49, %v1373_v50 }
 0x2c0   :  { %8274 = vmatpush1.bf16.msra.mxu0 %v15330_v55  ;;  %8704 = vmatpush1.bf16.msra.mxu1 %v15332_v60  ;;  %v15372_v55 = vcombine.low %v1362_v41, %v1366_v42  ;;  %v1377_v60 = vld [vmem:[#allocation5 + $0x2580] sm:$0xff] }
 0x2c1   :  { %8286 = vmatprep.subr.bf16.mxu0 %v15339_v61  ;;  %8716 = vmatprep.subr.bf16.mxu1 %v15341_v62  ;;  %v1381_v61 = vld [vmem:[#allocation5 + $0x25a0] sm:$0xff]  ;;  %v1378_v62 = vld [vmem:[#allocation5 + $0x2588] sm:$0xff] }
 0x2c2   :  { %v15387_v4 = vcombine.high %v1377_v60, %v1381_v61  ;;  %v15389_v5 = vcombine.high %v1378_v62, %v1382_v63  ;;  %v15388_v13 = vcombine.low %v1378_v62, %v1382_v63  ;;  %v1409_v42 = vld [vmem:[#allocation5 + $0x2680] sm:$0xff] }
 0x2c3   :  { %8276 = vmatmul.mubr.bf16.vlgmr.msra.gmra.mrb[0].mxu0 %v16840_v3  ;;  %8706 = vmatmul.mubr.bf16.vlgmr.msra.gmra.mrb[0].mxu1 %v16840_v3  ;;  %v1425_v63 = vld [vmem:[#allocation5 + $0x2700] sm:$0xff] }
 0x2c4   :  { %8287 = vmatpush1.bf16.msra.mxu0 %v15338_v8  ;;  %8717 = vmatpush1.bf16.msra.mxu1 %v15340_v9  ;;  %v1389_v8 = vld [vmem:[#allocation5 + $0x25e0] sm:$0xff]  ;;  %v1386_v9 = vld [vmem:[#allocation5 + $0x25c8] sm:$0xff] }
 0x2c5   :  { %8288 = vmatprep.subr.bf16.mxu0 %v15347_v11  ;;  %8718 = vmatprep.subr.bf16.mxu1 %v15349_v12  ;;  %v1390_v11 = vld [vmem:[#allocation5 + $0x25e8] sm:$0xff]  ;;  %v15386_v12 = vcombine.low %v1377_v60, %v1381_v61  ;;  %v15395_v16 = vcombine.high %v1385_v7, %v1389_v8 }
 0x2c6   :  { %8318 = vmatprep.mubr.bf16.mxu0 %v16842_v17  ;;  %8748 = vmatprep.mubr.bf16.mxu1 %v16842_v17  ;;  %v15397_v18 = vcombine.high %v1386_v9, %v1390_v11  ;;  %v15396_v24 = vcombine.low %v1386_v9, %v1390_v11  ;;  %v1433_v11 = vld [vmem:[#allocation5 + $0x2740] sm:$0xff] }
 0x2c8   :  { %8289 = vmatpush1.bf16.msra.mxu0 %v15346_v20  ;;  %8719 = vmatpush1.bf16.msra.mxu1 %v15348_v21  ;;  %v1397_v20 = vld [vmem:[#allocation5 + $0x2620] sm:$0xff]  ;;  %v1394_v21 = vld [vmem:[#allocation5 + $0x2608] sm:$0xff] }
 0x2c9   :  { %8290 = vmatprep.subr.bf16.mxu0 %v15355_v22  ;;  %8720 = vmatprep.subr.bf16.mxu1 %v15357_v23  ;;  %v1398_v22 = vld [vmem:[#allocation5 + $0x2628] sm:$0xff]  ;;  %v15394_v23 = vcombine.low %v1385_v7, %v1389_v8  ;;  %v15403_v28 = vcombine.high %v1393_v19, %v1397_v20 }
 0x2ca   :  { %v15405_v29 = vcombine.high %v1394_v21, %v1398_v22  ;;  %v15404_v39 = vcombine.low %v1394_v21, %v1398_v22  ;;  %v1441_v22 = vld [vmem:[#allocation5 + $0x2780] sm:$0xff] }
 0x2cc   :  { %8291 = vmatpush1.bf16.msra.mxu0 %v15354_v32  ;;  %8721 = vmatpush1.bf16.msra.mxu1 %v15356_v34  ;;  %v1405_v32 = vld [vmem:[#allocation5 + $0x2660] sm:$0xff]  ;;  %v1402_v34 = vld [vmem:[#allocation5 + $0x2648] sm:$0xff] }
 0x2cd   :  { %8292 = vmatprep.subr.bf16.mxu0 %v15363_v35  ;;  %8722 = vmatprep.subr.bf16.mxu1 %v15365_v36  ;;  %v1406_v35 = vld [vmem:[#allocation5 + $0x2668] sm:$0xff]  ;;  %v15402_v36 = vcombine.low %v1393_v19, %v1397_v20  ;;  %v15411_v40 = vcombine.high %v1401_v31, %v1405_v32 }
 0x2ce   :  { %v15413_v41 = vcombine.high %v1402_v34, %v1406_v35  ;;  %v15412_v49 = vcombine.low %v1402_v34, %v1406_v35  ;;  %v1449_v35 = vld [vmem:[#allocation5 + $0x27c0] sm:$0xff] }
 0x2d0   :  { %8293 = vmatpush1.bf16.msra.mxu0 %v15362_v44  ;;  %8723 = vmatpush1.bf16.msra.mxu1 %v15364_v45  ;;  %v1413_v44 = vld [vmem:[#allocation5 + $0x26a0] sm:$0xff]  ;;  %v1410_v45 = vld [vmem:[#allocation5 + $0x2688] sm:$0xff] }
 0x2d1   :  { %8294 = vmatprep.subr.bf16.mxu0 %v15371_v47  ;;  %8724 = vmatprep.subr.bf16.mxu1 %v15373_v48  ;;  %v1414_v47 = vld [vmem:[#allocation5 + $0x26a8] sm:$0xff]  ;;  %v15410_v48 = vcombine.low %v1401_v31, %v1405_v32  ;;  %v15419_v50 = vcombine.high %v1409_v42, %v1413_v44 }
 0x2d2   :  { %v15421_v51 = vcombine.high %v1410_v45, %v1414_v47  ;;  %v15420_v60 = vcombine.low %v1410_v45, %v1414_v47  ;;  %v179_v47 = vld [vmem:[#allocation5 + $0x10] sm:$0xff] }
 0x2d4   :  { %8295 = vmatpush1.bf16.msra.mxu0 %v15370_v54  ;;  %8725 = vmatpush1.bf16.msra.mxu1 %v15372_v55  ;;  %v1421_v54 = vld [vmem:[#allocation5 + $0x26e0] sm:$0xff]  ;;  %v1418_v55 = vld [vmem:[#allocation5 + $0x26c8] sm:$0xff] }
 0x2d5   :  { %8296 = vmatprep.subr.bf16.mxu0 %v15379_v56  ;;  %8726 = vmatprep.subr.bf16.mxu1 %v15381_v57  ;;  %v1422_v56 = vld [vmem:[#allocation5 + $0x26e8] sm:$0xff]  ;;  %v15418_v57 = vcombine.low %v1409_v42, %v1413_v44  ;;  %v15427_v61 = vcombine.high %v1417_v52, %v1421_v54 }
 0x2d6   :  { %v15429_v62 = vcombine.high %v1418_v55, %v1422_v56  ;;  %v15428_v7 = vcombine.low %v1418_v55, %v1422_v56 }
 0x2d8   :  { %8297 = vmatpush1.bf16.msra.mxu0 %v15378_v1  ;;  %8727 = vmatpush1.bf16.msra.mxu1 %v15380_v2  ;;  %v1429_v1 = vld [vmem:[#allocation5 + $0x2720] sm:$0xff]  ;;  %v1426_v2 = vld [vmem:[#allocation5 + $0x2708] sm:$0xff] }
 0x2d9   :  { %8298 = vmatprep.subr.bf16.mxu0 %v15387_v4  ;;  %8728 = vmatprep.subr.bf16.mxu1 %v15389_v5  ;;  %v1430_v4 = vld [vmem:[#allocation5 + $0x2728] sm:$0xff]  ;;  %v15426_v5 = vcombine.low %v1417_v52, %v1421_v54  ;;  %v15435_v8 = vcombine.high %v1425_v63, %v1429_v1  ;;  %v135_v52 = vld [vmem:[#allocation2 + $0x90] sm:$0xff] }
 0x2da   :  { %v15437_v9 = vcombine.high %v1426_v2, %v1430_v4  ;;  %v15436_v19 = vcombine.low %v1426_v2, %v1430_v4  ;;  %v155_v54 = vld [vmem:[#allocation2 + $0x130] sm:$0xff] }
 0x2dc   :  { %8299 = vmatpush1.bf16.msra.mxu0 %v15386_v12  ;;  %8729 = vmatpush1.bf16.msra.mxu1 %v15388_v13  ;;  %v1437_v12 = vld [vmem:[#allocation5 + $0x2760] sm:$0xff]  ;;  %v1434_v13 = vld [vmem:[#allocation5 + $0x2748] sm:$0xff] }
 0x2dd   :  { %8300 = vmatprep.subr.bf16.mxu0 %v15395_v16  ;;  %8730 = vmatprep.subr.bf16.mxu1 %v15397_v18  ;;  %v1438_v16 = vld [vmem:[#allocation5 + $0x2768] sm:$0xff]  ;;  %v15434_v18 = vcombine.low %v1425_v63, %v1429_v1  ;;  %v15443_v20 = vcombine.high %v1433_v11, %v1437_v12  ;;  %v188_v63 = vld [vmem:[#allocation5 + $0x58] sm:$0xff] }
 0x2de   :  { %v15445_v21 = vcombine.high %v1434_v13, %v1438_v16  ;;  %v15444_v31 = vcombine.low %v1434_v13, %v1438_v16  ;;  %v192_v1 = vld [vmem:[#allocation5 + $0x78] sm:$0xff] }
 0x2df   :  { %v14200_v16 = vcombine.low %v188_v63, %v192_v1 }
 0x2e0   :  { %8301 = vmatpush1.bf16.msra.mxu0 %v15394_v23  ;;  %8731 = vmatpush1.bf16.msra.mxu1 %v15396_v24  ;;  %v1445_v23 = vld [vmem:[#allocation5 + $0x27a0] sm:$0xff]  ;;  %v1442_v24 = vld [vmem:[#allocation5 + $0x2788] sm:$0xff] }
 0x2e1   :  { %8302 = vmatprep.subr.bf16.mxu0 %v15403_v28  ;;  %8732 = vmatprep.subr.bf16.mxu1 %v15405_v29  ;;  %v1446_v28 = vld [vmem:[#allocation5 + $0x27a8] sm:$0xff]  ;;  %v15442_v29 = vcombine.low %v1433_v11, %v1437_v12  ;;  %v15451_v32 = vcombine.high %v1441_v22, %v1445_v23  ;;  %v196_v11 = vld [vmem:[#allocation5 + $0x98] sm:$0xff] }
 0x2e2   :  { %v15453_v34 = vcombine.high %v1442_v24, %v1446_v28  ;;  %v15452_v42 = vcombine.low %v1442_v24, %v1446_v28  ;;  %v200_v12 = vld [vmem:[#allocation5 + $0xb8] sm:$0xff] }
 0x2e3   :  { %v14208_v28 = vcombine.low %v196_v11, %v200_v12 }
 0x2e4   :  { %8303 = vmatpush1.bf16.msra.mxu0 %v15402_v36  ;;  %8733 = vmatpush1.bf16.msra.mxu1 %v15404_v39  ;;  %v1453_v36 = vld [vmem:[#allocation5 + $0x27e0] sm:$0xff]  ;;  %v1450_v39 = vld [vmem:[#allocation5 + $0x27c8] sm:$0xff] }
 0x2e5   :  { %8304 = vmatprep.subr.bf16.mxu0 %v15411_v40  ;;  %8734 = vmatprep.subr.bf16.mxu1 %v15413_v41  ;;  %v1454_v40 = vld [vmem:[#allocation5 + $0x27e8] sm:$0xff]  ;;  %v15450_v41 = vcombine.low %v1441_v22, %v1445_v23  ;;  %v15459_v44 = vcombine.high %v1449_v35, %v1453_v36  ;;  %v204_v22 = vld [vmem:[#allocation5 + $0xd8] sm:$0xff] }
 0x2e6   :  { %v15461_v45 = vcombine.high %v1450_v39, %v1454_v40  ;;  %v15460_v55 = vcombine.low %v1450_v39, %v1454_v40  ;;  %v208_v23 = vld [vmem:[#allocation5 + $0xf8] sm:$0xff] }
 0x2e7   :  { %v14216_v40 = vcombine.low %v204_v22, %v208_v23 }
 0x2e8   :  { %8305 = vmatpush1.bf16.msra.mxu0 %v15410_v48  ;;  %8735 = vmatpush1.bf16.msra.mxu1 %v15412_v49  ;;  %v183_v48 = vld [vmem:[#allocation5 + $0x30] sm:$0xff]  ;;  %v180_v49 = vld [vmem:[#allocation5 + $0x18] sm:$0xff] }
 0x2e9   :  { %8306 = vmatprep.subr.bf16.mxu0 %v15419_v50  ;;  %8736 = vmatprep.subr.bf16.mxu1 %v15421_v51  ;;  %v184_v50 = vld [vmem:[#allocation5 + $0x38] sm:$0xff]  ;;  %v15458_v51 = vcombine.low %v1449_v35, %v1453_v36  ;;  %v14191_v56 = vcombine.high %v179_v47, %v183_v48  ;;  %v14190_v2 = vcombine.low %v179_v47, %v183_v48 }
 0x2ea   :  { %v14192_v4 = vcombine.low %v180_v49, %v184_v50  ;;  %v212_v35 = vld [vmem:[#allocation5 + $0x118] sm:$0xff] }
 0x2eb   :  { %v216_v36 = vld [vmem:[#allocation5 + $0x138] sm:$0xff] }
 0x2ec   :  { %8307 = vmatpush1.bf16.msra.mxu0 %v15418_v57  ;;  %8737 = vmatpush1.bf16.msra.mxu1 %v15420_v60  ;;  %v14193_v57 = vcombine.high %v180_v49, %v184_v50  ;;  %v187_v60 = vld [vmem:[#allocation5 + $0x50] sm:$0xff]  ;;  %v224_v47 = vld [vmem:[#allocation5 + $0x178] sm:$0xff]  ;;  %v14224_v49 = vcombine.low %v212_v35, %v216_v36 }
 0x2ed   :  { %8308 = vmatprep.subr.bf16.mxu0 %v15427_v61  ;;  %8738 = vmatprep.subr.bf16.mxu1 %v15429_v62  ;;  %v191_v61 = vld [vmem:[#allocation5 + $0x70] sm:$0xff]  ;;  %v16848_v62 = vpack.c.bf16 %v155_v54, %v135_v52 }
 0x2ee   :  { %v14198_v13 = vcombine.low %v187_v60, %v191_v61  ;;  %v227_v52 = vld [vmem:[#allocation5 + $0x190] sm:$0xff] }
 0x2ef   :  { %v231_v54 = vld [vmem:[#allocation5 + $0x1b0] sm:$0xff] }
 0x2f0   :  { %8309 = vmatpush1.bf16.msra.mxu0 %v15426_v5  ;;  %8739 = vmatpush1.bf16.msra.mxu1 %v15428_v7  ;;  %v14199_v5 = vcombine.high %v187_v60, %v191_v61  ;;  %v14201_v7 = vcombine.high %v188_v63, %v192_v1  ;;  %v14239_v61 = vcombine.high %v227_v52, %v231_v54  ;;  %v235_v1 = vld [vmem:[#allocation5 + $0x1d0] sm:$0xff] }
 0x2f1   :  { %8310 = vmatprep.subr.bf16.mxu0 %v15435_v8  ;;  %8740 = vmatprep.subr.bf16.mxu1 %v15437_v9  ;;  %v195_v8 = vld [vmem:[#allocation5 + $0x90] sm:$0xff] }
 0x2f2   :  { %v199_v9 = vld [vmem:[#allocation5 + $0xb0] sm:$0xff] }
 0x2f3   :  { %v14206_v24 = vcombine.low %v195_v8, %v199_v9 }
 0x2f4   :  { %8311 = vmatpush1.bf16.msra.mxu0 %v15434_v18  ;;  %8741 = vmatpush1.bf16.msra.mxu1 %v15436_v19  ;;  %v14207_v18 = vcombine.high %v195_v8, %v199_v9  ;;  %v14209_v19 = vcombine.high %v196_v11, %v200_v12  ;;  %v243_v12 = vld [vmem:[#allocation5 + $0x210] sm:$0xff] }
 0x2f5   :  { %8312 = vmatprep.subr.bf16.mxu0 %v15443_v20  ;;  %8742 = vmatprep.subr.bf16.mxu1 %v15445_v21  ;;  %v203_v20 = vld [vmem:[#allocation5 + $0xd0] sm:$0xff] }
 0x2f6   :  { %v207_v21 = vld [vmem:[#allocation5 + $0xf0] sm:$0xff] }
 0x2f7   :  { %v14214_v39 = vcombine.low %v203_v20, %v207_v21 }
 0x2f8   :  { %8313 = vmatpush1.bf16.msra.mxu0 %v15442_v29  ;;  %8743 = vmatpush1.bf16.msra.mxu1 %v15444_v31  ;;  %v14215_v29 = vcombine.high %v203_v20, %v207_v21  ;;  %v14217_v31 = vcombine.high %v204_v22, %v208_v23  ;;  %v251_v23 = vld [vmem:[#allocation5 + $0x250] sm:$0xff] }
 0x2f9   :  { %8314 = vmatprep.subr.bf16.mxu0 %v15451_v32  ;;  %8744 = vmatprep.subr.bf16.mxu1 %v15453_v34  ;;  %v211_v32 = vld [vmem:[#allocation5 + $0x110] sm:$0xff] }
 0x2fa   :  { %v215_v34 = vld [vmem:[#allocation5 + $0x130] sm:$0xff] }
 0x2fb   :  { %v14222_v48 = vcombine.low %v211_v32, %v215_v34 }
 0x2fc   :  { %8315 = vmatpush1.bf16.msra.mxu0 %v15450_v41  ;;  %8745 = vmatpush1.bf16.msra.mxu1 %v15452_v42  ;;  %v14223_v41 = vcombine.high %v211_v32, %v215_v34  ;;  %v219_v42 = vld [vmem:[#allocation5 + $0x150] sm:$0xff] }
 0x2fd   :  { %8316 = vmatprep.subr.bf16.mxu0 %v15459_v44  ;;  %8746 = vmatprep.subr.bf16.mxu1 %v15461_v45  ;;  %v223_v44 = vld [vmem:[#allocation5 + $0x170] sm:$0xff]  ;;  %v220_v45 = vld [vmem:[#allocation5 + $0x158] sm:$0xff] }
 0x2fe   :  { %v14231_v50 = vcombine.high %v219_v42, %v223_v44  ;;  %v14232_v60 = vcombine.low %v220_v45, %v224_v47 }
 0x300   :  { %8317 = vmatpush1.bf16.msra.mxu0 %v15458_v51  ;;  %8747 = vmatpush1.bf16.msra.mxu1 %v15460_v55  ;;  %v14233_v51 = vcombine.high %v220_v45, %v224_v47  ;;  %v228_v55 = vld [vmem:[#allocation5 + $0x198] sm:$0xff]  ;;  %v267_v47 = vld [vmem:[#allocation5 + $0x2d0] sm:$0xff] }
 0x301   :  { %8759 = vmatprep.subr.bf16.mxu0 %v14191_v56  ;;  %9189 = vmatprep.subr.bf16.mxu1 %v14193_v57  ;;  %v232_v56 = vld [vmem:[#allocation5 + $0x1b8] sm:$0xff]  ;;  %v14230_v57 = vcombine.low %v219_v42, %v223_v44 }
 0x302   :  { %v14241_v63 = vcombine.high %v228_v55, %v232_v56  ;;  %v14240_v8 = vcombine.low %v228_v55, %v232_v56  ;;  %v275_v56 = vld [vmem:[#allocation5 + $0x310] sm:$0xff] }
 0x303   :  { %8319 = vmatmul.mubr.bf16.vlgmr.msra.gmra.mrb[0].mxu0 %v16848_v62  ;;  %8749 = vmatmul.mubr.bf16.vlgmr.msra.gmra.mrb[0].mxu1 %v16848_v62 }
 0x304   :  { %8760 = vmatpush1.bf16.msra.mxu0 %v14190_v2  ;;  %9190 = vmatpush1.bf16.msra.mxu1 %v14192_v4  ;;  %v239_v2 = vld [vmem:[#allocation5 + $0x1f0] sm:$0xff]  ;;  %v236_v4 = vld [vmem:[#allocation5 + $0x1d8] sm:$0xff] }
 0x305   :  { %8761 = vmatprep.subr.bf16.mxu0 %v14199_v5  ;;  %9191 = vmatprep.subr.bf16.mxu1 %v14201_v7  ;;  %v240_v5 = vld [vmem:[#allocation5 + $0x1f8] sm:$0xff]  ;;  %v14238_v7 = vcombine.low %v227_v52, %v231_v54  ;;  %v14247_v9 = vcombine.high %v235_v1, %v239_v2 }
 0x306   :  { %8791 = vmatprep.mubr.bf16.mxu0 %v16772_v58  ;;  %9221 = vmatprep.mubr.bf16.mxu1 %v16772_v58  ;;  %v14225_v58 = vcombine.high %v212_v35, %v216_v36  ;;  %v14249_v11 = vcombine.high %v236_v4, %v240_v5  ;;  %v14248_v20 = vcombine.low %v236_v4, %v240_v5  ;;  %v259_v36 = vld [vmem:[#allocation5 + $0x290] sm:$0xff] }
 0x307   :  { %v283_v5 = vld [vmem:[#allocation5 + $0x350] sm:$0xff] }
 0x308   :  { %8762 = vmatpush1.bf16.msra.mxu0 %v14198_v13  ;;  %9192 = vmatpush1.bf16.msra.mxu1 %v14200_v16  ;;  %v247_v13 = vld [vmem:[#allocation5 + $0x230] sm:$0xff]  ;;  %v244_v16 = vld [vmem:[#allocation5 + $0x218] sm:$0xff] }
 0x309   :  { %8763 = vmatprep.subr.bf16.mxu0 %v14207_v18  ;;  %9193 = vmatprep.subr.bf16.mxu1 %v14209_v19  ;;  %v248_v18 = vld [vmem:[#allocation5 + $0x238] sm:$0xff]  ;;  %v14246_v19 = vcombine.low %v235_v1, %v239_v2  ;;  %v14255_v21 = vcombine.high %v243_v12, %v247_v13 }
 0x30a   :  { %v14257_v22 = vcombine.high %v244_v16, %v248_v18  ;;  %v14256_v32 = vcombine.low %v244_v16, %v248_v18  ;;  %v291_v18 = vld [vmem:[#allocation5 + $0x390] sm:$0xff] }
 0x30c   :  { %8764 = vmatpush1.bf16.msra.mxu0 %v14206_v24  ;;  %9194 = vmatpush1.bf16.msra.mxu1 %v14208_v28  ;;  %v255_v24 = vld [vmem:[#allocation5 + $0x270] sm:$0xff]  ;;  %v252_v28 = vld [vmem:[#allocation5 + $0x258] sm:$0xff] }
 0x30d   :  { %8765 = vmatprep.subr.bf16.mxu0 %v14215_v29  ;;  %9195 = vmatprep.subr.bf16.mxu1 %v14217_v31  ;;  %v256_v29 = vld [vmem:[#allocation5 + $0x278] sm:$0xff]  ;;  %v14254_v31 = vcombine.low %v243_v12, %v247_v13  ;;  %v14263_v34 = vcombine.high %v251_v23, %v255_v24 }
 0x30e   :  { %v14265_v35 = vcombine.high %v252_v28, %v256_v29  ;;  %v14264_v42 = vcombine.low %v252_v28, %v256_v29  ;;  %v299_v29 = vld [vmem:[#allocation5 + $0x3d0] sm:$0xff] }
 0x310   :  { %8766 = vmatpush1.bf16.msra.mxu0 %v14214_v39  ;;  %9196 = vmatpush1.bf16.msra.mxu1 %v14216_v40  ;;  %v263_v39 = vld [vmem:[#allocation5 + $0x2b0] sm:$0xff]  ;;  %v260_v40 = vld [vmem:[#allocation5 + $0x298] sm:$0xff] }
 0x311   :  { %8767 = vmatprep.subr.bf16.mxu0 %v14223_v41  ;;  %9197 = vmatprep.subr.bf16.mxu1 %v14225_v58  ;;  %v264_v41 = vld [vmem:[#allocation5 + $0x2b8] sm:$0xff]  ;;  %v14262_v58 = vcombine.low %v251_v23, %v255_v24  ;;  %v14271_v44 = vcombine.high %v259_v36, %v263_v39 }
 0x312   :  { %v14273_v45 = vcombine.high %v260_v40, %v264_v41  ;;  %v14272_v52 = vcombine.low %v260_v40, %v264_v41  ;;  %v307_v41 = vld [vmem:[#allocation5 + $0x410] sm:$0xff] }
 0x314   :  { %8768 = vmatpush1.bf16.msra.mxu0 %v14222_v48  ;;  %9198 = vmatpush1.bf16.msra.mxu1 %v14224_v49  ;;  %v271_v48 = vld [vmem:[#allocation5 + $0x2f0] sm:$0xff]  ;;  %v268_v49 = vld [vmem:[#allocation5 + $0x2d8] sm:$0xff] }
 0x315   :  { %8769 = vmatprep.subr.bf16.mxu0 %v14231_v50  ;;  %9199 = vmatprep.subr.bf16.mxu1 %v14233_v51  ;;  %v272_v50 = vld [vmem:[#allocation5 + $0x2f8] sm:$0xff]  ;;  %v14270_v51 = vcombine.low %v259_v36, %v263_v39  ;;  %v14279_v54 = vcombine.high %v267_v47, %v271_v48 }
 0x316   :  { %v14281_v55 = vcombine.high %v268_v49, %v272_v50  ;;  %v14280_v1 = vcombine.low %v268_v49, %v272_v50  ;;  %v315_v50 = vld [vmem:[#allocation5 + $0x450] sm:$0xff] }
 0x318   :  { %8770 = vmatpush1.bf16.msra.mxu0 %v14230_v57  ;;  %9200 = vmatpush1.bf16.msra.mxu1 %v14232_v60  ;;  %v279_v57 = vld [vmem:[#allocation5 + $0x330] sm:$0xff]  ;;  %v276_v60 = vld [vmem:[#allocation5 + $0x318] sm:$0xff] }
 0x319   :  { %8771 = vmatprep.subr.bf16.mxu0 %v14239_v61  ;;  %9201 = vmatprep.subr.bf16.mxu1 %v14241_v63  ;;  %v280_v61 = vld [vmem:[#allocation5 + $0x338] sm:$0xff]  ;;  %v14278_v63 = vcombine.low %v267_v47, %v271_v48  ;;  %v14287_v2 = vcombine.high %v275_v56, %v279_v57 }
 0x31a   :  { %v14289_v4 = vcombine.high %v276_v60, %v280_v61  ;;  %v14288_v12 = vcombine.low %v276_v60, %v280_v61  ;;  %v323_v61 = vld [vmem:[#allocation5 + $0x490] sm:$0xff] }
 0x31c   :  { %8772 = vmatpush1.bf16.msra.mxu0 %v14238_v7  ;;  %9202 = vmatpush1.bf16.msra.mxu1 %v14240_v8  ;;  %v287_v7 = vld [vmem:[#allocation5 + $0x370] sm:$0xff]  ;;  %v284_v8 = vld [vmem:[#allocation5 + $0x358] sm:$0xff] }
 0x31d   :  { %8773 = vmatprep.subr.bf16.mxu0 %v14247_v9  ;;  %9203 = vmatprep.subr.bf16.mxu1 %v14249_v11  ;;  %v288_v9 = vld [vmem:[#allocation5 + $0x378] sm:$0xff]  ;;  %v14286_v11 = vcombine.low %v275_v56, %v279_v57  ;;  %v14295_v13 = vcombine.high %v283_v5, %v287_v7 }
 0x31e   :  { %v14297_v16 = vcombine.high %v284_v8, %v288_v9  ;;  %v14296_v23 = vcombine.low %v284_v8, %v288_v9  ;;  %v331_v9 = vld [vmem:[#allocation5 + $0x4d0] sm:$0xff] }
 0x320   :  { %8774 = vmatpush1.bf16.msra.mxu0 %v14246_v19  ;;  %9204 = vmatpush1.bf16.msra.mxu1 %v14248_v20  ;;  %v295_v19 = vld [vmem:[#allocation5 + $0x3b0] sm:$0xff]  ;;  %v292_v20 = vld [vmem:[#allocation5 + $0x398] sm:$0xff] }
 0x321   :  { %8775 = vmatprep.subr.bf16.mxu0 %v14255_v21  ;;  %9205 = vmatprep.subr.bf16.mxu1 %v14257_v22  ;;  %v296_v21 = vld [vmem:[#allocation5 + $0x3b8] sm:$0xff]  ;;  %v14294_v22 = vcombine.low %v283_v5, %v287_v7  ;;  %v14303_v24 = vcombine.high %v291_v18, %v295_v19 }
 0x322   :  { %v14305_v28 = vcombine.high %v292_v20, %v296_v21  ;;  %v14304_v36 = vcombine.low %v292_v20, %v296_v21  ;;  %v339_v20 = vld [vmem:[#allocation5 + $0x510] sm:$0xff] }
 0x323   :  { %v343_v21 = vld [vmem:[#allocation5 + $0x530] sm:$0xff] }
 0x324   :  { %8776 = vmatpush1.bf16.msra.mxu0 %v14254_v31  ;;  %9206 = vmatpush1.bf16.msra.mxu1 %v14256_v32  ;;  %v303_v31 = vld [vmem:[#allocation5 + $0x3f0] sm:$0xff]  ;;  %v300_v32 = vld [vmem:[#allocation5 + $0x3d8] sm:$0xff] }
 0x325   :  { %8777 = vmatprep.subr.bf16.mxu0 %v14263_v34  ;;  %9207 = vmatprep.subr.bf16.mxu1 %v14265_v35  ;;  %v304_v34 = vld [vmem:[#allocation5 + $0x3f8] sm:$0xff]  ;;  %v14302_v35 = vcombine.low %v291_v18, %v295_v19  ;;  %v14311_v39 = vcombine.high %v299_v29, %v303_v31 }
 0x326   :  { %v14313_v40 = vcombine.high %v300_v32, %v304_v34  ;;  %v14312_v47 = vcombine.low %v300_v32, %v304_v34  ;;  %v351_v32 = vld [vmem:[#allocation5 + $0x570] sm:$0xff]  ;;  %v348_v34 = vld [vmem:[#allocation5 + $0x558] sm:$0xff] }
 0x328   :  { %8778 = vmatpush1.bf16.msra.mxu0 %v14262_v58  ;;  %9208 = vmatpush1.bf16.msra.mxu1 %v14264_v42  ;;  %v311_v58 = vld [vmem:[#allocation5 + $0x430] sm:$0xff]  ;;  %v308_v42 = vld [vmem:[#allocation5 + $0x418] sm:$0xff] }
 0x329   :  { %8779 = vmatprep.subr.bf16.mxu0 %v14271_v44  ;;  %9209 = vmatprep.subr.bf16.mxu1 %v14273_v45  ;;  %v312_v44 = vld [vmem:[#allocation5 + $0x438] sm:$0xff]  ;;  %v14310_v45 = vcombine.low %v299_v29, %v303_v31  ;;  %v14319_v48 = vcombine.high %v307_v41, %v311_v58  ;;  %v14351_v29 = vcombine.high %v339_v20, %v343_v21  ;;  %v347_v31 = vld [vmem:[#allocation5 + $0x550] sm:$0xff] }
 0x32a   :  { %v14321_v49 = vcombine.high %v308_v42, %v312_v44  ;;  %v14320_v56 = vcombine.low %v308_v42, %v312_v44  ;;  %v359_v42 = vld [vmem:[#allocation5 + $0x5b0] sm:$0xff]  ;;  %v356_v44 = vld [vmem:[#allocation5 + $0x598] sm:$0xff] }
 0x32c   :  { %8780 = vmatpush1.bf16.msra.mxu0 %v14270_v51  ;;  %9210 = vmatpush1.bf16.msra.mxu1 %v14272_v52  ;;  %v319_v51 = vld [vmem:[#allocation5 + $0x470] sm:$0xff]  ;;  %v316_v52 = vld [vmem:[#allocation5 + $0x458] sm:$0xff] }
 0x32d   :  { %8781 = vmatprep.subr.bf16.mxu0 %v14279_v54  ;;  %9211 = vmatprep.subr.bf16.mxu1 %v14281_v55  ;;  %v320_v54 = vld [vmem:[#allocation5 + $0x478] sm:$0xff]  ;;  %v14318_v55 = vcombine.low %v307_v41, %v311_v58  ;;  %v14327_v57 = vcombine.high %v315_v50, %v319_v51  ;;  %v355_v58 = vld [vmem:[#allocation5 + $0x590] sm:$0xff] }
 0x32e   :  { %v14329_v60 = vcombine.high %v316_v52, %v320_v54  ;;  %v14328_v5 = vcombine.low %v316_v52, %v320_v54  ;;  %v367_v52 = vld [vmem:[#allocation5 + $0x5f0] sm:$0xff]  ;;  %v364_v54 = vld [vmem:[#allocation5 + $0x5d8] sm:$0xff] }
 0x330   :  { %8782 = vmatpush1.bf16.msra.mxu0 %v14278_v63  ;;  %9212 = vmatpush1.bf16.msra.mxu1 %v14280_v1  ;;  %v327_v63 = vld [vmem:[#allocation5 + $0x4b0] sm:$0xff]  ;;  %v324_v1 = vld [vmem:[#allocation5 + $0x498] sm:$0xff] }
 0x331   :  { %8783 = vmatprep.subr.bf16.mxu0 %v14287_v2  ;;  %9213 = vmatprep.subr.bf16.mxu1 %v14289_v4  ;;  %v328_v2 = vld [vmem:[#allocation5 + $0x4b8] sm:$0xff]  ;;  %v14326_v4 = vcombine.low %v315_v50, %v319_v51  ;;  %v14335_v7 = vcombine.high %v323_v61, %v327_v63  ;;  %v363_v51 = vld [vmem:[#allocation5 + $0x5d0] sm:$0xff] }
 0x332   :  { %v14337_v8 = vcombine.high %v324_v1, %v328_v2 }
 0x334   :  { %8784 = vmatpush1.bf16.msra.mxu0 %v14286_v11  ;;  %9214 = vmatpush1.bf16.msra.mxu1 %v14288_v12  ;;  %v335_v11 = vld [vmem:[#allocation5 + $0x4f0] sm:$0xff]  ;;  %v332_v12 = vld [vmem:[#allocation5 + $0x4d8] sm:$0xff] }
 0x335   :  { %8785 = vmatprep.subr.bf16.mxu0 %v14295_v13  ;;  %9215 = vmatprep.subr.bf16.mxu1 %v14297_v16  ;;  %v336_v13 = vld [vmem:[#allocation5 + $0x4f8] sm:$0xff]  ;;  %v14334_v16 = vcombine.low %v323_v61, %v327_v63  ;;  %v14343_v18 = vcombine.high %v331_v9, %v335_v11  ;;  %v371_v63 = vld [vmem:[#allocation5 + $0x610] sm:$0xff] }
 0x336   :  { %v14345_v19 = vcombine.high %v332_v12, %v336_v13 }
 0x338   :  { %8786 = vmatpush1.bf16.msra.mxu0 %v14294_v22  ;;  %9216 = vmatpush1.bf16.msra.mxu1 %v14296_v23  ;;  %v340_v22 = vld [vmem:[#allocation5 + $0x518] sm:$0xff] }
 0x339   :  { %8787 = vmatprep.subr.bf16.mxu0 %v14303_v24  ;;  %9217 = vmatprep.subr.bf16.mxu1 %v14305_v28  ;;  %v344_v23 = vld [vmem:[#allocation5 + $0x538] sm:$0xff]  ;;  %v14342_v24 = vcombine.low %v331_v9, %v335_v11  ;;  %v14344_v28 = vcombine.low %v332_v12, %v336_v13  ;;  %v379_v11 = vld [vmem:[#allocation5 + $0x650] sm:$0xff] }
 0x33a   :  { %v383_v12 = vld [vmem:[#allocation5 + $0x670] sm:$0xff]  ;;  %v380_v13 = vld [vmem:[#allocation5 + $0x658] sm:$0xff] }
 0x33c   :  { %8788 = vmatpush1.bf16.msra.mxu0 %v14302_v35  ;;  %9218 = vmatpush1.bf16.msra.mxu1 %v14304_v36  ;;  %v352_v35 = vld [vmem:[#allocation5 + $0x578] sm:$0xff]  ;;  %v14350_v36 = vcombine.low %v339_v20, %v343_v21  ;;  %v387_v21 = vld [vmem:[#allocation5 + $0x690] sm:$0xff] }
 0x33d   :  { %8789 = vmatprep.subr.bf16.mxu0 %v14311_v39  ;;  %9219 = vmatprep.subr.bf16.mxu1 %v14313_v40  ;;  %v14352_v39 = vcombine.low %v340_v22, %v344_v23  ;;  %v14359_v40 = vcombine.high %v347_v31, %v351_v32  ;;  %v14361_v41 = vcombine.high %v348_v34, %v352_v35 }
 0x340   :  { %8790 = vmatpush1.bf16.msra.mxu0 %v14310_v45  ;;  %9220 = vmatpush1.bf16.msra.mxu1 %v14312_v47  ;;  %v360_v45 = vld [vmem:[#allocation5 + $0x5b8] sm:$0xff]  ;;  %v14358_v47 = vcombine.low %v347_v31, %v351_v32  ;;  %v395_v32 = vld [vmem:[#allocation5 + $0x6d0] sm:$0xff] }
 0x341   :  { %8802 = vmatprep.subr.bf16.mxu0 %v14319_v48  ;;  %9232 = vmatprep.subr.bf16.mxu1 %v14321_v49  ;;  %v14360_v48 = vcombine.low %v348_v34, %v352_v35  ;;  %v14367_v49 = vcombine.high %v355_v58, %v359_v42  ;;  %v14369_v50 = vcombine.high %v356_v44, %v360_v45  ;;  %v399_v34 = vld [vmem:[#allocation5 + $0x6f0] sm:$0xff]  ;;  %v396_v35 = vld [vmem:[#allocation5 + $0x6d8] sm:$0xff] }
 0x343   :  { %8792 = vmatmul.mubr.bf16.vlgmr.msra.gmra.mrb[4].mxu0 %v16776_v15  ;;  %9222 = vmatmul.mubr.bf16.vlgmr.msra.gmra.mrb[4].mxu1 %v16776_v15  ;;  %v14336_v15 = vcombine.low %v324_v1, %v328_v2  ;;  %v375_v1 = vld [vmem:[#allocation5 + $0x630] sm:$0xff]  ;;  %v372_v2 = vld [vmem:[#allocation5 + $0x618] sm:$0xff] }
 0x344   :  { %8803 = vmatpush1.bf16.msra.mxu0 %v14318_v55  ;;  %9233 = vmatpush1.bf16.msra.mxu1 %v14320_v56  ;;  %v368_v55 = vld [vmem:[#allocation5 + $0x5f8] sm:$0xff]  ;;  %v14366_v56 = vcombine.low %v355_v58, %v359_v42  ;;  %v403_v42 = vld [vmem:[#allocation5 + $0x710] sm:$0xff] }
 0x345   :  { %8804 = vmatprep.subr.bf16.mxu0 %v14327_v57  ;;  %9234 = vmatprep.subr.bf16.mxu1 %v14329_v60  ;;  %v14368_v57 = vcombine.low %v356_v44, %v360_v45  ;;  %v14375_v60 = vcombine.high %v363_v51, %v367_v52  ;;  %v14377_v61 = vcombine.high %v364_v54, %v368_v55  ;;  %v407_v44 = vld [vmem:[#allocation5 + $0x730] sm:$0xff]  ;;  %v404_v45 = vld [vmem:[#allocation5 + $0x718] sm:$0xff] }
 0x346   :  { %8834 = vmatprep.mubr.bf16.mxu0 %v16778_v25  ;;  %9264 = vmatprep.mubr.bf16.mxu1 %v16778_v25  ;;  %v14353_v25 = vcombine.high %v340_v22, %v344_v23  ;;  %v391_v22 = vld [vmem:[#allocation5 + $0x6b0] sm:$0xff]  ;;  %v388_v23 = vld [vmem:[#allocation5 + $0x698] sm:$0xff] }
 0x348   :  { %8805 = vmatpush1.bf16.msra.mxu0 %v14326_v4  ;;  %9235 = vmatpush1.bf16.msra.mxu1 %v14328_v5  ;;  %v376_v4 = vld [vmem:[#allocation5 + $0x638] sm:$0xff]  ;;  %v14374_v5 = vcombine.low %v363_v51, %v367_v52  ;;  %v411_v52 = vld [vmem:[#allocation5 + $0x750] sm:$0xff] }
 0x349   :  { %8806 = vmatprep.subr.bf16.mxu0 %v14335_v7  ;;  %9236 = vmatprep.subr.bf16.mxu1 %v14337_v8  ;;  %v14376_v7 = vcombine.low %v364_v54, %v368_v55  ;;  %v14383_v8 = vcombine.high %v371_v63, %v375_v1  ;;  %v14385_v9 = vcombine.high %v372_v2, %v376_v4  ;;  %v415_v54 = vld [vmem:[#allocation5 + $0x770] sm:$0xff]  ;;  %v412_v55 = vld [vmem:[#allocation5 + $0x758] sm:$0xff] }
 0x34c   :  { %8807 = vmatpush1.bf16.msra.mxu0 %v14334_v16  ;;  %9237 = vmatpush1.bf16.msra.mxu1 %v14336_v15  ;;  %v384_v16 = vld [vmem:[#allocation5 + $0x678] sm:$0xff]  ;;  %v14382_v15 = vcombine.low %v371_v63, %v375_v1  ;;  %v419_v1 = vld [vmem:[#allocation5 + $0x790] sm:$0xff] }
 0x34d   :  { %8808 = vmatprep.subr.bf16.mxu0 %v14343_v18  ;;  %9238 = vmatprep.subr.bf16.mxu1 %v14345_v19  ;;  %v14384_v18 = vcombine.low %v372_v2, %v376_v4  ;;  %v14391_v19 = vcombine.high %v379_v11, %v383_v12  ;;  %v14393_v20 = vcombine.high %v380_v13, %v384_v16  ;;  %v423_v2 = vld [vmem:[#allocation5 + $0x7b0] sm:$0xff]  ;;  %v420_v4 = vld [vmem:[#allocation5 + $0x798] sm:$0xff] }
 0x350   :  { %8809 = vmatpush1.bf16.msra.mxu0 %v14342_v24  ;;  %9239 = vmatpush1.bf16.msra.mxu1 %v14344_v28  ;;  %v392_v24 = vld [vmem:[#allocation5 + $0x6b8] sm:$0xff]  ;;  %v14390_v28 = vcombine.low %v379_v11, %v383_v12  ;;  %v427_v12 = vld [vmem:[#allocation5 + $0x7d0] sm:$0xff] }
 0x351   :  { %8810 = vmatprep.subr.bf16.mxu0 %v14351_v29  ;;  %9240 = vmatprep.subr.bf16.mxu1 %v14353_v25  ;;  %v14392_v29 = vcombine.low %v380_v13, %v384_v16  ;;  %v14399_v25 = vcombine.high %v387_v21, %v391_v22  ;;  %v14401_v31 = vcombine.high %v388_v23, %v392_v24  ;;  %v431_v13 = vld [vmem:[#allocation5 + $0x7f0] sm:$0xff]  ;;  %v428_v16 = vld [vmem:[#allocation5 + $0x7d8] sm:$0xff] }
 0x354   :  { %8811 = vmatpush1.bf16.msra.mxu0 %v14350_v36  ;;  %9241 = vmatpush1.bf16.msra.mxu1 %v14352_v39  ;;  %v400_v36 = vld [vmem:[#allocation5 + $0x6f8] sm:$0xff]  ;;  %v14398_v39 = vcombine.low %v387_v21, %v391_v22  ;;  %v435_v22 = vld [vmem:[#allocation5 + $0x810] sm:$0xff] }
 0x355   :  { %8812 = vmatprep.subr.bf16.mxu0 %v14359_v40  ;;  %9242 = vmatprep.subr.bf16.mxu1 %v14361_v41  ;;  %v14400_v40 = vcombine.low %v388_v23, %v392_v24  ;;  %v14407_v41 = vcombine.high %v395_v32, %v399_v34  ;;  %v14409_v58 = vcombine.high %v396_v35, %v400_v36  ;;  %v439_v23 = vld [vmem:[#allocation5 + $0x830] sm:$0xff]  ;;  %v436_v24 = vld [vmem:[#allocation5 + $0x818] sm:$0xff] }
 0x358   :  { %8813 = vmatpush1.bf16.msra.mxu0 %v14358_v47  ;;  %9243 = vmatpush1.bf16.msra.mxu1 %v14360_v48  ;;  %v408_v47 = vld [vmem:[#allocation5 + $0x738] sm:$0xff]  ;;  %v14406_v48 = vcombine.low %v395_v32, %v399_v34  ;;  %v443_v34 = vld [vmem:[#allocation5 + $0x850] sm:$0xff] }
 0x359   :  { %8814 = vmatprep.subr.bf16.mxu0 %v14367_v49  ;;  %9244 = vmatprep.subr.bf16.mxu1 %v14369_v50  ;;  %v14408_v49 = vcombine.low %v396_v35, %v400_v36  ;;  %v14415_v50 = vcombine.high %v403_v42, %v407_v44  ;;  %v14417_v51 = vcombine.high %v404_v45, %v408_v47  ;;  %v447_v35 = vld [vmem:[#allocation5 + $0x870] sm:$0xff]  ;;  %v444_v36 = vld [vmem:[#allocation5 + $0x858] sm:$0xff] }
 0x35c   :  { %8815 = vmatpush1.bf16.msra.mxu0 %v14366_v56  ;;  %9245 = vmatpush1.bf16.msra.mxu1 %v14368_v57  ;;  %v416_v56 = vld [vmem:[#allocation5 + $0x778] sm:$0xff]  ;;  %v14414_v57 = vcombine.low %v403_v42, %v407_v44  ;;  %v451_v44 = vld [vmem:[#allocation5 + $0x890] sm:$0xff] }
 0x35d   :  { %8816 = vmatprep.subr.bf16.mxu0 %v14375_v60  ;;  %9246 = vmatprep.subr.bf16.mxu1 %v14377_v61  ;;  %v14416_v60 = vcombine.low %v404_v45, %v408_v47  ;;  %v14423_v61 = vcombine.high %v411_v52, %v415_v54  ;;  %v14425_v63 = vcombine.high %v412_v55, %v416_v56  ;;  %v455_v45 = vld [vmem:[#allocation5 + $0x8b0] sm:$0xff]  ;;  %v452_v47 = vld [vmem:[#allocation5 + $0x898] sm:$0xff] }
 0x360   :  { %8817 = vmatpush1.bf16.msra.mxu0 %v14374_v5  ;;  %9247 = vmatpush1.bf16.msra.mxu1 %v14376_v7  ;;  %v424_v5 = vld [vmem:[#allocation5 + $0x7b8] sm:$0xff]  ;;  %v14422_v7 = vcombine.low %v411_v52, %v415_v54  ;;  %v459_v54 = vld [vmem:[#allocation5 + $0x8d0] sm:$0xff] }
 0x361   :  { %8818 = vmatprep.subr.bf16.mxu0 %v14383_v8  ;;  %9248 = vmatprep.subr.bf16.mxu1 %v14385_v9  ;;  %v14424_v8 = vcombine.low %v412_v55, %v416_v56  ;;  %v14431_v9 = vcombine.high %v419_v1, %v423_v2  ;;  %v14433_v11 = vcombine.high %v420_v4, %v424_v5  ;;  %v463_v55 = vld [vmem:[#allocation5 + $0x8f0] sm:$0xff]  ;;  %v460_v56 = vld [vmem:[#allocation5 + $0x8d8] sm:$0xff] }
 0x364   :  { %8819 = vmatpush1.bf16.msra.mxu0 %v14382_v15  ;;  %9249 = vmatpush1.bf16.msra.mxu1 %v14384_v18  ;;  %v432_v15 = vld [vmem:[#allocation5 + $0x7f8] sm:$0xff]  ;;  %v14430_v18 = vcombine.low %v419_v1, %v423_v2  ;;  %v467_v1 = vld [vmem:[#allocation5 + $0x910] sm:$0xff] }
 0x365   :  { %8820 = vmatprep.subr.bf16.mxu0 %v14391_v19  ;;  %9250 = vmatprep.subr.bf16.mxu1 %v14393_v20  ;;  %v14432_v19 = vcombine.low %v420_v4, %v424_v5  ;;  %v14439_v20 = vcombine.high %v427_v12, %v431_v13  ;;  %v14441_v21 = vcombine.high %v428_v16, %v432_v15  ;;  %v471_v2 = vld [vmem:[#allocation5 + $0x930] sm:$0xff]  ;;  %v468_v4 = vld [vmem:[#allocation5 + $0x918] sm:$0xff] }
 0x366   :  { %v472_v5 = vld [vmem:[#allocation5 + $0x938] sm:$0xff] }
 0x368   :  { %8821 = vmatpush1.bf16.msra.mxu0 %v14390_v28  ;;  %9251 = vmatpush1.bf16.msra.mxu1 %v14392_v29  ;;  %v440_v28 = vld [vmem:[#allocation5 + $0x838] sm:$0xff]  ;;  %v14438_v29 = vcombine.low %v427_v12, %v431_v13  ;;  %v479_v12 = vld [vmem:[#allocation5 + $0x970] sm:$0xff] }
 0x369   :  { %8822 = vmatprep.subr.bf16.mxu0 %v14399_v25  ;;  %9252 = vmatprep.subr.bf16.mxu1 %v14401_v31  ;;  %v14440_v25 = vcombine.low %v428_v16, %v432_v15  ;;  %v14447_v31 = vcombine.high %v435_v22, %v439_v23  ;;  %v14449_v32 = vcombine.high %v436_v24, %v440_v28  ;;  %v476_v13 = vld [vmem:[#allocation5 + $0x958] sm:$0xff] }
 0x36a   :  { %v480_v16 = vld [vmem:[#allocation5 + $0x978] sm:$0xff]  ;;  %v14478_v15 = vcombine.low %v467_v1, %v471_v2 }
 0x36c   :  { %8823 = vmatpush1.bf16.msra.mxu0 %v14398_v39  ;;  %9253 = vmatpush1.bf16.msra.mxu1 %v14400_v40  ;;  %v448_v39 = vld [vmem:[#allocation5 + $0x878] sm:$0xff]  ;;  %v14446_v40 = vcombine.low %v435_v22, %v439_v23  ;;  %v487_v22 = vld [vmem:[#allocation5 + $0x9b0] sm:$0xff] }
 0x36d   :  { %8824 = vmatprep.subr.bf16.mxu0 %v14407_v41  ;;  %9254 = vmatprep.subr.bf16.mxu1 %v14409_v58  ;;  %v14448_v41 = vcombine.low %v436_v24, %v440_v28  ;;  %v14455_v58 = vcombine.high %v443_v34, %v447_v35  ;;  %v14457_v42 = vcombine.high %v444_v36, %v448_v39  ;;  %v484_v23 = vld [vmem:[#allocation5 + $0x998] sm:$0xff] }
 0x36e   :  { %v488_v24 = vld [vmem:[#allocation5 + $0x9b8] sm:$0xff] }
 0x370   :  { %8825 = vmatpush1.bf16.msra.mxu0 %v14406_v48  ;;  %9255 = vmatpush1.bf16.msra.mxu1 %v14408_v49  ;;  %v456_v48 = vld [vmem:[#allocation5 + $0x8b8] sm:$0xff]  ;;  %v14454_v49 = vcombine.low %v443_v34, %v447_v35  ;;  %v495_v34 = vld [vmem:[#allocation5 + $0x9f0] sm:$0xff] }
 0x371   :  { %8826 = vmatprep.subr.bf16.mxu0 %v14415_v50  ;;  %9256 = vmatprep.subr.bf16.mxu1 %v14417_v51  ;;  %v14456_v50 = vcombine.low %v444_v36, %v448_v39  ;;  %v14463_v51 = vcombine.high %v451_v44, %v455_v45  ;;  %v14465_v52 = vcombine.high %v452_v47, %v456_v48  ;;  %v492_v35 = vld [vmem:[#allocation5 + $0x9d8] sm:$0xff] }
 0x372   :  { %v496_v36 = vld [vmem:[#allocation5 + $0x9f8] sm:$0xff] }
 0x374   :  { %8827 = vmatpush1.bf16.msra.mxu0 %v14414_v57  ;;  %9257 = vmatpush1.bf16.msra.mxu1 %v14416_v60  ;;  %v464_v57 = vld [vmem:[#allocation5 + $0x8f8] sm:$0xff]  ;;  %v14462_v60 = vcombine.low %v451_v44, %v455_v45  ;;  %v503_v44 = vld [vmem:[#allocation5 + $0xa30] sm:$0xff] }
 0x375   :  { %8828 = vmatprep.subr.bf16.mxu0 %v14423_v61  ;;  %9258 = vmatprep.subr.bf16.mxu1 %v14425_v63  ;;  %v14471_v61 = vcombine.high %v459_v54, %v463_v55  ;;  %v14473_v63 = vcombine.high %v460_v56, %v464_v57  ;;  %v500_v45 = vld [vmem:[#allocation5 + $0xa18] sm:$0xff] }
 0x378   :  { %8829 = vmatpush1.bf16.msra.mxu0 %v14422_v7  ;;  %9259 = vmatpush1.bf16.msra.mxu1 %v14424_v8  ;;  %v14470_v7 = vcombine.low %v459_v54, %v463_v55  ;;  %v14472_v8 = vcombine.low %v460_v56, %v464_v57  ;;  %v511_v54 = vld [vmem:[#allocation5 + $0xa70] sm:$0xff]  ;;  %v508_v55 = vld [vmem:[#allocation5 + $0xa58] sm:$0xff] }
 0x379   :  { %8830 = vmatprep.subr.bf16.mxu0 %v14431_v9  ;;  %9260 = vmatprep.subr.bf16.mxu1 %v14433_v11  ;;  %v14479_v9 = vcombine.high %v467_v1, %v471_v2  ;;  %v475_v11 = vld [vmem:[#allocation5 + $0x950] sm:$0xff]  ;;  %v512_v56 = vld [vmem:[#allocation5 + $0xa78] sm:$0xff] }
 0x37a   :  { %v14486_v28 = vcombine.low %v475_v11, %v479_v12  ;;  %v519_v1 = vld [vmem:[#allocation5 + $0xab0] sm:$0xff]  ;;  %v516_v2 = vld [vmem:[#allocation5 + $0xa98] sm:$0xff] }
 0x37c   :  { %8831 = vmatpush1.bf16.msra.mxu0 %v14430_v18  ;;  %9261 = vmatpush1.bf16.msra.mxu1 %v14432_v19  ;;  %v14480_v18 = vcombine.low %v468_v4, %v472_v5  ;;  %v14487_v19 = vcombine.high %v475_v11, %v479_v12  ;;  %v527_v11 = vld [vmem:[#allocation5 + $0xaf0] sm:$0xff]  ;;  %v524_v12 = vld [vmem:[#allocation5 + $0xad8] sm:$0xff] }
 0x37d   :  { %8832 = vmatprep.subr.bf16.mxu0 %v14439_v20  ;;  %9262 = vmatprep.subr.bf16.mxu1 %v14441_v21  ;;  %v14489_v20 = vcombine.high %v476_v13, %v480_v16  ;;  %v483_v21 = vld [vmem:[#allocation5 + $0x990] sm:$0xff] }
 0x37e   :  { %v14494_v39 = vcombine.low %v483_v21, %v487_v22 }
 0x380   :  { %8833 = vmatpush1.bf16.msra.mxu0 %v14438_v29  ;;  %9263 = vmatpush1.bf16.msra.mxu1 %v14440_v25  ;;  %v14488_v29 = vcombine.low %v476_v13, %v480_v16  ;;  %v14495_v25 = vcombine.high %v483_v21, %v487_v22  ;;  %v528_v13 = vld [vmem:[#allocation5 + $0xaf8] sm:$0xff]  ;;  %v535_v21 = vld [vmem:[#allocation5 + $0xb30] sm:$0xff] }
 0x381   :  { %8845 = vmatprep.subr.bf16.mxu0 %v14447_v31  ;;  %9275 = vmatprep.subr.bf16.mxu1 %v14449_v32  ;;  %v14497_v31 = vcombine.high %v484_v23, %v488_v24  ;;  %v491_v32 = vld [vmem:[#allocation5 + $0x9d0] sm:$0xff]  ;;  %v532_v22 = vld [vmem:[#allocation5 + $0xb18] sm:$0xff] }
 0x383   :  { %8835 = vmatmul.mubr.bf16.vlgmr.msra.gmra.mrb[4].mxu0 %v16784_v30  ;;  %9265 = vmatmul.mubr.bf16.vlgmr.msra.gmra.mrb[4].mxu1 %v16784_v30  ;;  %v14464_v30 = vcombine.low %v452_v47, %v456_v48  ;;  %v504_v47 = vld [vmem:[#allocation5 + $0xa38] sm:$0xff]  ;;  %v14502_v48 = vcombine.low %v491_v32, %v495_v34 }
 0x384   :  { %8846 = vmatpush1.bf16.msra.mxu0 %v14446_v40  ;;  %9276 = vmatpush1.bf16.msra.mxu1 %v14448_v41  ;;  %v14496_v40 = vcombine.low %v484_v23, %v488_v24  ;;  %v14503_v41 = vcombine.high %v491_v32, %v495_v34  ;;  %v536_v23 = vld [vmem:[#allocation5 + $0xb38] sm:$0xff]  ;;  %v543_v32 = vld [vmem:[#allocation5 + $0xb70] sm:$0xff] }
 0x385   :  { %8847 = vmatprep.subr.bf16.mxu0 %v14455_v58  ;;  %9277 = vmatprep.subr.bf16.mxu1 %v14457_v42  ;;  %v14505_v58 = vcombine.high %v492_v35, %v496_v36  ;;  %v499_v42 = vld [vmem:[#allocation5 + $0xa10] sm:$0xff]  ;;  %v540_v34 = vld [vmem:[#allocation5 + $0xb58] sm:$0xff] }
 0x386   :  { %8877 = vmatprep.mubr.bf16.mxu0 %v16786_v37  ;;  %9307 = vmatprep.mubr.bf16.mxu1 %v16786_v37  ;;  %v14481_v37 = vcombine.high %v468_v4, %v472_v5  ;;  %v14510_v57 = vcombine.low %v499_v42, %v503_v44  ;;  %v520_v4 = vld [vmem:[#allocation5 + $0xab8] sm:$0xff] }
 0x388   :  { %8848 = vmatpush1.bf16.msra.mxu0 %v14454_v49  ;;  %9278 = vmatpush1.bf16.msra.mxu1 %v14456_v50  ;;  %v14504_v49 = vcombine.low %v492_v35, %v496_v36  ;;  %v14511_v50 = vcombine.high %v499_v42, %v503_v44  ;;  %v544_v35 = vld [vmem:[#allocation5 + $0xb78] sm:$0xff]  ;;  %v551_v42 = vld [vmem:[#allocation5 + $0xbb0] sm:$0xff] }
 0x389   :  { %8849 = vmatprep.subr.bf16.mxu0 %v14463_v51  ;;  %9279 = vmatprep.subr.bf16.mxu1 %v14465_v52  ;;  %v14513_v51 = vcombine.high %v500_v45, %v504_v47  ;;  %v507_v52 = vld [vmem:[#allocation5 + $0xa50] sm:$0xff]  ;;  %v548_v44 = vld [vmem:[#allocation5 + $0xb98] sm:$0xff] }
 0x38a   :  { %v14518_v5 = vcombine.low %v507_v52, %v511_v54 }
 0x38c   :  { %8850 = vmatpush1.bf16.msra.mxu0 %v14462_v60  ;;  %9280 = vmatpush1.bf16.msra.mxu1 %v14464_v30  ;;  %v14512_v60 = vcombine.low %v500_v45, %v504_v47  ;;  %v14519_v30 = vcombine.high %v507_v52, %v511_v54  ;;  %v552_v45 = vld [vmem:[#allocation5 + $0xbb8] sm:$0xff]  ;;  %v559_v52 = vld [vmem:[#allocation5 + $0xbf0] sm:$0xff] }
 0x38d   :  { %8851 = vmatprep.subr.bf16.mxu0 %v14471_v61  ;;  %9281 = vmatprep.subr.bf16.mxu1 %v14473_v63  ;;  %v14521_v61 = vcombine.high %v508_v55, %v512_v56  ;;  %v515_v63 = vld [vmem:[#allocation5 + $0xa90] sm:$0xff]  ;;  %v556_v54 = vld [vmem:[#allocation5 + $0xbd8] sm:$0xff] }
 0x38e   :  { %v14526_v16 = vcombine.low %v515_v63, %v519_v1 }
 0x390   :  { %8852 = vmatpush1.bf16.msra.mxu0 %v14470_v7  ;;  %9282 = vmatpush1.bf16.msra.mxu1 %v14472_v8  ;;  %v14520_v7 = vcombine.low %v508_v55, %v512_v56  ;;  %v14527_v8 = vcombine.high %v515_v63, %v519_v1  ;;  %v560_v55 = vld [vmem:[#allocation5 + $0xbf8] sm:$0xff]  ;;  %v567_v63 = vld [vmem:[#allocation5 + $0xc30] sm:$0xff] }
 0x391   :  { %8853 = vmatprep.subr.bf16.mxu0 %v14479_v9  ;;  %9283 = vmatprep.subr.bf16.mxu1 %v14481_v37  ;;  %v14529_v9 = vcombine.high %v516_v2, %v520_v4  ;;  %v523_v37 = vld [vmem:[#allocation5 + $0xad0] sm:$0xff]  ;;  %v564_v1 = vld [vmem:[#allocation5 + $0xc18] sm:$0xff] }
 0x392   :  { %v14534_v24 = vcombine.low %v523_v37, %v527_v11 }
 0x394   :  { %8854 = vmatpush1.bf16.msra.mxu0 %v14478_v15  ;;  %9284 = vmatpush1.bf16.msra.mxu1 %v14480_v18  ;;  %v14528_v15 = vcombine.low %v516_v2, %v520_v4  ;;  %v14535_v18 = vcombine.high %v523_v37, %v527_v11  ;;  %v568_v2 = vld [vmem:[#allocation5 + $0xc38] sm:$0xff]  ;;  %v575_v37 = vld [vmem:[#allocation5 + $0xc70] sm:$0xff] }
 0x395   :  { %8855 = vmatprep.subr.bf16.mxu0 %v14487_v19  ;;  %9285 = vmatprep.subr.bf16.mxu1 %v14489_v20  ;;  %v14537_v19 = vcombine.high %v524_v12, %v528_v13  ;;  %v531_v20 = vld [vmem:[#allocation5 + $0xb10] sm:$0xff]  ;;  %v572_v11 = vld [vmem:[#allocation5 + $0xc58] sm:$0xff] }
 0x396   :  { %v14542_v36 = vcombine.low %v531_v20, %v535_v21 }
 0x398   :  { %8856 = vmatpush1.bf16.msra.mxu0 %v14486_v28  ;;  %9286 = vmatpush1.bf16.msra.mxu1 %v14488_v29  ;;  %v14536_v28 = vcombine.low %v524_v12, %v528_v13  ;;  %v14543_v29 = vcombine.high %v531_v20, %v535_v21  ;;  %v576_v12 = vld [vmem:[#allocation5 + $0xc78] sm:$0xff]  ;;  %v583_v20 = vld [vmem:[#allocation5 + $0xcb0] sm:$0xff] }
 0x399   :  { %8857 = vmatprep.subr.bf16.mxu0 %v14495_v25  ;;  %9287 = vmatprep.subr.bf16.mxu1 %v14497_v31  ;;  %v14545_v25 = vcombine.high %v532_v22, %v536_v23  ;;  %v539_v31 = vld [vmem:[#allocation5 + $0xb50] sm:$0xff]  ;;  %v580_v21 = vld [vmem:[#allocation5 + $0xc98] sm:$0xff] }
 0x39a   :  { %v14550_v47 = vcombine.low %v539_v31, %v543_v32 }
 0x39c   :  { %8858 = vmatpush1.bf16.msra.mxu0 %v14494_v39  ;;  %9288 = vmatpush1.bf16.msra.mxu1 %v14496_v40  ;;  %v14544_v39 = vcombine.low %v532_v22, %v536_v23  ;;  %v14551_v40 = vcombine.high %v539_v31, %v543_v32  ;;  %v584_v22 = vld [vmem:[#allocation5 + $0xcb8] sm:$0xff]  ;;  %v591_v31 = vld [vmem:[#allocation5 + $0xcf0] sm:$0xff] }
 0x39d   :  { %8859 = vmatprep.subr.bf16.mxu0 %v14503_v41  ;;  %9289 = vmatprep.subr.bf16.mxu1 %v14505_v58  ;;  %v14553_v41 = vcombine.high %v540_v34, %v544_v35  ;;  %v547_v58 = vld [vmem:[#allocation5 + $0xb90] sm:$0xff]  ;;  %v588_v32 = vld [vmem:[#allocation5 + $0xcd8] sm:$0xff] }
 0x39e   :  { %v14558_v56 = vcombine.low %v547_v58, %v551_v42 }
 0x3a0   :  { %8860 = vmatpush1.bf16.msra.mxu0 %v14502_v48  ;;  %9290 = vmatpush1.bf16.msra.mxu1 %v14504_v49  ;;  %v14552_v48 = vcombine.low %v540_v34, %v544_v35  ;;  %v14559_v49 = vcombine.high %v547_v58, %v551_v42  ;;  %v592_v34 = vld [vmem:[#allocation5 + $0xcf8] sm:$0xff]  ;;  %v1459_v35 = vlaneseq  ;;  %v599_v58 = vld [vmem:[#allocation5 + $0xd30] sm:$0xff] }
 0x3a1   :  { %8861 = vmatprep.subr.bf16.mxu0 %v14511_v50  ;;  %9291 = vmatprep.subr.bf16.mxu1 %v14513_v51  ;;  %v14561_v50 = vcombine.high %v548_v44, %v552_v45  ;;  %v555_v51 = vld [vmem:[#allocation5 + $0xbd0] sm:$0xff]  ;;  %v596_v42 = vld [vmem:[#allocation5 + $0xd18] sm:$0xff] }
 0x3a2   :  { %v14566_v4 = vcombine.low %v555_v51, %v559_v52 }
 0x3a4   :  { %8862 = vmatpush1.bf16.msra.mxu0 %v14510_v57  ;;  %9292 = vmatpush1.bf16.msra.mxu1 %v14512_v60  ;;  %v14560_v57 = vcombine.low %v548_v44, %v552_v45  ;;  %v14567_v60 = vcombine.high %v555_v51, %v559_v52  ;;  %v600_v44 = vld [vmem:[#allocation5 + $0xd38] sm:$0xff]  ;;  %v16866_v45 = vshrl.u32 %v1459_v35, 7  ;;  %v607_v51 = vld [vmem:[#allocation5 + $0xd70] sm:$0xff] }
 0x3a5   :  { %8863 = vmatprep.subr.bf16.mxu0 %v14519_v30  ;;  %9293 = vmatprep.subr.bf16.mxu1 %v14521_v61  ;;  %v14569_v30 = vcombine.high %v556_v54, %v560_v55  ;;  %v563_v61 = vld [vmem:[#allocation5 + $0xc10] sm:$0xff] }
 0x3a6   :  { %v14574_v13 = vcombine.low %v563_v61, %v567_v63  ;;  %v1461_v52 = vsub.s32 0, %v16866_v45 }
 0x3a8   :  { %8864 = vmatpush1.bf16.msra.mxu0 %v14518_v5  ;;  %9294 = vmatpush1.bf16.msra.mxu1 %v14520_v7  ;;  %v14568_v5 = vcombine.low %v556_v54, %v560_v55  ;;  %v14575_v7 = vcombine.high %v563_v61, %v567_v63  ;;  %v604_v54 = vld [vmem:[#allocation5 + $0xd58] sm:$0xff]  ;;  %v14608_v61 = vcombine.low %v596_v42, %v600_v44  ;;  %v1473_v63 = vsub.s32 3, %v16866_v45 }
 0x3a9   :  { %8865 = vmatprep.subr.bf16.mxu0 %v14527_v8  ;;  %9295 = vmatprep.subr.bf16.mxu1 %v14529_v9  ;;  %v14577_v8 = vcombine.high %v564_v1, %v568_v2  ;;  %v571_v9 = vld [vmem:[#allocation5 + $0xc50] sm:$0xff]  ;;  %v608_v55 = vld [vmem:[#allocation5 + $0xd78] sm:$0xff] }
 0x3aa   :  { %v14582_v23 = vcombine.low %v571_v9, %v575_v37 }
 0x3ac   :  { %8866 = vmatpush1.bf16.msra.mxu0 %v14526_v16  ;;  %9296 = vmatpush1.bf16.msra.mxu1 %v14528_v15  ;;  %v14576_v16 = vcombine.low %v564_v1, %v568_v2  ;;  %v14583_v15 = vcombine.high %v571_v9, %v575_v37  ;;  %v14617_v2 = vcombine.high %v604_v54, %v608_v55  ;;  %v616_v9 = vld [vmem:[#allocation5 + $0xdb8] sm:$0xff] }
 0x3ad   :  { %8867 = vmatprep.subr.bf16.mxu0 %v14535_v18  ;;  %9297 = vmatprep.subr.bf16.mxu1 %v14537_v19  ;;  %v14585_v18 = vcombine.high %v572_v11, %v576_v12  ;;  %v579_v19 = vld [vmem:[#allocation5 + $0xc90] sm:$0xff] }
 0x3b0   :  { %8868 = vmatpush1.bf16.msra.mxu0 %v14534_v24  ;;  %9298 = vmatpush1.bf16.msra.mxu1 %v14536_v28  ;;  %v14584_v24 = vcombine.low %v572_v11, %v576_v12  ;;  %v14591_v28 = vcombine.high %v579_v19, %v583_v20 }
 0x3b1   :  { %8869 = vmatprep.subr.bf16.mxu0 %v14543_v29  ;;  %9299 = vmatprep.subr.bf16.mxu1 %v14545_v25  ;;  %v14593_v29 = vcombine.high %v580_v21, %v584_v22  ;;  %v587_v25 = vld [vmem:[#allocation5 + $0xcd0] sm:$0xff] }
 0x3b4   :  { %8870 = vmatpush1.bf16.msra.mxu0 %v14542_v36  ;;  %9300 = vmatpush1.bf16.msra.mxu1 %v14544_v39  ;;  %v14590_v36 = vcombine.low %v579_v19, %v583_v20  ;;  %v14599_v39 = vcombine.high %v587_v25, %v591_v31  ;;  %v619_v20 = vld [vmem:[#allocation5 + $0xdd0] sm:$0xff] }
 0x3b5   :  { %8871 = vmatprep.subr.bf16.mxu0 %v14551_v40  ;;  %9301 = vmatprep.subr.bf16.mxu1 %v14553_v41  ;;  %v14601_v40 = vcombine.high %v588_v32, %v592_v34  ;;  %v595_v41 = vld [vmem:[#allocation5 + $0xd10] sm:$0xff] }
 0x3b8   :  { %8872 = vmatpush1.bf16.msra.mxu0 %v14550_v47  ;;  %9302 = vmatpush1.bf16.msra.mxu1 %v14552_v48  ;;  %v14598_v47 = vcombine.low %v587_v25, %v591_v31  ;;  %v14600_v48 = vcombine.low %v588_v32, %v592_v34 }
 0x3b9   :  { %8873 = vmatprep.subr.bf16.mxu0 %v14559_v49  ;;  %9303 = vmatprep.subr.bf16.mxu1 %v14561_v50  ;;  %v14609_v49 = vcombine.high %v596_v42, %v600_v44  ;;  %v603_v50 = vld [vmem:[#allocation5 + $0xd50] sm:$0xff] }
 0x3ba   :  { %v14615_v1 = vcombine.high %v603_v50, %v607_v51  ;;  %v14614_v12 = vcombine.low %v603_v50, %v607_v51  ;;  %v631_v50 = vld [vmem:[#allocation5 + $0xe30] sm:$0xff] }
 0x3bc   :  { %8874 = vmatpush1.bf16.msra.mxu0 %v14558_v56  ;;  %9304 = vmatpush1.bf16.msra.mxu1 %v14560_v57  ;;  %v14606_v56 = vcombine.low %v595_v41, %v599_v58  ;;  %v1457_v57 = vld [vmem:[#allocation7] sm:$0xff] }
 0x3bd   :  { %8875 = vmatprep.subr.bf16.mxu0 %v14567_v60  ;;  %9305 = vmatprep.subr.bf16.mxu1 %v14569_v30  ;;  %v1469_v60 = vsub.s32 2, %v16866_v45  ;;  %v1465_v30 = vsub.s32 1, %v16866_v45 }
 0x3bf   :  { %v1470_v37 = vrot.slane %v1457_v57, %v1469_v60  ;;  %v1466_v11 = vrot.slane %v1457_v57, %v1465_v30 }
 0x3c0   :  { %8876 = vmatpush1.bf16.msra.mxu0 %v14566_v4  ;;  %9306 = vmatpush1.bf16.msra.mxu1 %v14568_v5  ;;  %v611_v4 = vld [vmem:[#allocation5 + $0xd90] sm:$0xff] }
 0x3c1   :  { %8888 = vmatprep.subr.bf16.mxu0 %v14575_v7  ;;  %9318 = vmatprep.subr.bf16.mxu1 %v14577_v8  ;;  %v615_v5 = vld [vmem:[#allocation5 + $0xdb0] sm:$0xff]  ;;  %v1462_v7 = vrot.slane %v1457_v57, %v1461_v52  ;;  %v612_v8 = vld [vmem:[#allocation5 + $0xd98] sm:$0xff] }
 0x3c2   :  { %v14625_v19 = vcombine.high %v612_v8, %v616_v9  ;;  %v14622_v35 = vcombine.low %v611_v4, %v615_v5 }
 0x3c3   :  { %8878 = vmatmul.mubr.bf16.vlgmr.msra.gmra.mrb[4].mxu0 %v16792_v43  ;;  %9308 = vmatmul.mubr.bf16.vlgmr.msra.gmra.mrb[4].mxu1 %v16792_v43  ;;  %v14592_v43 = vcombine.low %v580_v21, %v584_v22  ;;  %v623_v21 = vld [vmem:[#allocation5 + $0xdf0] sm:$0xff] }
 0x3c4   :  { %8889 = vmatpush1.bf16.msra.mxu0 %v14574_v13  ;;  %9319 = vmatpush1.bf16.msra.mxu1 %v14576_v16  ;;  %v1474_v13 = vrot.slane %v1457_v57, %v1473_v63  ;;  %v14616_v16 = vcombine.low %v604_v54, %v608_v55  ;;  %v628_v57 = vld [vmem:[#allocation5 + $0xe18] sm:$0xff] }
 0x3c5   :  { %8890 = vmatprep.subr.bf16.mxu0 %v14583_v15  ;;  %9320 = vmatprep.subr.bf16.mxu1 %v14585_v18  ;;  %v14623_v15 = vcombine.high %v611_v4, %v615_v5 }
 0x3c6   :  { %8920 = vmatprep.mubr.bf16.mxu0 %v16794_v53  ;;  %9350 = vmatprep.mubr.bf16.mxu1 %v16794_v53  ;;  %v14607_v53 = vcombine.high %v595_v41, %v599_v58  ;;  %v14631_v58 = vcombine.high %v619_v20, %v623_v21 }
 0x3c8   :  { %8891 = vmatpush1.bf16.msra.mxu0 %v14582_v23  ;;  %9321 = vmatpush1.bf16.msra.mxu1 %v14584_v24 }
 0x3c9   :  { %8892 = vmatprep.subr.bf16.mxu0 %v14591_v28  ;;  %9322 = vmatprep.subr.bf16.mxu1 %v14593_v29  ;;  %v620_v28 = vld [vmem:[#allocation5 + $0xdd8] sm:$0xff] }
 0x3ca   :  { %v624_v29 = vld [vmem:[#allocation5 + $0xdf8] sm:$0xff] }
 0x3cc   :  { %8893 = vmatpush1.bf16.msra.mxu0 %v14590_v36  ;;  %9323 = vmatpush1.bf16.msra.mxu1 %v14592_v43  ;;  %v14624_v36 = vcombine.low %v612_v8, %v616_v9 }
 0x3cd   :  { %8894 = vmatprep.subr.bf16.mxu0 %v14599_v39  ;;  %9324 = vmatprep.subr.bf16.mxu1 %v14601_v40 }
 0x3d0   :  { %8895 = vmatpush1.bf16.msra.mxu0 %v14598_v47  ;;  %9325 = vmatpush1.bf16.msra.mxu1 %v14600_v48  ;;  %v14630_v48 = vcombine.low %v619_v20, %v623_v21  ;;  %v640_v20 = vld [vmem:[#allocation5 + $0xe78] sm:$0xff] }
 0x3d1   :  { %8896 = vmatprep.subr.bf16.mxu0 %v14607_v53  ;;  %9326 = vmatprep.subr.bf16.mxu1 %v14609_v49  ;;  %v14633_v53 = vcombine.high %v620_v28, %v624_v29  ;;  %v627_v49 = vld [vmem:[#allocation5 + $0xe10] sm:$0xff] }
 0x3d2   :  { %v14638_v21 = vcombine.low %v627_v49, %v631_v50 }
 0x3d4   :  { %8897 = vmatpush1.bf16.msra.mxu0 %v14606_v56  ;;  %9327 = vmatpush1.bf16.msra.mxu1 %v14608_v61  ;;  %v14632_v56 = vcombine.low %v620_v28, %v624_v29  ;;  %v632_v61 = vld [vmem:[#allocation5 + $0xe38] sm:$0xff]  ;;  %v643_v28 = vld [vmem:[#allocation5 + $0xe90] sm:$0xff] }
 0x3d5   :  { %8898 = vmatprep.subr.bf16.mxu0 %v14615_v1  ;;  %9328 = vmatprep.subr.bf16.mxu1 %v14617_v2  ;;  %v647_v29 = vld [vmem:[#allocation5 + $0xeb0] sm:$0xff] }
 0x3d6   :  { %v8320_v18 = vpop.f32.mrb[0].mxu0  ;;  %v8750_v23 = vpop.f32.mrb[0].mxu1 }
 0x3d7   :  { %v16133_v22 = vadd.f32 %v8320_v18, %v1462_v7  ;;  %v8322_v24 = vpop.f32.mrb[1].mxu0  ;;  %v16137_v25 = vadd.f32 %v8750_v23, %v1470_v37  ;;  %v8752_v32 = vpop.f32.mrb[1].mxu1 }
 0x3d8   :  { %v16134_v31 = vadd.f32 %v8322_v24, %v1466_v11  ;;  %v8324_v34 = vpop.f32.mrb[2].mxu0  ;;  %8899 = vmatpush1.bf16.msra.mxu0 %v14614_v12  ;;  %v16138_v43 = vadd.f32 %v8752_v32, %v1474_v13  ;;  %v8754_v40 = vpop.f32.mrb[2].mxu1  ;;  %9329 = vmatpush1.bf16.msra.mxu1 %v14616_v16  ;;  %v635_v16 = vld [vmem:[#allocation5 + $0xe50] sm:$0xff] }
 0x3d9   :  { %v16135_v39 = vadd.f32 %v8324_v34, %v1462_v7  ;;  %v8326_v41 = vpop.f32.mrb[3].mxu0  ;;  %8900 = vmatprep.subr.bf16.mxu0 %v14623_v15  ;;  %v16139_v42 = vadd.f32 %v8754_v40, %v1470_v37  ;;  %v8756_v47 = vpop.f32.mrb[3].mxu1  ;;  %9330 = vmatprep.subr.bf16.mxu1 %v14625_v19  ;;  %v9619_v51 = vmax.f32 %v16133_v22, 0.0  ;;  %v9621_v1 = vmax.f32 %v16137_v25, 0.0  ;;  %v639_v15 = vld [vmem:[#allocation5 + $0xe70] sm:$0xff]  ;;  %v636_v19 = vld [vmem:[#allocation5 + $0xe58] sm:$0xff] }
 0x3da   :  { %v16136_v44 = vadd.f32 %v8326_v41, %v1466_v11  ;;  %v16140_v55 = vadd.f32 %v8756_v47, %v1474_v13  ;;  %v9620_v2 = vmax.f32 %v16134_v31, 0.0  ;;  %v9622_v7 = vmax.f32 %v16138_v43, 0.0  ;;  %v644_v25 = vld [vmem:[#allocation5 + $0xe98] sm:$0xff]  ;;  %v651_v43 = vld [vmem:[#allocation5 + $0xed0] sm:$0xff] }
 0x3db   :  { %v9627_v54 = vmax.f32 %v16135_v39, 0.0  ;;  %v9629_v4 = vmax.f32 %v16139_v42, 0.0  ;;  %v14639_v37 = vcombine.high %v627_v49, %v631_v50  ;;  %v14641_v13 = vcombine.high %v628_v57, %v632_v61  ;;  %v648_v31 = vld [vmem:[#allocation5 + $0xeb8] sm:$0xff]  ;;  %v655_v39 = vld [vmem:[#allocation5 + $0xef0] sm:$0xff] }
 0x3dc   :  { %v9628_v5 = vmax.f32 %v16136_v44, 0.0  ;;  %8901 = vmatpush1.bf16.msra.mxu0 %v14622_v35  ;;  %v9630_v9 = vmax.f32 %v16140_v55, 0.0  ;;  %9331 = vmatpush1.bf16.msra.mxu1 %v14624_v36  ;;  %v14640_v22 = vcombine.low %v628_v57, %v632_v61  ;;  %v14647_v23 = vcombine.high %v635_v16, %v639_v15  ;;  %v652_v40 = vld [vmem:[#allocation5 + $0xed8] sm:$0xff]  ;;  %v667_v57 = vld [vmem:[#allocation5 + $0xf50] sm:$0xff] }
 0x3dd   :  { %v16880_v8 = vpack.c.bf16 %v9627_v54, %v9619_v51  ;;  %8902 = vmatprep.subr.bf16.mxu0 %v14631_v58  ;;  %v16882_v11 = vpack.c.bf16 %v9629_v4, %v9621_v1  ;;  %9332 = vmatprep.subr.bf16.mxu1 %v14633_v53  ;;  %v14649_v24 = vcombine.high %v636_v19, %v640_v20  ;;  %v656_v41 = vld [vmem:[#allocation5 + $0xef8] sm:$0xff]  ;;  %v663_v53 = vld [vmem:[#allocation5 + $0xf30] sm:$0xff] }
 0x3de   :  { %v16884_v12 = vpack.c.bf16 %v9628_v5, %v9620_v2  ;;  %v16886_v18 = vpack.c.bf16 %v9630_v9, %v9622_v7  ;;  %v14646_v32 = vcombine.low %v635_v16, %v639_v15  ;;  %v14648_v34 = vcombine.low %v636_v19, %v640_v20  ;;  %v660_v49 = vld [vmem:[#allocation5 + $0xf18] sm:$0xff]  ;;  %v671_v61 = vld [vmem:[#allocation5 + $0xf70] sm:$0xff] }
 0x3df   :  { %v14655_v35 = vcombine.high %v643_v28, %v647_v29  ;;  %v14657_v36 = vcombine.high %v644_v25, %v648_v31  ;;  %v14654_v58 = vcombine.low %v643_v28, %v647_v29  ;;  %v14656_v42 = vcombine.low %v644_v25, %v648_v31  ;;  %v664_v50 = vld [vmem:[#allocation5 + $0xf38] sm:$0xff] }
 0x3e0   :  { %8903 = vmatpush1.bf16.msra.mxu0 %v14630_v48  ;;  %9333 = vmatpush1.bf16.msra.mxu1 %v14632_v56  ;;  %v14663_v44 = vcombine.high %v651_v43, %v655_v39  ;;  %v14665_v47 = vcombine.high %v652_v40, %v656_v41  ;;  %v659_v48 = vld [vmem:[#allocation5 + $0xf10] sm:$0xff]  ;;  %v14662_v51 = vcombine.low %v651_v43, %v655_v39  ;;  %v668_v1 = vld [vmem:[#allocation5 + $0xf58] sm:$0xff] }
 0x3e1   :  { %8904 = vmatprep.subr.bf16.mxu0 %v14639_v37  ;;  %9334 = vmatprep.subr.bf16.mxu1 %v14641_v13  ;;  %v14664_v54 = vcombine.low %v652_v40, %v656_v41  ;;  %v14671_v55 = vcombine.high %v659_v48, %v663_v53  ;;  %v14673_v56 = vcombine.high %v660_v49, %v664_v50  ;;  %v672_v2 = vld [vmem:[#allocation5 + $0xf78] sm:$0xff]  ;;  %v675_v37 = vld [vmem:[#allocation5 + $0xf90] sm:$0xff] }
 0x3e2   :  { %v14670_v4 = vcombine.low %v659_v48, %v663_v53  ;;  %v14672_v5 = vcombine.low %v660_v49, %v664_v50  ;;  %v14679_v7 = vcombine.high %v667_v57, %v671_v61  ;;  %v14681_v9 = vcombine.high %v668_v1, %v672_v2  ;;  %v679_v13 = vld [vmem:[#allocation5 + $0xfb0] sm:$0xff]  ;;  %v676_v16 = vld [vmem:[#allocation5 + $0xf98] sm:$0xff] }
 0x3e3   :  { %v680_v15 = vld [vmem:[#allocation5 + $0xfb8] sm:$0xff]  ;;  %v14678_v19 = vcombine.low %v667_v57, %v671_v61  ;;  %v14680_v20 = vcombine.low %v668_v1, %v672_v2  ;;  %v14686_v25 = vcombine.low %v675_v37, %v679_v13 }
 0x3e4   :  { %8905 = vmatpush1.bf16.msra.mxu0 %v14638_v21  ;;  %9335 = vmatpush1.bf16.msra.mxu1 %v14640_v22  ;;  %v14687_v21 = vcombine.high %v675_v37, %v679_v13  ;;  %v14689_v22 = vcombine.high %v676_v16, %v680_v15  ;;  %v684_v28 = vld [vmem:[#allocation5 + $0xfd8] sm:$0xff]  ;;  %v14688_v31 = vcombine.low %v676_v16, %v680_v15 }
 0x3e5   :  { %8906 = vmatprep.subr.bf16.mxu0 %v14647_v23  ;;  %9336 = vmatprep.subr.bf16.mxu1 %v14649_v24  ;;  %v683_v23 = vld [vmem:[#allocation5 + $0xfd0] sm:$0xff]  ;;  %v688_v29 = vld [vmem:[#allocation5 + $0xff8] sm:$0xff] }
 0x3e6   :  { %v687_v24 = vld [vmem:[#allocation5 + $0xff0] sm:$0xff]  ;;  %v692_v43 = vld [vmem:[#allocation5 + $0x1018] sm:$0xff]  ;;  %v14696_v41 = vcombine.low %v684_v28, %v688_v29 }
 0x3e7   :  { %v696_v39 = vld [vmem:[#allocation5 + $0x1038] sm:$0xff]  ;;  %v14694_v40 = vcombine.low %v683_v23, %v687_v24 }
 0x3e8   :  { %8907 = vmatpush1.bf16.msra.mxu0 %v14646_v32  ;;  %9337 = vmatpush1.bf16.msra.mxu1 %v14648_v34  ;;  %v14695_v32 = vcombine.high %v683_v23, %v687_v24  ;;  %v14697_v34 = vcombine.high %v684_v28, %v688_v29  ;;  %v700_v48 = vld [vmem:[#allocation5 + $0x1058] sm:$0xff]  ;;  %v14704_v50 = vcombine.low %v692_v43, %v696_v39 }
 0x3e9   :  { %8908 = vmatprep.subr.bf16.mxu0 %v14655_v35  ;;  %9338 = vmatprep.subr.bf16.mxu1 %v14657_v36  ;;  %v691_v35 = vld [vmem:[#allocation5 + $0x1010] sm:$0xff]  ;;  %v704_v53 = vld [vmem:[#allocation5 + $0x1078] sm:$0xff] }
 0x3ea   :  { %v695_v36 = vld [vmem:[#allocation5 + $0x1030] sm:$0xff]  ;;  %v708_v57 = vld [vmem:[#allocation5 + $0x1098] sm:$0xff]  ;;  %v14712_v2 = vcombine.low %v700_v48, %v704_v53 }
 0x3eb   :  { %v14702_v49 = vcombine.low %v691_v35, %v695_v36  ;;  %v712_v61 = vld [vmem:[#allocation5 + $0x10b8] sm:$0xff] }
 0x3ec   :  { %8909 = vmatpush1.bf16.msra.mxu0 %v14654_v58  ;;  %9339 = vmatpush1.bf16.msra.mxu1 %v14656_v42  ;;  %v14703_v58 = vcombine.high %v691_v35, %v695_v36  ;;  %v14705_v42 = vcombine.high %v692_v43, %v696_v39  ;;  %v716_v37 = vld [vmem:[#allocation5 + $0x10d8] sm:$0xff] }
 0x3ed   :  { %8910 = vmatprep.subr.bf16.mxu0 %v14663_v44  ;;  %9340 = vmatprep.subr.bf16.mxu1 %v14665_v47  ;;  %v699_v44 = vld [vmem:[#allocation5 + $0x1050] sm:$0xff]  ;;  %v720_v13 = vld [vmem:[#allocation5 + $0x10f8] sm:$0xff] }
 0x3ee   :  { %v703_v47 = vld [vmem:[#allocation5 + $0x1070] sm:$0xff]  ;;  %v728_v23 = vld [vmem:[#allocation5 + $0x1138] sm:$0xff]  ;;  %v14728_v28 = vcombine.low %v716_v37, %v720_v13 }
 0x3ef   :  { %v14710_v1 = vcombine.low %v699_v44, %v703_v47 }
 0x3f0   :  { %8911 = vmatpush1.bf16.msra.mxu0 %v14662_v51  ;;  %9341 = vmatpush1.bf16.msra.mxu1 %v14664_v54  ;;  %v14711_v51 = vcombine.high %v699_v44, %v703_v47  ;;  %v14713_v54 = vcombine.high %v700_v48, %v704_v53 }
 0x3f1   :  { %8912 = vmatprep.subr.bf16.mxu0 %v14671_v55  ;;  %9342 = vmatprep.subr.bf16.mxu1 %v14673_v56  ;;  %v707_v55 = vld [vmem:[#allocation5 + $0x1090] sm:$0xff] }
 0x3f2   :  { %v711_v56 = vld [vmem:[#allocation5 + $0x10b0] sm:$0xff] }
 0x3f3   :  { %v14718_v16 = vcombine.low %v707_v55, %v711_v56 }
 0x3f4   :  { %8913 = vmatpush1.bf16.msra.mxu0 %v14670_v4  ;;  %9343 = vmatpush1.bf16.msra.mxu1 %v14672_v5  ;;  %v14719_v4 = vcombine.high %v707_v55, %v711_v56  ;;  %v14721_v5 = vcombine.high %v708_v57, %v712_v61 }
 0x3f5   :  { %8914 = vmatprep.subr.bf16.mxu0 %v14679_v7  ;;  %9344 = vmatprep.subr.bf16.mxu1 %v14681_v9  ;;  %v715_v7 = vld [vmem:[#allocation5 + $0x10d0] sm:$0xff] }
 0x3f6   :  { %v719_v9 = vld [vmem:[#allocation5 + $0x10f0] sm:$0xff] }
 0x3f7   :  { %v14727_v15 = vcombine.high %v715_v7, %v719_v9  ;;  %v14726_v24 = vcombine.low %v715_v7, %v719_v9 }
 0x3f8   :  { %8915 = vmatpush1.bf16.msra.mxu0 %v14678_v19  ;;  %9345 = vmatpush1.bf16.msra.mxu1 %v14680_v20  ;;  %v14729_v19 = vcombine.high %v716_v37, %v720_v13  ;;  %v723_v20 = vld [vmem:[#allocation5 + $0x1110] sm:$0xff] }
 0x3f9   :  { %8916 = vmatprep.subr.bf16.mxu0 %v14687_v21  ;;  %9346 = vmatprep.subr.bf16.mxu1 %v14689_v22  ;;  %v727_v21 = vld [vmem:[#allocation5 + $0x1130] sm:$0xff]  ;;  %v724_v22 = vld [vmem:[#allocation5 + $0x1118] sm:$0xff] }
 0x3fa   :  { %v14735_v29 = vcombine.high %v723_v20, %v727_v21  ;;  %v14734_v35 = vcombine.low %v723_v20, %v727_v21  ;;  %v14736_v36 = vcombine.low %v724_v22, %v728_v23 }
 0x3fc   :  { %8917 = vmatpush1.bf16.msra.mxu0 %v14686_v25  ;;  %9347 = vmatpush1.bf16.msra.mxu1 %v14688_v31  ;;  %v731_v25 = vld [vmem:[#allocation5 + $0x1150] sm:$0xff] }
 0x3fd   :  { %8918 = vmatprep.subr.bf16.mxu0 %v14695_v32  ;;  %9348 = vmatprep.subr.bf16.mxu1 %v14697_v34  ;;  %v735_v31 = vld [vmem:[#allocation5 + $0x1170] sm:$0xff]  ;;  %v732_v32 = vld [vmem:[#allocation5 + $0x1158] sm:$0xff] }
 0x3fe   :  { %v736_v34 = vld [vmem:[#allocation5 + $0x1178] sm:$0xff]  ;;  %v14743_v43 = vcombine.high %v731_v25, %v735_v31  ;;  %v14742_v44 = vcombine.low %v731_v25, %v735_v31 }
 0x3ff   :  { %v14745_v39 = vcombine.high %v732_v32, %v736_v34  ;;  %v14744_v47 = vcombine.low %v732_v32, %v736_v34 }
 0x400   :  { %8919 = vmatpush1.bf16.msra.mxu0 %v14694_v40  ;;  %9349 = vmatpush1.bf16.msra.mxu1 %v14696_v41  ;;  %v739_v40 = vld [vmem:[#allocation5 + $0x1190] sm:$0xff] }
 0x401   :  { %8931 = vmatprep.subr.bf16.mxu0 %v14703_v58  ;;  %9361 = vmatprep.subr.bf16.mxu1 %v14705_v42  ;;  %v743_v41 = vld [vmem:[#allocation5 + $0x11b0] sm:$0xff]  ;;  %v740_v58 = vld [vmem:[#allocation5 + $0x1198] sm:$0xff] }
 0x402   :  { %v744_v42 = vld [vmem:[#allocation5 + $0x11b8] sm:$0xff]  ;;  %v14751_v48 = vcombine.high %v739_v40, %v743_v41  ;;  %v14750_v55 = vcombine.low %v739_v40, %v743_v41 }
 0x403   :  { %8921 = vmatmul.mubr.bf16.vlgmr.msra.gmra.mrb[4].mxu0 %v16800_v0  ;;  %9351 = vmatmul.mubr.bf16.vlgmr.msra.gmra.mrb[4].mxu1 %v16800_v0  ;;  %v14720_v0 = vcombine.low %v708_v57, %v712_v61  ;;  %v14753_v53 = vcombine.high %v740_v58, %v744_v42  ;;  %v14752_v56 = vcombine.low %v740_v58, %v744_v42 }
 0x404   :  { %8932 = vmatpush1.bf16.msra.mxu0 %v14702_v49  ;;  %9362 = vmatpush1.bf16.msra.mxu1 %v14704_v50  ;;  %v747_v49 = vld [vmem:[#allocation5 + $0x11d0] sm:$0xff] }
 0x405   :  { %8933 = vmatprep.subr.bf16.mxu0 %v14711_v51  ;;  %9363 = vmatprep.subr.bf16.mxu1 %v14713_v54  ;;  %v751_v50 = vld [vmem:[#allocation5 + $0x11f0] sm:$0xff]  ;;  %v748_v51 = vld [vmem:[#allocation5 + $0x11d8] sm:$0xff] }
 0x406   :  { %8963 = vmatprep.mubr.bf16.mxu0 %v16802_v10  ;;  %9393 = vmatprep.mubr.bf16.mxu1 %v16802_v10  ;;  %v14737_v10 = vcombine.high %v724_v22, %v728_v23  ;;  %v752_v54 = vld [vmem:[#allocation5 + $0x11f8] sm:$0xff]  ;;  %v14759_v57 = vcombine.high %v747_v49, %v751_v50  ;;  %v14758_v7 = vcombine.low %v747_v49, %v751_v50 }
 0x407   :  { %v14761_v61 = vcombine.high %v748_v51, %v752_v54  ;;  %v14760_v9 = vcombine.low %v748_v51, %v752_v54 }
 0x408   :  { %8934 = vmatpush1.bf16.msra.mxu0 %v14710_v1  ;;  %9364 = vmatpush1.bf16.msra.mxu1 %v14712_v2  ;;  %v755_v1 = vld [vmem:[#allocation5 + $0x1210] sm:$0xff] }
 0x409   :  { %8935 = vmatprep.subr.bf16.mxu0 %v14719_v4  ;;  %9365 = vmatprep.subr.bf16.mxu1 %v14721_v5  ;;  %v759_v2 = vld [vmem:[#allocation5 + $0x1230] sm:$0xff]  ;;  %v756_v4 = vld [vmem:[#allocation5 + $0x1218] sm:$0xff] }
 0x40a   :  { %v760_v5 = vld [vmem:[#allocation5 + $0x1238] sm:$0xff]  ;;  %v14767_v37 = vcombine.high %v755_v1, %v759_v2  ;;  %v14766_v20 = vcombine.low %v755_v1, %v759_v2 }
 0x40b   :  { %v14769_v13 = vcombine.high %v756_v4, %v760_v5  ;;  %v14768_v21 = vcombine.low %v756_v4, %v760_v5 }
 0x40c   :  { %8936 = vmatpush1.bf16.msra.mxu0 %v14718_v16  ;;  %9366 = vmatpush1.bf16.msra.mxu1 %v14720_v0  ;;  %v763_v16 = vld [vmem:[#allocation5 + $0x1250] sm:$0xff] }
 0x40d   :  { %8937 = vmatprep.subr.bf16.mxu0 %v14727_v15  ;;  %9367 = vmatprep.subr.bf16.mxu1 %v14729_v19  ;;  %v767_v0 = vld [vmem:[#allocation5 + $0x1270] sm:$0xff]  ;;  %v764_v15 = vld [vmem:[#allocation5 + $0x1258] sm:$0xff] }
 0x40e   :  { %v768_v19 = vld [vmem:[#allocation5 + $0x1278] sm:$0xff]  ;;  %v14775_v22 = vcombine.high %v763_v16, %v767_v0  ;;  %v14774_v25 = vcombine.low %v763_v16, %v767_v0 }
 0x40f   :  { %v14777_v23 = vcombine.high %v764_v15, %v768_v19  ;;  %v14776_v31 = vcombine.low %v764_v15, %v768_v19 }
 0x410   :  { %8938 = vmatpush1.bf16.msra.mxu0 %v14726_v24  ;;  %9368 = vmatpush1.bf16.msra.mxu1 %v14728_v28  ;;  %v771_v24 = vld [vmem:[#allocation5 + $0x1290] sm:$0xff] }
 0x411   :  { %8939 = vmatprep.subr.bf16.mxu0 %v14735_v29  ;;  %9369 = vmatprep.subr.bf16.mxu1 %v14737_v10  ;;  %v775_v28 = vld [vmem:[#allocation5 + $0x12b0] sm:$0xff]  ;;  %v772_v29 = vld [vmem:[#allocation5 + $0x1298] sm:$0xff] }
 0x412   :  { %v776_v10 = vld [vmem:[#allocation5 + $0x12b8] sm:$0xff]  ;;  %v14783_v32 = vcombine.high %v771_v24, %v775_v28  ;;  %v14782_v40 = vcombine.low %v771_v24, %v775_v28 }
 0x413   :  { %v14785_v34 = vcombine.high %v772_v29, %v776_v10  ;;  %v14784_v41 = vcombine.low %v772_v29, %v776_v10 }
 0x414   :  { %8940 = vmatpush1.bf16.msra.mxu0 %v14734_v35  ;;  %9370 = vmatpush1.bf16.msra.mxu1 %v14736_v36  ;;  %v779_v35 = vld [vmem:[#allocation5 + $0x12d0] sm:$0xff] }
 0x415   :  { %8941 = vmatprep.subr.bf16.mxu0 %v14743_v43  ;;  %9371 = vmatprep.subr.bf16.mxu1 %v14745_v39  ;;  %v783_v36 = vld [vmem:[#allocation5 + $0x12f0] sm:$0xff]  ;;  %v780_v43 = vld [vmem:[#allocation5 + $0x12d8] sm:$0xff] }
 0x416   :  { %v784_v39 = vld [vmem:[#allocation5 + $0x12f8] sm:$0xff]  ;;  %v14791_v58 = vcombine.high %v779_v35, %v783_v36  ;;  %v14790_v49 = vcombine.low %v779_v35, %v783_v36 }
 0x417   :  { %v14793_v42 = vcombine.high %v780_v43, %v784_v39  ;;  %v14792_v50 = vcombine.low %v780_v43, %v784_v39 }
 0x418   :  { %8942 = vmatpush1.bf16.msra.mxu0 %v14742_v44  ;;  %9372 = vmatpush1.bf16.msra.mxu1 %v14744_v47  ;;  %v787_v44 = vld [vmem:[#allocation5 + $0x1310] sm:$0xff] }
 0x419   :  { %8943 = vmatprep.subr.bf16.mxu0 %v14751_v48  ;;  %9373 = vmatprep.subr.bf16.mxu1 %v14753_v53  ;;  %v791_v47 = vld [vmem:[#allocation5 + $0x1330] sm:$0xff]  ;;  %v788_v48 = vld [vmem:[#allocation5 + $0x1318] sm:$0xff] }
 0x41a   :  { %v792_v53 = vld [vmem:[#allocation5 + $0x1338] sm:$0xff]  ;;  %v14799_v51 = vcombine.high %v787_v44, %v791_v47  ;;  %v14798_v1 = vcombine.low %v787_v44, %v791_v47 }
 0x41b   :  { %v14801_v54 = vcombine.high %v788_v48, %v792_v53  ;;  %v14800_v2 = vcombine.low %v788_v48, %v792_v53 }
 0x41c   :  { %8944 = vmatpush1.bf16.msra.mxu0 %v14750_v55  ;;  %9374 = vmatpush1.bf16.msra.mxu1 %v14752_v56  ;;  %v795_v55 = vld [vmem:[#allocation5 + $0x1350] sm:$0xff] }
 0x41d   :  { %8945 = vmatprep.subr.bf16.mxu0 %v14759_v57  ;;  %9375 = vmatprep.subr.bf16.mxu1 %v14761_v61  ;;  %v799_v56 = vld [vmem:[#allocation5 + $0x1370] sm:$0xff]  ;;  %v796_v57 = vld [vmem:[#allocation5 + $0x1358] sm:$0xff] }
 0x41e   :  { %v800_v61 = vld [vmem:[#allocation5 + $0x1378] sm:$0xff]  ;;  %v14807_v4 = vcombine.high %v795_v55, %v799_v56  ;;  %v14806_v16 = vcombine.low %v795_v55, %v799_v56 }
 0x41f   :  { %v14809_v5 = vcombine.high %v796_v57, %v800_v61  ;;  %v14808_v0 = vcombine.low %v796_v57, %v800_v61 }
 0x420   :  { %8946 = vmatpush1.bf16.msra.mxu0 %v14758_v7  ;;  %9376 = vmatpush1.bf16.msra.mxu1 %v14760_v9  ;;  %v803_v7 = vld [vmem:[#allocation5 + $0x1390] sm:$0xff] }
 0x421   :  { %8947 = vmatprep.subr.bf16.mxu0 %v14767_v37  ;;  %9377 = vmatprep.subr.bf16.mxu1 %v14769_v13  ;;  %v807_v9 = vld [vmem:[#allocation5 + $0x13b0] sm:$0xff]  ;;  %v804_v37 = vld [vmem:[#allocation5 + $0x1398] sm:$0xff] }
 0x422   :  { %v808_v13 = vld [vmem:[#allocation5 + $0x13b8] sm:$0xff]  ;;  %v14815_v15 = vcombine.high %v803_v7, %v807_v9  ;;  %v14814_v24 = vcombine.low %v803_v7, %v807_v9 }
 0x423   :  { %v14817_v19 = vcombine.high %v804_v37, %v808_v13  ;;  %v14816_v28 = vcombine.low %v804_v37, %v808_v13  ;;  %v851_v13 = vld [vmem:[#allocation5 + $0x1510] sm:$0xff] }
 0x424   :  { %8948 = vmatpush1.bf16.msra.mxu0 %v14766_v20  ;;  %9378 = vmatpush1.bf16.msra.mxu1 %v14768_v21  ;;  %v811_v20 = vld [vmem:[#allocation5 + $0x13d0] sm:$0xff] }
 0x425   :  { %8949 = vmatprep.subr.bf16.mxu0 %v14775_v22  ;;  %9379 = vmatprep.subr.bf16.mxu1 %v14777_v23  ;;  %v815_v21 = vld [vmem:[#allocation5 + $0x13f0] sm:$0xff]  ;;  %v812_v22 = vld [vmem:[#allocation5 + $0x13d8] sm:$0xff] }
 0x426   :  { %v816_v23 = vld [vmem:[#allocation5 + $0x13f8] sm:$0xff]  ;;  %v14823_v29 = vcombine.high %v811_v20, %v815_v21  ;;  %v14822_v35 = vcombine.low %v811_v20, %v815_v21 }
 0x427   :  { %v14825_v10 = vcombine.high %v812_v22, %v816_v23  ;;  %v14824_v36 = vcombine.low %v812_v22, %v816_v23  ;;  %v859_v22 = vld [vmem:[#allocation5 + $0x1550] sm:$0xff] }
 0x428   :  { %8950 = vmatpush1.bf16.msra.mxu0 %v14774_v25  ;;  %9380 = vmatpush1.bf16.msra.mxu1 %v14776_v31  ;;  %v819_v25 = vld [vmem:[#allocation5 + $0x1410] sm:$0xff] }
 0x429   :  { %8951 = vmatprep.subr.bf16.mxu0 %v14783_v32  ;;  %9381 = vmatprep.subr.bf16.mxu1 %v14785_v34  ;;  %v823_v31 = vld [vmem:[#allocation5 + $0x1430] sm:$0xff]  ;;  %v820_v32 = vld [vmem:[#allocation5 + $0x1418] sm:$0xff] }
 0x42a   :  { %v824_v34 = vld [vmem:[#allocation5 + $0x1438] sm:$0xff]  ;;  %v14831_v43 = vcombine.high %v819_v25, %v823_v31  ;;  %v14830_v44 = vcombine.low %v819_v25, %v823_v31  ;;  %v863_v23 = vld [vmem:[#allocation5 + $0x1570] sm:$0xff] }
 0x42b   :  { %v14833_v39 = vcombine.high %v820_v32, %v824_v34  ;;  %v14832_v47 = vcombine.low %v820_v32, %v824_v34  ;;  %v14871_v25 = vcombine.high %v859_v22, %v863_v23  ;;  %v867_v32 = vld [vmem:[#allocation5 + $0x1590] sm:$0xff] }
 0x42c   :  { %8952 = vmatpush1.bf16.msra.mxu0 %v14782_v40  ;;  %9382 = vmatpush1.bf16.msra.mxu1 %v14784_v41  ;;  %v827_v40 = vld [vmem:[#allocation5 + $0x1450] sm:$0xff] }
 0x42d   :  { %8953 = vmatprep.subr.bf16.mxu0 %v14791_v58  ;;  %9383 = vmatprep.subr.bf16.mxu1 %v14793_v42  ;;  %v831_v41 = vld [vmem:[#allocation5 + $0x1470] sm:$0xff]  ;;  %v828_v58 = vld [vmem:[#allocation5 + $0x1458] sm:$0xff] }
 0x42e   :  { %v832_v42 = vld [vmem:[#allocation5 + $0x1478] sm:$0xff]  ;;  %v14839_v48 = vcombine.high %v827_v40, %v831_v41  ;;  %v14838_v55 = vcombine.low %v827_v40, %v831_v41  ;;  %v871_v34 = vld [vmem:[#allocation5 + $0x15b0] sm:$0xff] }
 0x42f   :  { %v14841_v53 = vcombine.high %v828_v58, %v832_v42  ;;  %v14840_v56 = vcombine.low %v828_v58, %v832_v42  ;;  %v14879_v40 = vcombine.high %v867_v32, %v871_v34  ;;  %v875_v58 = vld [vmem:[#allocation5 + $0x15d0] sm:$0xff] }
 0x430   :  { %8954 = vmatpush1.bf16.msra.mxu0 %v14790_v49  ;;  %9384 = vmatpush1.bf16.msra.mxu1 %v14792_v50  ;;  %v835_v49 = vld [vmem:[#allocation5 + $0x1490] sm:$0xff] }
 0x431   :  { %8955 = vmatprep.subr.bf16.mxu0 %v14799_v51  ;;  %9385 = vmatprep.subr.bf16.mxu1 %v14801_v54  ;;  %v839_v50 = vld [vmem:[#allocation5 + $0x14b0] sm:$0xff]  ;;  %v836_v51 = vld [vmem:[#allocation5 + $0x1498] sm:$0xff] }
 0x432   :  { %v840_v54 = vld [vmem:[#allocation5 + $0x14b8] sm:$0xff]  ;;  %v14847_v57 = vcombine.high %v835_v49, %v839_v50  ;;  %v14846_v7 = vcombine.low %v835_v49, %v839_v50  ;;  %v879_v42 = vld [vmem:[#allocation5 + $0x15f0] sm:$0xff] }
 0x433   :  { %v14849_v61 = vcombine.high %v836_v51, %v840_v54  ;;  %v14887_v49 = vcombine.high %v875_v58, %v879_v42 }
 0x434   :  { %8956 = vmatpush1.bf16.msra.mxu0 %v14798_v1  ;;  %9386 = vmatpush1.bf16.msra.mxu1 %v14800_v2  ;;  %v843_v1 = vld [vmem:[#allocation5 + $0x14d0] sm:$0xff] }
 0x435   :  { %8957 = vmatprep.subr.bf16.mxu0 %v14807_v4  ;;  %9387 = vmatprep.subr.bf16.mxu1 %v14809_v5  ;;  %v847_v2 = vld [vmem:[#allocation5 + $0x14f0] sm:$0xff]  ;;  %v844_v4 = vld [vmem:[#allocation5 + $0x14d8] sm:$0xff] }
 0x436   :  { %v848_v5 = vld [vmem:[#allocation5 + $0x14f8] sm:$0xff]  ;;  %v14855_v9 = vcombine.high %v843_v1, %v847_v2 }
 0x437   :  { %v14857_v37 = vcombine.high %v844_v4, %v848_v5  ;;  %v14856_v20 = vcombine.low %v844_v4, %v848_v5  ;;  %v891_v4 = vld [vmem:[#allocation5 + $0x1650] sm:$0xff] }
 0x438   :  { %8958 = vmatpush1.bf16.msra.mxu0 %v14806_v16  ;;  %9388 = vmatpush1.bf16.msra.mxu1 %v14808_v0  ;;  %v855_v16 = vld [vmem:[#allocation5 + $0x1530] sm:$0xff]  ;;  %v852_v0 = vld [vmem:[#allocation5 + $0x1518] sm:$0xff] }
 0x439   :  { %8959 = vmatprep.subr.bf16.mxu0 %v14815_v15  ;;  %9389 = vmatprep.subr.bf16.mxu1 %v14817_v19  ;;  %v856_v15 = vld [vmem:[#allocation5 + $0x1538] sm:$0xff]  ;;  %v14854_v19 = vcombine.low %v843_v1, %v847_v2  ;;  %v14863_v21 = vcombine.high %v851_v13, %v855_v16  ;;  %v895_v5 = vld [vmem:[#allocation5 + $0x1670] sm:$0xff] }
 0x43c   :  { %8960 = vmatpush1.bf16.msra.mxu0 %v14814_v24  ;;  %9390 = vmatpush1.bf16.msra.mxu1 %v14816_v28  ;;  %v860_v24 = vld [vmem:[#allocation5 + $0x1558] sm:$0xff] }
 0x43d   :  { %8961 = vmatprep.subr.bf16.mxu0 %v14823_v29  ;;  %9391 = vmatprep.subr.bf16.mxu1 %v14825_v10  ;;  %v864_v28 = vld [vmem:[#allocation5 + $0x1578] sm:$0xff]  ;;  %v14862_v29 = vcombine.low %v851_v13, %v855_v16  ;;  %v14864_v10 = vcombine.low %v852_v0, %v856_v15  ;;  %v14903_v13 = vcombine.high %v891_v4, %v895_v5 }
 0x43e   :  { %v14873_v31 = vcombine.high %v860_v24, %v864_v28 }
 0x440   :  { %8962 = vmatpush1.bf16.msra.mxu0 %v14822_v35  ;;  %9392 = vmatpush1.bf16.msra.mxu1 %v14824_v36  ;;  %v868_v35 = vld [vmem:[#allocation5 + $0x1598] sm:$0xff] }
 0x441   :  { %8974 = vmatprep.subr.bf16.mxu0 %v14831_v43  ;;  %9404 = vmatprep.subr.bf16.mxu1 %v14833_v39  ;;  %v872_v36 = vld [vmem:[#allocation5 + $0x15b8] sm:$0xff]  ;;  %v14870_v43 = vcombine.low %v859_v22, %v863_v23  ;;  %v14872_v39 = vcombine.low %v860_v24, %v864_v28  ;;  %v907_v24 = vld [vmem:[#allocation5 + $0x16d0] sm:$0xff] }
 0x442   :  { %v14881_v41 = vcombine.high %v868_v35, %v872_v36  ;;  %v911_v28 = vld [vmem:[#allocation5 + $0x16f0] sm:$0xff] }
 0x443   :  { %8964 = vmatmul.mubr.bf16.vlgmr.msra.gmra.mrb[4].mxu0 %v16808_v26  ;;  %9394 = vmatmul.mubr.bf16.vlgmr.msra.gmra.mrb[4].mxu1 %v16808_v26  ;;  %v14848_v26 = vcombine.low %v836_v51, %v840_v54  ;;  %v883_v51 = vld [vmem:[#allocation5 + $0x1610] sm:$0xff] }
 0x444   :  { %8975 = vmatpush1.bf16.msra.mxu0 %v14830_v44  ;;  %9405 = vmatpush1.bf16.msra.mxu1 %v14832_v47  ;;  %v876_v44 = vld [vmem:[#allocation5 + $0x15d8] sm:$0xff]  ;;  %v887_v54 = vld [vmem:[#allocation5 + $0x1630] sm:$0xff] }
 0x445   :  { %8976 = vmatprep.subr.bf16.mxu0 %v14839_v48  ;;  %9406 = vmatprep.subr.bf16.mxu1 %v14841_v53  ;;  %v880_v47 = vld [vmem:[#allocation5 + $0x15f8] sm:$0xff]  ;;  %v14878_v48 = vcombine.low %v867_v32, %v871_v34  ;;  %v14880_v53 = vcombine.low %v868_v35, %v872_v36  ;;  %v14895_v1 = vcombine.high %v883_v51, %v887_v54  ;;  %v915_v35 = vld [vmem:[#allocation5 + $0x1710] sm:$0xff] }
 0x446   :  { %9006 = vmatprep.mubr.bf16.mxu0 %v16810_v38  ;;  %9436 = vmatprep.mubr.bf16.mxu1 %v16810_v38  ;;  %v14865_v38 = vcombine.high %v852_v0, %v856_v15  ;;  %v14889_v50 = vcombine.high %v876_v44, %v880_v47  ;;  %v899_v0 = vld [vmem:[#allocation5 + $0x1690] sm:$0xff]  ;;  %v14919_v32 = vcombine.high %v907_v24, %v911_v28 }
 0x447   :  { %v903_v15 = vld [vmem:[#allocation5 + $0x16b0] sm:$0xff] }
 0x448   :  { %8977 = vmatpush1.bf16.msra.mxu0 %v14838_v55  ;;  %9407 = vmatpush1.bf16.msra.mxu1 %v14840_v56  ;;  %v884_v55 = vld [vmem:[#allocation5 + $0x1618] sm:$0xff]  ;;  %v14911_v22 = vcombine.high %v899_v0, %v903_v15  ;;  %v919_v36 = vld [vmem:[#allocation5 + $0x1730] sm:$0xff] }
 0x449   :  { %8978 = vmatprep.subr.bf16.mxu0 %v14847_v57  ;;  %9408 = vmatprep.subr.bf16.mxu1 %v14849_v61  ;;  %v888_v56 = vld [vmem:[#allocation5 + $0x1638] sm:$0xff]  ;;  %v14886_v57 = vcombine.low %v875_v58, %v879_v42  ;;  %v14888_v61 = vcombine.low %v876_v44, %v880_v47  ;;  %v14927_v58 = vcombine.high %v915_v35, %v919_v36  ;;  %v923_v44 = vld [vmem:[#allocation5 + $0x1750] sm:$0xff] }
 0x44a   :  { %v14897_v2 = vcombine.high %v884_v55, %v888_v56  ;;  %v927_v47 = vld [vmem:[#allocation5 + $0x1770] sm:$0xff] }
 0x44c   :  { %8979 = vmatpush1.bf16.msra.mxu0 %v14846_v7  ;;  %9409 = vmatpush1.bf16.msra.mxu1 %v14848_v26  ;;  %v892_v7 = vld [vmem:[#allocation5 + $0x1658] sm:$0xff] }
 0x44d   :  { %8980 = vmatprep.subr.bf16.mxu0 %v14855_v9  ;;  %9410 = vmatprep.subr.bf16.mxu1 %v14857_v37  ;;  %v896_v26 = vld [vmem:[#allocation5 + $0x1678] sm:$0xff]  ;;  %v14894_v9 = vcombine.low %v883_v51, %v887_v54  ;;  %v14896_v37 = vcombine.low %v884_v55, %v888_v56  ;;  %v14935_v51 = vcombine.high %v923_v44, %v927_v47  ;;  %v931_v55 = vld [vmem:[#allocation5 + $0x1790] sm:$0xff] }
 0x44e   :  { %v14905_v16 = vcombine.high %v892_v7, %v896_v26  ;;  %v935_v56 = vld [vmem:[#allocation5 + $0x17b0] sm:$0xff] }
 0x450   :  { %8981 = vmatpush1.bf16.msra.mxu0 %v14854_v19  ;;  %9411 = vmatpush1.bf16.msra.mxu1 %v14856_v20  ;;  %v900_v19 = vld [vmem:[#allocation5 + $0x1698] sm:$0xff] }
 0x451   :  { %8982 = vmatprep.subr.bf16.mxu0 %v14863_v21  ;;  %9412 = vmatprep.subr.bf16.mxu1 %v14865_v38  ;;  %v904_v20 = vld [vmem:[#allocation5 + $0x16b8] sm:$0xff]  ;;  %v14902_v21 = vcombine.low %v891_v4, %v895_v5  ;;  %v14904_v38 = vcombine.low %v892_v7, %v896_v26  ;;  %v14943_v4 = vcombine.high %v931_v55, %v935_v56  ;;  %v939_v7 = vld [vmem:[#allocation5 + $0x17d0] sm:$0xff] }
 0x452   :  { %v14913_v23 = vcombine.high %v900_v19, %v904_v20  ;;  %v943_v26 = vld [vmem:[#allocation5 + $0x17f0] sm:$0xff] }
 0x454   :  { %8983 = vmatpush1.bf16.msra.mxu0 %v14862_v29  ;;  %9413 = vmatpush1.bf16.msra.mxu1 %v14864_v10  ;;  %v908_v29 = vld [vmem:[#allocation5 + $0x16d8] sm:$0xff] }
 0x455   :  { %8984 = vmatprep.subr.bf16.mxu0 %v14871_v25  ;;  %9414 = vmatprep.subr.bf16.mxu1 %v14873_v31  ;;  %v912_v10 = vld [vmem:[#allocation5 + $0x16f8] sm:$0xff]  ;;  %v14910_v25 = vcombine.low %v899_v0, %v903_v15  ;;  %v14912_v31 = vcombine.low %v900_v19, %v904_v20  ;;  %v14951_v0 = vcombine.high %v939_v7, %v943_v26  ;;  %v947_v19 = vld [vmem:[#allocation5 + $0x1810] sm:$0xff] }
 0x456   :  { %v14921_v34 = vcombine.high %v908_v29, %v912_v10  ;;  %v951_v20 = vld [vmem:[#allocation5 + $0x1830] sm:$0xff] }
 0x458   :  { %8985 = vmatpush1.bf16.msra.mxu0 %v14870_v43  ;;  %9415 = vmatpush1.bf16.msra.mxu1 %v14872_v39  ;;  %v916_v43 = vld [vmem:[#allocation5 + $0x1718] sm:$0xff] }
 0x459   :  { %8986 = vmatprep.subr.bf16.mxu0 %v14879_v40  ;;  %9416 = vmatprep.subr.bf16.mxu1 %v14881_v41  ;;  %v920_v39 = vld [vmem:[#allocation5 + $0x1738] sm:$0xff]  ;;  %v14918_v40 = vcombine.low %v907_v24, %v911_v28  ;;  %v14920_v41 = vcombine.low %v908_v29, %v912_v10  ;;  %v14959_v24 = vcombine.high %v947_v19, %v951_v20  ;;  %v955_v29 = vld [vmem:[#allocation5 + $0x1850] sm:$0xff] }
 0x45a   :  { %v14929_v42 = vcombine.high %v916_v43, %v920_v39  ;;  %v959_v10 = vld [vmem:[#allocation5 + $0x1870] sm:$0xff] }
 0x45c   :  { %8987 = vmatpush1.bf16.msra.mxu0 %v14878_v48  ;;  %9417 = vmatpush1.bf16.msra.mxu1 %v14880_v53  ;;  %v924_v48 = vld [vmem:[#allocation5 + $0x1758] sm:$0xff] }
 0x45d   :  { %8988 = vmatprep.subr.bf16.mxu0 %v14887_v49  ;;  %9418 = vmatprep.subr.bf16.mxu1 %v14889_v50  ;;  %v928_v53 = vld [vmem:[#allocation5 + $0x1778] sm:$0xff]  ;;  %v14926_v49 = vcombine.low %v915_v35, %v919_v36  ;;  %v14928_v50 = vcombine.low %v916_v43, %v920_v39  ;;  %v14967_v35 = vcombine.high %v955_v29, %v959_v10  ;;  %v963_v43 = vld [vmem:[#allocation5 + $0x1890] sm:$0xff] }
 0x45e   :  { %v14937_v54 = vcombine.high %v924_v48, %v928_v53  ;;  %v967_v39 = vld [vmem:[#allocation5 + $0x18b0] sm:$0xff] }
 0x460   :  { %8989 = vmatpush1.bf16.msra.mxu0 %v14886_v57  ;;  %9419 = vmatpush1.bf16.msra.mxu1 %v14888_v61  ;;  %v932_v57 = vld [vmem:[#allocation5 + $0x1798] sm:$0xff] }
 0x461   :  { %8990 = vmatprep.subr.bf16.mxu0 %v14895_v1  ;;  %9420 = vmatprep.subr.bf16.mxu1 %v14897_v2  ;;  %v936_v61 = vld [vmem:[#allocation5 + $0x17b8] sm:$0xff]  ;;  %v14934_v1 = vcombine.low %v923_v44, %v927_v47  ;;  %v14936_v2 = vcombine.low %v924_v48, %v928_v53  ;;  %v14975_v44 = vcombine.high %v963_v43, %v967_v39  ;;  %v971_v48 = vld [vmem:[#allocation5 + $0x18d0] sm:$0xff] }
 0x462   :  { %v14945_v5 = vcombine.high %v932_v57, %v936_v61  ;;  %v975_v53 = vld [vmem:[#allocation5 + $0x18f0] sm:$0xff] }
 0x464   :  { %8991 = vmatpush1.bf16.msra.mxu0 %v14894_v9  ;;  %9421 = vmatpush1.bf16.msra.mxu1 %v14896_v37  ;;  %v940_v9 = vld [vmem:[#allocation5 + $0x17d8] sm:$0xff] }
 0x465   :  { %8992 = vmatprep.subr.bf16.mxu0 %v14903_v13  ;;  %9422 = vmatprep.subr.bf16.mxu1 %v14905_v16  ;;  %v944_v37 = vld [vmem:[#allocation5 + $0x17f8] sm:$0xff]  ;;  %v14942_v13 = vcombine.low %v931_v55, %v935_v56  ;;  %v14944_v16 = vcombine.low %v932_v57, %v936_v61  ;;  %v979_v56 = vld [vmem:[#allocation5 + $0x1910] sm:$0xff] }
 0x466   :  { %v14953_v15 = vcombine.high %v940_v9, %v944_v37  ;;  %v983_v57 = vld [vmem:[#allocation5 + $0x1930] sm:$0xff]  ;;  %v980_v61 = vld [vmem:[#allocation5 + $0x1918] sm:$0xff] }
 0x468   :  { %8993 = vmatpush1.bf16.msra.mxu0 %v14902_v21  ;;  %9423 = vmatpush1.bf16.msra.mxu1 %v14904_v38  ;;  %v948_v21 = vld [vmem:[#allocation5 + $0x1818] sm:$0xff] }
 0x469   :  { %8994 = vmatprep.subr.bf16.mxu0 %v14911_v22  ;;  %9424 = vmatprep.subr.bf16.mxu1 %v14913_v23  ;;  %v952_v38 = vld [vmem:[#allocation5 + $0x1838] sm:$0xff]  ;;  %v14950_v22 = vcombine.low %v939_v7, %v943_v26  ;;  %v14952_v23 = vcombine.low %v940_v9, %v944_v37  ;;  %v987_v7 = vld [vmem:[#allocation5 + $0x1950] sm:$0xff] }
 0x46a   :  { %v14961_v28 = vcombine.high %v948_v21, %v952_v38  ;;  %v991_v26 = vld [vmem:[#allocation5 + $0x1970] sm:$0xff]  ;;  %v988_v9 = vld [vmem:[#allocation5 + $0x1958] sm:$0xff] }
 0x46b   :  { %v992_v37 = vld [vmem:[#allocation5 + $0x1978] sm:$0xff] }
 0x46c   :  { %8995 = vmatpush1.bf16.msra.mxu0 %v14910_v25  ;;  %9425 = vmatpush1.bf16.msra.mxu1 %v14912_v31  ;;  %v956_v25 = vld [vmem:[#allocation5 + $0x1858] sm:$0xff] }
 0x46d   :  { %8996 = vmatprep.subr.bf16.mxu0 %v14919_v32  ;;  %9426 = vmatprep.subr.bf16.mxu1 %v14921_v34  ;;  %v960_v31 = vld [vmem:[#allocation5 + $0x1878] sm:$0xff]  ;;  %v14958_v32 = vcombine.low %v947_v19, %v951_v20  ;;  %v14960_v34 = vcombine.low %v948_v21, %v952_v38  ;;  %v995_v19 = vld [vmem:[#allocation5 + $0x1990] sm:$0xff] }
 0x46e   :  { %v14969_v36 = vcombine.high %v956_v25, %v960_v31  ;;  %v999_v20 = vld [vmem:[#allocation5 + $0x19b0] sm:$0xff]  ;;  %v996_v21 = vld [vmem:[#allocation5 + $0x1998] sm:$0xff] }
 0x46f   :  { %v1000_v38 = vld [vmem:[#allocation5 + $0x19b8] sm:$0xff] }
 0x470   :  { %8997 = vmatpush1.bf16.msra.mxu0 %v14918_v40  ;;  %9427 = vmatpush1.bf16.msra.mxu1 %v14920_v41  ;;  %v964_v40 = vld [vmem:[#allocation5 + $0x1898] sm:$0xff] }
 0x471   :  { %8998 = vmatprep.subr.bf16.mxu0 %v14927_v58  ;;  %9428 = vmatprep.subr.bf16.mxu1 %v14929_v42  ;;  %v968_v41 = vld [vmem:[#allocation5 + $0x18b8] sm:$0xff]  ;;  %v14966_v58 = vcombine.low %v955_v29, %v959_v10  ;;  %v14968_v42 = vcombine.low %v956_v25, %v960_v31  ;;  %v1003_v29 = vld [vmem:[#allocation5 + $0x19d0] sm:$0xff] }
 0x472   :  { %v14977_v47 = vcombine.high %v964_v40, %v968_v41  ;;  %v1007_v10 = vld [vmem:[#allocation5 + $0x19f0] sm:$0xff]  ;;  %v1004_v25 = vld [vmem:[#allocation5 + $0x19d8] sm:$0xff] }
 0x473   :  { %v1008_v31 = vld [vmem:[#allocation5 + $0x19f8] sm:$0xff] }
 0x474   :  { %8999 = vmatpush1.bf16.msra.mxu0 %v14926_v49  ;;  %9429 = vmatpush1.bf16.msra.mxu1 %v14928_v50  ;;  %v972_v49 = vld [vmem:[#allocation5 + $0x18d8] sm:$0xff] }
 0x475   :  { %9000 = vmatprep.subr.bf16.mxu0 %v14935_v51  ;;  %9430 = vmatprep.subr.bf16.mxu1 %v14937_v54  ;;  %v976_v50 = vld [vmem:[#allocation5 + $0x18f8] sm:$0xff]  ;;  %v14974_v51 = vcombine.low %v963_v43, %v967_v39  ;;  %v14983_v54 = vcombine.high %v971_v48, %v975_v53  ;;  %v1011_v43 = vld [vmem:[#allocation5 + $0x1a10] sm:$0xff] }
 0x476   :  { %v14985_v55 = vcombine.high %v972_v49, %v976_v50  ;;  %v1015_v39 = vld [vmem:[#allocation5 + $0x1a30] sm:$0xff] }
 0x478   :  { %9001 = vmatpush1.bf16.msra.mxu0 %v14934_v1  ;;  %9431 = vmatpush1.bf16.msra.mxu1 %v14936_v2  ;;  %v984_v1 = vld [vmem:[#allocation5 + $0x1938] sm:$0xff]  ;;  %v14982_v2 = vcombine.low %v971_v48, %v975_v53  ;;  %v1019_v48 = vld [vmem:[#allocation5 + $0x1a50] sm:$0xff] }
 0x479   :  { %9002 = vmatprep.subr.bf16.mxu0 %v14943_v4  ;;  %9432 = vmatprep.subr.bf16.mxu1 %v14945_v5  ;;  %v14984_v4 = vcombine.low %v972_v49, %v976_v50  ;;  %v14991_v5 = vcombine.high %v979_v56, %v983_v57  ;;  %v1023_v53 = vld [vmem:[#allocation5 + $0x1a70] sm:$0xff]  ;;  %v1020_v49 = vld [vmem:[#allocation5 + $0x1a58] sm:$0xff] }
 0x47a   :  { %v1024_v50 = vld [vmem:[#allocation5 + $0x1a78] sm:$0xff] }
 0x47c   :  { %9003 = vmatpush1.bf16.msra.mxu0 %v14942_v13  ;;  %9433 = vmatpush1.bf16.msra.mxu1 %v14944_v16  ;;  %v14990_v13 = vcombine.low %v979_v56, %v983_v57  ;;  %v14992_v16 = vcombine.low %v980_v61, %v984_v1  ;;  %v1027_v56 = vld [vmem:[#allocation5 + $0x1a90] sm:$0xff] }
 0x47d   :  { %9004 = vmatprep.subr.bf16.mxu0 %v14951_v0  ;;  %9434 = vmatprep.subr.bf16.mxu1 %v14953_v15  ;;  %v14999_v0 = vcombine.high %v987_v7, %v991_v26  ;;  %v15001_v15 = vcombine.high %v988_v9, %v992_v37  ;;  %v1031_v57 = vld [vmem:[#allocation5 + $0x1ab0] sm:$0xff] }
 0x480   :  { %9005 = vmatpush1.bf16.msra.mxu0 %v14950_v22  ;;  %9435 = vmatpush1.bf16.msra.mxu1 %v14952_v23  ;;  %v14998_v22 = vcombine.low %v987_v7, %v991_v26  ;;  %v15000_v23 = vcombine.low %v988_v9, %v992_v37  ;;  %v1035_v7 = vld [vmem:[#allocation5 + $0x1ad0] sm:$0xff]  ;;  %v1036_v9 = vld [vmem:[#allocation5 + $0x1ad8] sm:$0xff] }
 0x481   :  { %9017 = vmatprep.subr.bf16.mxu0 %v14959_v24  ;;  %9447 = vmatprep.subr.bf16.mxu1 %v14961_v28  ;;  %v15007_v24 = vcombine.high %v995_v19, %v999_v20  ;;  %v15009_v28 = vcombine.high %v996_v21, %v1000_v38  ;;  %v1039_v26 = vld [vmem:[#allocation5 + $0x1af0] sm:$0xff]  ;;  %v1040_v37 = vld [vmem:[#allocation5 + $0x1af8] sm:$0xff] }
 0x483   :  { %9007 = vmatmul.mubr.bf16.vlgmr.msra.gmra.mrb[4].mxu0 %v16816_v59  ;;  %9437 = vmatmul.mubr.bf16.vlgmr.msra.gmra.mrb[4].mxu1 %v16816_v59  ;;  %v14976_v59 = vcombine.low %v964_v40, %v968_v41  ;;  %v1012_v40 = vld [vmem:[#allocation5 + $0x1a18] sm:$0xff] }
 0x484   :  { %9018 = vmatpush1.bf16.msra.mxu0 %v14958_v32  ;;  %9448 = vmatpush1.bf16.msra.mxu1 %v14960_v34  ;;  %v15006_v32 = vcombine.low %v995_v19, %v999_v20  ;;  %v15008_v34 = vcombine.low %v996_v21, %v1000_v38  ;;  %v1016_v41 = vld [vmem:[#allocation5 + $0x1a38] sm:$0xff]  ;;  %v1043_v19 = vld [vmem:[#allocation5 + $0x1b10] sm:$0xff] }
 0x485   :  { %9019 = vmatprep.subr.bf16.mxu0 %v14967_v35  ;;  %9449 = vmatprep.subr.bf16.mxu1 %v14969_v36  ;;  %v15015_v35 = vcombine.high %v1003_v29, %v1007_v10  ;;  %v15017_v36 = vcombine.high %v1004_v25, %v1008_v31  ;;  %v1047_v20 = vld [vmem:[#allocation5 + $0x1b30] sm:$0xff]  ;;  %v1044_v21 = vld [vmem:[#allocation5 + $0x1b18] sm:$0xff] }
 0x486   :  { %9049 = vmatprep.mubr.bf16.mxu0 %v16818_v6  ;;  %9479 = vmatprep.mubr.bf16.mxu1 %v16818_v6  ;;  %v14993_v6 = vcombine.high %v980_v61, %v984_v1  ;;  %v1028_v61 = vld [vmem:[#allocation5 + $0x1a98] sm:$0xff] }
 0x487   :  { %v1032_v1 = vld [vmem:[#allocation5 + $0x1ab8] sm:$0xff] }
 0x488   :  { %9020 = vmatpush1.bf16.msra.mxu0 %v14966_v58  ;;  %9450 = vmatpush1.bf16.msra.mxu1 %v14968_v42  ;;  %v15014_v58 = vcombine.low %v1003_v29, %v1007_v10  ;;  %v15016_v42 = vcombine.low %v1004_v25, %v1008_v31  ;;  %v1048_v38 = vld [vmem:[#allocation5 + $0x1b38] sm:$0xff]  ;;  %v1051_v29 = vld [vmem:[#allocation5 + $0x1b50] sm:$0xff] }
 0x489   :  { %9021 = vmatprep.subr.bf16.mxu0 %v14975_v44  ;;  %9451 = vmatprep.subr.bf16.mxu1 %v14977_v47  ;;  %v15023_v44 = vcombine.high %v1011_v43, %v1015_v39  ;;  %v15025_v47 = vcombine.high %v1012_v40, %v1016_v41  ;;  %v1055_v10 = vld [vmem:[#allocation5 + $0x1b70] sm:$0xff]  ;;  %v1052_v25 = vld [vmem:[#allocation5 + $0x1b58] sm:$0xff] }
 0x48a   :  { %v1056_v31 = vld [vmem:[#allocation5 + $0x1b78] sm:$0xff] }
 0x48c   :  { %9022 = vmatpush1.bf16.msra.mxu0 %v14974_v51  ;;  %9452 = vmatpush1.bf16.msra.mxu1 %v14976_v59  ;;  %v15022_v51 = vcombine.low %v1011_v43, %v1015_v39  ;;  %v15024_v59 = vcombine.low %v1012_v40, %v1016_v41  ;;  %v1059_v43 = vld [vmem:[#allocation5 + $0x1b90] sm:$0xff]  ;;  %v1060_v40 = vld [vmem:[#allocation5 + $0x1b98] sm:$0xff] }
 0x48d   :  { %9023 = vmatprep.subr.bf16.mxu0 %v14983_v54  ;;  %9453 = vmatprep.subr.bf16.mxu1 %v14985_v55  ;;  %v15031_v54 = vcombine.high %v1019_v48, %v1023_v53  ;;  %v15033_v55 = vcombine.high %v1020_v49, %v1024_v50  ;;  %v1063_v39 = vld [vmem:[#allocation5 + $0x1bb0] sm:$0xff]  ;;  %v1064_v41 = vld [vmem:[#allocation5 + $0x1bb8] sm:$0xff] }
 0x490   :  { %9024 = vmatpush1.bf16.msra.mxu0 %v14982_v2  ;;  %9454 = vmatpush1.bf16.msra.mxu1 %v14984_v4  ;;  %v15030_v2 = vcombine.low %v1019_v48, %v1023_v53  ;;  %v15032_v4 = vcombine.low %v1020_v49, %v1024_v50  ;;  %v1067_v48 = vld [vmem:[#allocation5 + $0x1bd0] sm:$0xff]  ;;  %v1068_v49 = vld [vmem:[#allocation5 + $0x1bd8] sm:$0xff] }
 0x491   :  { %9025 = vmatprep.subr.bf16.mxu0 %v14991_v5  ;;  %9455 = vmatprep.subr.bf16.mxu1 %v14993_v6  ;;  %v15039_v5 = vcombine.high %v1027_v56, %v1031_v57  ;;  %v15041_v6 = vcombine.high %v1028_v61, %v1032_v1  ;;  %v1071_v53 = vld [vmem:[#allocation5 + $0x1bf0] sm:$0xff]  ;;  %v1072_v50 = vld [vmem:[#allocation5 + $0x1bf8] sm:$0xff] }
 0x494   :  { %9026 = vmatpush1.bf16.msra.mxu0 %v14990_v13  ;;  %9456 = vmatpush1.bf16.msra.mxu1 %v14992_v16  ;;  %v15038_v13 = vcombine.low %v1027_v56, %v1031_v57  ;;  %v15040_v16 = vcombine.low %v1028_v61, %v1032_v1  ;;  %v1075_v56 = vld [vmem:[#allocation5 + $0x1c10] sm:$0xff]  ;;  %v1076_v61 = vld [vmem:[#allocation5 + $0x1c18] sm:$0xff] }
 0x495   :  { %9027 = vmatprep.subr.bf16.mxu0 %v14999_v0  ;;  %9457 = vmatprep.subr.bf16.mxu1 %v15001_v15  ;;  %v15047_v0 = vcombine.high %v1035_v7, %v1039_v26  ;;  %v15049_v15 = vcombine.high %v1036_v9, %v1040_v37  ;;  %v1079_v57 = vld [vmem:[#allocation5 + $0x1c30] sm:$0xff]  ;;  %v1080_v1 = vld [vmem:[#allocation5 + $0x1c38] sm:$0xff] }
 0x498   :  { %9028 = vmatpush1.bf16.msra.mxu0 %v14998_v22  ;;  %9458 = vmatpush1.bf16.msra.mxu1 %v15000_v23  ;;  %v15046_v22 = vcombine.low %v1035_v7, %v1039_v26  ;;  %v15048_v23 = vcombine.low %v1036_v9, %v1040_v37  ;;  %v1083_v7 = vld [vmem:[#allocation5 + $0x1c50] sm:$0xff]  ;;  %v1084_v9 = vld [vmem:[#allocation5 + $0x1c58] sm:$0xff] }
 0x499   :  { %9029 = vmatprep.subr.bf16.mxu0 %v15007_v24  ;;  %9459 = vmatprep.subr.bf16.mxu1 %v15009_v28  ;;  %v15055_v24 = vcombine.high %v1043_v19, %v1047_v20  ;;  %v15057_v28 = vcombine.high %v1044_v21, %v1048_v38  ;;  %v1087_v26 = vld [vmem:[#allocation5 + $0x1c70] sm:$0xff]  ;;  %v1088_v37 = vld [vmem:[#allocation5 + $0x1c78] sm:$0xff] }
 0x49c   :  { %9030 = vmatpush1.bf16.msra.mxu0 %v15006_v32  ;;  %9460 = vmatpush1.bf16.msra.mxu1 %v15008_v34  ;;  %v15054_v32 = vcombine.low %v1043_v19, %v1047_v20  ;;  %v15056_v34 = vcombine.low %v1044_v21, %v1048_v38  ;;  %v1091_v19 = vld [vmem:[#allocation5 + $0x1c90] sm:$0xff]  ;;  %v1092_v21 = vld [vmem:[#allocation5 + $0x1c98] sm:$0xff] }
 0x49d   :  { %9031 = vmatprep.subr.bf16.mxu0 %v15015_v35  ;;  %9461 = vmatprep.subr.bf16.mxu1 %v15017_v36  ;;  %v15063_v35 = vcombine.high %v1051_v29, %v1055_v10  ;;  %v15065_v36 = vcombine.high %v1052_v25, %v1056_v31  ;;  %v1095_v20 = vld [vmem:[#allocation5 + $0x1cb0] sm:$0xff]  ;;  %v1096_v38 = vld [vmem:[#allocation5 + $0x1cb8] sm:$0xff] }
 0x4a0   :  { %9032 = vmatpush1.bf16.msra.mxu0 %v15014_v58  ;;  %9462 = vmatpush1.bf16.msra.mxu1 %v15016_v42  ;;  %v15062_v58 = vcombine.low %v1051_v29, %v1055_v10  ;;  %v15064_v42 = vcombine.low %v1052_v25, %v1056_v31  ;;  %v1099_v29 = vld [vmem:[#allocation5 + $0x1cd0] sm:$0xff]  ;;  %v1100_v25 = vld [vmem:[#allocation5 + $0x1cd8] sm:$0xff] }
 0x4a1   :  { %9033 = vmatprep.subr.bf16.mxu0 %v15023_v44  ;;  %9463 = vmatprep.subr.bf16.mxu1 %v15025_v47  ;;  %v15071_v44 = vcombine.high %v1059_v43, %v1063_v39  ;;  %v15073_v47 = vcombine.high %v1060_v40, %v1064_v41  ;;  %v1103_v10 = vld [vmem:[#allocation5 + $0x1cf0] sm:$0xff]  ;;  %v1104_v31 = vld [vmem:[#allocation5 + $0x1cf8] sm:$0xff] }
 0x4a4   :  { %9034 = vmatpush1.bf16.msra.mxu0 %v15022_v51  ;;  %9464 = vmatpush1.bf16.msra.mxu1 %v15024_v59  ;;  %v15070_v51 = vcombine.low %v1059_v43, %v1063_v39  ;;  %v15072_v59 = vcombine.low %v1060_v40, %v1064_v41  ;;  %v1111_v43 = vld [vmem:[#allocation5 + $0x1d30] sm:$0xff]  ;;  %v1108_v39 = vld [vmem:[#allocation5 + $0x1d18] sm:$0xff]  ;;  %v15110_v41 = vcombine.low %v1099_v29, %v1103_v10 }
 0x4a5   :  { %9035 = vmatprep.subr.bf16.mxu0 %v15031_v54  ;;  %9465 = vmatprep.subr.bf16.mxu1 %v15033_v55  ;;  %v15079_v54 = vcombine.high %v1067_v48, %v1071_v53  ;;  %v15081_v55 = vcombine.high %v1068_v49, %v1072_v50  ;;  %v1112_v40 = vld [vmem:[#allocation5 + $0x1d38] sm:$0xff] }
 0x4a8   :  { %9036 = vmatpush1.bf16.msra.mxu0 %v15030_v2  ;;  %9466 = vmatpush1.bf16.msra.mxu1 %v15032_v4  ;;  %v15078_v2 = vcombine.low %v1067_v48, %v1071_v53  ;;  %v15080_v4 = vcombine.low %v1068_v49, %v1072_v50  ;;  %v1116_v48 = vld [vmem:[#allocation5 + $0x1d58] sm:$0xff]  ;;  %v15120_v50 = vcombine.low %v1108_v39, %v1112_v40 }
 0x4a9   :  { %9037 = vmatprep.subr.bf16.mxu0 %v15039_v5  ;;  %9467 = vmatprep.subr.bf16.mxu1 %v15041_v6  ;;  %v15087_v5 = vcombine.high %v1075_v56, %v1079_v57  ;;  %v15089_v6 = vcombine.high %v1076_v61, %v1080_v1  ;;  %v1120_v53 = vld [vmem:[#allocation5 + $0x1d78] sm:$0xff] }
 0x4ac   :  { %9038 = vmatpush1.bf16.msra.mxu0 %v15038_v13  ;;  %9468 = vmatpush1.bf16.msra.mxu1 %v15040_v16  ;;  %v15086_v13 = vcombine.low %v1075_v56, %v1079_v57  ;;  %v15088_v16 = vcombine.low %v1076_v61, %v1080_v1  ;;  %v1124_v56 = vld [vmem:[#allocation5 + $0x1d98] sm:$0xff]  ;;  %v15128_v1 = vcombine.low %v1116_v48, %v1120_v53 }
 0x4ad   :  { %9039 = vmatprep.subr.bf16.mxu0 %v15047_v0  ;;  %9469 = vmatprep.subr.bf16.mxu1 %v15049_v15  ;;  %v15095_v0 = vcombine.high %v1083_v7, %v1087_v26  ;;  %v15097_v15 = vcombine.high %v1084_v9, %v1088_v37  ;;  %v1128_v57 = vld [vmem:[#allocation5 + $0x1db8] sm:$0xff] }
 0x4b0   :  { %9040 = vmatpush1.bf16.msra.mxu0 %v15046_v22  ;;  %9470 = vmatpush1.bf16.msra.mxu1 %v15048_v23  ;;  %v15094_v22 = vcombine.low %v1083_v7, %v1087_v26  ;;  %v15096_v23 = vcombine.low %v1084_v9, %v1088_v37  ;;  %v1132_v7 = vld [vmem:[#allocation5 + $0x1dd8] sm:$0xff]  ;;  %v15136_v37 = vcombine.low %v1124_v56, %v1128_v57 }
 0x4b1   :  { %9041 = vmatprep.subr.bf16.mxu0 %v15055_v24  ;;  %9471 = vmatprep.subr.bf16.mxu1 %v15057_v28  ;;  %v15103_v24 = vcombine.high %v1091_v19, %v1095_v20  ;;  %v15105_v28 = vcombine.high %v1092_v21, %v1096_v38  ;;  %v1136_v26 = vld [vmem:[#allocation5 + $0x1df8] sm:$0xff] }
 0x4b4   :  { %9042 = vmatpush1.bf16.msra.mxu0 %v15054_v32  ;;  %9472 = vmatpush1.bf16.msra.mxu1 %v15056_v34  ;;  %v15102_v32 = vcombine.low %v1091_v19, %v1095_v20  ;;  %v15111_v34 = vcombine.high %v1099_v29, %v1103_v10  ;;  %v1140_v19 = vld [vmem:[#allocation5 + $0x1e18] sm:$0xff] }
 0x4b5   :  { %9043 = vmatprep.subr.bf16.mxu0 %v15063_v35  ;;  %9473 = vmatprep.subr.bf16.mxu1 %v15065_v36  ;;  %v15113_v35 = vcombine.high %v1100_v25, %v1104_v31  ;;  %v1107_v36 = vld [vmem:[#allocation5 + $0x1d10] sm:$0xff]  ;;  %v1144_v20 = vld [vmem:[#allocation5 + $0x1e38] sm:$0xff] }
 0x4b6   :  { %v15118_v49 = vcombine.low %v1107_v36, %v1111_v43  ;;  %v1148_v29 = vld [vmem:[#allocation5 + $0x1e58] sm:$0xff] }
 0x4b7   :  { %v1152_v10 = vld [vmem:[#allocation5 + $0x1e78] sm:$0xff] }
 0x4b8   :  { %9044 = vmatpush1.bf16.msra.mxu0 %v15062_v58  ;;  %9474 = vmatpush1.bf16.msra.mxu1 %v15064_v42  ;;  %v15112_v58 = vcombine.low %v1100_v25, %v1104_v31  ;;  %v15119_v42 = vcombine.high %v1107_v36, %v1111_v43  ;;  %v15152_v31 = vcombine.low %v1140_v19, %v1144_v20  ;;  %v1156_v36 = vld [vmem:[#allocation5 + $0x1e98] sm:$0xff] }
 0x4b9   :  { %9045 = vmatprep.subr.bf16.mxu0 %v15071_v44  ;;  %9475 = vmatprep.subr.bf16.mxu1 %v15073_v47  ;;  %v1115_v44 = vld [vmem:[#allocation5 + $0x1d50] sm:$0xff]  ;;  %v1160_v43 = vld [vmem:[#allocation5 + $0x1eb8] sm:$0xff] }
 0x4ba   :  { %v1119_v47 = vld [vmem:[#allocation5 + $0x1d70] sm:$0xff] }
 0x4bb   :  { %v15126_v61 = vcombine.low %v1115_v44, %v1119_v47 }
 0x4bc   :  { %9046 = vmatpush1.bf16.msra.mxu0 %v15070_v51  ;;  %9476 = vmatpush1.bf16.msra.mxu1 %v15072_v59  ;;  %v15127_v51 = vcombine.high %v1115_v44, %v1119_v47  ;;  %v15129_v59 = vcombine.high %v1116_v48, %v1120_v53  ;;  %v1164_v44 = vld [vmem:[#allocation5 + $0x1ed8] sm:$0xff]  ;;  %v15168_v53 = vcombine.low %v1156_v36, %v1160_v43 }
 0x4bd   :  { %9047 = vmatprep.subr.bf16.mxu0 %v15079_v54  ;;  %9477 = vmatprep.subr.bf16.mxu1 %v15081_v55  ;;  %v1123_v54 = vld [vmem:[#allocation5 + $0x1d90] sm:$0xff]  ;;  %v1168_v47 = vld [vmem:[#allocation5 + $0x1ef8] sm:$0xff] }
 0x4be   :  { %v1127_v55 = vld [vmem:[#allocation5 + $0x1db0] sm:$0xff] }
 0x4bf   :  { %v15134_v9 = vcombine.low %v1123_v54, %v1127_v55 }
 0x4c0   :  { %9048 = vmatpush1.bf16.msra.mxu0 %v15078_v2  ;;  %9478 = vmatpush1.bf16.msra.mxu1 %v15080_v4  ;;  %v15135_v2 = vcombine.high %v1123_v54, %v1127_v55  ;;  %v15137_v4 = vcombine.high %v1124_v56, %v1128_v57  ;;  %v1172_v54 = vld [vmem:[#allocation5 + $0x1f18] sm:$0xff]  ;;  %v15176_v57 = vcombine.low %v1164_v44, %v1168_v47 }
 0x4c1   :  { %9060 = vmatprep.subr.bf16.mxu0 %v15087_v5  ;;  %9490 = vmatprep.subr.bf16.mxu1 %v15089_v6  ;;  %v1131_v5 = vld [vmem:[#allocation5 + $0x1dd0] sm:$0xff]  ;;  %v1176_v55 = vld [vmem:[#allocation5 + $0x1f38] sm:$0xff] }
 0x4c2   :  { %v1135_v6 = vld [vmem:[#allocation5 + $0x1df0] sm:$0xff] }
 0x4c3   :  { %9050 = vmatmul.mubr.bf16.vlgmr.msra.gmra.mrb[4].mxu0 %v16824_v33  ;;  %9480 = vmatmul.mubr.bf16.vlgmr.msra.gmra.mrb[4].mxu1 %v16824_v33  ;;  %v15104_v33 = vcombine.low %v1092_v21, %v1096_v38  ;;  %v15142_v21 = vcombine.low %v1131_v5, %v1135_v6  ;;  %v15144_v38 = vcombine.low %v1132_v7, %v1136_v26 }
 0x4c4   :  { %9061 = vmatpush1.bf16.msra.mxu0 %v15086_v13  ;;  %9491 = vmatpush1.bf16.msra.mxu1 %v15088_v16  ;;  %v15143_v13 = vcombine.high %v1131_v5, %v1135_v6  ;;  %v15145_v16 = vcombine.high %v1132_v7, %v1136_v26  ;;  %v1180_v5 = vld [vmem:[#allocation5 + $0x1f58] sm:$0xff]  ;;  %v15184_v26 = vcombine.low %v1172_v54, %v1176_v55 }
 0x4c5   :  { %9062 = vmatprep.subr.bf16.mxu0 %v15095_v0  ;;  %9492 = vmatprep.subr.bf16.mxu1 %v15097_v15  ;;  %v1139_v0 = vld [vmem:[#allocation5 + $0x1e10] sm:$0xff]  ;;  %v1184_v6 = vld [vmem:[#allocation5 + $0x1f78] sm:$0xff] }
 0x4c6   :  { %9092 = vmatprep.mubr.bf16.mxu0 %v16826_v46  ;;  %9522 = vmatprep.mubr.bf16.mxu1 %v16826_v46  ;;  %v15121_v46 = vcombine.high %v1108_v39, %v1112_v40  ;;  %v1143_v15 = vld [vmem:[#allocation5 + $0x1e30] sm:$0xff]  ;;  %v15160_v40 = vcombine.low %v1148_v29, %v1152_v10 }
 0x4c7   :  { %v15150_v25 = vcombine.low %v1139_v0, %v1143_v15 }
 0x4c8   :  { %9063 = vmatpush1.bf16.msra.mxu0 %v15094_v22  ;;  %9493 = vmatpush1.bf16.msra.mxu1 %v15096_v23  ;;  %v15151_v22 = vcombine.high %v1139_v0, %v1143_v15  ;;  %v15153_v23 = vcombine.high %v1140_v19, %v1144_v20  ;;  %v1188_v0 = vld [vmem:[#allocation5 + $0x1f98] sm:$0xff]  ;;  %v15192_v20 = vcombine.low %v1180_v5, %v1184_v6 }
 0x4c9   :  { %9064 = vmatprep.subr.bf16.mxu0 %v15103_v24  ;;  %9494 = vmatprep.subr.bf16.mxu1 %v15105_v28  ;;  %v1147_v24 = vld [vmem:[#allocation5 + $0x1e50] sm:$0xff]  ;;  %v1192_v15 = vld [vmem:[#allocation5 + $0x1fb8] sm:$0xff] }
 0x4ca   :  { %v1151_v28 = vld [vmem:[#allocation5 + $0x1e70] sm:$0xff] }
 0x4cb   :  { %v15158_v39 = vcombine.low %v1147_v24, %v1151_v28 }
 0x4cc   :  { %9065 = vmatpush1.bf16.msra.mxu0 %v15102_v32  ;;  %9495 = vmatpush1.bf16.msra.mxu1 %v15104_v33  ;;  %v15159_v32 = vcombine.high %v1147_v24, %v1151_v28  ;;  %v15161_v33 = vcombine.high %v1148_v29, %v1152_v10  ;;  %v1196_v24 = vld [vmem:[#allocation5 + $0x1fd8] sm:$0xff]  ;;  %v15200_v10 = vcombine.low %v1188_v0, %v1192_v15 }
 0x4cd   :  { %9066 = vmatprep.subr.bf16.mxu0 %v15111_v34  ;;  %9496 = vmatprep.subr.bf16.mxu1 %v15113_v35  ;;  %v1155_v34 = vld [vmem:[#allocation5 + $0x1e90] sm:$0xff]  ;;  %v1200_v28 = vld [vmem:[#allocation5 + $0x1ff8] sm:$0xff] }
 0x4ce   :  { %v1159_v35 = vld [vmem:[#allocation5 + $0x1eb0] sm:$0xff] }
 0x4cf   :  { %v15166_v48 = vcombine.low %v1155_v34, %v1159_v35 }
 0x4d0   :  { %9067 = vmatpush1.bf16.msra.mxu0 %v15110_v41  ;;  %9497 = vmatpush1.bf16.msra.mxu1 %v15112_v58  ;;  %v15167_v41 = vcombine.high %v1155_v34, %v1159_v35  ;;  %v15169_v58 = vcombine.high %v1156_v36, %v1160_v43  ;;  %v1204_v34 = vld [vmem:[#allocation5 + $0x2018] sm:$0xff]  ;;  %v15208_v43 = vcombine.low %v1196_v24, %v1200_v28 }
 0x4d1   :  { %9068 = vmatprep.subr.bf16.mxu0 %v15119_v42  ;;  %9498 = vmatprep.subr.bf16.mxu1 %v15121_v46  ;;  %v1163_v42 = vld [vmem:[#allocation5 + $0x1ed0] sm:$0xff]  ;;  %v1208_v35 = vld [vmem:[#allocation5 + $0x2038] sm:$0xff] }
 0x4d2   :  { %v1167_v46 = vld [vmem:[#allocation5 + $0x1ef0] sm:$0xff] }
 0x4d3   :  { %v15174_v56 = vcombine.low %v1163_v42, %v1167_v46 }
 0x4d4   :  { %9069 = vmatpush1.bf16.msra.mxu0 %v15118_v49  ;;  %9499 = vmatpush1.bf16.msra.mxu1 %v15120_v50  ;;  %v15175_v49 = vcombine.high %v1163_v42, %v1167_v46  ;;  %v15177_v50 = vcombine.high %v1164_v44, %v1168_v47  ;;  %v1212_v42 = vld [vmem:[#allocation5 + $0x2058] sm:$0xff]  ;;  %v15216_v47 = vcombine.low %v1204_v34, %v1208_v35 }
 0x4d5   :  { %9070 = vmatprep.subr.bf16.mxu0 %v15127_v51  ;;  %9500 = vmatprep.subr.bf16.mxu1 %v15129_v59  ;;  %v1171_v51 = vld [vmem:[#allocation5 + $0x1f10] sm:$0xff]  ;;  %v1216_v46 = vld [vmem:[#allocation5 + $0x2078] sm:$0xff] }
 0x4d6   :  { %v1175_v59 = vld [vmem:[#allocation5 + $0x1f30] sm:$0xff] }
 0x4d7   :  { %v15182_v7 = vcombine.low %v1171_v51, %v1175_v59 }
 0x4d8   :  { %9071 = vmatpush1.bf16.msra.mxu0 %v15126_v61  ;;  %9501 = vmatpush1.bf16.msra.mxu1 %v15128_v1  ;;  %v15183_v61 = vcombine.high %v1171_v51, %v1175_v59  ;;  %v15185_v1 = vcombine.high %v1172_v54, %v1176_v55  ;;  %v1220_v51 = vld [vmem:[#allocation5 + $0x2098] sm:$0xff]  ;;  %v15224_v55 = vcombine.low %v1212_v42, %v1216_v46 }
 0x4d9   :  { %9072 = vmatprep.subr.bf16.mxu0 %v15135_v2  ;;  %9502 = vmatprep.subr.bf16.mxu1 %v15137_v4  ;;  %v1179_v2 = vld [vmem:[#allocation5 + $0x1f50] sm:$0xff]  ;;  %v1224_v59 = vld [vmem:[#allocation5 + $0x20b8] sm:$0xff] }
 0x4da   :  { %v1183_v4 = vld [vmem:[#allocation5 + $0x1f70] sm:$0xff] }
 0x4db   :  { %v15190_v19 = vcombine.low %v1179_v2, %v1183_v4 }
 0x4dc   :  { %9073 = vmatpush1.bf16.msra.mxu0 %v15134_v9  ;;  %9503 = vmatpush1.bf16.msra.mxu1 %v15136_v37  ;;  %v15191_v9 = vcombine.high %v1179_v2, %v1183_v4  ;;  %v15193_v37 = vcombine.high %v1180_v5, %v1184_v6  ;;  %v1228_v2 = vld [vmem:[#allocation5 + $0x20d8] sm:$0xff] }
 0x4dd   :  { %9074 = vmatprep.subr.bf16.mxu0 %v15143_v13  ;;  %9504 = vmatprep.subr.bf16.mxu1 %v15145_v16  ;;  %v1187_v13 = vld [vmem:[#allocation5 + $0x1f90] sm:$0xff]  ;;  %v1232_v4 = vld [vmem:[#allocation5 + $0x20f8] sm:$0xff] }
 0x4de   :  { %v1191_v16 = vld [vmem:[#allocation5 + $0x1fb0] sm:$0xff] }
 0x4df   :  { %v15198_v29 = vcombine.low %v1187_v13, %v1191_v16 }
 0x4e0   :  { %9075 = vmatpush1.bf16.msra.mxu0 %v15142_v21  ;;  %9505 = vmatpush1.bf16.msra.mxu1 %v15144_v38  ;;  %v15199_v21 = vcombine.high %v1187_v13, %v1191_v16  ;;  %v15201_v38 = vcombine.high %v1188_v0, %v1192_v15  ;;  %v1240_v13 = vld [vmem:[#allocation5 + $0x2138] sm:$0xff]  ;;  %v15240_v0 = vcombine.low %v1228_v2, %v1232_v4 }
 0x4e1   :  { %9076 = vmatprep.subr.bf16.mxu0 %v15151_v22  ;;  %9506 = vmatprep.subr.bf16.mxu1 %v15153_v23  ;;  %v1195_v22 = vld [vmem:[#allocation5 + $0x1fd0] sm:$0xff] }
 0x4e2   :  { %v1199_v23 = vld [vmem:[#allocation5 + $0x1ff0] sm:$0xff] }
 0x4e3   :  { %v15206_v36 = vcombine.low %v1195_v22, %v1199_v23 }
 0x4e4   :  { %9077 = vmatpush1.bf16.msra.mxu0 %v15150_v25  ;;  %9507 = vmatpush1.bf16.msra.mxu1 %v15152_v31  ;;  %v15207_v25 = vcombine.high %v1195_v22, %v1199_v23  ;;  %v15209_v31 = vcombine.high %v1196_v24, %v1200_v28 }
 0x4e5   :  { %9078 = vmatprep.subr.bf16.mxu0 %v15159_v32  ;;  %9508 = vmatprep.subr.bf16.mxu1 %v15161_v33  ;;  %v1203_v32 = vld [vmem:[#allocation5 + $0x2010] sm:$0xff] }
 0x4e6   :  { %v1207_v33 = vld [vmem:[#allocation5 + $0x2030] sm:$0xff] }
 0x4e7   :  { %v15214_v44 = vcombine.low %v1203_v32, %v1207_v33 }
 0x4e8   :  { %9079 = vmatpush1.bf16.msra.mxu0 %v15158_v39  ;;  %9509 = vmatpush1.bf16.msra.mxu1 %v15160_v40  ;;  %v15215_v39 = vcombine.high %v1203_v32, %v1207_v33  ;;  %v15217_v40 = vcombine.high %v1204_v34, %v1208_v35 }
 0x4e9   :  { %9080 = vmatprep.subr.bf16.mxu0 %v15167_v41  ;;  %9510 = vmatprep.subr.bf16.mxu1 %v15169_v58  ;;  %v1211_v41 = vld [vmem:[#allocation5 + $0x2050] sm:$0xff] }
 0x4ea   :  { %v1215_v58 = vld [vmem:[#allocation5 + $0x2070] sm:$0xff] }
 0x4eb   :  { %v15222_v54 = vcombine.low %v1211_v41, %v1215_v58 }
 0x4ec   :  { %9081 = vmatpush1.bf16.msra.mxu0 %v15166_v48  ;;  %9511 = vmatpush1.bf16.msra.mxu1 %v15168_v53  ;;  %v15223_v48 = vcombine.high %v1211_v41, %v1215_v58  ;;  %v15225_v53 = vcombine.high %v1212_v42, %v1216_v46 }
 0x4ed   :  { %9082 = vmatprep.subr.bf16.mxu0 %v15175_v49  ;;  %9512 = vmatprep.subr.bf16.mxu1 %v15177_v50  ;;  %v1219_v49 = vld [vmem:[#allocation5 + $0x2090] sm:$0xff] }
 0x4ee   :  { %v1223_v50 = vld [vmem:[#allocation5 + $0x20b0] sm:$0xff] }
 0x4ef   :  { %v15230_v5 = vcombine.low %v1219_v49, %v1223_v50 }
 0x4f0   :  { %9083 = vmatpush1.bf16.msra.mxu0 %v15174_v56  ;;  %9513 = vmatpush1.bf16.msra.mxu1 %v15176_v57  ;;  %v15231_v56 = vcombine.high %v1219_v49, %v1223_v50  ;;  %v15233_v57 = vcombine.high %v1220_v51, %v1224_v59 }
 0x4f1   :  { %9084 = vmatprep.subr.bf16.mxu0 %v15183_v61  ;;  %9514 = vmatprep.subr.bf16.mxu1 %v15185_v1  ;;  %v1227_v61 = vld [vmem:[#allocation5 + $0x20d0] sm:$0xff] }
 0x4f2   :  { %v1231_v1 = vld [vmem:[#allocation5 + $0x20f0] sm:$0xff] }
 0x4f3   :  { %v15239_v6 = vcombine.high %v1227_v61, %v1231_v1  ;;  %v15238_v16 = vcombine.low %v1227_v61, %v1231_v1 }
 0x4f4   :  { %9085 = vmatpush1.bf16.msra.mxu0 %v15182_v7  ;;  %9515 = vmatpush1.bf16.msra.mxu1 %v15184_v26  ;;  %v15241_v7 = vcombine.high %v1228_v2, %v1232_v4  ;;  %v1235_v26 = vld [vmem:[#allocation5 + $0x2110] sm:$0xff] }
 0x4f5   :  { %9086 = vmatprep.subr.bf16.mxu0 %v15191_v9  ;;  %9516 = vmatprep.subr.bf16.mxu1 %v15193_v37  ;;  %v1239_v9 = vld [vmem:[#allocation5 + $0x2130] sm:$0xff]  ;;  %v1236_v37 = vld [vmem:[#allocation5 + $0x2118] sm:$0xff] }
 0x4f6   :  { %v15247_v15 = vcombine.high %v1235_v26, %v1239_v9  ;;  %v15246_v22 = vcombine.low %v1235_v26, %v1239_v9  ;;  %v15248_v23 = vcombine.low %v1236_v37, %v1240_v13 }
 0x4f8   :  { %9087 = vmatpush1.bf16.msra.mxu0 %v15190_v19  ;;  %9517 = vmatpush1.bf16.msra.mxu1 %v15192_v20  ;;  %v1243_v19 = vld [vmem:[#allocation5 + $0x2150] sm:$0xff] }
 0x4f9   :  { %9088 = vmatprep.subr.bf16.mxu0 %v15199_v21  ;;  %9518 = vmatprep.subr.bf16.mxu1 %v15201_v38  ;;  %v1247_v20 = vld [vmem:[#allocation5 + $0x2170] sm:$0xff]  ;;  %v1244_v21 = vld [vmem:[#allocation5 + $0x2158] sm:$0xff] }
 0x4fa   :  { %v1248_v38 = vld [vmem:[#allocation5 + $0x2178] sm:$0xff]  ;;  %v15255_v24 = vcombine.high %v1243_v19, %v1247_v20  ;;  %v15254_v32 = vcombine.low %v1243_v19, %v1247_v20 }
 0x4fb   :  { %v15257_v28 = vcombine.high %v1244_v21, %v1248_v38  ;;  %v15256_v33 = vcombine.low %v1244_v21, %v1248_v38 }
 0x4fc   :  { %9089 = vmatpush1.bf16.msra.mxu0 %v15198_v29  ;;  %9519 = vmatpush1.bf16.msra.mxu1 %v15200_v10  ;;  %v1251_v29 = vld [vmem:[#allocation5 + $0x2190] sm:$0xff] }
 0x4fd   :  { %9090 = vmatprep.subr.bf16.mxu0 %v15207_v25  ;;  %9520 = vmatprep.subr.bf16.mxu1 %v15209_v31  ;;  %v1255_v10 = vld [vmem:[#allocation5 + $0x21b0] sm:$0xff]  ;;  %v1252_v25 = vld [vmem:[#allocation5 + $0x2198] sm:$0xff] }
 0x4fe   :  { %v1256_v31 = vld [vmem:[#allocation5 + $0x21b8] sm:$0xff]  ;;  %v15263_v34 = vcombine.high %v1251_v29, %v1255_v10  ;;  %v15262_v41 = vcombine.low %v1251_v29, %v1255_v10 }
 0x4ff   :  { %v15265_v35 = vcombine.high %v1252_v25, %v1256_v31  ;;  %v15264_v58 = vcombine.low %v1252_v25, %v1256_v31 }
 0x500   :  { %9091 = vmatpush1.bf16.msra.mxu0 %v15206_v36  ;;  %9521 = vmatpush1.bf16.msra.mxu1 %v15208_v43  ;;  %v1259_v36 = vld [vmem:[#allocation5 + $0x21d0] sm:$0xff] }
 0x501   :  { %9103 = vmatprep.subr.bf16.mxu0 %v15215_v39  ;;  %9533 = vmatprep.subr.bf16.mxu1 %v15217_v40  ;;  %v1263_v43 = vld [vmem:[#allocation5 + $0x21f0] sm:$0xff]  ;;  %v1260_v39 = vld [vmem:[#allocation5 + $0x21d8] sm:$0xff] }
 0x502   :  { %v1264_v40 = vld [vmem:[#allocation5 + $0x21f8] sm:$0xff]  ;;  %v15271_v42 = vcombine.high %v1259_v36, %v1263_v43  ;;  %v15270_v49 = vcombine.low %v1259_v36, %v1263_v43 }
 0x503   :  { %9093 = vmatmul.mubr.bf16.vlgmr.msra.gmra.mrb[4].mxu0 %v16832_v14  ;;  %9523 = vmatmul.mubr.bf16.vlgmr.msra.gmra.mrb[4].mxu1 %v16832_v14  ;;  %v15232_v14 = vcombine.low %v1220_v51, %v1224_v59  ;;  %v15273_v46 = vcombine.high %v1260_v39, %v1264_v40  ;;  %v15272_v50 = vcombine.low %v1260_v39, %v1264_v40 }
 0x504   :  { %9104 = vmatpush1.bf16.msra.mxu0 %v15214_v44  ;;  %9534 = vmatpush1.bf16.msra.mxu1 %v15216_v47  ;;  %v1267_v44 = vld [vmem:[#allocation5 + $0x2210] sm:$0xff] }
 0x505   :  { %9105 = vmatprep.subr.bf16.mxu0 %v15223_v48  ;;  %9535 = vmatprep.subr.bf16.mxu1 %v15225_v53  ;;  %v1271_v47 = vld [vmem:[#allocation5 + $0x2230] sm:$0xff]  ;;  %v1268_v48 = vld [vmem:[#allocation5 + $0x2218] sm:$0xff] }
 0x506   :  { %9135 = vmatprep.mubr.bf16.mxu0 %v16834_v27  ;;  %9565 = vmatprep.mubr.bf16.mxu1 %v16834_v27  ;;  %v15249_v27 = vcombine.high %v1236_v37, %v1240_v13  ;;  %v1272_v53 = vld [vmem:[#allocation5 + $0x2238] sm:$0xff]  ;;  %v15279_v51 = vcombine.high %v1267_v44, %v1271_v47  ;;  %v15278_v61 = vcombine.low %v1267_v44, %v1271_v47 }
 0x507   :  { %v15281_v59 = vcombine.high %v1268_v48, %v1272_v53  ;;  %v15280_v1 = vcombine.low %v1268_v48, %v1272_v53 }
 0x508   :  { %9106 = vmatpush1.bf16.msra.mxu0 %v15222_v54  ;;  %9536 = vmatpush1.bf16.msra.mxu1 %v15224_v55  ;;  %v1275_v54 = vld [vmem:[#allocation5 + $0x2250] sm:$0xff] }
 0x509   :  { %9107 = vmatprep.subr.bf16.mxu0 %v15231_v56  ;;  %9537 = vmatprep.subr.bf16.mxu1 %v15233_v57  ;;  %v1279_v55 = vld [vmem:[#allocation5 + $0x2270] sm:$0xff]  ;;  %v1276_v56 = vld [vmem:[#allocation5 + $0x2258] sm:$0xff] }
 0x50a   :  { %v1280_v57 = vld [vmem:[#allocation5 + $0x2278] sm:$0xff]  ;;  %v15287_v2 = vcombine.high %v1275_v54, %v1279_v55  ;;  %v15286_v26 = vcombine.low %v1275_v54, %v1279_v55 }
 0x50b   :  { %v15289_v4 = vcombine.high %v1276_v56, %v1280_v57  ;;  %v15288_v9 = vcombine.low %v1276_v56, %v1280_v57 }
 0x50c   :  { %9108 = vmatpush1.bf16.msra.mxu0 %v15230_v5  ;;  %9538 = vmatpush1.bf16.msra.mxu1 %v15232_v14  ;;  %v1283_v5 = vld [vmem:[#allocation5 + $0x2290] sm:$0xff] }
 0x50d   :  { %9109 = vmatprep.subr.bf16.mxu0 %v15239_v6  ;;  %9539 = vmatprep.subr.bf16.mxu1 %v15241_v7  ;;  %v1287_v14 = vld [vmem:[#allocation5 + $0x22b0] sm:$0xff]  ;;  %v1284_v6 = vld [vmem:[#allocation5 + $0x2298] sm:$0xff] }
 0x50e   :  { %v1288_v7 = vld [vmem:[#allocation5 + $0x22b8] sm:$0xff]  ;;  %v15295_v37 = vcombine.high %v1283_v5, %v1287_v14  ;;  %v15294_v19 = vcombine.low %v1283_v5, %v1287_v14 }
 0x50f   :  { %v15297_v13 = vcombine.high %v1284_v6, %v1288_v7  ;;  %v15296_v20 = vcombine.low %v1284_v6, %v1288_v7 }
 0x510   :  { %9110 = vmatpush1.bf16.msra.mxu0 %v15238_v16  ;;  %9540 = vmatpush1.bf16.msra.mxu1 %v15240_v0  ;;  %v1291_v16 = vld [vmem:[#allocation5 + $0x22d0] sm:$0xff] }
 0x511   :  { %9111 = vmatprep.subr.bf16.mxu0 %v15247_v15  ;;  %9541 = vmatprep.subr.bf16.mxu1 %v15249_v27  ;;  %v1295_v0 = vld [vmem:[#allocation5 + $0x22f0] sm:$0xff]  ;;  %v1292_v15 = vld [vmem:[#allocation5 + $0x22d8] sm:$0xff] }
 0x512   :  { %v1296_v27 = vld [vmem:[#allocation5 + $0x22f8] sm:$0xff]  ;;  %v15303_v21 = vcombine.high %v1291_v16, %v1295_v0  ;;  %v15302_v29 = vcombine.low %v1291_v16, %v1295_v0 }
 0x513   :  { %v15305_v38 = vcombine.high %v1292_v15, %v1296_v27  ;;  %v15304_v10 = vcombine.low %v1292_v15, %v1296_v27 }
 0x514   :  { %9112 = vmatpush1.bf16.msra.mxu0 %v15246_v22  ;;  %9542 = vmatpush1.bf16.msra.mxu1 %v15248_v23  ;;  %v1299_v22 = vld [vmem:[#allocation5 + $0x2310] sm:$0xff] }
 0x515   :  { %9113 = vmatprep.subr.bf16.mxu0 %v15255_v24  ;;  %9543 = vmatprep.subr.bf16.mxu1 %v15257_v28  ;;  %v1303_v23 = vld [vmem:[#allocation5 + $0x2330] sm:$0xff]  ;;  %v1300_v24 = vld [vmem:[#allocation5 + $0x2318] sm:$0xff] }
 0x516   :  { %v1304_v28 = vld [vmem:[#allocation5 + $0x2338] sm:$0xff]  ;;  %v15311_v25 = vcombine.high %v1299_v22, %v1303_v23  ;;  %v15310_v36 = vcombine.low %v1299_v22, %v1303_v23 }
 0x517   :  { %v15313_v31 = vcombine.high %v1300_v24, %v1304_v28  ;;  %v15312_v43 = vcombine.low %v1300_v24, %v1304_v28 }
 0x518   :  { %9114 = vmatpush1.bf16.msra.mxu0 %v15254_v32  ;;  %9544 = vmatpush1.bf16.msra.mxu1 %v15256_v33  ;;  %v1307_v32 = vld [vmem:[#allocation5 + $0x2350] sm:$0xff] }
 0x519   :  { %9115 = vmatprep.subr.bf16.mxu0 %v15263_v34  ;;  %9545 = vmatprep.subr.bf16.mxu1 %v15265_v35  ;;  %v1311_v33 = vld [vmem:[#allocation5 + $0x2370] sm:$0xff]  ;;  %v1308_v34 = vld [vmem:[#allocation5 + $0x2358] sm:$0xff] }
 0x51a   :  { %v1312_v35 = vld [vmem:[#allocation5 + $0x2378] sm:$0xff]  ;;  %v15319_v39 = vcombine.high %v1307_v32, %v1311_v33  ;;  %v15318_v44 = vcombine.low %v1307_v32, %v1311_v33 }
 0x51b   :  { %v15321_v40 = vcombine.high %v1308_v34, %v1312_v35  ;;  %v15320_v47 = vcombine.low %v1308_v34, %v1312_v35  ;;  %v1363_v35 = vld [vmem:[#allocation5 + $0x2510] sm:$0xff] }
 0x51c   :  { %9116 = vmatpush1.bf16.msra.mxu0 %v15262_v41  ;;  %9546 = vmatpush1.bf16.msra.mxu1 %v15264_v58  ;;  %v1315_v41 = vld [vmem:[#allocation5 + $0x2390] sm:$0xff] }
 0x51d   :  { %9117 = vmatprep.subr.bf16.mxu0 %v15271_v42  ;;  %9547 = vmatprep.subr.bf16.mxu1 %v15273_v46  ;;  %v1319_v58 = vld [vmem:[#allocation5 + $0x23b0] sm:$0xff]  ;;  %v1316_v42 = vld [vmem:[#allocation5 + $0x2398] sm:$0xff] }
 0x51e   :  { %v1320_v46 = vld [vmem:[#allocation5 + $0x23b8] sm:$0xff]  ;;  %v15327_v48 = vcombine.high %v1315_v41, %v1319_v58  ;;  %v15326_v54 = vcombine.low %v1315_v41, %v1319_v58 }
 0x51f   :  { %v15329_v53 = vcombine.high %v1316_v42, %v1320_v46  ;;  %v15328_v55 = vcombine.low %v1316_v42, %v1320_v46  ;;  %v1371_v42 = vld [vmem:[#allocation5 + $0x2550] sm:$0xff] }
 0x520   :  { %9118 = vmatpush1.bf16.msra.mxu0 %v15270_v49  ;;  %9548 = vmatpush1.bf16.msra.mxu1 %v15272_v50  ;;  %v1323_v49 = vld [vmem:[#allocation5 + $0x23d0] sm:$0xff] }
 0x521   :  { %9119 = vmatprep.subr.bf16.mxu0 %v15279_v51  ;;  %9549 = vmatprep.subr.bf16.mxu1 %v15281_v59  ;;  %v1327_v50 = vld [vmem:[#allocation5 + $0x23f0] sm:$0xff]  ;;  %v1324_v51 = vld [vmem:[#allocation5 + $0x23d8] sm:$0xff] }
 0x522   :  { %v1328_v59 = vld [vmem:[#allocation5 + $0x23f8] sm:$0xff]  ;;  %v15335_v56 = vcombine.high %v1323_v49, %v1327_v50  ;;  %v15334_v5 = vcombine.low %v1323_v49, %v1327_v50  ;;  %v1375_v46 = vld [vmem:[#allocation5 + $0x2570] sm:$0xff] }
 0x523   :  { %v15337_v57 = vcombine.high %v1324_v51, %v1328_v59  ;;  %v15336_v14 = vcombine.low %v1324_v51, %v1328_v59  ;;  %v15383_v49 = vcombine.high %v1371_v42, %v1375_v46  ;;  %v1379_v51 = vld [vmem:[#allocation5 + $0x2590] sm:$0xff] }
 0x524   :  { %9120 = vmatpush1.bf16.msra.mxu0 %v15278_v61  ;;  %9550 = vmatpush1.bf16.msra.mxu1 %v15280_v1  ;;  %v1331_v61 = vld [vmem:[#allocation5 + $0x2410] sm:$0xff] }
 0x525   :  { %9121 = vmatprep.subr.bf16.mxu0 %v15287_v2  ;;  %9551 = vmatprep.subr.bf16.mxu1 %v15289_v4  ;;  %v1335_v1 = vld [vmem:[#allocation5 + $0x2430] sm:$0xff]  ;;  %v1332_v2 = vld [vmem:[#allocation5 + $0x2418] sm:$0xff] }
 0x526   :  { %v1336_v4 = vld [vmem:[#allocation5 + $0x2438] sm:$0xff]  ;;  %v15343_v6 = vcombine.high %v1331_v61, %v1335_v1  ;;  %v15342_v16 = vcombine.low %v1331_v61, %v1335_v1  ;;  %v1383_v59 = vld [vmem:[#allocation5 + $0x25b0] sm:$0xff] }
 0x527   :  { %v15345_v7 = vcombine.high %v1332_v2, %v1336_v4  ;;  %v15344_v0 = vcombine.low %v1332_v2, %v1336_v4  ;;  %v15391_v61 = vcombine.high %v1379_v51, %v1383_v59  ;;  %v1387_v2 = vld [vmem:[#allocation5 + $0x25d0] sm:$0xff] }
 0x528   :  { %9122 = vmatpush1.bf16.msra.mxu0 %v15286_v26  ;;  %9552 = vmatpush1.bf16.msra.mxu1 %v15288_v9  ;;  %v1339_v26 = vld [vmem:[#allocation5 + $0x2450] sm:$0xff] }
 0x529   :  { %9123 = vmatprep.subr.bf16.mxu0 %v15295_v37  ;;  %9553 = vmatprep.subr.bf16.mxu1 %v15297_v13  ;;  %v1343_v9 = vld [vmem:[#allocation5 + $0x2470] sm:$0xff]  ;;  %v1340_v37 = vld [vmem:[#allocation5 + $0x2458] sm:$0xff] }
 0x52a   :  { %v1344_v13 = vld [vmem:[#allocation5 + $0x2478] sm:$0xff]  ;;  %v15351_v15 = vcombine.high %v1339_v26, %v1343_v9  ;;  %v15350_v22 = vcombine.low %v1339_v26, %v1343_v9  ;;  %v1391_v4 = vld [vmem:[#allocation5 + $0x25f0] sm:$0xff] }
 0x52b   :  { %v15353_v27 = vcombine.high %v1340_v37, %v1344_v13  ;;  %v15352_v23 = vcombine.low %v1340_v37, %v1344_v13  ;;  %v15399_v26 = vcombine.high %v1387_v2, %v1391_v4  ;;  %v1395_v37 = vld [vmem:[#allocation5 + $0x2610] sm:$0xff] }
 0x52c   :  { %9124 = vmatpush1.bf16.msra.mxu0 %v15294_v19  ;;  %9554 = vmatpush1.bf16.msra.mxu1 %v15296_v20  ;;  %v1347_v19 = vld [vmem:[#allocation5 + $0x2490] sm:$0xff] }
 0x52d   :  { %9125 = vmatprep.subr.bf16.mxu0 %v15303_v21  ;;  %9555 = vmatprep.subr.bf16.mxu1 %v15305_v38  ;;  %v1351_v20 = vld [vmem:[#allocation5 + $0x24b0] sm:$0xff]  ;;  %v1348_v21 = vld [vmem:[#allocation5 + $0x2498] sm:$0xff] }
 0x52e   :  { %v1352_v38 = vld [vmem:[#allocation5 + $0x24b8] sm:$0xff]  ;;  %v15359_v24 = vcombine.high %v1347_v19, %v1351_v20  ;;  %v15358_v32 = vcombine.low %v1347_v19, %v1351_v20  ;;  %v1399_v13 = vld [vmem:[#allocation5 + $0x2630] sm:$0xff] }
 0x52f   :  { %v15361_v28 = vcombine.high %v1348_v21, %v1352_v38  ;;  %v15407_v19 = vcombine.high %v1395_v37, %v1399_v13 }
 0x530   :  { %9126 = vmatpush1.bf16.msra.mxu0 %v15302_v29  ;;  %9556 = vmatpush1.bf16.msra.mxu1 %v15304_v10  ;;  %v1355_v29 = vld [vmem:[#allocation5 + $0x24d0] sm:$0xff] }
 0x531   :  { %9127 = vmatprep.subr.bf16.mxu0 %v15311_v25  ;;  %9557 = vmatprep.subr.bf16.mxu1 %v15313_v31  ;;  %v1359_v10 = vld [vmem:[#allocation5 + $0x24f0] sm:$0xff]  ;;  %v1356_v25 = vld [vmem:[#allocation5 + $0x24d8] sm:$0xff] }
 0x532   :  { %v1360_v31 = vld [vmem:[#allocation5 + $0x24f8] sm:$0xff]  ;;  %v15367_v33 = vcombine.high %v1355_v29, %v1359_v10 }
 0x533   :  { %v15369_v34 = vcombine.high %v1356_v25, %v1360_v31  ;;  %v15368_v41 = vcombine.low %v1356_v25, %v1360_v31  ;;  %v1411_v25 = vld [vmem:[#allocation5 + $0x2690] sm:$0xff] }
 0x534   :  { %9128 = vmatpush1.bf16.msra.mxu0 %v15310_v36  ;;  %9558 = vmatpush1.bf16.msra.mxu1 %v15312_v43  ;;  %v1367_v36 = vld [vmem:[#allocation5 + $0x2530] sm:$0xff]  ;;  %v1364_v43 = vld [vmem:[#allocation5 + $0x2518] sm:$0xff] }
 0x535   :  { %9129 = vmatprep.subr.bf16.mxu0 %v15319_v39  ;;  %9559 = vmatprep.subr.bf16.mxu1 %v15321_v40  ;;  %v1368_v39 = vld [vmem:[#allocation5 + $0x2538] sm:$0xff]  ;;  %v15366_v40 = vcombine.low %v1355_v29, %v1359_v10  ;;  %v15375_v58 = vcombine.high %v1363_v35, %v1367_v36  ;;  %v1415_v31 = vld [vmem:[#allocation5 + $0x26b0] sm:$0xff] }
 0x538   :  { %9130 = vmatpush1.bf16.msra.mxu0 %v15318_v44  ;;  %9560 = vmatpush1.bf16.msra.mxu1 %v15320_v47  ;;  %v1372_v44 = vld [vmem:[#allocation5 + $0x2558] sm:$0xff] }
 0x539   :  { %9131 = vmatprep.subr.bf16.mxu0 %v15327_v48  ;;  %9561 = vmatprep.subr.bf16.mxu1 %v15329_v53  ;;  %v1376_v47 = vld [vmem:[#allocation5 + $0x2578] sm:$0xff]  ;;  %v15374_v48 = vcombine.low %v1363_v35, %v1367_v36  ;;  %v15376_v53 = vcombine.low %v1364_v43, %v1368_v39  ;;  %v15423_v35 = vcombine.high %v1411_v25, %v1415_v31 }
 0x53a   :  { %v15385_v50 = vcombine.high %v1372_v44, %v1376_v47 }
 0x53c   :  { %9132 = vmatpush1.bf16.msra.mxu0 %v15326_v54  ;;  %9562 = vmatpush1.bf16.msra.mxu1 %v15328_v55  ;;  %v1380_v54 = vld [vmem:[#allocation5 + $0x2598] sm:$0xff] }
 0x53d   :  { %9133 = vmatprep.subr.bf16.mxu0 %v15335_v56  ;;  %9563 = vmatprep.subr.bf16.mxu1 %v15337_v57  ;;  %v1384_v55 = vld [vmem:[#allocation5 + $0x25b8] sm:$0xff]  ;;  %v15382_v56 = vcombine.low %v1371_v42, %v1375_v46  ;;  %v15384_v57 = vcombine.low %v1372_v44, %v1376_v47  ;;  %v1427_v44 = vld [vmem:[#allocation5 + $0x2710] sm:$0xff] }
 0x53e   :  { %v15393_v1 = vcombine.high %v1380_v54, %v1384_v55  ;;  %v1431_v47 = vld [vmem:[#allocation5 + $0x2730] sm:$0xff] }
 0x540   :  { %9134 = vmatpush1.bf16.msra.mxu0 %v15334_v5  ;;  %9564 = vmatpush1.bf16.msra.mxu1 %v15336_v14  ;;  %v1388_v5 = vld [vmem:[#allocation5 + $0x25d8] sm:$0xff] }
 0x541   :  { %9146 = vmatprep.subr.bf16.mxu0 %v15343_v6  ;;  %9576 = vmatprep.subr.bf16.mxu1 %v15345_v7  ;;  %v1392_v14 = vld [vmem:[#allocation5 + $0x25f8] sm:$0xff]  ;;  %v15390_v6 = vcombine.low %v1379_v51, %v1383_v59  ;;  %v15392_v7 = vcombine.low %v1380_v54, %v1384_v55  ;;  %v15439_v51 = vcombine.high %v1427_v44, %v1431_v47  ;;  %v1435_v54 = vld [vmem:[#allocation5 + $0x2750] sm:$0xff] }
 0x542   :  { %v15401_v9 = vcombine.high %v1388_v5, %v1392_v14  ;;  %v1439_v55 = vld [vmem:[#allocation5 + $0x2770] sm:$0xff] }
 0x543   :  { %9136 = vmatmul.mubr.bf16.vlgmr.msra.gmra.mrb[4].mxu0 %v16840_v3  ;;  %9566 = vmatmul.mubr.bf16.vlgmr.msra.gmra.mrb[4].mxu1 %v16840_v3  ;;  %v15360_v3 = vcombine.low %v1348_v21, %v1352_v38  ;;  %v1403_v21 = vld [vmem:[#allocation5 + $0x2650] sm:$0xff] }
 0x544   :  { %9147 = vmatpush1.bf16.msra.mxu0 %v15342_v16  ;;  %9577 = vmatpush1.bf16.msra.mxu1 %v15344_v0  ;;  %v1396_v16 = vld [vmem:[#allocation5 + $0x2618] sm:$0xff]  ;;  %v1407_v38 = vld [vmem:[#allocation5 + $0x2670] sm:$0xff] }
 0x545   :  { %9148 = vmatprep.subr.bf16.mxu0 %v15351_v15  ;;  %9578 = vmatprep.subr.bf16.mxu1 %v15353_v27  ;;  %v1400_v0 = vld [vmem:[#allocation5 + $0x2638] sm:$0xff]  ;;  %v15398_v15 = vcombine.low %v1387_v2, %v1391_v4  ;;  %v15400_v27 = vcombine.low %v1388_v5, %v1392_v14  ;;  %v15415_v29 = vcombine.high %v1403_v21, %v1407_v38  ;;  %v1443_v5 = vld [vmem:[#allocation5 + $0x2790] sm:$0xff] }
 0x546   :  { %9178 = vmatprep.mubr.bf16.mxu0 %v16842_v17  ;;  %9608 = vmatprep.mubr.bf16.mxu1 %v16842_v17  ;;  %v15377_v17 = vcombine.high %v1364_v43, %v1368_v39  ;;  %v15409_v20 = vcombine.high %v1396_v16, %v1400_v0  ;;  %v1419_v43 = vld [vmem:[#allocation5 + $0x26d0] sm:$0xff]  ;;  %v15447_v2 = vcombine.high %v1435_v54, %v1439_v55 }
 0x547   :  { %v1423_v39 = vld [vmem:[#allocation5 + $0x26f0] sm:$0xff] }
 0x548   :  { %9149 = vmatpush1.bf16.msra.mxu0 %v15350_v22  ;;  %9579 = vmatpush1.bf16.msra.mxu1 %v15352_v23  ;;  %v1404_v22 = vld [vmem:[#allocation5 + $0x2658] sm:$0xff]  ;;  %v15431_v42 = vcombine.high %v1419_v43, %v1423_v39  ;;  %v1447_v14 = vld [vmem:[#allocation5 + $0x27b0] sm:$0xff] }
 0x549   :  { %9150 = vmatprep.subr.bf16.mxu0 %v15359_v24  ;;  %9580 = vmatprep.subr.bf16.mxu1 %v15361_v28  ;;  %v1408_v23 = vld [vmem:[#allocation5 + $0x2678] sm:$0xff]  ;;  %v15406_v24 = vcombine.low %v1395_v37, %v1399_v13  ;;  %v15408_v28 = vcombine.low %v1396_v16, %v1400_v0  ;;  %v15455_v37 = vcombine.high %v1443_v5, %v1447_v14  ;;  %v1451_v16 = vld [vmem:[#allocation5 + $0x27d0] sm:$0xff] }
 0x54a   :  { %v15417_v10 = vcombine.high %v1404_v22, %v1408_v23  ;;  %v1455_v0 = vld [vmem:[#allocation5 + $0x27f0] sm:$0xff] }
 0x54c   :  { %9151 = vmatpush1.bf16.msra.mxu0 %v15358_v32  ;;  %9581 = vmatpush1.bf16.msra.mxu1 %v15360_v3  ;;  %v1412_v32 = vld [vmem:[#allocation5 + $0x2698] sm:$0xff] }
 0x54d   :  { %9152 = vmatprep.subr.bf16.mxu0 %v15367_v33  ;;  %9582 = vmatprep.subr.bf16.mxu1 %v15369_v34  ;;  %v1416_v3 = vld [vmem:[#allocation5 + $0x26b8] sm:$0xff]  ;;  %v15414_v33 = vcombine.low %v1403_v21, %v1407_v38  ;;  %v15416_v34 = vcombine.low %v1404_v22, %v1408_v23  ;;  %v15463_v21 = vcombine.high %v1451_v16, %v1455_v0  ;;  %v9643_v22 = vld [vmem:[#allocation8] sm:$0xff] }
 0x54e   :  { %v15425_v36 = vcombine.high %v1412_v32, %v1416_v3  ;;  %v9647_v23 = vld [vmem:[#allocation8 + $0x20] sm:$0xff] }
 0x550   :  { %9153 = vmatpush1.bf16.msra.mxu0 %v15366_v40  ;;  %9583 = vmatpush1.bf16.msra.mxu1 %v15368_v41  ;;  %v1420_v40 = vld [vmem:[#allocation5 + $0x26d8] sm:$0xff] }
 0x551   :  { %9154 = vmatprep.subr.bf16.mxu0 %v15375_v58  ;;  %9584 = vmatprep.subr.bf16.mxu1 %v15377_v17  ;;  %v1424_v41 = vld [vmem:[#allocation5 + $0x26f8] sm:$0xff]  ;;  %v15422_v58 = vcombine.low %v1411_v25, %v1415_v31  ;;  %v15424_v17 = vcombine.low %v1412_v32, %v1416_v3  ;;  %v15467_v25 = vcombine.high %v9643_v22, %v9647_v23  ;;  %v9651_v32 = vld [vmem:[#allocation8 + $0x40] sm:$0xff] }
 0x552   :  { %v15433_v46 = vcombine.high %v1420_v40, %v1424_v41  ;;  %v9655_v3 = vld [vmem:[#allocation8 + $0x60] sm:$0xff] }
 0x554   :  { %9155 = vmatpush1.bf16.msra.mxu0 %v15374_v48  ;;  %9585 = vmatpush1.bf16.msra.mxu1 %v15376_v53  ;;  %v1428_v48 = vld [vmem:[#allocation5 + $0x2718] sm:$0xff] }
 0x555   :  { %9156 = vmatprep.subr.bf16.mxu0 %v15383_v49  ;;  %9586 = vmatprep.subr.bf16.mxu1 %v15385_v50  ;;  %v1432_v53 = vld [vmem:[#allocation5 + $0x2738] sm:$0xff]  ;;  %v15430_v49 = vcombine.low %v1419_v43, %v1423_v39  ;;  %v15432_v50 = vcombine.low %v1420_v40, %v1424_v41  ;;  %v15475_v43 = vcombine.high %v9651_v32, %v9655_v3  ;;  %v9659_v39 = vld [vmem:[#allocation8 + $0x80] sm:$0xff] }
 0x556   :  { %v15441_v59 = vcombine.high %v1428_v48, %v1432_v53  ;;  %v9663_v40 = vld [vmem:[#allocation8 + $0xa0] sm:$0xff] }
 0x558   :  { %9157 = vmatpush1.bf16.msra.mxu0 %v15382_v56  ;;  %9587 = vmatpush1.bf16.msra.mxu1 %v15384_v57  ;;  %v1436_v56 = vld [vmem:[#allocation5 + $0x2758] sm:$0xff] }
 0x559   :  { %9158 = vmatprep.subr.bf16.mxu0 %v15391_v61  ;;  %9588 = vmatprep.subr.bf16.mxu1 %v15393_v1  ;;  %v1440_v57 = vld [vmem:[#allocation5 + $0x2778] sm:$0xff]  ;;  %v15438_v61 = vcombine.low %v1427_v44, %v1431_v47  ;;  %v15440_v1 = vcombine.low %v1428_v48, %v1432_v53  ;;  %v15483_v44 = vcombine.high %v9659_v39, %v9663_v40  ;;  %v9667_v48 = vld [vmem:[#allocation8 + $0xc0] sm:$0xff] }
 0x55a   :  { %v15449_v4 = vcombine.high %v1436_v56, %v1440_v57  ;;  %v9671_v53 = vld [vmem:[#allocation8 + $0xe0] sm:$0xff] }
 0x55c   :  { %9159 = vmatpush1.bf16.msra.mxu0 %v15390_v6  ;;  %9589 = vmatpush1.bf16.msra.mxu1 %v15392_v7  ;;  %v1444_v6 = vld [vmem:[#allocation5 + $0x2798] sm:$0xff] }
 0x55d   :  { %9160 = vmatprep.subr.bf16.mxu0 %v15399_v26  ;;  %9590 = vmatprep.subr.bf16.mxu1 %v15401_v9  ;;  %v1448_v7 = vld [vmem:[#allocation5 + $0x27b8] sm:$0xff]  ;;  %v15446_v26 = vcombine.low %v1435_v54, %v1439_v55  ;;  %v15448_v9 = vcombine.low %v1436_v56, %v1440_v57  ;;  %v9675_v55 = vld [vmem:[#allocation8 + $0x100] sm:$0xff]  ;;  %v9676_v57 = vld [vmem:[#allocation8 + $0x108] sm:$0xff] }
 0x55e   :  { %v15457_v13 = vcombine.high %v1444_v6, %v1448_v7  ;;  %v9679_v56 = vld [vmem:[#allocation8 + $0x120] sm:$0xff] }
 0x560   :  { %9161 = vmatpush1.bf16.msra.mxu0 %v15398_v15  ;;  %9591 = vmatpush1.bf16.msra.mxu1 %v15400_v27  ;;  %v1452_v15 = vld [vmem:[#allocation5 + $0x27d8] sm:$0xff] }
 0x561   :  { %9162 = vmatprep.subr.bf16.mxu0 %v15407_v19  ;;  %9592 = vmatprep.subr.bf16.mxu1 %v15409_v20  ;;  %v1456_v27 = vld [vmem:[#allocation5 + $0x27f8] sm:$0xff]  ;;  %v15454_v19 = vcombine.low %v1443_v5, %v1447_v14  ;;  %v15456_v20 = vcombine.low %v1444_v6, %v1448_v7  ;;  %v9683_v14 = vld [vmem:[#allocation8 + $0x140] sm:$0xff]  ;;  %v9684_v7 = vld [vmem:[#allocation8 + $0x148] sm:$0xff] }
 0x562   :  { %v15465_v38 = vcombine.high %v1452_v15, %v1456_v27  ;;  %v9687_v6 = vld [vmem:[#allocation8 + $0x160] sm:$0xff] }
 0x564   :  { %9163 = vmatpush1.bf16.msra.mxu0 %v15406_v24  ;;  %9593 = vmatpush1.bf16.msra.mxu1 %v15408_v28  ;;  %v9644_v24 = vld [vmem:[#allocation8 + $0x8] sm:$0xff] }
 0x565   :  { %9164 = vmatprep.subr.bf16.mxu0 %v15415_v29  ;;  %9594 = vmatprep.subr.bf16.mxu1 %v15417_v10  ;;  %v9648_v28 = vld [vmem:[#allocation8 + $0x28] sm:$0xff]  ;;  %v15462_v29 = vcombine.low %v1451_v16, %v1455_v0  ;;  %v15464_v10 = vcombine.low %v1452_v15, %v1456_v27  ;;  %v9691_v0 = vld [vmem:[#allocation8 + $0x180] sm:$0xff] }
 0x566   :  { %v15469_v31 = vcombine.high %v9644_v24, %v9648_v28  ;;  %v9695_v15 = vld [vmem:[#allocation8 + $0x1a0] sm:$0xff]  ;;  %v9692_v27 = vld [vmem:[#allocation8 + $0x188] sm:$0xff] }
 0x568   :  { %9165 = vmatpush1.bf16.msra.mxu0 %v15414_v33  ;;  %9595 = vmatpush1.bf16.msra.mxu1 %v15416_v34  ;;  %v15466_v33 = vcombine.low %v9643_v22, %v9647_v23  ;;  %v9652_v34 = vld [vmem:[#allocation8 + $0x48] sm:$0xff]  ;;  %v9699_v23 = vld [vmem:[#allocation8 + $0x1c0] sm:$0xff] }
 0x569   :  { %9166 = vmatprep.subr.bf16.mxu0 %v15423_v35  ;;  %9596 = vmatprep.subr.bf16.mxu1 %v15425_v36  ;;  %v9656_v35 = vld [vmem:[#allocation8 + $0x68] sm:$0xff]  ;;  %v15468_v36 = vcombine.low %v9644_v24, %v9648_v28  ;;  %v9703_v24 = vld [vmem:[#allocation8 + $0x1e0] sm:$0xff] }
 0x56a   :  { %v15477_v41 = vcombine.high %v9652_v34, %v9656_v35  ;;  %v9700_v28 = vld [vmem:[#allocation8 + $0x1c8] sm:$0xff] }
 0x56c   :  { %9167 = vmatpush1.bf16.msra.mxu0 %v15422_v58  ;;  %9597 = vmatpush1.bf16.msra.mxu1 %v15424_v17  ;;  %v9660_v58 = vld [vmem:[#allocation8 + $0x88] sm:$0xff] }
 0x56d   :  { %9168 = vmatprep.subr.bf16.mxu0 %v15431_v42  ;;  %9598 = vmatprep.subr.bf16.mxu1 %v15433_v46  ;;  %v9664_v17 = vld [vmem:[#allocation8 + $0xa8] sm:$0xff]  ;;  %v15474_v42 = vcombine.low %v9651_v32, %v9655_v3  ;;  %v15476_v46 = vcombine.low %v9652_v34, %v9656_v35  ;;  %v9707_v3 = vld [vmem:[#allocation8 + $0x200] sm:$0xff] }
 0x56e   :  { %v15485_v47 = vcombine.high %v9660_v58, %v9664_v17  ;;  %v9708_v34 = vld [vmem:[#allocation8 + $0x208] sm:$0xff] }
 0x56f   :  { %v9712_v35 = vld [vmem:[#allocation8 + $0x228] sm:$0xff] }
 0x570   :  { %9169 = vmatpush1.bf16.msra.mxu0 %v15430_v49  ;;  %9599 = vmatpush1.bf16.msra.mxu1 %v15432_v50  ;;  %v9668_v49 = vld [vmem:[#allocation8 + $0xc8] sm:$0xff] }
 0x571   :  { %9170 = vmatprep.subr.bf16.mxu0 %v15439_v51  ;;  %9600 = vmatprep.subr.bf16.mxu1 %v15441_v59  ;;  %v9672_v50 = vld [vmem:[#allocation8 + $0xe8] sm:$0xff]  ;;  %v15482_v51 = vcombine.low %v9659_v39, %v9663_v40  ;;  %v15491_v59 = vcombine.high %v9667_v48, %v9671_v53  ;;  %v15533_v40 = vcombine.high %v9708_v34, %v9712_v35 }
 0x572   :  { %v15493_v54 = vcombine.high %v9668_v49, %v9672_v50 }
 0x574   :  { %9171 = vmatpush1.bf16.msra.mxu0 %v15438_v61  ;;  %9601 = vmatpush1.bf16.msra.mxu1 %v15440_v1  ;;  %v9680_v61 = vld [vmem:[#allocation8 + $0x128] sm:$0xff]  ;;  %v15490_v1 = vcombine.low %v9667_v48, %v9671_v53  ;;  %v9723_v53 = vld [vmem:[#allocation8 + $0x280] sm:$0xff] }
 0x575   :  { %9172 = vmatprep.subr.bf16.mxu0 %v15447_v2  ;;  %9602 = vmatprep.subr.bf16.mxu1 %v15449_v4  ;;  %v15492_v2 = vcombine.low %v9668_v49, %v9672_v50  ;;  %v15499_v4 = vcombine.high %v9675_v55, %v9679_v56  ;;  %v15501_v5 = vcombine.high %v9676_v57, %v9680_v61  ;;  %v9727_v49 = vld [vmem:[#allocation8 + $0x2a0] sm:$0xff]  ;;  %v9724_v50 = vld [vmem:[#allocation8 + $0x288] sm:$0xff] }
 0x578   :  { %9173 = vmatpush1.bf16.msra.mxu0 %v15446_v26  ;;  %9603 = vmatpush1.bf16.msra.mxu1 %v15448_v9  ;;  %v9688_v26 = vld [vmem:[#allocation8 + $0x168] sm:$0xff]  ;;  %v15498_v9 = vcombine.low %v9675_v55, %v9679_v56  ;;  %v9731_v56 = vld [vmem:[#allocation8 + $0x2c0] sm:$0xff] }
 0x579   :  { %9174 = vmatprep.subr.bf16.mxu0 %v15455_v37  ;;  %9604 = vmatprep.subr.bf16.mxu1 %v15457_v13  ;;  %v15500_v37 = vcombine.low %v9676_v57, %v9680_v61  ;;  %v15507_v13 = vcombine.high %v9683_v14, %v9687_v6  ;;  %v15509_v16 = vcombine.high %v9684_v7, %v9688_v26  ;;  %v9735_v57 = vld [vmem:[#allocation8 + $0x2e0] sm:$0xff]  ;;  %v9732_v61 = vld [vmem:[#allocation8 + $0x2c8] sm:$0xff] }
 0x57c   :  { %9175 = vmatpush1.bf16.msra.mxu0 %v15454_v19  ;;  %9605 = vmatpush1.bf16.msra.mxu1 %v15456_v20  ;;  %v9696_v19 = vld [vmem:[#allocation8 + $0x1a8] sm:$0xff]  ;;  %v15506_v20 = vcombine.low %v9683_v14, %v9687_v6  ;;  %v9739_v6 = vld [vmem:[#allocation8 + $0x300] sm:$0xff] }
 0x57d   :  { %9176 = vmatprep.subr.bf16.mxu0 %v15463_v21  ;;  %9606 = vmatprep.subr.bf16.mxu1 %v15465_v38  ;;  %v15508_v21 = vcombine.low %v9684_v7, %v9688_v26  ;;  %v15515_v38 = vcombine.high %v9691_v0, %v9695_v15  ;;  %v15517_v22 = vcombine.high %v9692_v27, %v9696_v19  ;;  %v9743_v7 = vld [vmem:[#allocation8 + $0x320] sm:$0xff]  ;;  %v9740_v26 = vld [vmem:[#allocation8 + $0x308] sm:$0xff] }
 0x580   :  { %9177 = vmatpush1.bf16.msra.mxu0 %v15462_v29  ;;  %9607 = vmatpush1.bf16.msra.mxu1 %v15464_v10  ;;  %v9704_v29 = vld [vmem:[#allocation8 + $0x1e8] sm:$0xff]  ;;  %v15514_v10 = vcombine.low %v9691_v0, %v9695_v15  ;;  %v9747_v15 = vld [vmem:[#allocation8 + $0x340] sm:$0xff] }
 0x581   :  { %12757 = vmatprep.subr.bf16.mxu0 %v15467_v25  ;;  %12929 = vmatprep.subr.bf16.mxu1 %v15469_v31  ;;  %v15516_v25 = vcombine.low %v9692_v27, %v9696_v19  ;;  %v15523_v31 = vcombine.high %v9699_v23, %v9703_v24  ;;  %v15525_v32 = vcombine.high %v9700_v28, %v9704_v29  ;;  %v9751_v27 = vld [vmem:[#allocation8 + $0x360] sm:$0xff]  ;;  %v9748_v19 = vld [vmem:[#allocation8 + $0x348] sm:$0xff] }
 0x583   :  { %9179 = vmatmul.mubr.bf16.vlgmr.msra.gmra.mrb[4].mxu0 %v16848_v62  ;;  %9609 = vmatmul.mubr.bf16.vlgmr.msra.gmra.mrb[4].mxu1 %v16848_v62  ;;  %v15484_v62 = vcombine.low %v9660_v58, %v9664_v17  ;;  %v9719_v58 = vld [vmem:[#allocation8 + $0x260] sm:$0xff]  ;;  %v9716_v17 = vld [vmem:[#allocation8 + $0x248] sm:$0xff] }
 0x584   :  { %12758 = vmatpush1.bf16.msra.mxu0 %v15466_v33  ;;  %12789 = vmatprep.mubr.bf16.mxu0 %v16884_v12  ;;  %v9711_v33 = vld [vmem:[#allocation8 + $0x220] sm:$0xff] }
 0x585   :  { %12930 = vmatpush1.bf16.msra.mxu1 %v15468_v36  ;;  %12961 = vmatprep.mubr.bf16.mxu1 %v16884_v12  ;;  %v15522_v36 = vcombine.low %v9699_v23, %v9703_v24  ;;  %v15531_v39 = vcombine.high %v9707_v3, %v9711_v33  ;;  %v9755_v24 = vld [vmem:[#allocation8 + $0x380] sm:$0xff] }
 0x586   :  { %12759 = vmatprep.subr.bf16.mxu0 %v15475_v43  ;;  %12931 = vmatprep.subr.bf16.mxu1 %v15477_v41  ;;  %v15524_v43 = vcombine.low %v9700_v28, %v9704_v29  ;;  %v9715_v41 = vld [vmem:[#allocation8 + $0x240] sm:$0xff]  ;;  %v9756_v29 = vld [vmem:[#allocation8 + $0x388] sm:$0xff] }
 0x587   :  { %v9759_v28 = vld [vmem:[#allocation8 + $0x3a0] sm:$0xff] }
 0x588   :  { %12760 = vmatpush1.bf16.msra.mxu0 %v15474_v42  ;;  %v9720_v42 = vld [vmem:[#allocation8 + $0x268] sm:$0xff] }
 0x589   :  { %12932 = vmatpush1.bf16.msra.mxu1 %v15476_v46  ;;  %12761 = vmatprep.subr.bf16.mxu0 %v15483_v44  ;;  %v15530_v46 = vcombine.low %v9707_v3, %v9711_v33  ;;  %v15532_v44 = vcombine.low %v9708_v34, %v9712_v35  ;;  %v15541_v48 = vcombine.high %v9716_v17, %v9720_v42  ;;  %v9763_v33 = vld [vmem:[#allocation8 + $0x3c0] sm:$0xff]  ;;  %v9764_v35 = vld [vmem:[#allocation8 + $0x3c8] sm:$0xff] }
 0x58a   :  { %12933 = vmatprep.subr.bf16.mxu1 %v15485_v47  ;;  %v15539_v47 = vcombine.high %v9715_v41, %v9719_v58  ;;  %v9767_v34 = vld [vmem:[#allocation8 + $0x3e0] sm:$0xff] }
 0x58c   :  { %12762 = vmatpush1.bf16.msra.mxu0 %v15482_v51  ;;  %v9728_v51 = vld [vmem:[#allocation8 + $0x2a8] sm:$0xff] }
 0x58d   :  { %12934 = vmatpush1.bf16.msra.mxu1 %v15484_v62  ;;  %12763 = vmatprep.subr.bf16.mxu0 %v15491_v59  ;;  %v15538_v62 = vcombine.low %v9715_v41, %v9719_v58  ;;  %v15540_v59 = vcombine.low %v9716_v17, %v9720_v42  ;;  %v15549_v55 = vcombine.high %v9724_v50, %v9728_v51  ;;  %v9771_v58 = vld [vmem:[#allocation8 + $0x400] sm:$0xff]  ;;  %v9772_v42 = vld [vmem:[#allocation8 + $0x408] sm:$0xff] }
 0x58e   :  { %12935 = vmatprep.subr.bf16.mxu1 %v15493_v54  ;;  %v15547_v54 = vcombine.high %v9723_v53, %v9727_v49  ;;  %v9775_v17 = vld [vmem:[#allocation8 + $0x420] sm:$0xff] }
 0x590   :  { %12764 = vmatpush1.bf16.msra.mxu0 %v15490_v1  ;;  %v9736_v1 = vld [vmem:[#allocation8 + $0x2e8] sm:$0xff] }
 0x591   :  { %12936 = vmatpush1.bf16.msra.mxu1 %v15492_v2  ;;  %12765 = vmatprep.subr.bf16.mxu0 %v15499_v4  ;;  %v15546_v2 = vcombine.low %v9723_v53, %v9727_v49  ;;  %v15548_v4 = vcombine.low %v9724_v50, %v9728_v51  ;;  %v15557_v14 = vcombine.high %v9732_v61, %v9736_v1  ;;  %v9779_v49 = vld [vmem:[#allocation8 + $0x440] sm:$0xff] }
 0x592   :  { %12937 = vmatprep.subr.bf16.mxu1 %v15501_v5  ;;  %v15555_v5 = vcombine.high %v9731_v56, %v9735_v57  ;;  %v9783_v50 = vld [vmem:[#allocation8 + $0x460] sm:$0xff]  ;;  %v15594_v51 = vcombine.low %v9771_v58, %v9775_v17 }
 0x594   :  { %12766 = vmatpush1.bf16.msra.mxu0 %v15498_v9  ;;  %v9744_v9 = vld [vmem:[#allocation8 + $0x328] sm:$0xff] }
 0x595   :  { %12938 = vmatpush1.bf16.msra.mxu1 %v15500_v37  ;;  %12767 = vmatprep.subr.bf16.mxu0 %v15507_v13  ;;  %v15554_v37 = vcombine.low %v9731_v56, %v9735_v57  ;;  %v15556_v13 = vcombine.low %v9732_v61, %v9736_v1  ;;  %v15565_v0 = vcombine.high %v9740_v26, %v9744_v9  ;;  %v9787_v56 = vld [vmem:[#allocation8 + $0x480] sm:$0xff]  ;;  %v9788_v1 = vld [vmem:[#allocation8 + $0x488] sm:$0xff] }
 0x596   :  { %12939 = vmatprep.subr.bf16.mxu1 %v15509_v16  ;;  %v15563_v16 = vcombine.high %v9739_v6, %v9743_v7  ;;  %v9791_v57 = vld [vmem:[#allocation8 + $0x4a0] sm:$0xff] }
 0x598   :  { %12768 = vmatpush1.bf16.msra.mxu0 %v15506_v20  ;;  %v9752_v20 = vld [vmem:[#allocation8 + $0x368] sm:$0xff] }
 0x599   :  { %12940 = vmatpush1.bf16.msra.mxu1 %v15508_v21  ;;  %12769 = vmatprep.subr.bf16.mxu0 %v15515_v38  ;;  %v15562_v21 = vcombine.low %v9739_v6, %v9743_v7  ;;  %v15564_v38 = vcombine.low %v9740_v26, %v9744_v9  ;;  %v15573_v23 = vcombine.high %v9748_v19, %v9752_v20  ;;  %v9795_v7 = vld [vmem:[#allocation8 + $0x4c0] sm:$0xff]  ;;  %v9796_v9 = vld [vmem:[#allocation8 + $0x4c8] sm:$0xff] }
 0x59a   :  { %12941 = vmatprep.subr.bf16.mxu1 %v15517_v22  ;;  %v15571_v22 = vcombine.high %v9747_v15, %v9751_v27  ;;  %v9799_v26 = vld [vmem:[#allocation8 + $0x4e0] sm:$0xff] }
 0x59c   :  { %12770 = vmatpush1.bf16.msra.mxu0 %v15514_v10  ;;  %v9760_v10 = vld [vmem:[#allocation8 + $0x3a8] sm:$0xff] }
 0x59d   :  { %12942 = vmatpush1.bf16.msra.mxu1 %v15516_v25  ;;  %12771 = vmatprep.subr.bf16.mxu0 %v15523_v31  ;;  %v15570_v25 = vcombine.low %v9747_v15, %v9751_v27  ;;  %v15572_v31 = vcombine.low %v9748_v19, %v9752_v20  ;;  %v15581_v3 = vcombine.high %v9756_v29, %v9760_v10  ;;  %v9803_v27 = vld [vmem:[#allocation8 + $0x500] sm:$0xff]  ;;  %v9804_v20 = vld [vmem:[#allocation8 + $0x508] sm:$0xff] }
 0x59e   :  { %12943 = vmatprep.subr.bf16.mxu1 %v15525_v32  ;;  %v15579_v32 = vcombine.high %v9755_v24, %v9759_v28  ;;  %v9807_v19 = vld [vmem:[#allocation8 + $0x520] sm:$0xff] }
 0x5a0   :  { %12772 = vmatpush1.bf16.msra.mxu0 %v15522_v36  ;;  %v9768_v36 = vld [vmem:[#allocation8 + $0x3e8] sm:$0xff] }
 0x5a1   :  { %12944 = vmatpush1.bf16.msra.mxu1 %v15524_v43  ;;  %12773 = vmatprep.subr.bf16.mxu0 %v15531_v39  ;;  %v15578_v43 = vcombine.low %v9755_v24, %v9759_v28  ;;  %v15580_v39 = vcombine.low %v9756_v29, %v9760_v10  ;;  %v15589_v41 = vcombine.high %v9764_v35, %v9768_v36  ;;  %v9811_v28 = vld [vmem:[#allocation8 + $0x540] sm:$0xff]  ;;  %v9812_v10 = vld [vmem:[#allocation8 + $0x548] sm:$0xff] }
 0x5a2   :  { %12945 = vmatprep.subr.bf16.mxu1 %v15533_v40  ;;  %v15587_v40 = vcombine.high %v9763_v33, %v9767_v34  ;;  %v9815_v29 = vld [vmem:[#allocation8 + $0x560] sm:$0xff] }
 0x5a4   :  { %12774 = vmatpush1.bf16.msra.mxu0 %v15530_v46  ;;  %v9776_v46 = vld [vmem:[#allocation8 + $0x428] sm:$0xff] }
 0x5a5   :  { %12946 = vmatpush1.bf16.msra.mxu1 %v15532_v44  ;;  %12775 = vmatprep.subr.bf16.mxu0 %v15539_v47  ;;  %v15586_v44 = vcombine.low %v9763_v33, %v9767_v34  ;;  %v15588_v47 = vcombine.low %v9764_v35, %v9768_v36  ;;  %v15597_v53 = vcombine.high %v9772_v42, %v9776_v46  ;;  %v9819_v34 = vld [vmem:[#allocation8 + $0x580] sm:$0xff]  ;;  %v9820_v36 = vld [vmem:[#allocation8 + $0x588] sm:$0xff] }
 0x5a6   :  { %12947 = vmatprep.subr.bf16.mxu1 %v15541_v48  ;;  %v15595_v48 = vcombine.high %v9771_v58, %v9775_v17  ;;  %v9823_v35 = vld [vmem:[#allocation8 + $0x5a0] sm:$0xff] }
 0x5a7   :  { %v9827_v17 = vld [vmem:[#allocation8 + $0x5c0] sm:$0xff] }
 0x5a8   :  { %12776 = vmatpush1.bf16.msra.mxu0 %v15538_v62  ;;  %v9780_v62 = vld [vmem:[#allocation8 + $0x448] sm:$0xff] }
 0x5a9   :  { %12948 = vmatpush1.bf16.msra.mxu1 %v15540_v59  ;;  %12777 = vmatprep.subr.bf16.mxu0 %v15547_v54  ;;  %v9784_v59 = vld [vmem:[#allocation8 + $0x468] sm:$0xff]  ;;  %v15596_v54 = vcombine.low %v9772_v42, %v9776_v46  ;;  %v9831_v42 = vld [vmem:[#allocation8 + $0x5e0] sm:$0xff] }
 0x5aa   :  { %12949 = vmatprep.subr.bf16.mxu1 %v15549_v55  ;;  %v15603_v55 = vcombine.high %v9779_v49, %v9783_v50  ;;  %v15605_v61 = vcombine.high %v9780_v62, %v9784_v59  ;;  %v9828_v46 = vld [vmem:[#allocation8 + $0x5c8] sm:$0xff] }
 0x5ac   :  { %12778 = vmatpush1.bf16.msra.mxu0 %v15546_v2  ;;  %v9792_v2 = vld [vmem:[#allocation8 + $0x4a8] sm:$0xff] }
 0x5ad   :  { %12950 = vmatpush1.bf16.msra.mxu1 %v15548_v4  ;;  %12779 = vmatprep.subr.bf16.mxu0 %v15555_v5  ;;  %v15602_v4 = vcombine.low %v9779_v49, %v9783_v50  ;;  %v15604_v5 = vcombine.low %v9780_v62, %v9784_v59  ;;  %v15613_v6 = vcombine.high %v9788_v1, %v9792_v2  ;;  %v9835_v50 = vld [vmem:[#allocation8 + $0x600] sm:$0xff]  ;;  %v9836_v62 = vld [vmem:[#allocation8 + $0x608] sm:$0xff] }
 0x5ae   :  { %12951 = vmatprep.subr.bf16.mxu1 %v15557_v14  ;;  %v15611_v14 = vcombine.high %v9787_v56, %v9791_v57  ;;  %v9840_v59 = vld [vmem:[#allocation8 + $0x628] sm:$0xff] }
 0x5b0   :  { %12780 = vmatpush1.bf16.msra.mxu0 %v15554_v37  ;;  %v9800_v37 = vld [vmem:[#allocation8 + $0x4e8] sm:$0xff] }
 0x5b1   :  { %12952 = vmatpush1.bf16.msra.mxu1 %v15556_v13  ;;  %12781 = vmatprep.subr.bf16.mxu0 %v15563_v16  ;;  %v15610_v13 = vcombine.low %v9787_v56, %v9791_v57  ;;  %v15612_v16 = vcombine.low %v9788_v1, %v9792_v2  ;;  %v15621_v15 = vcombine.high %v9796_v9, %v9800_v37  ;;  %v9847_v1 = vld [vmem:[#allocation8 + $0x660] sm:$0xff]  ;;  %v9844_v2 = vld [vmem:[#allocation8 + $0x648] sm:$0xff] }
 0x5b2   :  { %12953 = vmatprep.subr.bf16.mxu1 %v15565_v0  ;;  %v15619_v0 = vcombine.high %v9795_v7, %v9799_v26  ;;  %v15661_v57 = vcombine.high %v9836_v62, %v9840_v59 }
 0x5b4   :  { %12782 = vmatpush1.bf16.msra.mxu0 %v15562_v21  ;;  %v9808_v21 = vld [vmem:[#allocation8 + $0x528] sm:$0xff] }
 0x5b5   :  { %12954 = vmatpush1.bf16.msra.mxu1 %v15564_v38  ;;  %12783 = vmatprep.subr.bf16.mxu0 %v15571_v22  ;;  %v15618_v38 = vcombine.low %v9795_v7, %v9799_v26  ;;  %v15620_v22 = vcombine.low %v9796_v9, %v9800_v37  ;;  %v15629_v24 = vcombine.high %v9804_v20, %v9808_v21  ;;  %v9851_v26 = vld [vmem:[#allocation8 + $0x680] sm:$0xff]  ;;  %v9852_v37 = vld [vmem:[#allocation8 + $0x688] sm:$0xff] }
 0x5b6   :  { %12955 = vmatprep.subr.bf16.mxu1 %v15573_v23  ;;  %v15627_v23 = vcombine.high %v9803_v27, %v9807_v19  ;;  %v9855_v9 = vld [vmem:[#allocation8 + $0x6a0] sm:$0xff] }
 0x5b8   :  { %12784 = vmatpush1.bf16.msra.mxu0 %v15570_v25  ;;  %v9816_v25 = vld [vmem:[#allocation8 + $0x568] sm:$0xff] }
 0x5b9   :  { %12956 = vmatpush1.bf16.msra.mxu1 %v15572_v31  ;;  %12785 = vmatprep.subr.bf16.mxu0 %v15579_v32  ;;  %v15626_v31 = vcombine.low %v9803_v27, %v9807_v19  ;;  %v15628_v32 = vcombine.low %v9804_v20, %v9808_v21  ;;  %v15637_v33 = vcombine.high %v9812_v10, %v9816_v25  ;;  %v9859_v19 = vld [vmem:[#allocation8 + $0x6c0] sm:$0xff]  ;;  %v9860_v21 = vld [vmem:[#allocation8 + $0x6c8] sm:$0xff] }
 0x5ba   :  { %12957 = vmatprep.subr.bf16.mxu1 %v15581_v3  ;;  %v15635_v3 = vcombine.high %v9811_v28, %v9815_v29  ;;  %v9863_v20 = vld [vmem:[#allocation8 + $0x6e0] sm:$0xff] }
 0x5bc   :  { %12786 = vmatpush1.bf16.msra.mxu0 %v15578_v43  ;;  %v9824_v43 = vld [vmem:[#allocation8 + $0x5a8] sm:$0xff] }
 0x5bd   :  { %12958 = vmatpush1.bf16.msra.mxu1 %v15580_v39  ;;  %12787 = vmatprep.subr.bf16.mxu0 %v15587_v40  ;;  %v15634_v39 = vcombine.low %v9811_v28, %v9815_v29  ;;  %v15636_v40 = vcombine.low %v9812_v10, %v9816_v25  ;;  %v15645_v58 = vcombine.high %v9820_v36, %v9824_v43  ;;  %v9867_v29 = vld [vmem:[#allocation8 + $0x700] sm:$0xff]  ;;  %v9868_v25 = vld [vmem:[#allocation8 + $0x708] sm:$0xff] }
 0x5be   :  { %12959 = vmatprep.subr.bf16.mxu1 %v15589_v41  ;;  %v15643_v41 = vcombine.high %v9819_v34, %v9823_v35  ;;  %v9871_v10 = vld [vmem:[#allocation8 + $0x720] sm:$0xff] }
 0x5c0   :  { %12788 = vmatpush1.bf16.msra.mxu0 %v15586_v44  ;;  %v9832_v44 = vld [vmem:[#allocation8 + $0x5e8] sm:$0xff] }
 0x5c1   :  { %12960 = vmatpush1.bf16.msra.mxu1 %v15588_v47  ;;  %12800 = vmatprep.subr.bf16.mxu0 %v15595_v48  ;;  %v15642_v47 = vcombine.low %v9819_v34, %v9823_v35  ;;  %v15644_v48 = vcombine.low %v9820_v36, %v9824_v43  ;;  %v15653_v49 = vcombine.high %v9828_v46, %v9832_v44  ;;  %v9875_v35 = vld [vmem:[#allocation8 + $0x740] sm:$0xff]  ;;  %v9876_v43 = vld [vmem:[#allocation8 + $0x748] sm:$0xff] }
 0x5c2   :  { %12972 = vmatprep.subr.bf16.mxu1 %v15597_v53  ;;  %v15651_v53 = vcombine.high %v9827_v17, %v9831_v42  ;;  %v9879_v36 = vld [vmem:[#allocation8 + $0x760] sm:$0xff] }
 0x5c3   :  { %12790 = vmatmul.mubr.bf16.vlgmr.msra.gmra.mrb[8].mxu0 %v16880_v8 }
 0x5c4   :  { %12962 = vmatmul.mubr.bf16.vlgmr.msra.gmra.mrb[8].mxu1 %v16880_v8  ;;  %12801 = vmatpush1.bf16.msra.mxu0 %v15594_v51  ;;  %v9839_v51 = vld [vmem:[#allocation8 + $0x620] sm:$0xff] }
 0x5c5   :  { %12832 = vmatprep.mubr.bf16.mxu0 %v16886_v18  ;;  %12973 = vmatpush1.bf16.msra.mxu1 %v15596_v54  ;;  %v15650_v54 = vcombine.low %v9827_v17, %v9831_v42  ;;  %v15659_v56 = vcombine.high %v9835_v50, %v9839_v51  ;;  %v9883_v42 = vld [vmem:[#allocation8 + $0x780] sm:$0xff] }
 0x5c6   :  { %13004 = vmatprep.mubr.bf16.mxu1 %v16886_v18  ;;  %12802 = vmatprep.subr.bf16.mxu0 %v15603_v55  ;;  %v15652_v55 = vcombine.low %v9828_v46, %v9832_v44  ;;  %v9887_v46 = vld [vmem:[#allocation8 + $0x7a0] sm:$0xff]  ;;  %v9884_v44 = vld [vmem:[#allocation8 + $0x788] sm:$0xff] }
 0x5c7   :  { %12974 = vmatprep.subr.bf16.mxu1 %v15605_v61  ;;  %v9843_v61 = vld [vmem:[#allocation8 + $0x640] sm:$0xff] }
 0x5c8   :  { %12803 = vmatpush1.bf16.msra.mxu0 %v15602_v4  ;;  %v9848_v4 = vld [vmem:[#allocation8 + $0x668] sm:$0xff] }
 0x5c9   :  { %12975 = vmatpush1.bf16.msra.mxu1 %v15604_v5  ;;  %12804 = vmatprep.subr.bf16.mxu0 %v15611_v14  ;;  %v15658_v5 = vcombine.low %v9835_v50, %v9839_v51  ;;  %v15660_v14 = vcombine.low %v9836_v62, %v9840_v59  ;;  %v15669_v7 = vcombine.high %v9844_v2, %v9848_v4  ;;  %v9891_v51 = vld [vmem:[#allocation8 + $0x7c0] sm:$0xff]  ;;  %v9892_v59 = vld [vmem:[#allocation8 + $0x7c8] sm:$0xff] }
 0x5ca   :  { %12976 = vmatprep.subr.bf16.mxu1 %v15613_v6  ;;  %v15667_v6 = vcombine.high %v9843_v61, %v9847_v1  ;;  %v9895_v62 = vld [vmem:[#allocation8 + $0x7e0] sm:$0xff] }
 0x5cc   :  { %12805 = vmatpush1.bf16.msra.mxu0 %v15610_v13  ;;  %v9856_v13 = vld [vmem:[#allocation8 + $0x6a8] sm:$0xff] }
 0x5cd   :  { %12977 = vmatpush1.bf16.msra.mxu1 %v15612_v16  ;;  %12806 = vmatprep.subr.bf16.mxu0 %v15619_v0  ;;  %v15666_v16 = vcombine.low %v9843_v61, %v9847_v1  ;;  %v15668_v0 = vcombine.low %v9844_v2, %v9848_v4  ;;  %v15677_v27 = vcombine.high %v9852_v37, %v9856_v13  ;;  %v9899_v1 = vld [vmem:[#allocation8 + $0x800] sm:$0xff]  ;;  %v9900_v4 = vld [vmem:[#allocation8 + $0x808] sm:$0xff] }
 0x5ce   :  { %12978 = vmatprep.subr.bf16.mxu1 %v15621_v15  ;;  %v15675_v15 = vcombine.high %v9851_v26, %v9855_v9  ;;  %v9903_v2 = vld [vmem:[#allocation8 + $0x820] sm:$0xff] }
 0x5d0   :  { %12807 = vmatpush1.bf16.msra.mxu0 %v15618_v38  ;;  %v9864_v38 = vld [vmem:[#allocation8 + $0x6e8] sm:$0xff] }
 0x5d1   :  { %12979 = vmatpush1.bf16.msra.mxu1 %v15620_v22  ;;  %12808 = vmatprep.subr.bf16.mxu0 %v15627_v23  ;;  %v15674_v22 = vcombine.low %v9851_v26, %v9855_v9  ;;  %v15676_v23 = vcombine.low %v9852_v37, %v9856_v13  ;;  %v15685_v28 = vcombine.high %v9860_v21, %v9864_v38  ;;  %v9907_v9 = vld [vmem:[#allocation8 + $0x840] sm:$0xff]  ;;  %v9908_v13 = vld [vmem:[#allocation8 + $0x848] sm:$0xff] }
 0x5d2   :  { %12980 = vmatprep.subr.bf16.mxu1 %v15629_v24  ;;  %v15683_v24 = vcombine.high %v9859_v19, %v9863_v20  ;;  %v9911_v37 = vld [vmem:[#allocation8 + $0x860] sm:$0xff] }
 0x5d4   :  { %12809 = vmatpush1.bf16.msra.mxu0 %v15626_v31  ;;  %v9872_v31 = vld [vmem:[#allocation8 + $0x728] sm:$0xff] }
 0x5d5   :  { %12981 = vmatpush1.bf16.msra.mxu1 %v15628_v32  ;;  %12810 = vmatprep.subr.bf16.mxu0 %v15635_v3  ;;  %v15682_v32 = vcombine.low %v9859_v19, %v9863_v20  ;;  %v15684_v3 = vcombine.low %v9860_v21, %v9864_v38  ;;  %v15693_v34 = vcombine.high %v9868_v25, %v9872_v31  ;;  %v9915_v20 = vld [vmem:[#allocation8 + $0x880] sm:$0xff]  ;;  %v9916_v38 = vld [vmem:[#allocation8 + $0x888] sm:$0xff] }
 0x5d6   :  { %12982 = vmatprep.subr.bf16.mxu1 %v15637_v33  ;;  %v15691_v33 = vcombine.high %v9867_v29, %v9871_v10  ;;  %v9919_v21 = vld [vmem:[#allocation8 + $0x8a0] sm:$0xff] }
 0x5d8   :  { %12811 = vmatpush1.bf16.msra.mxu0 %v15634_v39  ;;  %v9880_v39 = vld [vmem:[#allocation8 + $0x768] sm:$0xff] }
 0x5d9   :  { %12983 = vmatpush1.bf16.msra.mxu1 %v15636_v40  ;;  %12812 = vmatprep.subr.bf16.mxu0 %v15643_v41  ;;  %v15690_v40 = vcombine.low %v9867_v29, %v9871_v10  ;;  %v15692_v41 = vcombine.low %v9868_v25, %v9872_v31  ;;  %v15701_v17 = vcombine.high %v9876_v43, %v9880_v39  ;;  %v9923_v10 = vld [vmem:[#allocation8 + $0x8c0] sm:$0xff]  ;;  %v9924_v31 = vld [vmem:[#allocation8 + $0x8c8] sm:$0xff] }
 0x5da   :  { %12984 = vmatprep.subr.bf16.mxu1 %v15645_v58  ;;  %v15699_v58 = vcombine.high %v9875_v35, %v9879_v36  ;;  %v9927_v25 = vld [vmem:[#allocation8 + $0x8e0] sm:$0xff] }
 0x5dc   :  { %12813 = vmatpush1.bf16.msra.mxu0 %v15642_v47  ;;  %v9888_v47 = vld [vmem:[#allocation8 + $0x7a8] sm:$0xff] }
 0x5dd   :  { %12985 = vmatpush1.bf16.msra.mxu1 %v15644_v48  ;;  %12814 = vmatprep.subr.bf16.mxu0 %v15651_v53  ;;  %v15698_v48 = vcombine.low %v9875_v35, %v9879_v36  ;;  %v15700_v53 = vcombine.low %v9876_v43, %v9880_v39  ;;  %v15709_v50 = vcombine.high %v9884_v44, %v9888_v47  ;;  %v9931_v36 = vld [vmem:[#allocation8 + $0x900] sm:$0xff]  ;;  %v9932_v39 = vld [vmem:[#allocation8 + $0x908] sm:$0xff] }
 0x5de   :  { %12986 = vmatprep.subr.bf16.mxu1 %v15653_v49  ;;  %v15707_v49 = vcombine.high %v9883_v42, %v9887_v46  ;;  %v9935_v43 = vld [vmem:[#allocation8 + $0x920] sm:$0xff] }
 0x5e0   :  { %12815 = vmatpush1.bf16.msra.mxu0 %v15650_v54  ;;  %v9896_v54 = vld [vmem:[#allocation8 + $0x7e8] sm:$0xff] }
 0x5e1   :  { %12987 = vmatpush1.bf16.msra.mxu1 %v15652_v55  ;;  %12816 = vmatprep.subr.bf16.mxu0 %v15659_v56  ;;  %v15706_v55 = vcombine.low %v9883_v42, %v9887_v46  ;;  %v15708_v56 = vcombine.low %v9884_v44, %v9888_v47  ;;  %v15717_v61 = vcombine.high %v9892_v59, %v9896_v54  ;;  %v9939_v46 = vld [vmem:[#allocation8 + $0x940] sm:$0xff]  ;;  %v9940_v47 = vld [vmem:[#allocation8 + $0x948] sm:$0xff] }
 0x5e2   :  { %12988 = vmatprep.subr.bf16.mxu1 %v15661_v57  ;;  %v15715_v57 = vcombine.high %v9891_v51, %v9895_v62  ;;  %v9943_v44 = vld [vmem:[#allocation8 + $0x960] sm:$0xff] }
 0x5e4   :  { %12817 = vmatpush1.bf16.msra.mxu0 %v15658_v5  ;;  %v9904_v5 = vld [vmem:[#allocation8 + $0x828] sm:$0xff] }
 0x5e5   :  { %12989 = vmatpush1.bf16.msra.mxu1 %v15660_v14  ;;  %12818 = vmatprep.subr.bf16.mxu0 %v15667_v6  ;;  %v15714_v14 = vcombine.low %v9891_v51, %v9895_v62  ;;  %v15716_v6 = vcombine.low %v9892_v59, %v9896_v54  ;;  %v15725_v26 = vcombine.high %v9900_v4, %v9904_v5  ;;  %v9947_v62 = vld [vmem:[#allocation8 + $0x980] sm:$0xff]  ;;  %v9948_v54 = vld [vmem:[#allocation8 + $0x988] sm:$0xff] }
 0x5e6   :  { %12990 = vmatprep.subr.bf16.mxu1 %v15669_v7  ;;  %v15723_v7 = vcombine.high %v9899_v1, %v9903_v2  ;;  %v9951_v59 = vld [vmem:[#allocation8 + $0x9a0] sm:$0xff] }
 0x5e8   :  { %12819 = vmatpush1.bf16.msra.mxu0 %v15666_v16  ;;  %v9912_v16 = vld [vmem:[#allocation8 + $0x868] sm:$0xff] }
 0x5e9   :  { %12991 = vmatpush1.bf16.msra.mxu1 %v15668_v0  ;;  %12820 = vmatprep.subr.bf16.mxu0 %v15675_v15  ;;  %v15722_v0 = vcombine.low %v9899_v1, %v9903_v2  ;;  %v15724_v15 = vcombine.low %v9900_v4, %v9904_v5  ;;  %v15733_v19 = vcombine.high %v9908_v13, %v9912_v16  ;;  %v9955_v2 = vld [vmem:[#allocation8 + $0x9c0] sm:$0xff]  ;;  %v9956_v5 = vld [vmem:[#allocation8 + $0x9c8] sm:$0xff] }
 0x5ea   :  { %12992 = vmatprep.subr.bf16.mxu1 %v15677_v27  ;;  %v15731_v27 = vcombine.high %v9907_v9, %v9911_v37  ;;  %v9959_v4 = vld [vmem:[#allocation8 + $0x9e0] sm:$0xff] }
 0x5ec   :  { %12821 = vmatpush1.bf16.msra.mxu0 %v15674_v22  ;;  %v9920_v22 = vld [vmem:[#allocation8 + $0x8a8] sm:$0xff] }
 0x5ed   :  { %12993 = vmatpush1.bf16.msra.mxu1 %v15676_v23  ;;  %12822 = vmatprep.subr.bf16.mxu0 %v15683_v24  ;;  %v15730_v23 = vcombine.low %v9907_v9, %v9911_v37  ;;  %v15732_v24 = vcombine.low %v9908_v13, %v9912_v16  ;;  %v15741_v29 = vcombine.high %v9916_v38, %v9920_v22  ;;  %v9963_v37 = vld [vmem:[#allocation8 + $0xa00] sm:$0xff]  ;;  %v9964_v16 = vld [vmem:[#allocation8 + $0xa08] sm:$0xff] }
 0x5ee   :  { %12994 = vmatprep.subr.bf16.mxu1 %v15685_v28  ;;  %v15739_v28 = vcombine.high %v9915_v20, %v9919_v21  ;;  %v9967_v13 = vld [vmem:[#allocation8 + $0xa20] sm:$0xff] }
 0x5f0   :  { %12823 = vmatpush1.bf16.msra.mxu0 %v15682_v32  ;;  %v9928_v32 = vld [vmem:[#allocation8 + $0x8e8] sm:$0xff] }
 0x5f1   :  { %12995 = vmatpush1.bf16.msra.mxu1 %v15684_v3  ;;  %12824 = vmatprep.subr.bf16.mxu0 %v15691_v33  ;;  %v15738_v3 = vcombine.low %v9915_v20, %v9919_v21  ;;  %v15740_v33 = vcombine.low %v9916_v38, %v9920_v22  ;;  %v15749_v35 = vcombine.high %v9924_v31, %v9928_v32  ;;  %v9971_v21 = vld [vmem:[#allocation8 + $0xa40] sm:$0xff]  ;;  %v9972_v22 = vld [vmem:[#allocation8 + $0xa48] sm:$0xff] }
 0x5f2   :  { %12996 = vmatprep.subr.bf16.mxu1 %v15693_v34  ;;  %v15747_v34 = vcombine.high %v9923_v10, %v9927_v25  ;;  %v9975_v38 = vld [vmem:[#allocation8 + $0xa60] sm:$0xff] }
 0x5f4   :  { %12825 = vmatpush1.bf16.msra.mxu0 %v15690_v40  ;;  %v9936_v40 = vld [vmem:[#allocation8 + $0x928] sm:$0xff] }
 0x5f5   :  { %12997 = vmatpush1.bf16.msra.mxu1 %v15692_v41  ;;  %12826 = vmatprep.subr.bf16.mxu0 %v15699_v58  ;;  %v15746_v41 = vcombine.low %v9923_v10, %v9927_v25  ;;  %v15748_v58 = vcombine.low %v9924_v31, %v9928_v32  ;;  %v15757_v42 = vcombine.high %v9932_v39, %v9936_v40  ;;  %v9979_v25 = vld [vmem:[#allocation8 + $0xa80] sm:$0xff]  ;;  %v9980_v32 = vld [vmem:[#allocation8 + $0xa88] sm:$0xff] }
 0x5f6   :  { %12998 = vmatprep.subr.bf16.mxu1 %v15701_v17  ;;  %v15755_v17 = vcombine.high %v9931_v36, %v9935_v43  ;;  %v9983_v31 = vld [vmem:[#allocation8 + $0xaa0] sm:$0xff] }
 0x5f8   :  { %12827 = vmatpush1.bf16.msra.mxu0 %v15698_v48  ;;  %v9944_v48 = vld [vmem:[#allocation8 + $0x968] sm:$0xff] }
 0x5f9   :  { %12999 = vmatpush1.bf16.msra.mxu1 %v15700_v53  ;;  %12828 = vmatprep.subr.bf16.mxu0 %v15707_v49  ;;  %v15754_v53 = vcombine.low %v9931_v36, %v9935_v43  ;;  %v15756_v49 = vcombine.low %v9932_v39, %v9936_v40  ;;  %v15765_v51 = vcombine.high %v9940_v47, %v9944_v48  ;;  %v9987_v43 = vld [vmem:[#allocation8 + $0xac0] sm:$0xff]  ;;  %v9988_v40 = vld [vmem:[#allocation8 + $0xac8] sm:$0xff] }
 0x5fa   :  { %13000 = vmatprep.subr.bf16.mxu1 %v15709_v50  ;;  %v15763_v50 = vcombine.high %v9939_v46, %v9943_v44  ;;  %v9991_v39 = vld [vmem:[#allocation8 + $0xae0] sm:$0xff] }
 0x5fc   :  { %12829 = vmatpush1.bf16.msra.mxu0 %v15706_v55  ;;  %v9952_v55 = vld [vmem:[#allocation8 + $0x9a8] sm:$0xff] }
 0x5fd   :  { %13001 = vmatpush1.bf16.msra.mxu1 %v15708_v56  ;;  %12830 = vmatprep.subr.bf16.mxu0 %v15715_v57  ;;  %v15762_v56 = vcombine.low %v9939_v46, %v9943_v44  ;;  %v15764_v57 = vcombine.low %v9940_v47, %v9944_v48  ;;  %v15773_v1 = vcombine.high %v9948_v54, %v9952_v55  ;;  %v9995_v44 = vld [vmem:[#allocation8 + $0xb00] sm:$0xff]  ;;  %v9996_v48 = vld [vmem:[#allocation8 + $0xb08] sm:$0xff] }
 0x5fe   :  { %13002 = vmatprep.subr.bf16.mxu1 %v15717_v61  ;;  %v15771_v61 = vcombine.high %v9947_v62, %v9951_v59  ;;  %v9999_v47 = vld [vmem:[#allocation8 + $0xb20] sm:$0xff] }
 0x600   :  { %12831 = vmatpush1.bf16.msra.mxu0 %v15714_v14  ;;  %v9960_v14 = vld [vmem:[#allocation8 + $0x9e8] sm:$0xff] }
 0x601   :  { %13003 = vmatpush1.bf16.msra.mxu1 %v15716_v6  ;;  %12843 = vmatprep.subr.bf16.mxu0 %v15723_v7  ;;  %v15770_v6 = vcombine.low %v9947_v62, %v9951_v59  ;;  %v15772_v7 = vcombine.low %v9948_v54, %v9952_v55  ;;  %v15781_v9 = vcombine.high %v9956_v5, %v9960_v14  ;;  %v10003_v59 = vld [vmem:[#allocation8 + $0xb40] sm:$0xff]  ;;  %v10004_v55 = vld [vmem:[#allocation8 + $0xb48] sm:$0xff] }
 0x602   :  { %13015 = vmatprep.subr.bf16.mxu1 %v15725_v26  ;;  %v15779_v26 = vcombine.high %v9955_v2, %v9959_v4  ;;  %v10007_v54 = vld [vmem:[#allocation8 + $0xb60] sm:$0xff] }
 0x603   :  { %12833 = vmatmul.mubr.bf16.vlgmr.msra.gmra.mrb[8].mxu0 %v16882_v11 }
 0x604   :  { %13005 = vmatmul.mubr.bf16.vlgmr.msra.gmra.mrb[8].mxu1 %v16882_v11  ;;  %12844 = vmatpush1.bf16.msra.mxu0 %v15722_v0  ;;  %v9968_v0 = vld [vmem:[#allocation8 + $0xa28] sm:$0xff] }
 0x605   :  { %13016 = vmatpush1.bf16.msra.mxu1 %v15724_v15  ;;  %12845 = vmatprep.subr.bf16.mxu0 %v15731_v27  ;;  %v15778_v15 = vcombine.low %v9955_v2, %v9959_v4  ;;  %v15780_v27 = vcombine.low %v9956_v5, %v9960_v14  ;;  %v15789_v20 = vcombine.high %v9964_v16, %v9968_v0  ;;  %v10011_v4 = vld [vmem:[#allocation8 + $0xb80] sm:$0xff]  ;;  %v10012_v14 = vld [vmem:[#allocation8 + $0xb88] sm:$0xff] }
 0x606   :  { %13017 = vmatprep.subr.bf16.mxu1 %v15733_v19  ;;  %v15787_v19 = vcombine.high %v9963_v37, %v9967_v13  ;;  %v10015_v5 = vld [vmem:[#allocation8 + $0xba0] sm:$0xff] }
 0x608   :  { %12846 = vmatpush1.bf16.msra.mxu0 %v15730_v23  ;;  %v9976_v23 = vld [vmem:[#allocation8 + $0xa68] sm:$0xff] }
 0x609   :  { %13018 = vmatpush1.bf16.msra.mxu1 %v15732_v24  ;;  %12847 = vmatprep.subr.bf16.mxu0 %v15739_v28  ;;  %v15786_v24 = vcombine.low %v9963_v37, %v9967_v13  ;;  %v15788_v28 = vcombine.low %v9964_v16, %v9968_v0  ;;  %v15797_v10 = vcombine.high %v9972_v22, %v9976_v23  ;;  %v10019_v13 = vld [vmem:[#allocation8 + $0xbc0] sm:$0xff]  ;;  %v10020_v0 = vld [vmem:[#allocation8 + $0xbc8] sm:$0xff] }
 0x60a   :  { %13019 = vmatprep.subr.bf16.mxu1 %v15741_v29  ;;  %v15795_v29 = vcombine.high %v9971_v21, %v9975_v38  ;;  %v10023_v16 = vld [vmem:[#allocation8 + $0xbe0] sm:$0xff] }
 0x60c   :  { %12848 = vmatpush1.bf16.msra.mxu0 %v15738_v3  ;;  %v9984_v3 = vld [vmem:[#allocation8 + $0xaa8] sm:$0xff] }
 0x60d   :  { %13020 = vmatpush1.bf16.msra.mxu1 %v15740_v33  ;;  %12849 = vmatprep.subr.bf16.mxu0 %v15747_v34  ;;  %v15794_v33 = vcombine.low %v9971_v21, %v9975_v38  ;;  %v15796_v34 = vcombine.low %v9972_v22, %v9976_v23  ;;  %v15805_v36 = vcombine.high %v9980_v32, %v9984_v3  ;;  %v16922_v38 = vld [vmem:[#allocation8 + $0xc00] sm:$0xff]  ;;  %v16926_v23 = vld [vmem:[#allocation8 + $0xc08] sm:$0xff] }
 0x60e   :  { %13021 = vmatprep.subr.bf16.mxu1 %v15749_v35  ;;  %v15803_v35 = vcombine.high %v9979_v25, %v9983_v31  ;;  %v16924_v22 = vld [vmem:[#allocation8 + $0xc20] sm:$0xff] }
 0x610   :  { %12850 = vmatpush1.bf16.msra.mxu0 %v15746_v41  ;;  %v9992_v41 = vld [vmem:[#allocation8 + $0xae8] sm:$0xff] }
 0x611   :  { %13022 = vmatpush1.bf16.msra.mxu1 %v15748_v58  ;;  %12851 = vmatprep.subr.bf16.mxu0 %v15755_v17  ;;  %v15802_v58 = vcombine.low %v9979_v25, %v9983_v31  ;;  %v15804_v17 = vcombine.low %v9980_v32, %v9984_v3  ;;  %v15813_v46 = vcombine.high %v9988_v40, %v9992_v41  ;;  %v1477_v31 = vsub.s32 4, %v16866_v45 }
 0x612   :  { %13023 = vmatprep.subr.bf16.mxu1 %v15757_v42  ;;  %v15811_v42 = vcombine.high %v9987_v43, %v9991_v39  ;;  %v1485_v32 = vsub.s32 6, %v16866_v45  ;;  %v1481_v3 = vsub.s32 5, %v16866_v45 }
 0x614   :  { %12852 = vmatpush1.bf16.msra.mxu0 %v15754_v53  ;;  %v10000_v53 = vld [vmem:[#allocation8 + $0xb28] sm:$0xff] }
 0x615   :  { %13024 = vmatpush1.bf16.msra.mxu1 %v15756_v49  ;;  %12853 = vmatprep.subr.bf16.mxu0 %v15763_v50  ;;  %v15810_v49 = vcombine.low %v9987_v43, %v9991_v39  ;;  %v15812_v50 = vcombine.low %v9988_v40, %v9992_v41  ;;  %v15821_v62 = vcombine.high %v9996_v48, %v10000_v53 }
 0x616   :  { %13025 = vmatprep.subr.bf16.mxu1 %v15765_v51  ;;  %v15819_v51 = vcombine.high %v9995_v44, %v9999_v47 }
 0x618   :  { %12854 = vmatpush1.bf16.msra.mxu0 %v15762_v56  ;;  %v10008_v56 = vld [vmem:[#allocation8 + $0xb68] sm:$0xff] }
 0x619   :  { %13026 = vmatpush1.bf16.msra.mxu1 %v15764_v57  ;;  %12855 = vmatprep.subr.bf16.mxu0 %v15771_v61  ;;  %v15818_v57 = vcombine.low %v9995_v44, %v9999_v47  ;;  %v15820_v61 = vcombine.low %v9996_v48, %v10000_v53  ;;  %v15829_v2 = vcombine.high %v10004_v55, %v10008_v56 }
 0x61a   :  { %13027 = vmatprep.subr.bf16.mxu1 %v15773_v1  ;;  %v15827_v1 = vcombine.high %v10003_v59, %v10007_v54 }
 0x61c   :  { %12856 = vmatpush1.bf16.msra.mxu0 %v15770_v6  ;;  %v10016_v6 = vld [vmem:[#allocation8 + $0xba8] sm:$0xff] }
 0x61d   :  { %13028 = vmatpush1.bf16.msra.mxu1 %v15772_v7  ;;  %12857 = vmatprep.subr.bf16.mxu0 %v15779_v26  ;;  %v15826_v7 = vcombine.low %v10003_v59, %v10007_v54  ;;  %v15828_v26 = vcombine.low %v10004_v55, %v10008_v56  ;;  %v15837_v37 = vcombine.high %v10012_v14, %v10016_v6 }
 0x61e   :  { %13029 = vmatprep.subr.bf16.mxu1 %v15781_v9  ;;  %v15835_v9 = vcombine.high %v10011_v4, %v10015_v5 }
 0x620   :  { %12858 = vmatpush1.bf16.msra.mxu0 %v15778_v15  ;;  %v10024_v15 = vld [vmem:[#allocation8 + $0xbe8] sm:$0xff] }
 0x621   :  { %13030 = vmatpush1.bf16.msra.mxu1 %v15780_v27  ;;  %12859 = vmatprep.subr.bf16.mxu0 %v15787_v19  ;;  %v15834_v27 = vcombine.low %v10011_v4, %v10015_v5  ;;  %v15836_v19 = vcombine.low %v10012_v14, %v10016_v6  ;;  %v15845_v21 = vcombine.high %v10020_v0, %v10024_v15  ;;  %v10035_v4 = vld [vmem:[#allocation8 + $0xc40] sm:$0xff] }
 0x622   :  { %13031 = vmatprep.subr.bf16.mxu1 %v15789_v20  ;;  %v15843_v20 = vcombine.high %v10019_v13, %v10023_v16 }
 0x624   :  { %12860 = vmatpush1.bf16.msra.mxu0 %v15786_v24  ;;  %v16928_v24 = vld [vmem:[#allocation8 + $0xc28] sm:$0xff] }
 0x625   :  { %13032 = vmatpush1.bf16.msra.mxu1 %v15788_v28  ;;  %12861 = vmatprep.subr.bf16.mxu0 %v15795_v29  ;;  %v15842_v28 = vcombine.low %v10019_v13, %v10023_v16  ;;  %v15844_v29 = vcombine.low %v10020_v0, %v10024_v15  ;;  %v15853_v25 = vcombine.high %v16926_v23, %v16928_v24 }
 0x626   :  { %13033 = vmatprep.subr.bf16.mxu1 %v15797_v10  ;;  %v15851_v10 = vcombine.high %v16922_v38, %v16924_v22  ;;  %v15850_v16 = vcombine.low %v16922_v38, %v16924_v22  ;;  %v15852_v0 = vcombine.low %v16926_v23, %v16928_v24 }
 0x628   :  { %12862 = vmatpush1.bf16.msra.mxu0 %v15794_v33  ;;  %v1489_v33 = vsub.s32 7, %v16866_v45 }
 0x629   :  { %13034 = vmatpush1.bf16.msra.mxu1 %v15796_v34  ;;  %12863 = vmatprep.subr.bf16.mxu0 %v15803_v35  ;;  %v16445_v34 = vld [vmem:[#allocation7] sm:$0xff] }
 0x62a   :  { %13035 = vmatprep.subr.bf16.mxu1 %v15805_v36  ;;  %v1478_v35 = vrot.slane %v16445_v34, %v1477_v31  ;;  %v1486_v36 = vrot.slane %v16445_v34, %v1485_v32  ;;  %v1482_v43 = vrot.slane %v16445_v34, %v1481_v3  ;;  %v1490_v39 = vrot.slane %v16445_v34, %v1489_v33  ;;  %v10052_v34 = vld [vmem:[#allocation8 + $0xcc8] sm:$0xff] }
 0x62c   :  { %12864 = vmatpush1.bf16.msra.mxu0 %v15802_v58 }
 0x62d   :  { %13036 = vmatpush1.bf16.msra.mxu1 %v15804_v17  ;;  %12865 = vmatprep.subr.bf16.mxu0 %v15811_v42 }
 0x62e   :  { %13037 = vmatprep.subr.bf16.mxu1 %v15813_v46 }
 0x630   :  { %12866 = vmatpush1.bf16.msra.mxu0 %v15810_v49 }
 0x631   :  { %13038 = vmatpush1.bf16.msra.mxu1 %v15812_v50  ;;  %12867 = vmatprep.subr.bf16.mxu0 %v15819_v51 }
 0x632   :  { %13039 = vmatprep.subr.bf16.mxu1 %v15821_v62 }
 0x634   :  { %12868 = vmatpush1.bf16.msra.mxu0 %v15818_v57 }
 0x635   :  { %13040 = vmatpush1.bf16.msra.mxu1 %v15820_v61  ;;  %12869 = vmatprep.subr.bf16.mxu0 %v15827_v1 }
 0x636   :  { %13041 = vmatprep.subr.bf16.mxu1 %v15829_v2 }
 0x638   :  { %12870 = vmatpush1.bf16.msra.mxu0 %v15826_v7  ;;  %v10039_v7 = vld [vmem:[#allocation8 + $0xc60] sm:$0xff] }
 0x639   :  { %13042 = vmatpush1.bf16.msra.mxu1 %v15828_v26  ;;  %12871 = vmatprep.subr.bf16.mxu0 %v15835_v9  ;;  %v10036_v26 = vld [vmem:[#allocation8 + $0xc48] sm:$0xff]  ;;  %v15858_v38 = vcombine.low %v10035_v4, %v10039_v7 }
 0x63a   :  { %13043 = vmatprep.subr.bf16.mxu1 %v15837_v37  ;;  %v10040_v9 = vld [vmem:[#allocation8 + $0xc68] sm:$0xff] }
 0x63b   :  { %v15860_v22 = vcombine.low %v10036_v26, %v10040_v9 }
 0x63c   :  { %12872 = vmatpush1.bf16.msra.mxu0 %v15834_v27  ;;  %v10043_v27 = vld [vmem:[#allocation8 + $0xc80] sm:$0xff] }
 0x63d   :  { %13044 = vmatpush1.bf16.msra.mxu1 %v15836_v19  ;;  %12873 = vmatprep.subr.bf16.mxu0 %v15843_v20  ;;  %v15859_v19 = vcombine.high %v10035_v4, %v10039_v7  ;;  %v15861_v20 = vcombine.high %v10036_v26, %v10040_v9  ;;  %v10083_v7 = vld [vmem:[#allocation8 + $0xdc0] sm:$0xff]  ;;  %v10084_v9 = vld [vmem:[#allocation8 + $0xdc8] sm:$0xff] }
 0x63e   :  { %13045 = vmatprep.subr.bf16.mxu1 %v15845_v21  ;;  %v10047_v21 = vld [vmem:[#allocation8 + $0xca0] sm:$0xff] }
 0x63f   :  { %v15867_v23 = vcombine.high %v10043_v27, %v10047_v21  ;;  %v10087_v26 = vld [vmem:[#allocation8 + $0xde0] sm:$0xff] }
 0x640   :  { %12874 = vmatpush1.bf16.msra.mxu0 %v15842_v28  ;;  %v10044_v28 = vld [vmem:[#allocation8 + $0xc88] sm:$0xff] }
 0x641   :  { %13046 = vmatpush1.bf16.msra.mxu1 %v15844_v29  ;;  %12886 = vmatprep.subr.bf16.mxu0 %v15851_v10  ;;  %v10048_v29 = vld [vmem:[#allocation8 + $0xca8] sm:$0xff]  ;;  %v10051_v10 = vld [vmem:[#allocation8 + $0xcc0] sm:$0xff] }
 0x642   :  { %13058 = vmatprep.subr.bf16.mxu1 %v15853_v25  ;;  %v15869_v24 = vcombine.high %v10044_v28, %v10048_v29  ;;  %v10055_v25 = vld [vmem:[#allocation8 + $0xce0] sm:$0xff] }
 0x656   :  { %v9180_v40 = vpop.f32.mrb[4].mxu0  ;;  %v9610_v58 = vpop.f32.mrb[4].mxu1 }
 0x657   :  { %v16141_v41 = vadd.f32 %v9180_v40, %v1478_v35  ;;  %v9182_v17 = vpop.f32.mrb[5].mxu0  ;;  %v16145_v42 = vadd.f32 %v9610_v58, %v1486_v36  ;;  %v9612_v44 = vpop.f32.mrb[5].mxu1  ;;  %v10063_v58 = vld [vmem:[#allocation8 + $0xd20] sm:$0xff] }
 0x658   :  { %v16142_v46 = vadd.f32 %v9182_v17, %v1482_v43  ;;  %v9184_v47 = vpop.f32.mrb[6].mxu0  ;;  %v16146_v48 = vadd.f32 %v9612_v44, %v1490_v39  ;;  %v9614_v49 = vpop.f32.mrb[6].mxu1  ;;  %v10060_v17 = vld [vmem:[#allocation8 + $0xd08] sm:$0xff] }
 0x659   :  { %v16143_v53 = vadd.f32 %v9184_v47, %v1478_v35  ;;  %v9186_v50 = vpop.f32.mrb[7].mxu0  ;;  %v16147_v51 = vadd.f32 %v9614_v49, %v1486_v36  ;;  %v9616_v59 = vpop.f32.mrb[7].mxu1  ;;  %v9623_v54 = vmax.f32 %v16141_v41, 0.0  ;;  %v9625_v57 = vmax.f32 %v16145_v42, 0.0  ;;  %v10056_v35 = vld [vmem:[#allocation8 + $0xce8] sm:$0xff]  ;;  %v10059_v41 = vld [vmem:[#allocation8 + $0xd00] sm:$0xff] }
 0x65a   :  { %v16144_v62 = vadd.f32 %v9186_v50, %v1482_v43  ;;  %v16148_v56 = vadd.f32 %v9616_v59, %v1490_v39  ;;  %v9624_v61 = vmax.f32 %v16142_v46, 0.0  ;;  %v9626_v5 = vmax.f32 %v16146_v48, 0.0  ;;  %v10064_v42 = vld [vmem:[#allocation8 + $0xd28] sm:$0xff]  ;;  %v10071_v49 = vld [vmem:[#allocation8 + $0xd60] sm:$0xff] }
 0x65b   :  { %v9631_v55 = vmax.f32 %v16143_v53, 0.0  ;;  %v9633_v1 = vmax.f32 %v16147_v51, 0.0  ;;  %v15866_v36 = vcombine.low %v10043_v27, %v10047_v21  ;;  %v15868_v43 = vcombine.low %v10044_v28, %v10048_v29  ;;  %v10067_v53 = vld [vmem:[#allocation8 + $0xd40] sm:$0xff]  ;;  %v10068_v50 = vld [vmem:[#allocation8 + $0xd48] sm:$0xff] }
 0x65c   :  { %v9632_v2 = vmax.f32 %v16144_v62, 0.0  ;;  %v9634_v6 = vmax.f32 %v16148_v56, 0.0  ;;  %v15875_v39 = vcombine.high %v10051_v10, %v10055_v25  ;;  %v15877_v40 = vcombine.high %v10052_v34, %v10056_v35  ;;  %v10072_v51 = vld [vmem:[#allocation8 + $0xd68] sm:$0xff]  ;;  %v10075_v56 = vld [vmem:[#allocation8 + $0xd80] sm:$0xff] }
 0x65d   :  { %v16946_v14 = vpack.c.bf16 %v9631_v55, %v9623_v54  ;;  %v16948_v37 = vpack.c.bf16 %v9633_v1, %v9625_v57  ;;  %v15874_v46 = vcombine.low %v10051_v10, %v10055_v25  ;;  %v15876_v44 = vcombine.low %v10052_v34, %v10056_v35  ;;  %v10079_v57 = vld [vmem:[#allocation8 + $0xda0] sm:$0xff]  ;;  %v10080_v1 = vld [vmem:[#allocation8 + $0xda8] sm:$0xff] }
 0x65e   :  { %v16950_v13 = vpack.c.bf16 %v9632_v2, %v9624_v61  ;;  %v16956_v15 = vpack.c.bf16 %v9634_v6, %v9626_v5  ;;  %v15883_v47 = vcombine.high %v10059_v41, %v10063_v58  ;;  %v15885_v48 = vcombine.high %v10060_v17, %v10064_v42  ;;  %v10076_v61 = vld [vmem:[#allocation8 + $0xd88] sm:$0xff]  ;;  %v10091_v21 = vld [vmem:[#allocation8 + $0xe00] sm:$0xff] }
 0x65f   :  { %v15882_v62 = vcombine.low %v10059_v41, %v10063_v58  ;;  %v15884_v59 = vcombine.low %v10060_v17, %v10064_v42  ;;  %v15891_v54 = vcombine.high %v10067_v53, %v10071_v49  ;;  %v15893_v55 = vcombine.high %v10068_v50, %v10072_v51  ;;  %v10095_v28 = vld [vmem:[#allocation8 + $0xe20] sm:$0xff]  ;;  %v10092_v29 = vld [vmem:[#allocation8 + $0xe08] sm:$0xff] }
 0x660   :  { %12875 = vmatprep.mubr.bf16.mxu0 %v16950_v13  ;;  %13047 = vmatprep.mubr.bf16.mxu1 %v16950_v13  ;;  %v15890_v2 = vcombine.low %v10067_v53, %v10071_v49  ;;  %v15892_v4 = vcombine.low %v10068_v50, %v10072_v51  ;;  %v15899_v5 = vcombine.high %v10075_v56, %v10079_v57  ;;  %v10099_v25 = vld [vmem:[#allocation8 + $0xe40] sm:$0xff]  ;;  %v10100_v35 = vld [vmem:[#allocation8 + $0xe48] sm:$0xff] }
 0x661   :  { %12876 = vmatmul.mubr.bf16.vlgmr.msra.gmra.mrb[8].mxu0 %v16946_v14  ;;  %13048 = vmatmul.mubr.bf16.vlgmr.msra.gmra.mrb[8].mxu1 %v16946_v14  ;;  %v15901_v6 = vcombine.high %v10076_v61, %v10080_v1  ;;  %v15900_v27 = vcombine.low %v10076_v61, %v10080_v1  ;;  %v10103_v34 = vld [vmem:[#allocation8 + $0xe60] sm:$0xff]  ;;  %v10108_v42 = vld [vmem:[#allocation8 + $0xe88] sm:$0xff] }
 0x662   :  { %12887 = vmatpush1.bf16.msra.mxu0 %v15850_v16  ;;  %13059 = vmatpush1.bf16.msra.mxu1 %v15852_v0  ;;  %v10088_v16 = vld [vmem:[#allocation8 + $0xde8] sm:$0xff]  ;;  %v15898_v0 = vcombine.low %v10075_v56, %v10079_v57  ;;  %v10107_v58 = vld [vmem:[#allocation8 + $0xe80] sm:$0xff] }
 0x663   :  { %12918 = vmatprep.mubr.bf16.mxu0 %v16956_v15  ;;  %13090 = vmatprep.mubr.bf16.mxu1 %v16956_v15  ;;  %v10111_v17 = vld [vmem:[#allocation8 + $0xea0] sm:$0xff]  ;;  %v10116_v51 = vld [vmem:[#allocation8 + $0xec8] sm:$0xff] }
 0x664   :  { %12888 = vmatprep.subr.bf16.mxu0 %v15859_v19  ;;  %13060 = vmatprep.subr.bf16.mxu1 %v15861_v20  ;;  %v15907_v19 = vcombine.high %v10083_v7, %v10087_v26  ;;  %v15909_v20 = vcombine.high %v10084_v9, %v10088_v16  ;;  %v10115_v49 = vld [vmem:[#allocation8 + $0xec0] sm:$0xff]  ;;  %v10124_v1 = vld [vmem:[#allocation8 + $0xf08] sm:$0xff] }
 0x665   :  { %v10119_v50 = vld [vmem:[#allocation8 + $0xee0] sm:$0xff] }
 0x666   :  { %12889 = vmatpush1.bf16.msra.mxu0 %v15858_v38  ;;  %13061 = vmatpush1.bf16.msra.mxu1 %v15860_v22  ;;  %v10096_v38 = vld [vmem:[#allocation8 + $0xe28] sm:$0xff]  ;;  %v15906_v22 = vcombine.low %v10083_v7, %v10087_v26  ;;  %v10123_v57 = vld [vmem:[#allocation8 + $0xf00] sm:$0xff] }
 0x667   :  { %12890 = vmatprep.subr.bf16.mxu0 %v15867_v23  ;;  %13062 = vmatprep.subr.bf16.mxu1 %v15869_v24  ;;  %v15908_v23 = vcombine.low %v10084_v9, %v10088_v16  ;;  %v15915_v24 = vcombine.high %v10091_v21, %v10095_v28  ;;  %v15917_v10 = vcombine.high %v10092_v29, %v10096_v38  ;;  %v10127_v61 = vld [vmem:[#allocation8 + $0xf20] sm:$0xff]  ;;  %v10132_v16 = vld [vmem:[#allocation8 + $0xf48] sm:$0xff] }
 0x668   :  { %v10131_v26 = vld [vmem:[#allocation8 + $0xf40] sm:$0xff] }
 0x669   :  { %v10135_v9 = vld [vmem:[#allocation8 + $0xf60] sm:$0xff] }
 0x66a   :  { %12891 = vmatpush1.bf16.msra.mxu0 %v15866_v36  ;;  %13063 = vmatpush1.bf16.msra.mxu1 %v15868_v43  ;;  %v10104_v36 = vld [vmem:[#allocation8 + $0xe68] sm:$0xff]  ;;  %v15914_v43 = vcombine.low %v10091_v21, %v10095_v28  ;;  %v10139_v28 = vld [vmem:[#allocation8 + $0xf80] sm:$0xff] }
 0x66b   :  { %12892 = vmatprep.subr.bf16.mxu0 %v15875_v39  ;;  %13064 = vmatprep.subr.bf16.mxu1 %v15877_v40  ;;  %v15916_v39 = vcombine.low %v10092_v29, %v10096_v38  ;;  %v15923_v40 = vcombine.high %v10099_v25, %v10103_v34  ;;  %v15925_v41 = vcombine.high %v10100_v35, %v10104_v36  ;;  %v10143_v29 = vld [vmem:[#allocation8 + $0xfa0] sm:$0xff]  ;;  %v10140_v38 = vld [vmem:[#allocation8 + $0xf88] sm:$0xff] }
 0x66e   :  { %12893 = vmatpush1.bf16.msra.mxu0 %v15874_v46  ;;  %13065 = vmatpush1.bf16.msra.mxu1 %v15876_v44  ;;  %v10112_v46 = vld [vmem:[#allocation8 + $0xea8] sm:$0xff]  ;;  %v15922_v44 = vcombine.low %v10099_v25, %v10103_v34  ;;  %v10147_v34 = vld [vmem:[#allocation8 + $0xfc0] sm:$0xff] }
 0x66f   :  { %12894 = vmatprep.subr.bf16.mxu0 %v15883_v47  ;;  %13066 = vmatprep.subr.bf16.mxu1 %v15885_v48  ;;  %v15924_v47 = vcombine.low %v10100_v35, %v10104_v36  ;;  %v15931_v48 = vcombine.high %v10107_v58, %v10111_v17  ;;  %v15933_v53 = vcombine.high %v10108_v42, %v10112_v46  ;;  %v10151_v35 = vld [vmem:[#allocation8 + $0xfe0] sm:$0xff]  ;;  %v10148_v36 = vld [vmem:[#allocation8 + $0xfc8] sm:$0xff] }
 0x672   :  { %12895 = vmatpush1.bf16.msra.mxu0 %v15882_v62  ;;  %13067 = vmatpush1.bf16.msra.mxu1 %v15884_v59  ;;  %v10120_v62 = vld [vmem:[#allocation8 + $0xee8] sm:$0xff]  ;;  %v15930_v59 = vcombine.low %v10107_v58, %v10111_v17  ;;  %v9645_v17 = vld [vmem:[#allocation8 + $0x10] sm:$0xff] }
 0x673   :  { %12896 = vmatprep.subr.bf16.mxu0 %v15891_v54  ;;  %13068 = vmatprep.subr.bf16.mxu1 %v15893_v55  ;;  %v15932_v54 = vcombine.low %v10108_v42, %v10112_v46  ;;  %v15939_v55 = vcombine.high %v10115_v49, %v10119_v50  ;;  %v15941_v56 = vcombine.high %v10116_v51, %v10120_v62  ;;  %v9649_v42 = vld [vmem:[#allocation8 + $0x30] sm:$0xff]  ;;  %v9646_v46 = vld [vmem:[#allocation8 + $0x18] sm:$0xff] }
 0x676   :  { %12897 = vmatpush1.bf16.msra.mxu0 %v15890_v2  ;;  %13069 = vmatpush1.bf16.msra.mxu1 %v15892_v4  ;;  %v10128_v2 = vld [vmem:[#allocation8 + $0xf28] sm:$0xff]  ;;  %v15938_v4 = vcombine.low %v10115_v49, %v10119_v50  ;;  %v9653_v50 = vld [vmem:[#allocation8 + $0x50] sm:$0xff] }
 0x677   :  { %12898 = vmatprep.subr.bf16.mxu0 %v15899_v5  ;;  %13070 = vmatprep.subr.bf16.mxu1 %v15901_v6  ;;  %v15940_v5 = vcombine.low %v10116_v51, %v10120_v62  ;;  %v15947_v6 = vcombine.high %v10123_v57, %v10127_v61  ;;  %v15949_v7 = vcombine.high %v10124_v1, %v10128_v2  ;;  %v9657_v51 = vld [vmem:[#allocation8 + $0x70] sm:$0xff]  ;;  %v9654_v62 = vld [vmem:[#allocation8 + $0x58] sm:$0xff] }
 0x67a   :  { %12899 = vmatpush1.bf16.msra.mxu0 %v15898_v0  ;;  %13071 = vmatpush1.bf16.msra.mxu1 %v15900_v27  ;;  %v10136_v0 = vld [vmem:[#allocation8 + $0xf68] sm:$0xff]  ;;  %v15946_v27 = vcombine.low %v10123_v57, %v10127_v61  ;;  %v9661_v61 = vld [vmem:[#allocation8 + $0x90] sm:$0xff] }
 0x67b   :  { %12900 = vmatprep.subr.bf16.mxu0 %v15907_v19  ;;  %13072 = vmatprep.subr.bf16.mxu1 %v15909_v20  ;;  %v15948_v19 = vcombine.low %v10124_v1, %v10128_v2  ;;  %v15955_v20 = vcombine.high %v10131_v26, %v10135_v9  ;;  %v15957_v21 = vcombine.high %v10132_v16, %v10136_v0  ;;  %v9665_v1 = vld [vmem:[#allocation8 + $0xb0] sm:$0xff]  ;;  %v9662_v2 = vld [vmem:[#allocation8 + $0x98] sm:$0xff] }
 0x67e   :  { %12901 = vmatpush1.bf16.msra.mxu0 %v15906_v22  ;;  %13073 = vmatpush1.bf16.msra.mxu1 %v15908_v23  ;;  %v10144_v22 = vld [vmem:[#allocation8 + $0xfa8] sm:$0xff]  ;;  %v15954_v23 = vcombine.low %v10131_v26, %v10135_v9  ;;  %v9669_v9 = vld [vmem:[#allocation8 + $0xd0] sm:$0xff] }
 0x67f   :  { %12902 = vmatprep.subr.bf16.mxu0 %v15915_v24  ;;  %13074 = vmatprep.subr.bf16.mxu1 %v15917_v10  ;;  %v15956_v24 = vcombine.low %v10132_v16, %v10136_v0  ;;  %v15963_v10 = vcombine.high %v10139_v28, %v10143_v29  ;;  %v15965_v25 = vcombine.high %v10140_v38, %v10144_v22  ;;  %v9673_v16 = vld [vmem:[#allocation8 + $0xf0] sm:$0xff]  ;;  %v9670_v0 = vld [vmem:[#allocation8 + $0xd8] sm:$0xff] }
 0x682   :  { %12903 = vmatpush1.bf16.msra.mxu0 %v15914_v43  ;;  %13075 = vmatpush1.bf16.msra.mxu1 %v15916_v39  ;;  %v10152_v43 = vld [vmem:[#allocation8 + $0xfe8] sm:$0xff]  ;;  %v15962_v39 = vcombine.low %v10139_v28, %v10143_v29  ;;  %v9677_v29 = vld [vmem:[#allocation8 + $0x110] sm:$0xff] }
 0x683   :  { %12904 = vmatprep.subr.bf16.mxu0 %v15923_v40  ;;  %13076 = vmatprep.subr.bf16.mxu1 %v15925_v41  ;;  %v15964_v40 = vcombine.low %v10140_v38, %v10144_v22  ;;  %v15971_v41 = vcombine.high %v10147_v34, %v10151_v35  ;;  %v15973_v58 = vcombine.high %v10148_v36, %v10152_v43  ;;  %v9681_v38 = vld [vmem:[#allocation8 + $0x130] sm:$0xff]  ;;  %v9682_v22 = vld [vmem:[#allocation8 + $0x138] sm:$0xff] }
 0x686   :  { %12905 = vmatpush1.bf16.msra.mxu0 %v15922_v44  ;;  %13077 = vmatpush1.bf16.msra.mxu1 %v15924_v47  ;;  %v9650_v44 = vld [vmem:[#allocation8 + $0x38] sm:$0xff]  ;;  %v15970_v47 = vcombine.low %v10147_v34, %v10151_v35  ;;  %v9685_v34 = vld [vmem:[#allocation8 + $0x150] sm:$0xff] }
 0x687   :  { %12906 = vmatprep.subr.bf16.mxu0 %v15931_v48  ;;  %13078 = vmatprep.subr.bf16.mxu1 %v15933_v53  ;;  %v15972_v48 = vcombine.low %v10148_v36, %v10152_v43  ;;  %v15471_v53 = vcombine.high %v9645_v17, %v9649_v42  ;;  %v15473_v49 = vcombine.high %v9646_v46, %v9650_v44  ;;  %v9689_v35 = vld [vmem:[#allocation8 + $0x170] sm:$0xff]  ;;  %v9686_v36 = vld [vmem:[#allocation8 + $0x158] sm:$0xff] }
 0x688   :  { %v9690_v43 = vld [vmem:[#allocation8 + $0x178] sm:$0xff] }
 0x68a   :  { %12907 = vmatpush1.bf16.msra.mxu0 %v15930_v59  ;;  %13079 = vmatpush1.bf16.msra.mxu1 %v15932_v54  ;;  %v9658_v59 = vld [vmem:[#allocation8 + $0x78] sm:$0xff]  ;;  %v15470_v54 = vcombine.low %v9645_v17, %v9649_v42  ;;  %v9693_v17 = vld [vmem:[#allocation8 + $0x190] sm:$0xff] }
 0x68b   :  { %12908 = vmatprep.subr.bf16.mxu0 %v15939_v55  ;;  %13080 = vmatprep.subr.bf16.mxu1 %v15941_v56  ;;  %v15472_v55 = vcombine.low %v9646_v46, %v9650_v44  ;;  %v15479_v56 = vcombine.high %v9653_v50, %v9657_v51  ;;  %v15481_v57 = vcombine.high %v9654_v62, %v9658_v59  ;;  %v9697_v42 = vld [vmem:[#allocation8 + $0x1b0] sm:$0xff]  ;;  %v9694_v46 = vld [vmem:[#allocation8 + $0x198] sm:$0xff] }
 0x68c   :  { %v9698_v44 = vld [vmem:[#allocation8 + $0x1b8] sm:$0xff] }
 0x68e   :  { %12909 = vmatpush1.bf16.msra.mxu0 %v15938_v4  ;;  %13081 = vmatpush1.bf16.msra.mxu1 %v15940_v5  ;;  %v9666_v4 = vld [vmem:[#allocation8 + $0xb8] sm:$0xff]  ;;  %v15478_v5 = vcombine.low %v9653_v50, %v9657_v51  ;;  %v9701_v50 = vld [vmem:[#allocation8 + $0x1d0] sm:$0xff] }
 0x68f   :  { %12910 = vmatprep.subr.bf16.mxu0 %v15947_v6  ;;  %13082 = vmatprep.subr.bf16.mxu1 %v15949_v7  ;;  %v15480_v6 = vcombine.low %v9654_v62, %v9658_v59  ;;  %v15487_v7 = vcombine.high %v9661_v61, %v9665_v1  ;;  %v15489_v26 = vcombine.high %v9662_v2, %v9666_v4  ;;  %v9705_v51 = vld [vmem:[#allocation8 + $0x1f0] sm:$0xff]  ;;  %v9702_v62 = vld [vmem:[#allocation8 + $0x1d8] sm:$0xff] }
 0x690   :  { %v9706_v59 = vld [vmem:[#allocation8 + $0x1f8] sm:$0xff] }
 0x692   :  { %12911 = vmatpush1.bf16.msra.mxu0 %v15946_v27  ;;  %13083 = vmatpush1.bf16.msra.mxu1 %v15948_v19  ;;  %v9674_v27 = vld [vmem:[#allocation8 + $0xf8] sm:$0xff]  ;;  %v15486_v19 = vcombine.low %v9661_v61, %v9665_v1  ;;  %v9709_v61 = vld [vmem:[#allocation8 + $0x210] sm:$0xff] }
 0x693   :  { %12912 = vmatprep.subr.bf16.mxu0 %v15955_v20  ;;  %13084 = vmatprep.subr.bf16.mxu1 %v15957_v21  ;;  %v15488_v20 = vcombine.low %v9662_v2, %v9666_v4  ;;  %v15495_v21 = vcombine.high %v9669_v9, %v9673_v16  ;;  %v15497_v28 = vcombine.high %v9670_v0, %v9674_v27  ;;  %v9713_v1 = vld [vmem:[#allocation8 + $0x230] sm:$0xff]  ;;  %v9710_v2 = vld [vmem:[#allocation8 + $0x218] sm:$0xff] }
 0x694   :  { %v9714_v4 = vld [vmem:[#allocation8 + $0x238] sm:$0xff] }
 0x696   :  { %12913 = vmatpush1.bf16.msra.mxu0 %v15954_v23  ;;  %13085 = vmatpush1.bf16.msra.mxu1 %v15956_v24  ;;  %v15494_v23 = vcombine.low %v9669_v9, %v9673_v16  ;;  %v15496_v24 = vcombine.low %v9670_v0, %v9674_v27  ;;  %v9717_v9 = vld [vmem:[#allocation8 + $0x250] sm:$0xff]  ;;  %v9718_v0 = vld [vmem:[#allocation8 + $0x258] sm:$0xff] }
 0x697   :  { %12914 = vmatprep.subr.bf16.mxu0 %v15963_v10  ;;  %13086 = vmatprep.subr.bf16.mxu1 %v15965_v25  ;;  %v15503_v10 = vcombine.high %v9677_v29, %v9681_v38  ;;  %v9721_v16 = vld [vmem:[#allocation8 + $0x270] sm:$0xff]  ;;  %v9722_v27 = vld [vmem:[#allocation8 + $0x278] sm:$0xff] }
 0x69a   :  { %12915 = vmatpush1.bf16.msra.mxu0 %v15962_v39  ;;  %13087 = vmatpush1.bf16.msra.mxu1 %v15964_v40  ;;  %v15502_v39 = vcombine.low %v9677_v29, %v9681_v38  ;;  %v9725_v29 = vld [vmem:[#allocation8 + $0x290] sm:$0xff] }
 0x69b   :  { %12916 = vmatprep.subr.bf16.mxu0 %v15971_v41  ;;  %13088 = vmatprep.subr.bf16.mxu1 %v15973_v58  ;;  %v15511_v41 = vcombine.high %v9685_v34, %v9689_v35  ;;  %v15513_v58 = vcombine.high %v9686_v36, %v9690_v43  ;;  %v9729_v38 = vld [vmem:[#allocation8 + $0x2b0] sm:$0xff] }
 0x69e   :  { %12917 = vmatpush1.bf16.msra.mxu0 %v15970_v47  ;;  %13089 = vmatpush1.bf16.msra.mxu1 %v15972_v48  ;;  %v15510_v47 = vcombine.low %v9685_v34, %v9689_v35  ;;  %v15512_v48 = vcombine.low %v9686_v36, %v9690_v43  ;;  %v9733_v34 = vld [vmem:[#allocation8 + $0x2d0] sm:$0xff]  ;;  %v9734_v36 = vld [vmem:[#allocation8 + $0x2d8] sm:$0xff] }
 0x69f   :  { %13101 = vmatprep.subr.bf16.mxu0 %v15471_v53  ;;  %13273 = vmatprep.subr.bf16.mxu1 %v15473_v49  ;;  %v15519_v53 = vcombine.high %v9693_v17, %v9697_v42  ;;  %v15521_v49 = vcombine.high %v9694_v46, %v9698_v44  ;;  %v9737_v35 = vld [vmem:[#allocation8 + $0x2f0] sm:$0xff]  ;;  %v9738_v43 = vld [vmem:[#allocation8 + $0x2f8] sm:$0xff] }
 0x6a1   :  { %12919 = vmatmul.mubr.bf16.vlgmr.msra.gmra.mrb[8].mxu0 %v16948_v37  ;;  %13091 = vmatmul.mubr.bf16.vlgmr.msra.gmra.mrb[8].mxu1 %v16948_v37 }
 0x6a2   :  { %13102 = vmatpush1.bf16.msra.mxu0 %v15470_v54  ;;  %13133 = vmatprep.mubr.bf16.mxu0 %v16884_v12  ;;  %v15518_v54 = vcombine.low %v9693_v17, %v9697_v42  ;;  %v9741_v17 = vld [vmem:[#allocation8 + $0x310] sm:$0xff] }
 0x6a3   :  { %13274 = vmatpush1.bf16.msra.mxu1 %v15472_v55  ;;  %13305 = vmatprep.mubr.bf16.mxu1 %v16884_v12  ;;  %v9678_v12 = vld [vmem:[#allocation8 + $0x118] sm:$0xff]  ;;  %v15520_v55 = vcombine.low %v9694_v46, %v9698_v44  ;;  %v9745_v42 = vld [vmem:[#allocation8 + $0x330] sm:$0xff] }
 0x6a4   :  { %13103 = vmatprep.subr.bf16.mxu0 %v15479_v56  ;;  %13275 = vmatprep.subr.bf16.mxu1 %v15481_v57  ;;  %v15505_v25 = vcombine.high %v9678_v12, %v9682_v22  ;;  %v15504_v40 = vcombine.low %v9678_v12, %v9682_v22  ;;  %v15527_v56 = vcombine.high %v9701_v50, %v9705_v51  ;;  %v9726_v12 = vld [vmem:[#allocation8 + $0x298] sm:$0xff] }
 0x6a5   :  { %v15529_v57 = vcombine.high %v9702_v62, %v9706_v59  ;;  %v9730_v22 = vld [vmem:[#allocation8 + $0x2b8] sm:$0xff] }
 0x6a6   :  { %13104 = vmatpush1.bf16.msra.mxu0 %v15478_v5  ;;  %v15526_v5 = vcombine.low %v9701_v50, %v9705_v51  ;;  %v9742_v46 = vld [vmem:[#allocation8 + $0x318] sm:$0xff]  ;;  %v9749_v50 = vld [vmem:[#allocation8 + $0x350] sm:$0xff] }
 0x6a7   :  { %13276 = vmatpush1.bf16.msra.mxu1 %v15480_v6  ;;  %13105 = vmatprep.subr.bf16.mxu0 %v15487_v7  ;;  %v15528_v6 = vcombine.low %v9702_v62, %v9706_v59  ;;  %v15535_v7 = vcombine.high %v9709_v61, %v9713_v1  ;;  %v9746_v44 = vld [vmem:[#allocation8 + $0x338] sm:$0xff]  ;;  %v9753_v51 = vld [vmem:[#allocation8 + $0x370] sm:$0xff] }
 0x6a8   :  { %13277 = vmatprep.subr.bf16.mxu1 %v15489_v26  ;;  %v15537_v26 = vcombine.high %v9710_v2, %v9714_v4  ;;  %v9750_v62 = vld [vmem:[#allocation8 + $0x358] sm:$0xff] }
 0x6a9   :  { %v9754_v59 = vld [vmem:[#allocation8 + $0x378] sm:$0xff] }
 0x6aa   :  { %13106 = vmatpush1.bf16.msra.mxu0 %v15486_v19  ;;  %v15534_v19 = vcombine.low %v9709_v61, %v9713_v1  ;;  %v9757_v61 = vld [vmem:[#allocation8 + $0x390] sm:$0xff] }
 0x6ab   :  { %13278 = vmatpush1.bf16.msra.mxu1 %v15488_v20  ;;  %13107 = vmatprep.subr.bf16.mxu0 %v15495_v21  ;;  %v15536_v20 = vcombine.low %v9710_v2, %v9714_v4  ;;  %v15543_v21 = vcombine.high %v9717_v9, %v9721_v16  ;;  %v9761_v1 = vld [vmem:[#allocation8 + $0x3b0] sm:$0xff]  ;;  %v9758_v2 = vld [vmem:[#allocation8 + $0x398] sm:$0xff] }
 0x6ac   :  { %13279 = vmatprep.subr.bf16.mxu1 %v15497_v28  ;;  %v15545_v28 = vcombine.high %v9718_v0, %v9722_v27  ;;  %v9762_v4 = vld [vmem:[#allocation8 + $0x3b8] sm:$0xff] }
 0x6ae   :  { %13108 = vmatpush1.bf16.msra.mxu0 %v15494_v23  ;;  %v15542_v23 = vcombine.low %v9717_v9, %v9721_v16  ;;  %v9765_v9 = vld [vmem:[#allocation8 + $0x3d0] sm:$0xff] }
 0x6af   :  { %13280 = vmatpush1.bf16.msra.mxu1 %v15496_v24  ;;  %13109 = vmatprep.subr.bf16.mxu0 %v15503_v10  ;;  %v15544_v24 = vcombine.low %v9718_v0, %v9722_v27  ;;  %v15551_v10 = vcombine.high %v9725_v29, %v9729_v38  ;;  %v9769_v16 = vld [vmem:[#allocation8 + $0x3f0] sm:$0xff]  ;;  %v9766_v0 = vld [vmem:[#allocation8 + $0x3d8] sm:$0xff] }
 0x6b0   :  { %13281 = vmatprep.subr.bf16.mxu1 %v15505_v25  ;;  %v15553_v25 = vcombine.high %v9726_v12, %v9730_v22  ;;  %v9770_v27 = vld [vmem:[#allocation8 + $0x3f8] sm:$0xff] }
 0x6b2   :  { %13110 = vmatpush1.bf16.msra.mxu0 %v15502_v39  ;;  %v15550_v39 = vcombine.low %v9725_v29, %v9729_v38  ;;  %v9773_v29 = vld [vmem:[#allocation8 + $0x410] sm:$0xff] }
 0x6b3   :  { %13282 = vmatpush1.bf16.msra.mxu1 %v15504_v40  ;;  %13111 = vmatprep.subr.bf16.mxu0 %v15511_v41  ;;  %v15552_v40 = vcombine.low %v9726_v12, %v9730_v22  ;;  %v15559_v41 = vcombine.high %v9733_v34, %v9737_v35  ;;  %v9777_v38 = vld [vmem:[#allocation8 + $0x430] sm:$0xff]  ;;  %v9774_v12 = vld [vmem:[#allocation8 + $0x418] sm:$0xff] }
 0x6b4   :  { %13283 = vmatprep.subr.bf16.mxu1 %v15513_v58  ;;  %v15561_v58 = vcombine.high %v9734_v36, %v9738_v43  ;;  %v9778_v22 = vld [vmem:[#allocation8 + $0x438] sm:$0xff] }
 0x6b6   :  { %13112 = vmatpush1.bf16.msra.mxu0 %v15510_v47  ;;  %v15558_v47 = vcombine.low %v9733_v34, %v9737_v35  ;;  %v9781_v34 = vld [vmem:[#allocation8 + $0x450] sm:$0xff] }
 0x6b7   :  { %13284 = vmatpush1.bf16.msra.mxu1 %v15512_v48  ;;  %13113 = vmatprep.subr.bf16.mxu0 %v15519_v53  ;;  %v15560_v48 = vcombine.low %v9734_v36, %v9738_v43  ;;  %v15567_v53 = vcombine.high %v9741_v17, %v9745_v42  ;;  %v9785_v35 = vld [vmem:[#allocation8 + $0x470] sm:$0xff]  ;;  %v15598_v36 = vcombine.low %v9773_v29, %v9777_v38  ;;  %v9782_v43 = vld [vmem:[#allocation8 + $0x458] sm:$0xff] }
 0x6b8   :  { %13285 = vmatprep.subr.bf16.mxu1 %v15521_v49  ;;  %v15569_v49 = vcombine.high %v9742_v46, %v9746_v44 }
 0x6ba   :  { %13114 = vmatpush1.bf16.msra.mxu0 %v15518_v54  ;;  %v15566_v54 = vcombine.low %v9741_v17, %v9745_v42  ;;  %v9793_v17 = vld [vmem:[#allocation8 + $0x4b0] sm:$0xff] }
 0x6bb   :  { %13286 = vmatpush1.bf16.msra.mxu1 %v15520_v55  ;;  %13115 = vmatprep.subr.bf16.mxu0 %v15527_v56  ;;  %v15568_v55 = vcombine.low %v9742_v46, %v9746_v44  ;;  %v15575_v56 = vcombine.high %v9749_v50, %v9753_v51  ;;  %v9790_v46 = vld [vmem:[#allocation8 + $0x498] sm:$0xff] }
 0x6bc   :  { %13287 = vmatprep.subr.bf16.mxu1 %v15529_v57  ;;  %v15577_v57 = vcombine.high %v9750_v62, %v9754_v59  ;;  %v9794_v44 = vld [vmem:[#allocation8 + $0x4b8] sm:$0xff] }
 0x6be   :  { %13116 = vmatpush1.bf16.msra.mxu0 %v15526_v5  ;;  %v15574_v5 = vcombine.low %v9749_v50, %v9753_v51  ;;  %v9797_v50 = vld [vmem:[#allocation8 + $0x4d0] sm:$0xff] }
 0x6bf   :  { %13288 = vmatpush1.bf16.msra.mxu1 %v15528_v6  ;;  %13117 = vmatprep.subr.bf16.mxu0 %v15535_v7  ;;  %v15576_v6 = vcombine.low %v9750_v62, %v9754_v59  ;;  %v15583_v7 = vcombine.high %v9757_v61, %v9761_v1  ;;  %v9801_v51 = vld [vmem:[#allocation8 + $0x4f0] sm:$0xff]  ;;  %v9798_v62 = vld [vmem:[#allocation8 + $0x4d8] sm:$0xff] }
 0x6c0   :  { %13289 = vmatprep.subr.bf16.mxu1 %v15537_v26  ;;  %v15585_v26 = vcombine.high %v9758_v2, %v9762_v4  ;;  %v9802_v59 = vld [vmem:[#allocation8 + $0x4f8] sm:$0xff] }
 0x6c2   :  { %13118 = vmatpush1.bf16.msra.mxu0 %v15534_v19  ;;  %v15582_v19 = vcombine.low %v9757_v61, %v9761_v1  ;;  %v9809_v61 = vld [vmem:[#allocation8 + $0x530] sm:$0xff]  ;;  %v9806_v1 = vld [vmem:[#allocation8 + $0x518] sm:$0xff] }
 0x6c3   :  { %13290 = vmatpush1.bf16.msra.mxu1 %v15536_v20  ;;  %13119 = vmatprep.subr.bf16.mxu0 %v15543_v21  ;;  %v15584_v20 = vcombine.low %v9758_v2, %v9762_v4  ;;  %v15591_v21 = vcombine.high %v9765_v9, %v9769_v16  ;;  %v9810_v2 = vld [vmem:[#allocation8 + $0x538] sm:$0xff]  ;;  %v15624_v4 = vcombine.low %v9798_v62, %v9802_v59 }
 0x6c4   :  { %13291 = vmatprep.subr.bf16.mxu1 %v15545_v28  ;;  %v15593_v28 = vcombine.high %v9766_v0, %v9770_v27 }
 0x6c6   :  { %13120 = vmatpush1.bf16.msra.mxu0 %v15542_v23  ;;  %v15590_v23 = vcombine.low %v9765_v9, %v9769_v16  ;;  %v9814_v9 = vld [vmem:[#allocation8 + $0x558] sm:$0xff] }
 0x6c7   :  { %13292 = vmatpush1.bf16.msra.mxu1 %v15544_v24  ;;  %13121 = vmatprep.subr.bf16.mxu0 %v15551_v10  ;;  %v15592_v24 = vcombine.low %v9766_v0, %v9770_v27  ;;  %v15599_v10 = vcombine.high %v9773_v29, %v9777_v38  ;;  %v9818_v16 = vld [vmem:[#allocation8 + $0x578] sm:$0xff]  ;;  %v15632_v27 = vcombine.low %v9806_v1, %v9810_v2 }
 0x6c8   :  { %13293 = vmatprep.subr.bf16.mxu1 %v15553_v25  ;;  %v15601_v25 = vcombine.high %v9774_v12, %v9778_v22  ;;  %v9822_v29 = vld [vmem:[#allocation8 + $0x598] sm:$0xff] }
 0x6c9   :  { %v9826_v38 = vld [vmem:[#allocation8 + $0x5b8] sm:$0xff] }
 0x6ca   :  { %13122 = vmatpush1.bf16.msra.mxu0 %v15550_v39  ;;  %v9786_v39 = vld [vmem:[#allocation8 + $0x478] sm:$0xff] }
 0x6cb   :  { %13294 = vmatpush1.bf16.msra.mxu1 %v15552_v40  ;;  %13123 = vmatprep.subr.bf16.mxu0 %v15559_v41  ;;  %v15600_v40 = vcombine.low %v9774_v12, %v9778_v22  ;;  %v15607_v41 = vcombine.high %v9781_v34, %v9785_v35  ;;  %v15609_v42 = vcombine.high %v9782_v43, %v9786_v39 }
 0x6cc   :  { %13295 = vmatprep.subr.bf16.mxu1 %v15561_v58  ;;  %v9789_v58 = vld [vmem:[#allocation8 + $0x490] sm:$0xff]  ;;  %v15640_v22 = vcombine.low %v9814_v9, %v9818_v16 }
 0x6ce   :  { %13124 = vmatpush1.bf16.msra.mxu0 %v15558_v47  ;;  %v15606_v47 = vcombine.low %v9781_v34, %v9785_v35  ;;  %v9830_v34 = vld [vmem:[#allocation8 + $0x5d8] sm:$0xff] }
 0x6cf   :  { %13296 = vmatpush1.bf16.msra.mxu1 %v15560_v48  ;;  %13125 = vmatprep.subr.bf16.mxu0 %v15567_v53  ;;  %v15608_v48 = vcombine.low %v9782_v43, %v9786_v39  ;;  %v15615_v53 = vcombine.high %v9789_v58, %v9793_v17  ;;  %v9834_v35 = vld [vmem:[#allocation8 + $0x5f8] sm:$0xff]  ;;  %v15648_v43 = vcombine.low %v9822_v29, %v9826_v38 }
 0x6d0   :  { %13297 = vmatprep.subr.bf16.mxu1 %v15569_v49  ;;  %v15617_v49 = vcombine.high %v9790_v46, %v9794_v44 }
 0x6d2   :  { %13126 = vmatpush1.bf16.msra.mxu0 %v15566_v54  ;;  %v15614_v54 = vcombine.low %v9789_v58, %v9793_v17  ;;  %v9841_v58 = vld [vmem:[#allocation8 + $0x630] sm:$0xff]  ;;  %v9838_v17 = vld [vmem:[#allocation8 + $0x618] sm:$0xff] }
 0x6d3   :  { %13298 = vmatpush1.bf16.msra.mxu1 %v15568_v55  ;;  %13127 = vmatprep.subr.bf16.mxu0 %v15575_v56  ;;  %v15623_v55 = vcombine.high %v9797_v50, %v9801_v51  ;;  %v15625_v56 = vcombine.high %v9798_v62, %v9802_v59 }
 0x6d4   :  { %13299 = vmatprep.subr.bf16.mxu1 %v15577_v57  ;;  %v9805_v57 = vld [vmem:[#allocation8 + $0x510] sm:$0xff] }
 0x6d5   :  { %v15630_v0 = vcombine.low %v9805_v57, %v9809_v61 }
 0x6d6   :  { %13128 = vmatpush1.bf16.msra.mxu0 %v15574_v5  ;;  %v15631_v5 = vcombine.high %v9805_v57, %v9809_v61  ;;  %v9854_v57 = vld [vmem:[#allocation8 + $0x698] sm:$0xff] }
 0x6d7   :  { %13300 = vmatpush1.bf16.msra.mxu1 %v15576_v6  ;;  %13129 = vmatprep.subr.bf16.mxu0 %v15583_v7  ;;  %v15633_v6 = vcombine.high %v9806_v1, %v9810_v2  ;;  %v9813_v7 = vld [vmem:[#allocation8 + $0x550] sm:$0xff]  ;;  %v9858_v61 = vld [vmem:[#allocation8 + $0x6b8] sm:$0xff] }
 0x6d8   :  { %13301 = vmatprep.subr.bf16.mxu1 %v15585_v26  ;;  %v9817_v26 = vld [vmem:[#allocation8 + $0x570] sm:$0xff] }
 0x6d9   :  { %v15638_v12 = vcombine.low %v9813_v7, %v9817_v26 }
 0x6da   :  { %13130 = vmatpush1.bf16.msra.mxu0 %v15582_v19  ;;  %v15639_v19 = vcombine.high %v9813_v7, %v9817_v26  ;;  %v9862_v7 = vld [vmem:[#allocation8 + $0x6d8] sm:$0xff] }
 0x6db   :  { %13302 = vmatpush1.bf16.msra.mxu1 %v15584_v20  ;;  %13131 = vmatprep.subr.bf16.mxu0 %v15591_v21  ;;  %v15641_v20 = vcombine.high %v9814_v9, %v9818_v16  ;;  %v9821_v21 = vld [vmem:[#allocation8 + $0x590] sm:$0xff]  ;;  %v9866_v26 = vld [vmem:[#allocation8 + $0x6f8] sm:$0xff]  ;;  %v15680_v16 = vcombine.low %v9854_v57, %v9858_v61 }
 0x6dc   :  { %13303 = vmatprep.subr.bf16.mxu1 %v15593_v28  ;;  %v9825_v28 = vld [vmem:[#allocation8 + $0x5b0] sm:$0xff] }
 0x6de   :  { %13132 = vmatpush1.bf16.msra.mxu0 %v15590_v23  ;;  %v15647_v23 = vcombine.high %v9821_v21, %v9825_v28 }
 0x6df   :  { %13304 = vmatpush1.bf16.msra.mxu1 %v15592_v24  ;;  %13144 = vmatprep.subr.bf16.mxu0 %v15599_v10  ;;  %v15649_v24 = vcombine.high %v9822_v29, %v9826_v38  ;;  %v9829_v10 = vld [vmem:[#allocation8 + $0x5d0] sm:$0xff]  ;;  %v15688_v38 = vcombine.low %v9862_v7, %v9866_v26 }
 0x6e0   :  { %13316 = vmatprep.subr.bf16.mxu1 %v15601_v25  ;;  %v9833_v25 = vld [vmem:[#allocation8 + $0x5f0] sm:$0xff] }
 0x6e1   :  { %13134 = vmatmul.mubr.bf16.vlgmr.msra.gmra.mrb[12].mxu0 %v16880_v8  ;;  %v15655_v39 = vcombine.high %v9829_v10, %v9833_v25 }
 0x6e2   :  { %13306 = vmatmul.mubr.bf16.vlgmr.msra.gmra.mrb[12].mxu1 %v16880_v8  ;;  %13145 = vmatpush1.bf16.msra.mxu0 %v15598_v36  ;;  %v15616_v8 = vcombine.low %v9790_v46, %v9794_v44  ;;  %v15646_v36 = vcombine.low %v9821_v21, %v9825_v28  ;;  %v15654_v46 = vcombine.low %v9829_v10, %v9833_v25  ;;  %v9870_v21 = vld [vmem:[#allocation8 + $0x718] sm:$0xff] }
 0x6e3   :  { %13176 = vmatprep.mubr.bf16.mxu0 %v16886_v18  ;;  %13317 = vmatpush1.bf16.msra.mxu1 %v15600_v40  ;;  %v15657_v40 = vcombine.high %v9830_v34, %v9834_v35  ;;  %v15656_v44 = vcombine.low %v9830_v34, %v9834_v35  ;;  %v9874_v28 = vld [vmem:[#allocation8 + $0x738] sm:$0xff] }
 0x6e4   :  { %13348 = vmatprep.mubr.bf16.mxu1 %v16886_v18  ;;  %13146 = vmatprep.subr.bf16.mxu0 %v15607_v41  ;;  %v15622_v18 = vcombine.low %v9797_v50, %v9801_v51  ;;  %v9837_v41 = vld [vmem:[#allocation8 + $0x610] sm:$0xff]  ;;  %v9846_v50 = vld [vmem:[#allocation8 + $0x658] sm:$0xff]  ;;  %v15696_v35 = vcombine.low %v9870_v21, %v9874_v28 }
 0x6e5   :  { %13318 = vmatprep.subr.bf16.mxu1 %v15609_v42  ;;  %v9842_v42 = vld [vmem:[#allocation8 + $0x638] sm:$0xff]  ;;  %v15662_v62 = vcombine.low %v9837_v41, %v9841_v58 }
 0x6e6   :  { %13147 = vmatpush1.bf16.msra.mxu0 %v15606_v47  ;;  %v15663_v47 = vcombine.high %v9837_v41, %v9841_v58  ;;  %v9850_v51 = vld [vmem:[#allocation8 + $0x678] sm:$0xff]  ;;  %v15664_v59 = vcombine.low %v9838_v17, %v9842_v42 }
 0x6e7   :  { %13319 = vmatpush1.bf16.msra.mxu1 %v15608_v48  ;;  %13148 = vmatprep.subr.bf16.mxu0 %v15615_v53  ;;  %v15665_v48 = vcombine.high %v9838_v17, %v9842_v42  ;;  %v9845_v53 = vld [vmem:[#allocation8 + $0x650] sm:$0xff]  ;;  %v15672_v2 = vcombine.low %v9846_v50, %v9850_v51  ;;  %v9878_v10 = vld [vmem:[#allocation8 + $0x758] sm:$0xff] }
 0x6e8   :  { %13320 = vmatprep.subr.bf16.mxu1 %v15617_v49  ;;  %v9849_v49 = vld [vmem:[#allocation8 + $0x670] sm:$0xff]  ;;  %v9882_v25 = vld [vmem:[#allocation8 + $0x778] sm:$0xff] }
 0x6e9   :  { %v15670_v1 = vcombine.low %v9845_v53, %v9849_v49  ;;  %v9886_v41 = vld [vmem:[#allocation8 + $0x798] sm:$0xff]  ;;  %v15704_v42 = vcombine.low %v9878_v10, %v9882_v25 }
 0x6ea   :  { %13149 = vmatpush1.bf16.msra.mxu0 %v15614_v54  ;;  %v15671_v54 = vcombine.high %v9845_v53, %v9849_v49  ;;  %v9890_v58 = vld [vmem:[#allocation8 + $0x7b8] sm:$0xff] }
 0x6eb   :  { %13321 = vmatpush1.bf16.msra.mxu1 %v15616_v8  ;;  %13150 = vmatprep.subr.bf16.mxu0 %v15623_v55  ;;  %v15673_v8 = vcombine.high %v9846_v50, %v9850_v51  ;;  %v9853_v55 = vld [vmem:[#allocation8 + $0x690] sm:$0xff]  ;;  %v9894_v53 = vld [vmem:[#allocation8 + $0x7d8] sm:$0xff]  ;;  %v15712_v51 = vcombine.low %v9886_v41, %v9890_v58 }
 0x6ec   :  { %13322 = vmatprep.subr.bf16.mxu1 %v15625_v56  ;;  %v9857_v56 = vld [vmem:[#allocation8 + $0x6b0] sm:$0xff]  ;;  %v9898_v49 = vld [vmem:[#allocation8 + $0x7f8] sm:$0xff] }
 0x6ed   :  { %v15678_v9 = vcombine.low %v9853_v55, %v9857_v56 }
 0x6ee   :  { %13151 = vmatpush1.bf16.msra.mxu0 %v15622_v18  ;;  %v15679_v18 = vcombine.high %v9853_v55, %v9857_v56  ;;  %v9902_v55 = vld [vmem:[#allocation8 + $0x818] sm:$0xff] }
 0x6ef   :  { %13323 = vmatpush1.bf16.msra.mxu1 %v15624_v4  ;;  %13152 = vmatprep.subr.bf16.mxu0 %v15631_v5  ;;  %v15681_v4 = vcombine.high %v9854_v57, %v9858_v61  ;;  %v9861_v5 = vld [vmem:[#allocation8 + $0x6d0] sm:$0xff]  ;;  %v9906_v56 = vld [vmem:[#allocation8 + $0x838] sm:$0xff]  ;;  %v15720_v61 = vcombine.low %v9894_v53, %v9898_v49 }
 0x6f0   :  { %13324 = vmatprep.subr.bf16.mxu1 %v15633_v6  ;;  %v9865_v6 = vld [vmem:[#allocation8 + $0x6f0] sm:$0xff] }
 0x6f1   :  { %v15686_v29 = vcombine.low %v9861_v5, %v9865_v6 }
 0x6f2   :  { %13153 = vmatpush1.bf16.msra.mxu0 %v15630_v0  ;;  %v15687_v0 = vcombine.high %v9861_v5, %v9865_v6  ;;  %v9910_v6 = vld [vmem:[#allocation8 + $0x858] sm:$0xff] }
 0x6f3   :  { %13325 = vmatpush1.bf16.msra.mxu1 %v15632_v27  ;;  %13154 = vmatprep.subr.bf16.mxu0 %v15639_v19  ;;  %v15689_v27 = vcombine.high %v9862_v7, %v9866_v26  ;;  %v9869_v19 = vld [vmem:[#allocation8 + $0x710] sm:$0xff]  ;;  %v9914_v7 = vld [vmem:[#allocation8 + $0x878] sm:$0xff]  ;;  %v15728_v26 = vcombine.low %v9902_v55, %v9906_v56 }
 0x6f4   :  { %13326 = vmatprep.subr.bf16.mxu1 %v15641_v20  ;;  %v9873_v20 = vld [vmem:[#allocation8 + $0x730] sm:$0xff] }
 0x6f5   :  { %v15694_v34 = vcombine.low %v9869_v19, %v9873_v20 }
 0x6f6   :  { %13155 = vmatpush1.bf16.msra.mxu0 %v15638_v12  ;;  %v15695_v12 = vcombine.high %v9869_v19, %v9873_v20  ;;  %v9918_v19 = vld [vmem:[#allocation8 + $0x898] sm:$0xff] }
 0x6f7   :  { %13327 = vmatpush1.bf16.msra.mxu1 %v15640_v22  ;;  %13156 = vmatprep.subr.bf16.mxu0 %v15647_v23  ;;  %v15697_v22 = vcombine.high %v9870_v21, %v9874_v28  ;;  %v9877_v23 = vld [vmem:[#allocation8 + $0x750] sm:$0xff]  ;;  %v9922_v20 = vld [vmem:[#allocation8 + $0x8b8] sm:$0xff]  ;;  %v15736_v28 = vcombine.low %v9910_v6, %v9914_v7 }
 0x6f8   :  { %13328 = vmatprep.subr.bf16.mxu1 %v15649_v24  ;;  %v9881_v24 = vld [vmem:[#allocation8 + $0x770] sm:$0xff] }
 0x6f9   :  { %v15702_v17 = vcombine.low %v9877_v23, %v9881_v24 }
 0x6fa   :  { %13157 = vmatpush1.bf16.msra.mxu0 %v15646_v36  ;;  %v15703_v36 = vcombine.high %v9877_v23, %v9881_v24  ;;  %v9926_v23 = vld [vmem:[#allocation8 + $0x8d8] sm:$0xff] }
 0x6fb   :  { %13329 = vmatpush1.bf16.msra.mxu1 %v15648_v43  ;;  %13158 = vmatprep.subr.bf16.mxu0 %v15655_v39  ;;  %v15705_v43 = vcombine.high %v9878_v10, %v9882_v25  ;;  %v9885_v39 = vld [vmem:[#allocation8 + $0x790] sm:$0xff]  ;;  %v9930_v24 = vld [vmem:[#allocation8 + $0x8f8] sm:$0xff] }
 0x6fc   :  { %13330 = vmatprep.subr.bf16.mxu1 %v15657_v40  ;;  %v9889_v40 = vld [vmem:[#allocation8 + $0x7b0] sm:$0xff] }
 0x6fd   :  { %v15710_v50 = vcombine.low %v9885_v39, %v9889_v40 }
 0x6fe   :  { %13159 = vmatpush1.bf16.msra.mxu0 %v15654_v46  ;;  %v15711_v46 = vcombine.high %v9885_v39, %v9889_v40  ;;  %v9938_v39 = vld [vmem:[#allocation8 + $0x938] sm:$0xff]  ;;  %v15752_v40 = vcombine.low %v9926_v23, %v9930_v24 }
 0x6ff   :  { %13331 = vmatpush1.bf16.msra.mxu1 %v15656_v44  ;;  %13160 = vmatprep.subr.bf16.mxu0 %v15663_v47  ;;  %v15713_v44 = vcombine.high %v9886_v41, %v9890_v58  ;;  %v9893_v47 = vld [vmem:[#allocation8 + $0x7d0] sm:$0xff] }
 0x700   :  { %13332 = vmatprep.subr.bf16.mxu1 %v15665_v48  ;;  %v9897_v48 = vld [vmem:[#allocation8 + $0x7f0] sm:$0xff] }
 0x701   :  { %v15718_v57 = vcombine.low %v9893_v47, %v9897_v48 }
 0x702   :  { %13161 = vmatpush1.bf16.msra.mxu0 %v15662_v62  ;;  %v15719_v62 = vcombine.high %v9893_v47, %v9897_v48 }
 0x703   :  { %13333 = vmatpush1.bf16.msra.mxu1 %v15664_v59  ;;  %13162 = vmatprep.subr.bf16.mxu0 %v15671_v54  ;;  %v15721_v59 = vcombine.high %v9894_v53, %v9898_v49  ;;  %v9901_v54 = vld [vmem:[#allocation8 + $0x810] sm:$0xff] }
 0x704   :  { %13334 = vmatprep.subr.bf16.mxu1 %v15673_v8  ;;  %v9905_v8 = vld [vmem:[#allocation8 + $0x830] sm:$0xff] }
 0x705   :  { %v15726_v5 = vcombine.low %v9901_v54, %v9905_v8 }
 0x706   :  { %13163 = vmatpush1.bf16.msra.mxu0 %v15670_v1  ;;  %v15727_v1 = vcombine.high %v9901_v54, %v9905_v8 }
 0x707   :  { %13335 = vmatpush1.bf16.msra.mxu1 %v15672_v2  ;;  %13164 = vmatprep.subr.bf16.mxu0 %v15679_v18  ;;  %v15729_v2 = vcombine.high %v9902_v55, %v9906_v56  ;;  %v9909_v18 = vld [vmem:[#allocation8 + $0x850] sm:$0xff] }
 0x708   :  { %13336 = vmatprep.subr.bf16.mxu1 %v15681_v4  ;;  %v9913_v4 = vld [vmem:[#allocation8 + $0x870] sm:$0xff] }
 0x709   :  { %v15734_v21 = vcombine.low %v9909_v18, %v9913_v4 }
 0x70a   :  { %13165 = vmatpush1.bf16.msra.mxu0 %v15678_v9  ;;  %v15735_v9 = vcombine.high %v9909_v18, %v9913_v4 }
 0x70b   :  { %13337 = vmatpush1.bf16.msra.mxu1 %v15680_v16  ;;  %13166 = vmatprep.subr.bf16.mxu0 %v15687_v0  ;;  %v9917_v16 = vld [vmem:[#allocation8 + $0x890] sm:$0xff] }
 0x70c   :  { %13338 = vmatprep.subr.bf16.mxu1 %v15689_v27  ;;  %v9921_v0 = vld [vmem:[#allocation8 + $0x8b0] sm:$0xff]  ;;  %v15737_v27 = vcombine.high %v9910_v6, %v9914_v7 }
 0x70d   :  { %v15742_v10 = vcombine.low %v9917_v16, %v9921_v0  ;;  %v9965_v7 = vld [vmem:[#allocation8 + $0xa10] sm:$0xff] }
 0x70e   :  { %13167 = vmatpush1.bf16.msra.mxu0 %v15686_v29  ;;  %v15743_v29 = vcombine.high %v9917_v16, %v9921_v0  ;;  %v9970_v16 = vld [vmem:[#allocation8 + $0xa38] sm:$0xff] }
 0x70f   :  { %13339 = vmatpush1.bf16.msra.mxu1 %v15688_v38  ;;  %13168 = vmatprep.subr.bf16.mxu0 %v15695_v12  ;;  %v15745_v38 = vcombine.high %v9918_v19, %v9922_v20  ;;  %v9925_v12 = vld [vmem:[#allocation8 + $0x8d0] sm:$0xff] }
 0x710   :  { %13340 = vmatprep.subr.bf16.mxu1 %v15697_v22  ;;  %v9929_v22 = vld [vmem:[#allocation8 + $0x8f0] sm:$0xff] }
 0x711   :  { %v15751_v25 = vcombine.high %v9925_v12, %v9929_v22 }
 0x712   :  { %13169 = vmatpush1.bf16.msra.mxu0 %v15694_v34  ;;  %v15753_v34 = vcombine.high %v9926_v23, %v9930_v24 }
 0x713   :  { %13341 = vmatpush1.bf16.msra.mxu1 %v15696_v35  ;;  %13170 = vmatprep.subr.bf16.mxu0 %v15703_v36  ;;  %v9933_v35 = vld [vmem:[#allocation8 + $0x910] sm:$0xff] }
 0x714   :  { %13342 = vmatprep.subr.bf16.mxu1 %v15705_v43  ;;  %v9937_v36 = vld [vmem:[#allocation8 + $0x930] sm:$0xff]  ;;  %v9934_v43 = vld [vmem:[#allocation8 + $0x918] sm:$0xff] }
 0x715   :  { %v15759_v41 = vcombine.high %v9933_v35, %v9937_v36  ;;  %v15761_v58 = vcombine.high %v9934_v43, %v9938_v39  ;;  %v15758_v47 = vcombine.low %v9933_v35, %v9937_v36  ;;  %v15760_v48 = vcombine.low %v9934_v43, %v9938_v39 }
 0x716   :  { %13171 = vmatpush1.bf16.msra.mxu0 %v15702_v17  ;;  %v9941_v17 = vld [vmem:[#allocation8 + $0x950] sm:$0xff] }
 0x717   :  { %13343 = vmatpush1.bf16.msra.mxu1 %v15704_v42  ;;  %13172 = vmatprep.subr.bf16.mxu0 %v15711_v46  ;;  %v9945_v42 = vld [vmem:[#allocation8 + $0x970] sm:$0xff]  ;;  %v9942_v46 = vld [vmem:[#allocation8 + $0x958] sm:$0xff] }
 0x718   :  { %13344 = vmatprep.subr.bf16.mxu1 %v15713_v44  ;;  %v9946_v44 = vld [vmem:[#allocation8 + $0x978] sm:$0xff]  ;;  %v15767_v53 = vcombine.high %v9941_v17, %v9945_v42  ;;  %v15766_v54 = vcombine.low %v9941_v17, %v9945_v42 }
 0x719   :  { %v15769_v49 = vcombine.high %v9942_v46, %v9946_v44  ;;  %v15768_v8 = vcombine.low %v9942_v46, %v9946_v44 }
 0x71a   :  { %13173 = vmatpush1.bf16.msra.mxu0 %v15710_v50  ;;  %v9949_v50 = vld [vmem:[#allocation8 + $0x990] sm:$0xff] }
 0x71b   :  { %13345 = vmatpush1.bf16.msra.mxu1 %v15712_v51  ;;  %13174 = vmatprep.subr.bf16.mxu0 %v15719_v62  ;;  %v9953_v51 = vld [vmem:[#allocation8 + $0x9b0] sm:$0xff]  ;;  %v9950_v62 = vld [vmem:[#allocation8 + $0x998] sm:$0xff] }
 0x71c   :  { %13346 = vmatprep.subr.bf16.mxu1 %v15721_v59  ;;  %v9954_v59 = vld [vmem:[#allocation8 + $0x9b8] sm:$0xff]  ;;  %v15775_v55 = vcombine.high %v9949_v50, %v9953_v51  ;;  %v15774_v18 = vcombine.low %v9949_v50, %v9953_v51 }
 0x71d   :  { %v15777_v56 = vcombine.high %v9950_v62, %v9954_v59  ;;  %v15776_v4 = vcombine.low %v9950_v62, %v9954_v59 }
 0x71e   :  { %13175 = vmatpush1.bf16.msra.mxu0 %v15718_v57  ;;  %v9957_v57 = vld [vmem:[#allocation8 + $0x9d0] sm:$0xff] }
 0x71f   :  { %13347 = vmatpush1.bf16.msra.mxu1 %v15720_v61  ;;  %13187 = vmatprep.subr.bf16.mxu0 %v15727_v1  ;;  %v9961_v61 = vld [vmem:[#allocation8 + $0x9f0] sm:$0xff]  ;;  %v9958_v1 = vld [vmem:[#allocation8 + $0x9d8] sm:$0xff] }
 0x720   :  { %13359 = vmatprep.subr.bf16.mxu1 %v15729_v2  ;;  %v9962_v2 = vld [vmem:[#allocation8 + $0x9f8] sm:$0xff]  ;;  %v15782_v0 = vcombine.low %v9957_v57, %v9961_v61 }
 0x721   :  { %13177 = vmatmul.mubr.bf16.vlgmr.msra.gmra.mrb[12].mxu0 %v16882_v11  ;;  %v15785_v6 = vcombine.high %v9958_v1, %v9962_v2 }
 0x722   :  { %13349 = vmatmul.mubr.bf16.vlgmr.msra.gmra.mrb[12].mxu1 %v16882_v11  ;;  %13188 = vmatpush1.bf16.msra.mxu0 %v15726_v5  ;;  %v15744_v11 = vcombine.low %v9918_v19, %v9922_v20  ;;  %v15783_v5 = vcombine.high %v9957_v57, %v9961_v61 }
 0x723   :  { %13219 = vmatprep.mubr.bf16.mxu0 %v16950_v13  ;;  %13360 = vmatpush1.bf16.msra.mxu1 %v15728_v26  ;;  %v9969_v26 = vld [vmem:[#allocation8 + $0xa30] sm:$0xff] }
 0x724   :  { %13391 = vmatprep.mubr.bf16.mxu1 %v16950_v13  ;;  %13189 = vmatprep.subr.bf16.mxu0 %v15735_v9  ;;  %v15750_v13 = vcombine.low %v9925_v12, %v9929_v22  ;;  %v9966_v9 = vld [vmem:[#allocation8 + $0xa18] sm:$0xff]  ;;  %v15791_v19 = vcombine.high %v9965_v7, %v9969_v26  ;;  %v15790_v12 = vcombine.low %v9965_v7, %v9969_v26 }
 0x725   :  { %13361 = vmatprep.subr.bf16.mxu1 %v15737_v27  ;;  %v15784_v27 = vcombine.low %v9958_v1, %v9962_v2  ;;  %v15793_v20 = vcombine.high %v9966_v9, %v9970_v16  ;;  %v15792_v22 = vcombine.low %v9966_v9, %v9970_v16 }
 0x726   :  { %13190 = vmatpush1.bf16.msra.mxu0 %v15734_v21  ;;  %v9973_v21 = vld [vmem:[#allocation8 + $0xa50] sm:$0xff] }
 0x727   :  { %13362 = vmatpush1.bf16.msra.mxu1 %v15736_v28  ;;  %13191 = vmatprep.subr.bf16.mxu0 %v15743_v29  ;;  %v9977_v28 = vld [vmem:[#allocation8 + $0xa70] sm:$0xff]  ;;  %v9974_v29 = vld [vmem:[#allocation8 + $0xa58] sm:$0xff] }
 0x728   :  { %13363 = vmatprep.subr.bf16.mxu1 %v15745_v38  ;;  %v9978_v38 = vld [vmem:[#allocation8 + $0xa78] sm:$0xff]  ;;  %v15799_v23 = vcombine.high %v9973_v21, %v9977_v28  ;;  %v15798_v35 = vcombine.low %v9973_v21, %v9977_v28 }
 0x729   :  { %v15801_v24 = vcombine.high %v9974_v29, %v9978_v38  ;;  %v15800_v36 = vcombine.low %v9974_v29, %v9978_v38 }
 0x72a   :  { %13192 = vmatpush1.bf16.msra.mxu0 %v15742_v10  ;;  %v9981_v10 = vld [vmem:[#allocation8 + $0xa90] sm:$0xff] }
 0x72b   :  { %13364 = vmatpush1.bf16.msra.mxu1 %v15744_v11  ;;  %13193 = vmatprep.subr.bf16.mxu0 %v15751_v25  ;;  %v9985_v11 = vld [vmem:[#allocation8 + $0xab0] sm:$0xff]  ;;  %v9982_v25 = vld [vmem:[#allocation8 + $0xa98] sm:$0xff] }
 0x72c   :  { %13365 = vmatprep.subr.bf16.mxu1 %v15753_v34  ;;  %v9986_v34 = vld [vmem:[#allocation8 + $0xab8] sm:$0xff]  ;;  %v15807_v43 = vcombine.high %v9981_v10, %v9985_v11  ;;  %v15806_v17 = vcombine.low %v9981_v10, %v9985_v11 }
 0x72d   :  { %v15809_v39 = vcombine.high %v9982_v25, %v9986_v34  ;;  %v15808_v42 = vcombine.low %v9982_v25, %v9986_v34 }
 0x72e   :  { %13194 = vmatpush1.bf16.msra.mxu0 %v15750_v13  ;;  %v9989_v13 = vld [vmem:[#allocation8 + $0xad0] sm:$0xff] }
 0x72f   :  { %13366 = vmatpush1.bf16.msra.mxu1 %v15752_v40  ;;  %13195 = vmatprep.subr.bf16.mxu0 %v15759_v41  ;;  %v9993_v40 = vld [vmem:[#allocation8 + $0xaf0] sm:$0xff]  ;;  %v9990_v41 = vld [vmem:[#allocation8 + $0xad8] sm:$0xff] }
 0x730   :  { %13367 = vmatprep.subr.bf16.mxu1 %v15761_v58  ;;  %v9994_v58 = vld [vmem:[#allocation8 + $0xaf8] sm:$0xff]  ;;  %v15815_v46 = vcombine.high %v9989_v13, %v9993_v40  ;;  %v15814_v50 = vcombine.low %v9989_v13, %v9993_v40 }
 0x731   :  { %v15817_v44 = vcombine.high %v9990_v41, %v9994_v58  ;;  %v15816_v51 = vcombine.low %v9990_v41, %v9994_v58  ;;  %v10042_v13 = vld [vmem:[#allocation8 + $0xc78] sm:$0xff]  ;;  %v10045_v58 = vld [vmem:[#allocation8 + $0xc90] sm:$0xff] }
 0x732   :  { %13196 = vmatpush1.bf16.msra.mxu0 %v15758_v47  ;;  %v9997_v47 = vld [vmem:[#allocation8 + $0xb10] sm:$0xff] }
 0x733   :  { %13368 = vmatpush1.bf16.msra.mxu1 %v15760_v48  ;;  %13197 = vmatprep.subr.bf16.mxu0 %v15767_v53  ;;  %v10001_v48 = vld [vmem:[#allocation8 + $0xb30] sm:$0xff]  ;;  %v9998_v53 = vld [vmem:[#allocation8 + $0xb18] sm:$0xff] }
 0x734   :  { %13369 = vmatprep.subr.bf16.mxu1 %v15769_v49  ;;  %v10002_v49 = vld [vmem:[#allocation8 + $0xb38] sm:$0xff]  ;;  %v15823_v62 = vcombine.high %v9997_v47, %v10001_v48  ;;  %v15822_v57 = vcombine.low %v9997_v47, %v10001_v48 }
 0x735   :  { %v15825_v59 = vcombine.high %v9998_v53, %v10002_v49  ;;  %v15824_v61 = vcombine.low %v9998_v53, %v10002_v49 }
 0x736   :  { %13198 = vmatpush1.bf16.msra.mxu0 %v15766_v54  ;;  %v10005_v54 = vld [vmem:[#allocation8 + $0xb50] sm:$0xff] }
 0x737   :  { %13370 = vmatpush1.bf16.msra.mxu1 %v15768_v8  ;;  %13199 = vmatprep.subr.bf16.mxu0 %v15775_v55  ;;  %v10009_v8 = vld [vmem:[#allocation8 + $0xb70] sm:$0xff]  ;;  %v10006_v55 = vld [vmem:[#allocation8 + $0xb58] sm:$0xff] }
 0x738   :  { %13371 = vmatprep.subr.bf16.mxu1 %v15777_v56  ;;  %v10010_v56 = vld [vmem:[#allocation8 + $0xb78] sm:$0xff]  ;;  %v15831_v1 = vcombine.high %v10005_v54, %v10009_v8  ;;  %v15830_v7 = vcombine.low %v10005_v54, %v10009_v8 }
 0x739   :  { %v15833_v2 = vcombine.high %v10006_v55, %v10010_v56  ;;  %v15832_v26 = vcombine.low %v10006_v55, %v10010_v56  ;;  %v10061_v56 = vld [vmem:[#allocation8 + $0xd10] sm:$0xff] }
 0x73a   :  { %13200 = vmatpush1.bf16.msra.mxu0 %v15774_v18  ;;  %v10013_v18 = vld [vmem:[#allocation8 + $0xb90] sm:$0xff] }
 0x73b   :  { %13372 = vmatpush1.bf16.msra.mxu1 %v15776_v4  ;;  %13201 = vmatprep.subr.bf16.mxu0 %v15783_v5  ;;  %v10017_v4 = vld [vmem:[#allocation8 + $0xbb0] sm:$0xff]  ;;  %v10014_v5 = vld [vmem:[#allocation8 + $0xb98] sm:$0xff] }
 0x73c   :  { %13373 = vmatprep.subr.bf16.mxu1 %v15785_v6  ;;  %v10018_v6 = vld [vmem:[#allocation8 + $0xbb8] sm:$0xff]  ;;  %v15839_v9 = vcombine.high %v10013_v18, %v10017_v4  ;;  %v15838_v21 = vcombine.low %v10013_v18, %v10017_v4 }
 0x73d   :  { %v15841_v16 = vcombine.high %v10014_v5, %v10018_v6  ;;  %v15840_v28 = vcombine.low %v10014_v5, %v10018_v6  ;;  %v10069_v5 = vld [vmem:[#allocation8 + $0xd50] sm:$0xff] }
 0x73e   :  { %13202 = vmatpush1.bf16.msra.mxu0 %v15782_v0  ;;  %v10021_v0 = vld [vmem:[#allocation8 + $0xbd0] sm:$0xff] }
 0x73f   :  { %13374 = vmatpush1.bf16.msra.mxu1 %v15784_v27  ;;  %13203 = vmatprep.subr.bf16.mxu0 %v15791_v19  ;;  %v10025_v27 = vld [vmem:[#allocation8 + $0xbf0] sm:$0xff]  ;;  %v10022_v19 = vld [vmem:[#allocation8 + $0xbd8] sm:$0xff] }
 0x740   :  { %13375 = vmatprep.subr.bf16.mxu1 %v15793_v20  ;;  %v10026_v20 = vld [vmem:[#allocation8 + $0xbf8] sm:$0xff]  ;;  %v15847_v29 = vcombine.high %v10021_v0, %v10025_v27  ;;  %v15846_v10 = vcombine.low %v10021_v0, %v10025_v27  ;;  %v10073_v6 = vld [vmem:[#allocation8 + $0xd70] sm:$0xff] }
 0x741   :  { %v15849_v38 = vcombine.high %v10022_v19, %v10026_v20  ;;  %v15848_v11 = vcombine.low %v10022_v19, %v10026_v20  ;;  %v15895_v27 = vcombine.high %v10069_v5, %v10073_v6  ;;  %v10077_v20 = vld [vmem:[#allocation8 + $0xd90] sm:$0xff] }
 0x742   :  { %13204 = vmatpush1.bf16.msra.mxu0 %v15790_v12  ;;  %v10029_v12 = vld [vmem:[#allocation8 + $0xc10] sm:$0xff] }
 0x743   :  { %13376 = vmatpush1.bf16.msra.mxu1 %v15792_v22  ;;  %13205 = vmatprep.subr.bf16.mxu0 %v15799_v23  ;;  %v10033_v22 = vld [vmem:[#allocation8 + $0xc30] sm:$0xff]  ;;  %v10030_v23 = vld [vmem:[#allocation8 + $0xc18] sm:$0xff] }
 0x744   :  { %13377 = vmatprep.subr.bf16.mxu1 %v15801_v24  ;;  %v10034_v24 = vld [vmem:[#allocation8 + $0xc38] sm:$0xff]  ;;  %v15855_v25 = vcombine.high %v10029_v12, %v10033_v22 }
 0x745   :  { %v15857_v34 = vcombine.high %v10030_v23, %v10034_v24  ;;  %v15856_v40 = vcombine.low %v10030_v23, %v10034_v24  ;;  %v15894_v24 = vcombine.low %v10069_v5, %v10073_v6 }
 0x746   :  { %13206 = vmatpush1.bf16.msra.mxu0 %v15798_v35  ;;  %v10037_v35 = vld [vmem:[#allocation8 + $0xc50] sm:$0xff] }
 0x747   :  { %13378 = vmatpush1.bf16.msra.mxu1 %v15800_v36  ;;  %13207 = vmatprep.subr.bf16.mxu0 %v15807_v43  ;;  %v10041_v36 = vld [vmem:[#allocation8 + $0xc70] sm:$0xff]  ;;  %v15854_v43 = vcombine.low %v10029_v12, %v10033_v22  ;;  %v10082_v12 = vld [vmem:[#allocation8 + $0xdb8] sm:$0xff] }
 0x748   :  { %13379 = vmatprep.subr.bf16.mxu1 %v15809_v39  ;;  %v10038_v39 = vld [vmem:[#allocation8 + $0xc58] sm:$0xff]  ;;  %v15863_v41 = vcombine.high %v10037_v35, %v10041_v36  ;;  %v15862_v47 = vcombine.low %v10037_v35, %v10041_v36 }
 0x749   :  { %v15864_v48 = vcombine.low %v10038_v39, %v10042_v13 }
 0x74a   :  { %13208 = vmatpush1.bf16.msra.mxu0 %v15806_v17  ;;  %v10049_v17 = vld [vmem:[#allocation8 + $0xcb0] sm:$0xff] }
 0x74b   :  { %13380 = vmatpush1.bf16.msra.mxu1 %v15808_v42  ;;  %13209 = vmatprep.subr.bf16.mxu0 %v15815_v46  ;;  %v15865_v42 = vcombine.high %v10038_v39, %v10042_v13  ;;  %v10046_v46 = vld [vmem:[#allocation8 + $0xc98] sm:$0xff]  ;;  %v15871_v53 = vcombine.high %v10045_v58, %v10049_v17  ;;  %v15870_v54 = vcombine.low %v10045_v58, %v10049_v17 }
 0x74c   :  { %13381 = vmatprep.subr.bf16.mxu1 %v15817_v44  ;;  %v10050_v44 = vld [vmem:[#allocation8 + $0xcb8] sm:$0xff] }
 0x74d   :  { %v15873_v49 = vcombine.high %v10046_v46, %v10050_v44 }
 0x74e   :  { %13210 = vmatpush1.bf16.msra.mxu0 %v15814_v50  ;;  %v10053_v50 = vld [vmem:[#allocation8 + $0xcd0] sm:$0xff] }
 0x74f   :  { %13382 = vmatpush1.bf16.msra.mxu1 %v15816_v51  ;;  %13211 = vmatprep.subr.bf16.mxu0 %v15823_v62  ;;  %v10057_v51 = vld [vmem:[#allocation8 + $0xcf0] sm:$0xff]  ;;  %v10054_v62 = vld [vmem:[#allocation8 + $0xcd8] sm:$0xff] }
 0x750   :  { %13383 = vmatprep.subr.bf16.mxu1 %v15825_v59  ;;  %v10058_v59 = vld [vmem:[#allocation8 + $0xcf8] sm:$0xff]  ;;  %v15879_v8 = vcombine.high %v10053_v50, %v10057_v51 }
 0x751   :  { %v15881_v55 = vcombine.high %v10054_v62, %v10058_v59 }
 0x752   :  { %13212 = vmatpush1.bf16.msra.mxu0 %v15822_v57  ;;  %v10065_v57 = vld [vmem:[#allocation8 + $0xd30] sm:$0xff] }
 0x753   :  { %13384 = vmatpush1.bf16.msra.mxu1 %v15824_v61  ;;  %13213 = vmatprep.subr.bf16.mxu0 %v15831_v1  ;;  %v10062_v61 = vld [vmem:[#allocation8 + $0xd18] sm:$0xff]  ;;  %v15887_v18 = vcombine.high %v10061_v56, %v10065_v57 }
 0x754   :  { %13385 = vmatprep.subr.bf16.mxu1 %v15833_v2  ;;  %v10066_v1 = vld [vmem:[#allocation8 + $0xd38] sm:$0xff]  ;;  %v15880_v2 = vcombine.low %v10054_v62, %v10058_v59 }
 0x755   :  { %v15889_v4 = vcombine.high %v10062_v61, %v10066_v1  ;;  %v15888_v0 = vcombine.low %v10062_v61, %v10066_v1  ;;  %v10094_v1 = vld [vmem:[#allocation8 + $0xe18] sm:$0xff] }
 0x756   :  { %13214 = vmatpush1.bf16.msra.mxu0 %v15830_v7  ;;  %v10070_v7 = vld [vmem:[#allocation8 + $0xd58] sm:$0xff] }
 0x757   :  { %13386 = vmatpush1.bf16.msra.mxu1 %v15832_v26  ;;  %13215 = vmatprep.subr.bf16.mxu0 %v15839_v9  ;;  %v10074_v26 = vld [vmem:[#allocation8 + $0xd78] sm:$0xff]  ;;  %v15886_v9 = vcombine.low %v10061_v56, %v10065_v57 }
 0x758   :  { %13387 = vmatprep.subr.bf16.mxu1 %v15841_v16  ;;  %v16980_v16 = vld [vmem:[#allocation10] sm:$0xff]  ;;  %v15897_v19 = vcombine.high %v10070_v7, %v10074_v26 }
 0x759   :  { %v10164_v22 = vrot.slane %v16980_v16, %v1465_v30  ;;  %v10172_v23 = vrot.slane %v16980_v16, %v1473_v63 }
 0x75a   :  { %13216 = vmatpush1.bf16.msra.mxu0 %v15838_v21  ;;  %v10081_v21 = vld [vmem:[#allocation8 + $0xdb0] sm:$0xff] }
 0x75b   :  { %13388 = vmatpush1.bf16.msra.mxu1 %v15840_v28  ;;  %13217 = vmatprep.subr.bf16.mxu0 %v15847_v29  ;;  %v10160_v28 = vrot.slane %v16980_v16, %v1461_v52  ;;  %v10168_v29 = vrot.slane %v16980_v16, %v1469_v60  ;;  %v15903_v52 = vcombine.high %v10077_v20, %v10081_v21 }
 0x75c   :  { %13389 = vmatprep.subr.bf16.mxu1 %v15849_v38  ;;  %v10078_v38 = vld [vmem:[#allocation8 + $0xd98] sm:$0xff]  ;;  %v15902_v30 = vcombine.low %v10077_v20, %v10081_v21  ;;  %v10105_v20 = vld [vmem:[#allocation8 + $0xe70] sm:$0xff] }
 0x75d   :  { %v15905_v35 = vcombine.high %v10078_v38, %v10082_v12  ;;  %v10102_v21 = vld [vmem:[#allocation8 + $0xe58] sm:$0xff] }
 0x75e   :  { %13218 = vmatpush1.bf16.msra.mxu0 %v15846_v10  ;;  %v15896_v10 = vcombine.low %v10070_v7, %v10074_v26 }
 0x75f   :  { %13390 = vmatpush1.bf16.msra.mxu1 %v15848_v11  ;;  %13230 = vmatprep.subr.bf16.mxu0 %v15855_v25  ;;  %v10085_v11 = vld [vmem:[#allocation8 + $0xdd0] sm:$0xff] }
 0x760   :  { %13402 = vmatprep.subr.bf16.mxu1 %v15857_v34  ;;  %v10089_v25 = vld [vmem:[#allocation8 + $0xdf0] sm:$0xff] }
 0x761   :  { %13220 = vmatmul.mubr.bf16.vlgmr.msra.gmra.mrb[12].mxu0 %v16946_v14 }
 0x762   :  { %13392 = vmatmul.mubr.bf16.vlgmr.msra.gmra.mrb[12].mxu1 %v16946_v14  ;;  %13231 = vmatpush1.bf16.msra.mxu0 %v15854_v43  ;;  %v15872_v14 = vcombine.low %v10046_v46, %v10050_v44  ;;  %v15904_v46 = vcombine.low %v10078_v38, %v10082_v12  ;;  %v15910_v44 = vcombine.low %v10085_v11, %v10089_v25 }
 0x763   :  { %13262 = vmatprep.mubr.bf16.mxu0 %v16956_v15  ;;  %13403 = vmatpush1.bf16.msra.mxu1 %v15856_v40  ;;  %v10086_v40 = vld [vmem:[#allocation8 + $0xdd8] sm:$0xff] }
 0x764   :  { %13434 = vmatprep.mubr.bf16.mxu1 %v16956_v15  ;;  %13232 = vmatprep.subr.bf16.mxu0 %v15863_v41  ;;  %v15878_v15 = vcombine.low %v10053_v50, %v10057_v51  ;;  %v10090_v41 = vld [vmem:[#allocation8 + $0xdf8] sm:$0xff]  ;;  %v15911_v50 = vcombine.high %v10085_v11, %v10089_v25 }
 0x765   :  { %13404 = vmatprep.subr.bf16.mxu1 %v15865_v42  ;;  %v15912_v59 = vcombine.low %v10086_v40, %v10090_v41 }
 0x766   :  { %13233 = vmatpush1.bf16.msra.mxu0 %v15862_v47 }
 0x767   :  { %13405 = vmatpush1.bf16.msra.mxu1 %v15864_v48  ;;  %13234 = vmatprep.subr.bf16.mxu0 %v15871_v53 }
 0x768   :  { %13406 = vmatprep.subr.bf16.mxu1 %v15873_v49 }
 0x76a   :  { %13235 = vmatpush1.bf16.msra.mxu0 %v15870_v54  ;;  %v15913_v54 = vcombine.high %v10086_v40, %v10090_v41 }
 0x76b   :  { %13407 = vmatpush1.bf16.msra.mxu1 %v15872_v14  ;;  %13236 = vmatprep.subr.bf16.mxu0 %v15879_v8  ;;  %v10093_v14 = vld [vmem:[#allocation8 + $0xe10] sm:$0xff] }
 0x76c   :  { %13408 = vmatprep.subr.bf16.mxu1 %v15881_v55  ;;  %v10097_v8 = vld [vmem:[#allocation8 + $0xe30] sm:$0xff] }
 0x76d   :  { %v15919_v26 = vcombine.high %v10093_v14, %v10097_v8 }
 0x76e   :  { %13237 = vmatpush1.bf16.msra.mxu0 %v15878_v15  ;;  %v10098_v15 = vld [vmem:[#allocation8 + $0xe38] sm:$0xff] }
 0x76f   :  { %13409 = vmatpush1.bf16.msra.mxu1 %v15880_v2  ;;  %13238 = vmatprep.subr.bf16.mxu0 %v15887_v18  ;;  %v15920_v38 = vcombine.low %v10094_v1, %v10098_v15 }
 0x770   :  { %13410 = vmatprep.subr.bf16.mxu1 %v15889_v4 }
 0x772   :  { %13239 = vmatpush1.bf16.msra.mxu0 %v15886_v9 }
 0x773   :  { %13411 = vmatpush1.bf16.msra.mxu1 %v15888_v0  ;;  %13240 = vmatprep.subr.bf16.mxu0 %v15895_v27  ;;  %v15921_v27 = vcombine.high %v10094_v1, %v10098_v15 }
 0x774   :  { %v12920_v34 = vpop.f32.mrb[8].mxu0  ;;  %v13092_v60 = vpop.f32.mrb[8].mxu1  ;;  %13412 = vmatprep.subr.bf16.mxu1 %v15897_v19  ;;  %v10101_v19 = vld [vmem:[#allocation8 + $0xe50] sm:$0xff] }
 0x775   :  { %v16149_v36 = vadd.f32 %v12920_v34, %v10160_v28  ;;  %v16153_v43 = vadd.f32 %v13092_v60, %v10168_v29  ;;  %v12922_v39 = vpop.f32.mrb[9].mxu0  ;;  %v13094_v13 = vpop.f32.mrb[9].mxu1  ;;  %v15927_v12 = vcombine.high %v10101_v19, %v10105_v20  ;;  %v15926_v11 = vcombine.low %v10101_v19, %v10105_v20 }
 0x776   :  { %v16150_v58 = vadd.f32 %v12922_v39, %v10164_v22  ;;  %v16154_v63 = vadd.f32 %v13094_v13, %v10172_v23  ;;  %v12924_v17 = vpop.f32.mrb[10].mxu0  ;;  %v13096_v42 = vpop.f32.mrb[10].mxu1  ;;  %13241 = vmatpush1.bf16.msra.mxu0 %v15894_v24  ;;  %v10113_v24 = vld [vmem:[#allocation8 + $0xeb0] sm:$0xff]  ;;  %v10122_v39 = vld [vmem:[#allocation8 + $0xef8] sm:$0xff] }
 0x777   :  { %v16151_v47 = vadd.f32 %v12924_v17, %v10160_v28  ;;  %v16155_v48 = vadd.f32 %v13096_v42, %v10168_v29  ;;  %13413 = vmatpush1.bf16.msra.mxu1 %v15896_v10  ;;  %v12926_v53 = vpop.f32.mrb[11].mxu0  ;;  %v13098_v49 = vpop.f32.mrb[11].mxu1  ;;  %13242 = vmatprep.subr.bf16.mxu0 %v15903_v52  ;;  %v13445_v55 = vmax.f32 %v16149_v36, 0.0  ;;  %v13447_v56 = vmax.f32 %v16153_v43, 0.0  ;;  %v10106_v28 = vld [vmem:[#allocation8 + $0xe78] sm:$0xff]  ;;  %v10121_v36 = vld [vmem:[#allocation8 + $0xef0] sm:$0xff] }
 0x778   :  { %v16152_v51 = vadd.f32 %v12926_v53, %v10164_v22  ;;  %v16156_v62 = vadd.f32 %v13098_v49, %v10172_v23  ;;  %13414 = vmatprep.subr.bf16.mxu1 %v15905_v35  ;;  %v13446_v2 = vmax.f32 %v16150_v58, 0.0  ;;  %v13448_v18 = vmax.f32 %v16154_v63, 0.0  ;;  %v10109_v23 = vld [vmem:[#allocation8 + $0xe90] sm:$0xff]  ;;  %v10110_v10 = vld [vmem:[#allocation8 + $0xe98] sm:$0xff] }
 0x779   :  { %v13453_v57 = vmax.f32 %v16151_v47, 0.0  ;;  %v13455_v61 = vmax.f32 %v16155_v48, 0.0  ;;  %v15918_v29 = vcombine.low %v10093_v14, %v10097_v8  ;;  %v15929_v22 = vcombine.high %v10102_v21, %v10106_v28  ;;  %v10114_v52 = vld [vmem:[#allocation8 + $0xeb8] sm:$0xff]  ;;  %v10117_v35 = vld [vmem:[#allocation8 + $0xed0] sm:$0xff] }
 0x77a   :  { %v13454_v4 = vmax.f32 %v16152_v51, 0.0  ;;  %v13456_v5 = vmax.f32 %v16156_v62, 0.0  ;;  %13243 = vmatpush1.bf16.msra.mxu0 %v15902_v30  ;;  %v15928_v25 = vcombine.low %v10102_v21, %v10106_v28  ;;  %v15935_v34 = vcombine.high %v10109_v23, %v10113_v24  ;;  %v10118_v43 = vld [vmem:[#allocation8 + $0xed8] sm:$0xff]  ;;  %v10125_v58 = vld [vmem:[#allocation8 + $0xf10] sm:$0xff] }
 0x77b   :  { %v16994_v6 = vpack.c.bf16 %v13453_v57, %v13445_v55  ;;  %v16996_v7 = vpack.c.bf16 %v13455_v61, %v13447_v56  ;;  %13415 = vmatpush1.bf16.msra.mxu1 %v15904_v46  ;;  %13244 = vmatprep.subr.bf16.mxu0 %v15911_v50  ;;  %v15937_v60 = vcombine.high %v10110_v10, %v10114_v52  ;;  %v10129_v63 = vld [vmem:[#allocation8 + $0xf30] sm:$0xff]  ;;  %v10126_v17 = vld [vmem:[#allocation8 + $0xf18] sm:$0xff] }
 0x77c   :  { %v16998_v9 = vpack.c.bf16 %v13454_v4, %v13446_v2  ;;  %v17000_v0 = vpack.c.bf16 %v13456_v5, %v13448_v18  ;;  %13416 = vmatprep.subr.bf16.mxu1 %v15913_v54  ;;  %v15934_v13 = vcombine.low %v10109_v23, %v10113_v24  ;;  %v15936_v30 = vcombine.low %v10110_v10, %v10114_v52  ;;  %v10130_v42 = vld [vmem:[#allocation8 + $0xf38] sm:$0xff]  ;;  %v10133_v53 = vld [vmem:[#allocation8 + $0xf50] sm:$0xff]  ;;  %v16376_v23 = vld [vmem:[#allocation11 + $0x80] sm:$0xff]  }
 0x77d   :  { %v15943_v40 = vcombine.high %v10117_v35, %v10121_v36  ;;  %v15945_v41 = vcombine.high %v10118_v43, %v10122_v39  ;;  %v15942_v46 = vcombine.low %v10117_v35, %v10121_v36  ;;  %v15951_v47 = vcombine.high %v10125_v58, %v10129_v63  ;;  %v10137_v49 = vld [vmem:[#allocation8 + $0xf70] sm:$0xff]  ;;  %v10134_v50 = vld [vmem:[#allocation8 + $0xf58] sm:$0xff]  ;;  %v16385_v36 = vld [vmem:[#allocation11 + $0x58] sm:$0xff]  }
 0x77e   :  { %13245 = vmatpush1.bf16.msra.mxu0 %v15910_v44  ;;  %v15944_v44 = vcombine.low %v10118_v43, %v10122_v39  ;;  %v15953_v48 = vcombine.high %v10126_v17, %v10130_v42  ;;  %v10138_v51 = vld [vmem:[#allocation8 + $0xf78] sm:$0xff]  ;;  %v15950_v62 = vcombine.low %v10125_v58, %v10129_v63  ;;  %v15959_v54 = vcombine.high %v10133_v53, %v10137_v49  ;;  %v10141_v8 = vld [vmem:[#allocation8 + $0xf90] sm:$0xff]  ;;  %v16387_v43 = vld [vmem:[#allocation11 + $0x18] sm:$0xff]  }
 0x77f   :  { %13417 = vmatpush1.bf16.msra.mxu1 %v15912_v59  ;;  %13246 = vmatprep.subr.bf16.mxu0 %v15919_v26  ;;  %v15952_v59 = vcombine.low %v10126_v17, %v10130_v42  ;;  %v15961_v14 = vcombine.high %v10134_v50, %v10138_v51  ;;  %v10145_v55 = vld [vmem:[#allocation8 + $0xfb0] sm:$0xff]  ;;  %v10142_v56 = vld [vmem:[#allocation8 + $0xf98] sm:$0xff]  ;;  %v15958_v61 = vcombine.low %v10133_v53, %v10137_v49  ;;  %v16389_v39 = vld [vmem:[#allocation11 + $0x60] sm:$0xff]  }
 0x780   :  { %13418 = vmatprep.subr.bf16.mxu1 %v15921_v27  ;;  %v10146_v57 = vld [vmem:[#allocation8 + $0xfb8] sm:$0xff]  ;;  %v15960_v1 = vcombine.low %v10134_v50, %v10138_v51  ;;  %v15967_v15 = vcombine.high %v10141_v8, %v10145_v55  ;;  %v10149_v18 = vld [vmem:[#allocation8 + $0xfd0] sm:$0xff]  ;;  %v15966_v27 = vcombine.low %v10141_v8, %v10145_v55  ;;  %v16403_v53 = vld [vmem:[#allocation11 + $0x38] sm:$0xff]  }
 0x781   :  { %v15969_v2 = vcombine.high %v10142_v56, %v10146_v57  ;;  %v10153_v4 = vld [vmem:[#allocation8 + $0xff0] sm:$0xff]  ;;  %v10150_v5 = vld [vmem:[#allocation8 + $0xfd8] sm:$0xff]  ;;  %v15968_v19 = vcombine.low %v10142_v56, %v10146_v57  ;;  %v16404_v49 = vld [vmem:[#allocation11 + $0xb8] sm:$0xff]  }
 0x782   :  { %13247 = vmatpush1.bf16.msra.mxu0 %v15918_v29  ;;  %v10154_v26 = vld [vmem:[#allocation8 + $0xff8] sm:$0xff]  ;;  %v15975_v20 = vcombine.high %v10149_v18, %v10153_v4  ;;  %v15974_v28 = vcombine.low %v10149_v18, %v10153_v4  ;;  %v16377_v24 = vld [vmem:[#allocation11 + $0x48] sm:$0xff]   ;;  %v16405_v50 = vld [vmem:[#allocation11 + $0x140] sm:$0xff]  }
 0x783   :  { %13419 = vmatpush1.bf16.msra.mxu1 %v15920_v38  ;;  %13248 = vmatprep.subr.bf16.mxu0 %v15927_v12  ;;  %v15977_v21 = vcombine.high %v10150_v5, %v10154_v26  ;;  %v15976_v29 = vcombine.low %v10150_v5, %v10154_v26  ;;  %v16373_v38 = vld [vmem:[#allocation11 + $0x40] sm:$0xff]   ;;  %v16378_v10 = vld [vmem:[#allocation11 + $0xc8] sm:$0xff]   ;;  %v16384_v35 = vld [vmem:[#allocation11 + $0x90] sm:$0xff]  }
 0x784   :  { %13420 = vmatprep.subr.bf16.mxu1 %v15929_v22  ;;  %v16374_v12 = vld [vmem:[#allocation11 + $0xc0] sm:$0xff]   ;;  %v16379_v52 = vld [vmem:[#allocation11 + $0x8] sm:$0xff]   ;;  %v16397_v17 = vld [vmem:[#allocation11 + $0x70] sm:$0xff]  }
 0x785   :  { %v16375_v22 = vld [vmem:[#allocation11] sm:$0xff]   ;;  %v16395_v58 = vld [vmem:[#allocation11 + $0x28] sm:$0xff]   ;;  %v16398_v42 = vld [vmem:[#allocation11 + $0xf0] sm:$0xff]  }
 0x786   :  { %13249 = vmatpush1.bf16.msra.mxu0 %v15926_v11  ;;  %v16380_v11 = vld [vmem:[#allocation11 + $0x88] sm:$0xff]   ;;  %v16406_v51 = vld [vmem:[#allocation11 + $0x1c0] sm:$0xff]   ;;  %v16413_v56 = vld [vmem:[#allocation11 + $0x150] sm:$0xff]  }
 0x787   :  { %13421 = vmatpush1.bf16.msra.mxu1 %v15928_v25  ;;  %13250 = vmatprep.subr.bf16.mxu0 %v15935_v34  ;;  %v16381_v25 = vld [vmem:[#allocation11 + $0x50] sm:$0xff]   ;;  %v16396_v63 = vld [vmem:[#allocation11 + $0xa8] sm:$0xff]   ;;  %v16421_v18 = vld [vmem:[#allocation11 + $0x160] sm:$0xff]  }
 0x788   :  { %13422 = vmatprep.subr.bf16.mxu1 %v15937_v60  ;;  %v16382_v34 = vld [vmem:[#allocation11 + $0xd0] sm:$0xff]   ;;  %v16411_v8 = vld [vmem:[#allocation11 + $0x108] sm:$0xff]   ;;  %v16422_v4 = vld [vmem:[#allocation11 + $0x1e0] sm:$0xff]  }
 0x789   :  { %v16383_v60 = vld [vmem:[#allocation11 + $0x10] sm:$0xff]   ;;  %v16412_v55 = vld [vmem:[#allocation11 + $0x188] sm:$0xff]   ;;  %v16423_v5 = vld [vmem:[#allocation11 + $0x120] sm:$0xff]  }
 0x78a   :  { %13251 = vmatpush1.bf16.msra.mxu0 %v15934_v13  ;;  %v16390_v13 = vld [vmem:[#allocation11 + $0xe0] sm:$0xff]   ;;  %v16414_v57 = vld [vmem:[#allocation11 + $0x1d0] sm:$0xff]  }
 0x78b   :  { %13423 = vmatpush1.bf16.msra.mxu1 %v15936_v30  ;;  %13252 = vmatprep.subr.bf16.mxu0 %v15943_v40  ;;  %v16392_v30 = vld [vmem:[#allocation11 + $0xa0] sm:$0xff]   ;;  %v16393_v40 = vld [vmem:[#allocation11 + $0x68] sm:$0xff]  }
 0x78c   :  { %13424 = vmatprep.subr.bf16.mxu1 %v15945_v41  ;;  %v16394_v41 = vld [vmem:[#allocation11 + $0xe8] sm:$0xff]   ;;  %v16424_v26 = vld [vmem:[#allocation11 + $0x1a0] sm:$0xff]  }
 0x78e   :  { %13253 = vmatpush1.bf16.msra.mxu0 %v15942_v46  ;;  %v16399_v46 = vld [vmem:[#allocation11 + $0x30] sm:$0xff]  }
 0x78f   :  { %13425 = vmatpush1.bf16.msra.mxu1 %v15944_v44  ;;  %13254 = vmatprep.subr.bf16.mxu0 %v15951_v47  ;;  %v16400_v44 = vld [vmem:[#allocation11 + $0xb0] sm:$0xff]   ;;  %v16401_v47 = vld [vmem:[#allocation11 + $0x78] sm:$0xff]  }
 0x790   :  { %13426 = vmatprep.subr.bf16.mxu1 %v15953_v48  ;;  %v16402_v48 = vld [vmem:[#allocation11 + $0xf8] sm:$0xff]  }
 0x792   :  { %13255 = vmatpush1.bf16.msra.mxu0 %v15950_v62  ;;  %v16407_v62 = vld [vmem:[#allocation11 + $0x100] sm:$0xff]  }
 0x793   :  { %13427 = vmatpush1.bf16.msra.mxu1 %v15952_v59  ;;  %13256 = vmatprep.subr.bf16.mxu0 %v15959_v54  ;;  %v16408_v59 = vld [vmem:[#allocation11 + $0x180] sm:$0xff]   ;;  %v16409_v54 = vld [vmem:[#allocation11 + $0x148] sm:$0xff]  }
 0x794   :  { %13428 = vmatprep.subr.bf16.mxu1 %v15961_v14  ;;  %v16410_v14 = vld [vmem:[#allocation11 + $0x1c8] sm:$0xff]  }
 0x796   :  { %13257 = vmatpush1.bf16.msra.mxu0 %v15958_v61  ;;  %v16415_v61 = vld [vmem:[#allocation11 + $0x110] sm:$0xff]  }
 0x797   :  { %13429 = vmatpush1.bf16.msra.mxu1 %v15960_v1  ;;  %13258 = vmatprep.subr.bf16.mxu0 %v15967_v15  ;;  %v16416_v1 = vld [vmem:[#allocation11 + $0x190] sm:$0xff]   ;;  %v16417_v15 = vld [vmem:[#allocation11 + $0x158] sm:$0xff]  }
 0x798   :  { %13430 = vmatprep.subr.bf16.mxu1 %v15969_v2  ;;  %v16418_v2 = vld [vmem:[#allocation11 + $0x1d8] sm:$0xff]  }
 0x79a   :  { %13259 = vmatpush1.bf16.msra.mxu0 %v15966_v27  ;;  %v16425_v27 = vld [vmem:[#allocation11 + $0x168] sm:$0xff]  }
 0x79b   :  { %13431 = vmatpush1.bf16.msra.mxu1 %v15968_v19  ;;  %13260 = vmatprep.subr.bf16.mxu0 %v15975_v20  ;;  %v16426_v19 = vld [vmem:[#allocation11 + $0x1e8] sm:$0xff]  }
 0x79c   :  { %13432 = vmatprep.subr.bf16.mxu1 %v15977_v21  ;;  %v16427_v20 = vld [vmem:[#allocation11 + $0x128] sm:$0xff]  }
 0x79d   :  { %v16428_v21 = vld [vmem:[#allocation11 + $0x1a8] sm:$0xff]  }
 0x79e   :  { %13261 = vmatpush1.bf16.msra.mxu0 %v15974_v28  ;;  %v16429_v28 = vld [vmem:[#allocation11 + $0x170] sm:$0xff]  }
 0x79f   :  { %13433 = vmatpush1.bf16.msra.mxu1 %v15976_v29  ;;  %16045 = vmatprep.subr.bf16.mxu0 %v16373_v38  ;;  %v16430_v29 = vld [vmem:[#allocation11 + $0x1f0] sm:$0xff]  }
 0x7a0   :  { %16067 = vmatprep.subr.bf16.mxu1 %v16374_v12  ;;  %v16431_v38 = vld [vmem:[#allocation11 + $0x130] sm:$0xff]  }
 0x7a1   :  { %13263 = vmatmul.mubr.bf16.vlgmr.msra.gmra.mrb[12].mxu0 %v16948_v37  ;;  %v16432_v12 = vld [vmem:[#allocation11 + $0x1b0] sm:$0xff]  }
 0x7a2   :  { %13435 = vmatmul.mubr.bf16.vlgmr.msra.gmra.mrb[12].mxu1 %v16948_v37  ;;  %16046 = vmatpush3.bf16.msra.mxu0 %v16375_v22  ;;  %v16386_v37 = vld [vmem:[#allocation11 + $0xd8] sm:$0xff]  }
 0x7a3   :  { %14020 = vmatprep.mubr.bf16.mxu0 %v16998_v9  ;;  %16068 = vmatpush3.bf16.msra.mxu1 %v16376_v23  ;;  %v16388_v9 = vld [vmem:[#allocation11 + $0x98] sm:$0xff]  }
 0x7a4   :  { %14061 = vmatprep.mubr.bf16.mxu1 %v17000_v0  ;;  %16047 = vmatprep.subr.bf16.mxu0 %v16377_v24  ;;  %v16391_v0 = vld [vmem:[#allocation11 + $0x20] sm:$0xff]   ;;  %v16433_v22 = vld [vmem:[#allocation11 + $0x178] sm:$0xff]  }
 0x7a5   :  { %16069 = vmatprep.subr.bf16.mxu1 %v16378_v10  ;;  %v16434_v23 = vld [vmem:[#allocation11 + $0x1f8] sm:$0xff]  }
 0x7a6   :  { %16048 = vmatpush3.bf16.msra.mxu0 %v16379_v52  ;;  %v16435_v24 = vld [vmem:[#allocation11 + $0x138] sm:$0xff]   ;;  %v10176_v52 = vrot.slane %v16980_v16, %v1477_v31 }
 0x7a7   :  { %16070 = vmatpush3.bf16.msra.mxu1 %v16380_v11  ;;  %16049 = vmatprep.subr.bf16.mxu0 %v16381_v25  ;;  %v16436_v10 = vld [vmem:[#allocation11 + $0x1b8] sm:$0xff]   ;;  %v10184_v11 = vrot.slane %v16980_v16, %v1485_v32  ;;  %v10180_v25 = vrot.slane %v16980_v16, %v1481_v3 }
 0x7a8   :  { %16071 = vmatprep.subr.bf16.mxu1 %v16382_v34  ;;  %v10188_v34 = vrot.slane %v16980_v16, %v1489_v33 }
 0x7aa   :  { %16050 = vmatpush3.bf16.msra.mxu0 %v16383_v60 }
 0x7ab   :  { %16072 = vmatpush3.bf16.msra.mxu1 %v16384_v35  ;;  %16051 = vmatprep.subr.bf16.mxu0 %v16385_v36 }
 0x7ac   :  { %16073 = vmatprep.subr.bf16.mxu1 %v16386_v37 }
 0x7ae   :  { %16052 = vmatpush3.bf16.msra.mxu0 %v16387_v43 }
 0x7af   :  { %16074 = vmatpush3.bf16.msra.mxu1 %v16388_v9  ;;  %16053 = vmatprep.subr.bf16.mxu0 %v16389_v39 }
 0x7b0   :  { %16075 = vmatprep.subr.bf16.mxu1 %v16390_v13 }
 0x7b2   :  { %16054 = vmatpush3.bf16.msra.mxu0 %v16391_v0 }
 0x7b3   :  { %16076 = vmatpush3.bf16.msra.mxu1 %v16392_v30  ;;  %16055 = vmatprep.subr.bf16.mxu0 %v16393_v40 }
 0x7b4   :  { %16077 = vmatprep.subr.bf16.mxu1 %v16394_v41 }
 0x7b6   :  { %16056 = vmatpush3.bf16.msra.mxu0 %v16395_v58 }
 0x7b7   :  { %16078 = vmatpush3.bf16.msra.mxu1 %v16396_v63  ;;  %16057 = vmatprep.subr.bf16.mxu0 %v16397_v17 }
 0x7b8   :  { %16079 = vmatprep.subr.bf16.mxu1 %v16398_v42 }
 0x7ba   :  { %16058 = vmatpush3.bf16.msra.mxu0 %v16399_v46 }
 0x7bb   :  { %16080 = vmatpush3.bf16.msra.mxu1 %v16400_v44  ;;  %16059 = vmatprep.subr.bf16.mxu0 %v16401_v47 }
 0x7bc   :  { %16081 = vmatprep.subr.bf16.mxu1 %v16402_v48 }
 0x7be   :  { %16060 = vmatpush3.bf16.msra.mxu0 %v16403_v53 }
 0x7bf   :  { %16082 = vmatpush3.bf16.msra.mxu1 %v16404_v49  ;;  %16089 = vmatprep.subr.bf16.mxu0 %v16405_v50 }
 0x7c0   :  { %16111 = vmatprep.subr.bf16.mxu1 %v16406_v51 }
 0x7c1   :  { %14021 = vmatmul.mubr.bf16.vlgmr.msra.gmra.mrb[16].mxu0 %v16994_v6  ;;  %v16419_v6 = vld [vmem:[#allocation11 + $0x118] sm:$0xff]  }
 0x7c2   :  { %14062 = vmatmul.mubr.bf16.vlgmr.msra.gmra.mrb[16].mxu1 %v16996_v7  ;;  %16090 = vmatpush3.bf16.msra.mxu0 %v16407_v62  ;;  %v16420_v7 = vld [vmem:[#allocation11 + $0x198] sm:$0xff]   ;;  %v15978_v62 = vld [vmem:[#allocation13] ss:$0 sm:$0xff] }
 0x7c3   :  { %16112 = vmatpush3.bf16.msra.mxu1 %v16408_v59  ;;  %16091 = vmatprep.subr.bf16.mxu0 %v16409_v54 }
 0x7c4   :  { %16113 = vmatprep.subr.bf16.mxu1 %v16410_v14 }
 0x7c6   :  { %16092 = vmatpush3.bf16.msra.mxu0 %v16411_v8 }
 0x7c7   :  { %16114 = vmatpush3.bf16.msra.mxu1 %v16412_v55  ;;  %16093 = vmatprep.subr.bf16.mxu0 %v16413_v56 }
 0x7c8   :  { %16115 = vmatprep.subr.bf16.mxu1 %v16414_v57 }
 0x7ca   :  { %16094 = vmatpush3.bf16.msra.mxu0 %v16415_v61 }
 0x7cb   :  { %16116 = vmatpush3.bf16.msra.mxu1 %v16416_v1  ;;  %16095 = vmatprep.subr.bf16.mxu0 %v16417_v15 }
 0x7cc   :  { %16117 = vmatprep.subr.bf16.mxu1 %v16418_v2 }
 0x7ce   :  { %16096 = vmatpush3.bf16.msra.mxu0 %v16419_v6 }
 0x7cf   :  { %16118 = vmatpush3.bf16.msra.mxu1 %v16420_v7  ;;  %16097 = vmatprep.subr.bf16.mxu0 %v16421_v18 }
 0x7d0   :  { %16119 = vmatprep.subr.bf16.mxu1 %v16422_v4 }
 0x7d2   :  { %16098 = vmatpush3.bf16.msra.mxu0 %v16423_v5 }
 0x7d3   :  { %16120 = vmatpush3.bf16.msra.mxu1 %v16424_v26  ;;  %16099 = vmatprep.subr.bf16.mxu0 %v16425_v27 }
 0x7d4   :  { %16121 = vmatprep.subr.bf16.mxu1 %v16426_v19 }
 0x7d6   :  { %16100 = vmatpush3.bf16.msra.mxu0 %v16427_v20 }
 0x7d7   :  { %16122 = vmatpush3.bf16.msra.mxu1 %v16428_v21  ;;  %16101 = vmatprep.subr.bf16.mxu0 %v16429_v28 }
 0x7d8   :  { %16123 = vmatprep.subr.bf16.mxu1 %v16430_v29 }
 0x7da   :  { %16102 = vmatpush3.bf16.msra.mxu0 %v16431_v38 }
 0x7db   :  { %16124 = vmatpush3.bf16.msra.mxu1 %v16432_v12  ;;  %16103 = vmatprep.subr.bf16.mxu0 %v16433_v22 }
 0x7dc   :  { %16125 = vmatprep.subr.bf16.mxu1 %v16434_v23 }
 0x7de   :  { %16104 = vmatpush3.bf16.msra.mxu0 %v16435_v24 }
 0x7df   :  { %16126 = vmatpush3.bf16.msra.mxu1 %v16436_v10 }
 0x874   :  { %v13264_v60 = vpop.f32.mrb[12].mxu0 }
 0x875   :  { %v16157_v35 = vadd.f32 %v13264_v60, %v10176_v52  ;;  %v13436_v36 = vpop.f32.mrb[12].mxu1  ;;  %v13266_v37 = vpop.f32.mrb[13].mxu0 }
 0x876   :  { %v16161_v43 = vadd.f32 %v13436_v36, %v10184_v11  ;;  %v16158_v9 = vadd.f32 %v13266_v37, %v10180_v25  ;;  %v13438_v39 = vpop.f32.mrb[13].mxu1  ;;  %v13268_v31 = vpop.f32.mrb[14].mxu0 }
 0x877   :  { %v16162_v13 = vadd.f32 %v13438_v39, %v10188_v34  ;;  %v16159_v0 = vadd.f32 %v13268_v31, %v10176_v52  ;;  %v13440_v30 = vpop.f32.mrb[14].mxu1  ;;  %v13270_v32 = vpop.f32.mrb[15].mxu0  ;;  %v13449_v3 = vmax.f32 %v16157_v35, 0.0 }
 0x878   :  { %v16163_v40 = vadd.f32 %v13440_v30, %v10184_v11  ;;  %v16160_v41 = vadd.f32 %v13270_v32, %v10180_v25  ;;  %v13442_v58 = vpop.f32.mrb[15].mxu1  ;;  %v13451_v17 = vmax.f32 %v16161_v43, 0.0  ;;  %v13450_v33 = vmax.f32 %v16158_v9, 0.0 }
 0x879   :  { %v13457_v63 = vmax.f32 %v16159_v0, 0.0  ;;  %v16164_v45 = vadd.f32 %v13442_v58, %v10188_v34  ;;  %v13452_v46 = vmax.f32 %v16162_v13, 0.0 }
 0x87a   :  { %v13459_v16 = vmax.f32 %v16163_v40, 0.0  ;;  %v13458_v42 = vmax.f32 %v16160_v41, 0.0 }
 0x87b   :  { %v13465_v44 = vpack.c.bf16 %v13457_v63, %v13449_v3  ;;  %v13460_v47 = vmax.f32 %v16164_v45, 0.0 }
 0x87c   :  { %v13467_v48 = vpack.c.bf16 %v13459_v16, %v13451_v17  ;;  %v13466_v53 = vpack.c.bf16 %v13458_v42, %v13450_v33 }
 0x87d   :  { %v13468_v49 = vpack.c.bf16 %v13460_v47, %v13452_v46 }
 0x87e   :  { %14102 = vmatprep.mubr.bf16.mxu0 %v13466_v53 }
 0x87f   :  { %14143 = vmatprep.mubr.bf16.mxu1 %v13468_v49  ;;  %14103 = vmatmul.mubr.bf16.vlgmr.msra.gmra.mrb[20].mxu0 %v13465_v44 }
 0x880   :  { %14144 = vmatmul.mubr.bf16.vlgmr.msra.gmra.mrb[20].mxu1 %v13467_v48 }
 0x894   :  { %v16061_v50 = vpop.f32.mrb[16].mxu0 }
 0x895   :  { %v16083_v51 = vpop.f32.mrb[16].mxu1  ;;  %v16062_v59 = vpop.f32.mrb[17].mxu0 }
 0x896   :  { %v16063_v54 = vadd.f32 %v16062_v59, %v16061_v50  ;;  %v16084_v14 = vpop.f32.mrb[17].mxu1  ;;  %v16064_v8 = vpop.f32.mrb[18].mxu0 }
 0x897   :  { %v16085_v55 = vadd.f32 %v16084_v14, %v16083_v51  ;;  %v16086_v56 = vpop.f32.mrb[18].mxu1  ;;  %v16065_v57 = vpop.f32.mrb[19].mxu0 }
 0x898   :  { %v14023_v61 = vadd.f32 %v16063_v54, %v15978_v62  ;;  %v16066_v1 = vadd.f32 %v16065_v57, %v16064_v8  ;;  %v16087_v15 = vpop.f32.mrb[19].mxu1 }
 0x899   :  { %v16088_v2 = vadd.f32 %v16087_v15, %v16086_v56 }
 0x89a   :  { %v14064_v6 = vadd.f32 %v16085_v55, %v14023_v61  ;;  %v14026_v7 = vadd.f32 %v16066_v1, %v15978_v62 }
 0x89c   :  { %v14067_v18 = vadd.f32 %v16088_v2, %v14026_v7 }
 0x952   :  { %v16105_v4 = vpop.f32.mrb[20].mxu0 }
 0x953   :  { %v16127_v5 = vpop.f32.mrb[20].mxu1  ;;  %v16106_v26 = vpop.f32.mrb[21].mxu0 }
 0x954   :  { %v16107_v27 = vadd.f32 %v16106_v26, %v16105_v4  ;;  %v16128_v19 = vpop.f32.mrb[21].mxu1  ;;  %v16108_v20 = vpop.f32.mrb[22].mxu0 }
 0x955   :  { %v16129_v21 = vadd.f32 %v16128_v19, %v16127_v5  ;;  %v16130_v28 = vpop.f32.mrb[22].mxu1  ;;  %v16109_v29 = vpop.f32.mrb[23].mxu0 }
 0x956   :  { %v14105_v38 = vadd.f32 %v16107_v27, %v14064_v6  ;;  %v16110_v12 = vadd.f32 %v16109_v29, %v16108_v20  ;;  %v16131_v22 = vpop.f32.mrb[23].mxu1 }
 0x957   :  { %v16132_v23 = vadd.f32 %v16131_v22, %v16130_v28 }
 0x958   :  { %v14146_v24 = vadd.f32 %v16129_v21, %v14105_v38  ;;  %v14108_v10 = vadd.f32 %v16110_v12, %v14067_v18 }
 0x95a   :  { %v16043_v52 = vmul.f32 -1.442695, %v14146_v24  ;;  %v14149_v11 = vadd.f32 %v16132_v23, %v14108_v10 }
 0x95c   :  { %16437 = vpow2.f32 %v16043_v52  ;;  %v16044_v25 = vmul.f32 -1.442695, %v14149_v11 }
 0x95e   :  { %16439 = vpow2.f32 %v16044_v25 }
 0x966   :  { %v16438_v34 = vpop.eup %16437 }
 0x967   :  { %v14158_v60 = vadd.f32 1.0, %v16438_v34 }
 0x968   :  { %v16440_v35 = vpop.eup %16439 }
 0x969   :  { %16441 = vrcp.f32 %v14158_v60  ;;  %v14159_v36 = vadd.f32 1.0, %v16440_v35 }
 0x96b   :  { %16443 = vrcp.f32 %v14159_v36 }
 0x973   :  { %v16442_v37 = vpop.eup %16441 }
 0x974   :  { %14164 = vst [vmem:[#allocation14] sm:$0xff] %v16442_v37 }
 0x975   :  { %v16444_v43 = vpop.eup %16443 }
 0x976   :  { %14165 = vst [vmem:[#allocation14 + $0x8] sm:$0xff] %v16444_v43 }
 0x977   :  { %16611 = shalt.err (!%p16608_p4)
}
 0x978   :  { %s16612_s15 = scalar_lea.hbm %s17039_s7, 256 }
 0x979   :  { %p16613_p5 = scmp.ne.s32.totalorder %s17039_s7, %s16612_s15  ;;  %p16616_p6 = scmp.lt.u32.totalorder %s16612_s15, %s17039_s7 }
 0x97b   :  { %p16618_p7 = pnand %p16616_p6, %p16613_p5 }
 0x97d   :  { %16621 = shalt.err (!%p16618_p7)
}
 0x97e   :  { %s16646_s21 = smov 128   ;;  %s16647_s22 = smov 8  }
 0x97f   :  { %14177 = dma.vmem_to_hbm [thread:$0]  %s14172_s3, 256, %s17039_s7, [#allocation4], %s16646_s21, %s16646_s21, %s16647_s22  }
 0x980   :  { %16630 = dma.done.wait [#allocation4], 256  }
 0x981   :  { %16631 = vsyncadd [#allocation4], 4294967040 }
 0x982   :  { %14181 = vsyncpa [#allocation3], 1 }
 0x983   :  { %14182 = vsyncpa [#allocation6], 1 }
 0x984   :  { %14183 = vsyncpa [#allocation9], 1 }
 0x985   :  { %14184 = vsyncpa [#allocation12], 1 }
 0x986   :  { %14185 = vsyncpa [#allocation4], 1 }

</bundles_post_ra>
